<compile_context>
chip_gen: v6e
topology: v6e:2x2x1
jax: 0.10.0
libtpu: 0.0.40
codegen_flags: <defaults>
</compile_context>

<pallas_src>
import jax
import jax.numpy as jnp
import numpy as np
from jax.experimental import pallas as pl
from jax.experimental.pallas import tpu as pltpu

LANE = 128    # TPU lane width; all channel-like dims are padded to this
C1 = 6        # LeNet conv1 out-channels
C2 = 16       # LeNet conv2 out-channels
KS = 5        # conv kernel size


# ----------------------------------------------------------------------------
# Pallas kernels (hot path)
# ----------------------------------------------------------------------------
def conv_relu_pool_kernel(p_ref, w_ref, b_ref, o_ref):
    """Fused conv (one big im2col matmul) + bias + ReLU + 2x2 max-pool.

    p_ref: (4, TM, Kp)  pool-position-major im2col patches
    w_ref: (Kp, 128)    b_ref: (1, 128)    o_ref: (TM, 128)
    """
    tm = o_ref.shape[0]
    kp = p_ref.shape[2]
    p = p_ref[...].reshape(4 * tm, kp)                     # single MXU push
    y = jnp.dot(p, w_ref[...], preferred_element_type=jnp.float32) + b_ref[...]
    y = jnp.maximum(y, 0.0)                                # ReLU
    o_ref[...] = jnp.maximum(                              # 2x2 max-pool (VPU)
        jnp.maximum(y[0 * tm:1 * tm], y[1 * tm:2 * tm]),
        jnp.maximum(y[2 * tm:3 * tm], y[3 * tm:4 * tm]),
    ).astype(o_ref.dtype)


def conv2_mlp_kernel(p_ref, wc_ref, bc_ref, w1_ref, b1_ref,
                     w2_ref, b2_ref, w3_ref, b3_ref, o_ref):
    """Fused conv2 + ReLU + pool + flatten + fc1/fc2/fc3 for one batch block.

    p_ref : (4, S*TN, Kp)   rows ordered (spatial s, batch n)
    wc_ref: (Kp, 128)       conv2 weight (lane-padded)
    w1_ref: (S, 128, 128)   fc1 weight, one (C,F) slice per spatial position
    w2_ref, w3_ref: (128, 128)   biases: (1, 128)
    o_ref : (TN, 128)
    """
    tn = o_ref.shape[0]
    m = p_ref.shape[1]
    kp = p_ref.shape[2]
    n_s = m // tn                                          # spatial positions

    p = p_ref[...].reshape(4 * m, kp)
    y = jnp.dot(p, wc_ref[...], preferred_element_type=jnp.float32) + bc_ref[...]
    y = jnp.maximum(y, 0.0)
    y = jnp.maximum(                                       # (S*TN, 128)
        jnp.maximum(y[0 * m:1 * m], y[1 * m:2 * m]),
        jnp.maximum(y[2 * m:3 * m], y[3 * m:4 * m]))

    # fc1: the NCHW flatten is folded into per-spatial-position weight slices,
    # so fc1 is a sum of small (TN,128)@(128,128) matmuls over s.
    acc = jnp.zeros((tn, b1_ref.shape[1]), jnp.float32)
    for s in range(n_s):                                   # static unrolled loop
        acc = acc + jnp.dot(y[s * tn:(s + 1) * tn], w1_ref[s],
                            preferred_element_type=jnp.float32)
    h = jnp.maximum(acc + b1_ref[...], 0.0)
    h = jnp.maximum(jnp.dot(h, w2_ref[...],
                            preferred_element_type=jnp.float32) + b2_ref[...], 0.0)
    o = jnp.dot(h, w3_ref[...], preferred_element_type=jnp.float32) + b3_ref[...]
    o_ref[...] = o.astype(o_ref.dtype)


# ----------------------------------------------------------------------------
# pallas_call wrappers
# ----------------------------------------------------------------------------
def conv_relu_pool(patches, w_col, b_row, tm):
    _, m, kp = patches.shape
    cout = w_col.shape[1]
    return pl.pallas_call(
        conv_relu_pool_kernel,
        out_shape=jax.ShapeDtypeStruct((m, cout), jnp.float32),
        grid_spec=pltpu.PrefetchScalarGridSpec(
            num_scalar_prefetch=0,
            grid=(m // tm,),
            in_specs=[
                pl.BlockSpec((4, tm, kp), lambda i: (0, i, 0)),
                pl.BlockSpec((kp, cout), lambda i: (0, 0)),
                pl.BlockSpec((1, cout), lambda i: (0, 0)),
            ],
            out_specs=pl.BlockSpec((tm, cout), lambda i: (i, 0)),
        ),
        compiler_params=pltpu.CompilerParams(
            dimension_semantics=("parallel",)),
    )(patches, w_col, b_row)


def conv2_mlp_fused(p2, w2_col, b2_row, w1r, b1f, w2f, b2f, w3f, b3f, *, tn):
    _, m2, k2p = p2.shape
    s_spatial = w1r.shape[0]
    blk_m = s_spatial * tn
    nb = m2 // blk_m
    npad = nb * tn
    return pl.pallas_call(
        conv2_mlp_kernel,
        out_shape=jax.ShapeDtypeStruct((npad, LANE), jnp.float32),
        grid_spec=pltpu.PrefetchScalarGridSpec(
            num_scalar_prefetch=0,
            grid=(nb,),
            in_specs=[
                pl.BlockSpec((4, blk_m, k2p), lambda i: (0, i, 0)),
                pl.BlockSpec((k2p, LANE), lambda i: (0, 0)),
                pl.BlockSpec((1, LANE), lambda i: (0, 0)),
                pl.BlockSpec((s_spatial, LANE, LANE), lambda i: (0, 0, 0)),
                pl.BlockSpec((1, LANE), lambda i: (0, 0)),
                pl.BlockSpec((LANE, LANE), lambda i: (0, 0)),
                pl.BlockSpec((1, LANE), lambda i: (0, 0)),
                pl.BlockSpec((LANE, LANE), lambda i: (0, 0)),
                pl.BlockSpec((1, LANE), lambda i: (0, 0)),
            ],
            out_specs=pl.BlockSpec((tn, LANE), lambda i: (i, 0)),
        ),
        compiler_params=pltpu.CompilerParams(
            dimension_semantics=("parallel",)),
    )(p2, w2_col, b2_row, w1r, b1f, w2f, b2f, w3f, b3f)


# ----------------------------------------------------------------------------
# Plain-JAX glue: NHWC im2col grouped by 2x2 pool windows
# ----------------------------------------------------------------------------
def _round_up(x, m):
    return ((x + m - 1) // m) * m


def _im2col_nhwc(x, ksize):
    """(N,H,W,C) -> patches (N,Ho,Wo,C*k*k); K ordered (c, kh, kw) to match
    flattened PyTorch (Cout, Cin, KH, KW) conv weights."""
    n, h, w, c = x.shape
    ho, wo = h - ksize + 1, w - ksize + 1
    cols = [x[:, kh:kh + ho, kw:kw + wo, :]
            for kh in range(ksize) for kw in range(ksize)]
    p = jnp.stack(cols, axis=-1)                           # (N,Ho,Wo,C,K*K)
    return p.reshape(n, ho, wo, c * ksize * ksize), ho, wo


def _pool_groups_nm(p, ho, wo):
    """Rows ordered (n, h2, w2): (N,Ho,Wo,K) -> (4, N*Ho2*Wo2, K)."""
    n, _, _, k = p.shape
    ho2, wo2 = ho // 2, wo // 2
    p = p[:, :ho2 * 2, :wo2 * 2, :]
    p = p.reshape(n, ho2, 2, wo2, 2, k)
    p = jnp.transpose(p, (2, 4, 0, 1, 3, 5))               # (2,2,N,Ho2,Wo2,K)
    return p.reshape(4, n * ho2 * wo2, k), ho2, wo2


def _pool_groups_sn(p, ho, wo, tn):
    """Rows ordered (batch_block, h2, w2, n_in_block); batch zero-padded to a
    multiple of tn.  (N,Ho,Wo,K) -> (4, (Npad//tn)*Ho2*Wo2*tn, K)."""
    n, _, _, k = p.shape
    ho2, wo2 = ho // 2, wo // 2
    npad = _round_up(n, tn)
    nb = npad // tn
    p = p[:, :ho2 * 2, :wo2 * 2, :]
    p = p.reshape(n, ho2, 2, wo2, 2, k)
    p = jnp.transpose(p, (2, 4, 0, 1, 3, 5))               # (2,2,N,Ho2,Wo2,K)
    p = jnp.pad(p, ((0, 0), (0, 0), (0, npad - n), (0, 0), (0, 0), (0, 0)))
    p = p.reshape(2, 2, nb, tn, ho2, wo2, k)
    p = jnp.transpose(p, (0, 1, 2, 4, 5, 3, 6))            # (2,2,Nb,Ho2,Wo2,TN,K)
    return p.reshape(4, nb * ho2 * wo2 * tn, k)


# ----------------------------------------------------------------------------
# One-time weight layout preparation (lane padding + flatten fold)
# ----------------------------------------------------------------------------
def _pad2(x, r, c):
    return jnp.pad(x, ((0, r - x.shape[0]), (0, c - x.shape[1])))


def prepare_params(params, pooled_hw):
    """Pad all lane dims to 128; fold the PyTorch NCHW flatten into a
    permutation of the fc1 weight.  Run once, outside the jitted forward."""
    (w1c, b1c, w2c, b2c, wf1, bf1, wf2, bf2, wf3, bf3) = params
    ph, pw = pooled_hw

    k1p = _round_up(w1c.shape[1] * KS * KS, LANE)
    k2p = _round_up(w2c.shape[1] * KS * KS, LANE)

    w1_col = _pad2(w1c.reshape(w1c.shape[0], -1).T, k1p, LANE)   # (k1p, 128)
    b1_row = _pad2(b1c.reshape(1, -1), 1, LANE)
    w2_col = _pad2(w2c.reshape(w2c.shape[0], -1).T, k2p, LANE)   # (k2p, 128)
    b2_row = _pad2(b2c.reshape(1, -1), 1, LANE)

    nf1 = wf1.shape[0]                                           # 120
    # PyTorch flatten order is (c, h, w); kernel-native order is (h, w, c).
    w1r = wf1.reshape(nf1, C2, ph, pw)
    w1r = jnp.transpose(w1r, (2, 3, 1, 0)).reshape(ph * pw, C2, nf1)
    w1r = jnp.pad(w1r, ((0, 0), (0, LANE - C2), (0, LANE - nf1)))
    b1f = _pad2(bf1.reshape(1, -1), 1, LANE)

    w2f = _pad2(wf2.T, LANE, LANE)
    b2f = _pad2(bf2.reshape(1, -1), 1, LANE)
    w3f = _pad2(wf3.T, LANE, LANE)
    b3f = _pad2(bf3.reshape(1, -1), 1, LANE)
    return (w1_col, b1_row, w2_col, b2_row, w1r, b1f, w2f, b2f, w3f, b3f)


# ----------------------------------------------------------------------------
# Full LeNet forward (PyTorch-equivalent semantics)
# ----------------------------------------------------------------------------
def make_lenet_forward(out_classes):
    def forward(x, prep):
        (w1_col, b1_row, w2_col, b2_row,
         w1r, b1f, w2f, b2f, w3f, b3f) = prep
        n = x.shape[0]
        x_nhwc = jnp.transpose(x, (0, 2, 3, 1))            # single input transpose

        # ---- conv1 + relu + maxpool (Pallas kernel A, tiled over M) ----
        p, ho, wo = _im2col_nhwc(x_nhwc, KS)
        k1, k1p = p.shape[-1], w1_col.shape[0]
        p1, ho2, wo2 = _pool_groups_nm(p, ho, wo)
        m1 = p1.shape[1]
        tm = min(512, _round_up(m1, 8))                    # VMEM-safe on v7x too
        m1p = _round_up(m1, tm)
        p1 = jnp.pad(p1, ((0, 0), (0, m1p - m1), (0, k1p - k1)))
        y1 = conv_relu_pool(p1, w1_col, b1_row, tm)        # (m1p, 128) lane-dense
        y1 = y1[:m1].reshape(n, ho2, wo2, LANE)[..., :C1]  # NHWC, real channels

        # ---- conv2 + relu + maxpool + flatten + fc1/fc2/fc3 (kernel B) ----
        p, ho, wo = _im2col_nhwc(y1, KS)
        k2, k2p = p.shape[-1], w2_col.shape[0]
        tn = min(32, _round_up(n, 8))                      # batch block size
        p2 = _pool_groups_sn(p, ho, wo, tn)
        p2 = jnp.pad(p2, ((0, 0), (0, 0), (0, k2p - k2)))
        out = conv2_mlp_fused(p2, w2_col, b2_row, w1r, b1f, w2f, b2f, w3f, b3f,
                              tn=tn)                       # (Npad, 128)
        return out[:n, :out_classes]
    return forward


# ----------------------------------------------------------------------------
# Deterministic parameter init (PyTorch-style uniform bounds)
# ----------------------------------------------------------------------------
def init_params(key, in_channels, out_classes, fc1_in):
    ks = jax.random.split(key, 10)

    def u(k, shape, fan_in):
        bound = 1.0 / np.sqrt(fan_in)
        return jax.random.uniform(k, shape, jnp.float32, -bound, bound)

    w1c = u(ks[0], (C1, in_channels, KS, KS), in_channels * KS * KS)
    b1c = u(ks[1], (C1,), in_channels * KS * KS)
    w2c = u(ks[2], (C2, C1, KS, KS), C1 * KS * KS)
    b2c = u(ks[3], (C2,), C1 * KS * KS)
    wf1 = u(ks[4], (120, fc1_in), fc1_in)      # LazyLinear(120)
    bf1 = u(ks[5], (120,), fc1_in)
    wf2 = u(ks[6], (84, 120), 120)
    bf2 = u(ks[7], (84,), 120)
    wf3 = u(ks[8], (out_classes, 84), 84)
    bf3 = u(ks[9], (out_classes,), 84)
    return (w1c, b1c, w2c, b2c, wf1, bf1, wf2, bf2, wf3, bf3)


# Pure-JAX reference mirroring the PyTorch forward (for correctness check).
def lenet_reference(x, params):
    (w1c, b1c, w2c, b2c, wf1, bf1, wf2, bf2, wf3, bf3) = params
    dn = ('NCHW', 'OIHW', 'NCHW')
    y = jax.lax.conv_general_dilated(x, w1c, (1, 1), 'VALID', dimension_numbers=dn)
    y = jax.nn.relu(y + b1c.reshape(1, -1, 1, 1))
    y = jax.lax.reduce_window(y, -jnp.inf, jax.lax.max, (1, 1, 2, 2), (1, 1, 2, 2), 'VALID')
    y = jax.lax.conv_general_dilated(y, w2c, (1, 1), 'VALID', dimension_numbers=dn)
    y = jax.nn.relu(y + b2c.reshape(1, -1, 1, 1))
    y = jax.lax.reduce_window(y, -jnp.inf, jax.lax.max, (1, 1, 2, 2), (1, 1, 2, 2), 'VALID')
    y = y.reshape(y.shape[0], -1)
    y = jax.nn.relu(y @ wf1.T + bf1)
    y = jax.nn.relu(y @ wf2.T + bf2)
    return y @ wf3.T + bf3


if __name__ == "__main__":
    key = jax.random.PRNGKey(0)
    kx, kp = jax.random.split(key)

    n, cin, h, w = 2, 3, 32, 32        # classic LeNet-5 input size, small batch
    out_classes = 10
    x = jax.random.normal(kx, (n, cin, h, w), jnp.float32)

    # fc1 in-features (what LazyLinear would infer): 16 * pooled_h * pooled_w
    ph = ((h - KS + 1) // 2 - KS + 1) // 2
    pw = ((w - KS + 1) // 2 - KS + 1) // 2
    fc1_in = C2 * ph * pw

    params = init_params(kp, cin, out_classes, fc1_in)
    prep = prepare_params(params, (ph, pw))     # one-time weight layout prep

    forward = jax.jit(make_lenet_forward(out_classes))
    out = jax.block_until_ready(forward(x, prep))
    assert out.shape == (n, out_classes)

    ref = jax.block_until_ready(lenet_reference(x, params))
    np.testing.assert_allclose(np.asarray(out), np.asarray(ref), rtol=2e-2, atol=2e-2)

    print("KERNEL_OK")
</pallas_src>

<mosaic_0001>
module attributes {stable_mosaic.version = 11 : i64} {
  func.func @conv_relu_pool_kernel(%arg0: i32, %arg1: memref<4x392x128xf32, #tpu.memory_space<vmem>>, %arg2: memref<128x128xf32, #tpu.memory_space<vmem>>, %arg3: memref<1x128xf32, #tpu.memory_space<vmem>>, %arg4: memref<392x128xf32, #tpu.memory_space<vmem>>) attributes {dimension_semantics = [#tpu.dimension_semantics<parallel>], iteration_bounds = array<i64: 1>, scalar_prefetch = 0 : i64, scratch_operands = 0 : i64, tpu.core_type = #tpu.core_type<tc>, window_params = [{transform_indices = @transform_0, window_bounds = array<i64: 4, 392, 128>}, {pipeline_mode = #tpu.pipeline_mode<synchronous>, transform_indices = @transform_1, window_bounds = array<i64: 128, 128>}, {pipeline_mode = #tpu.pipeline_mode<synchronous>, transform_indices = @transform_2, window_bounds = array<i64: 1, 128>}, {transform_indices = @transform_3, window_bounds = array<i64: 392, 128>}]} {
    %c0 = arith.constant 0 : index
    %c0_0 = arith.constant 0 : index
    %c0_1 = arith.constant 0 : index
    %0 = vector.load %arg1[%c0, %c0_0, %c0_1] : memref<4x392x128xf32, #tpu.memory_space<vmem>>, vector<4x392x128xf32>
    %1 = vector.shape_cast %0 : vector<4x392x128xf32> to vector<1568x128xf32>
    %c0_2 = arith.constant 0 : index
    %c0_3 = arith.constant 0 : index
    %2 = vector.load %arg2[%c0_2, %c0_3] : memref<128x128xf32, #tpu.memory_space<vmem>>, vector<128x128xf32>
    %cst = arith.constant dense<0.000000e+00> : vector<1568x128xf32>
    %3 = tpu.matmul %1, %2, %cst {dimension_numbers = #tpu.dot_dimension_numbers<[1], [0], [0], [1], [0, 0, 1, 1], [], []>} : vector<1568x128xf32>, vector<128x128xf32>, vector<1568x128xf32> -> vector<1568x128xf32>
    %c0_4 = arith.constant 0 : index
    %c0_5 = arith.constant 0 : index
    %4 = vector.load %arg3[%c0_4, %c0_5] : memref<1x128xf32, #tpu.memory_space<vmem>>, vector<1x128xf32>
    %5 = vector.broadcast %4 : vector<1x128xf32> to vector<1568x128xf32>
    %6 = arith.addf %3, %5 : vector<1568x128xf32>
    %cst_6 = arith.constant 0.000000e+00 : f32
    %7 = vector.broadcast %cst_6 : f32 to vector<1568x128xf32>
    %8 = arith.maximumf %6, %7 : vector<1568x128xf32>
    %9 = vector.extract_strided_slice %8 {offsets = [0, 0], sizes = [392, 128], strides = [1, 1]} : vector<1568x128xf32> to vector<392x128xf32>
    %10 = vector.extract_strided_slice %8 {offsets = [392, 0], sizes = [392, 128], strides = [1, 1]} : vector<1568x128xf32> to vector<392x128xf32>
    %11 = arith.maximumf %9, %10 : vector<392x128xf32>
    %12 = vector.extract_strided_slice %8 {offsets = [784, 0], sizes = [392, 128], strides = [1, 1]} : vector<1568x128xf32> to vector<392x128xf32>
    %13 = vector.extract_strided_slice %8 {offsets = [1176, 0], sizes = [392, 128], strides = [1, 1]} : vector<1568x128xf32> to vector<392x128xf32>
    %14 = arith.maximumf %12, %13 : vector<392x128xf32>
    %15 = arith.maximumf %11, %14 : vector<392x128xf32>
    %c0_7 = arith.constant 0 : index
    %c0_8 = arith.constant 0 : index
    %16 = vector.load %arg4[%c0_7, %c0_8] : memref<392x128xf32, #tpu.memory_space<vmem>>, vector<392x128xf32>
    tpu.vector_store %arg4[%c0_7, %c0_8], %15 {strides = array<i32>} : memref<392x128xf32, #tpu.memory_space<vmem>>, vector<392x128xf32>,
    return
  }
  func.func @transform_0(%arg0: i32) -> (i32, i32, i32) {
    %c0_i32 = arith.constant 0 : i32
    %c0_i32_0 = arith.constant 0 : i32
    %c0_i32_1 = arith.constant 0 : i32
    return %c0_i32, %arg0, %c0_i32_0 : i32, i32, i32
  }
  func.func @transform_1(%arg0: i32) -> (i32, i32) {
    %c0_i32 = arith.constant 0 : i32
    %c0_i32_0 = arith.constant 0 : i32
    %c0_i32_1 = arith.constant 0 : i32
    return %c0_i32, %c0_i32_0 : i32, i32
  }
  func.func @transform_2(%arg0: i32) -> (i32, i32) {
    %c0_i32 = arith.constant 0 : i32
    %c0_i32_0 = arith.constant 0 : i32
    %c0_i32_1 = arith.constant 0 : i32
    return %c0_i32, %c0_i32_0 : i32, i32
  }
  func.func @transform_3(%arg0: i32) -> (i32, i32) {
    %c0_i32 = arith.constant 0 : i32
    %c0_i32_0 = arith.constant 0 : i32
    return %arg0, %c0_i32 : i32, i32
  }
}

module attributes {stable_mosaic.version = 11 : i64} {
  func.func @conv2_mlp_kernel(%arg0: i32, %arg1: memref<4x200x256xf32, #tpu.memory_space<vmem>>, %arg2: memref<256x128xf32, #tpu.memory_space<vmem>>, %arg3: memref<1x128xf32, #tpu.memory_space<vmem>>, %arg4: memref<25x128x128xf32, #tpu.memory_space<vmem>>, %arg5: memref<1x128xf32, #tpu.memory_space<vmem>>, %arg6: memref<128x128xf32, #tpu.memory_space<vmem>>, %arg7: memref<1x128xf32, #tpu.memory_space<vmem>>, %arg8: memref<128x128xf32, #tpu.memory_space<vmem>>, %arg9: memref<1x128xf32, #tpu.memory_space<vmem>>, %arg10: memref<8x128xf32, #tpu.memory_space<vmem>>) attributes {dimension_semantics = [#tpu.dimension_semantics<parallel>], iteration_bounds = array<i64: 1>, scalar_prefetch = 0 : i64, scratch_operands = 0 : i64, tpu.core_type = #tpu.core_type<tc>, window_params = [{transform_indices = @transform_0, window_bounds = array<i64: 4, 200, 256>}, {pipeline_mode = #tpu.pipeline_mode<synchronous>, transform_indices = @transform_1, window_bounds = array<i64: 256, 128>}, {pipeline_mode = #tpu.pipeline_mode<synchronous>, transform_indices = @transform_2, window_bounds = array<i64: 1, 128>}, {pipeline_mode = #tpu.pipeline_mode<synchronous>, transform_indices = @transform_3, window_bounds = array<i64: 25, 128, 128>}, {pipeline_mode = #tpu.pipeline_mode<synchronous>, transform_indices = @transform_4, window_bounds = array<i64: 1, 128>}, {pipeline_mode = #tpu.pipeline_mode<synchronous>, transform_indices = @transform_5, window_bounds = array<i64: 128, 128>}, {pipeline_mode = #tpu.pipeline_mode<synchronous>, transform_indices = @transform_6, window_bounds = array<i64: 1, 128>}, {pipeline_mode = #tpu.pipeline_mode<synchronous>, transform_indices = @transform_7, window_bounds = array<i64: 128, 128>}, {pipeline_mode = #tpu.pipeline_mode<synchronous>, transform_indices = @transform_8, window_bounds = array<i64: 1, 128>}, {transform_indices = @transform_9, window_bounds = array<i64: 8, 128>}]} {
    %c0 = arith.constant 0 : index
    %c0_0 = arith.constant 0 : index
    %c0_1 = arith.constant 0 : index
    %0 = vector.load %arg1[%c0, %c0_0, %c0_1] : memref<4x200x256xf32, #tpu.memory_space<vmem>>, vector<4x200x256xf32>
    %1 = vector.shape_cast %0 : vector<4x200x256xf32> to vector<800x256xf32>
    %c0_2 = arith.constant 0 : index
    %c0_3 = arith.constant 0 : index
    %2 = vector.load %arg2[%c0_2, %c0_3] : memref<256x128xf32, #tpu.memory_space<vmem>>, vector<256x128xf32>
    %cst = arith.constant dense<0.000000e+00> : vector<800x128xf32>
    %3 = tpu.matmul %1, %2, %cst {dimension_numbers = #tpu.dot_dimension_numbers<[1], [0], [0], [1], [0, 0, 1, 1], [], []>} : vector<800x256xf32>, vector<256x128xf32>, vector<800x128xf32> -> vector<800x128xf32>
    %c0_4 = arith.constant 0 : index
    %c0_5 = arith.constant 0 : index
    %4 = vector.load %arg3[%c0_4, %c0_5] : memref<1x128xf32, #tpu.memory_space<vmem>>, vector<1x128xf32>
    %5 = vector.broadcast %4 : vector<1x128xf32> to vector<800x128xf32>
    %6 = arith.addf %3, %5 : vector<800x128xf32>
    %cst_6 = arith.constant 0.000000e+00 : f32
    %7 = vector.broadcast %cst_6 : f32 to vector<800x128xf32>
    %8 = arith.maximumf %6, %7 : vector<800x128xf32>
    %9 = vector.extract_strided_slice %8 {offsets = [0, 0], sizes = [200, 128], strides = [1, 1]} : vector<800x128xf32> to vector<200x128xf32>
    %10 = vector.extract_strided_slice %8 {offsets = [200, 0], sizes = [200, 128], strides = [1, 1]} : vector<800x128xf32> to vector<200x128xf32>
    %11 = arith.maximumf %9, %10 : vector<200x128xf32>
    %12 = vector.extract_strided_slice %8 {offsets = [400, 0], sizes = [200, 128], strides = [1, 1]} : vector<800x128xf32> to vector<200x128xf32>
    %13 = vector.extract_strided_slice %8 {offsets = [600, 0], sizes = [200, 128], strides = [1, 1]} : vector<800x128xf32> to vector<200x128xf32>
    %14 = arith.maximumf %12, %13 : vector<200x128xf32>
    %15 = arith.maximumf %11, %14 : vector<200x128xf32>
    %cst_7 = arith.constant 0.000000e+00 : f32
    %16 = vector.broadcast %cst_7 : f32 to vector<8x128xf32>
    %17 = vector.extract_strided_slice %15 {offsets = [0, 0], sizes = [8, 128], strides = [1, 1]} : vector<200x128xf32> to vector<8x128xf32>
    %c0_8 = arith.constant 0 : index
    %c0_9 = arith.constant 0 : index
    %c0_10 = arith.constant 0 : index
    %18 = vector.load %arg4[%c0_8, %c0_9, %c0_10] : memref<25x128x128xf32, #tpu.memory_space<vmem>>, vector<1x128x128xf32>
    %19 = vector.shape_cast %18 : vector<1x128x128xf32> to vector<128x128xf32>
    %cst_11 = arith.constant dense<0.000000e+00> : vector<8x128xf32>
    %20 = tpu.matmul %17, %19, %cst_11 {dimension_numbers = #tpu.dot_dimension_numbers<[1], [0], [0], [1], [0, 0, 1, 1], [], []>} : vector<8x128xf32>, vector<128x128xf32>, vector<8x128xf32> -> vector<8x128xf32>
    %21 = arith.addf %16, %20 : vector<8x128xf32>
    %22 = vector.extract_strided_slice %15 {offsets = [8, 0], sizes = [8, 128], strides = [1, 1]} : vector<200x128xf32> to vector<8x128xf32>
    %c1 = arith.constant 1 : index
    %c0_12 = arith.constant 0 : index
    %c0_13 = arith.constant 0 : index
    %23 = vector.load %arg4[%c1, %c0_12, %c0_13] : memref<25x128x128xf32, #tpu.memory_space<vmem>>, vector<1x128x128xf32>
    %24 = vector.shape_cast %23 : vector<1x128x128xf32> to vector<128x128xf32>
    %cst_14 = arith.constant dense<0.000000e+00> : vector<8x128xf32>
    %25 = tpu.matmul %22, %24, %cst_14 {dimension_numbers = #tpu.dot_dimension_numbers<[1], [0], [0], [1], [0, 0, 1, 1], [], []>} : vector<8x128xf32>, vector<128x128xf32>, vector<8x128xf32> -> vector<8x128xf32>
    %26 = arith.addf %21, %25 : vector<8x128xf32>
    %27 = vector.extract_strided_slice %15 {offsets = [16, 0], sizes = [8, 128], strides = [1, 1]} : vector<200x128xf32> to vector<8x128xf32>
    %c2 = arith.constant 2 : index
    %c0_15 = arith.constant 0 : index
    %c0_16 = arith.constant 0 : index
    %28 = vector.load %arg4[%c2, %c0_15, %c0_16] : memref<25x128x128xf32, #tpu.memory_space<vmem>>, vector<1x128x128xf32>
    %29 = vector.shape_cast %28 : vector<1x128x128xf32> to vector<128x128xf32>
    %cst_17 = arith.constant dense<0.000000e+00> : vector<8x128xf32>
    %30 = tpu.matmul %27, %29, %cst_17 {dimension_numbers = #tpu.dot_dimension_numbers<[1], [0], [0], [1], [0, 0, 1, 1], [], []>} : vector<8x128xf32>, vector<128x128xf32>, vector<8x128xf32> -> vector<8x128xf32>
    %31 = arith.addf %26, %30 : vector<8x128xf32>
    %32 = vector.extract_strided_slice %15 {offsets = [24, 0], sizes = [8, 128], strides = [1, 1]} : vector<200x128xf32> to vector<8x128xf32>
    %c3 = arith.constant 3 : index
    %c0_18 = arith.constant 0 : index
    %c0_19 = arith.constant 0 : index
    %33 = vector.load %arg4[%c3, %c0_18, %c0_19] : memref<25x128x128xf32, #tpu.memory_space<vmem>>, vector<1x128x128xf32>
    %34 = vector.shape_cast %33 : vector<1x128x128xf32> to vector<128x128xf32>
    %cst_20 = arith.constant dense<0.000000e+00> : vector<8x128xf32>
    %35 = tpu.matmul %32, %34, %cst_20 {dimension_numbers = #tpu.dot_dimension_numbers<[1], [0], [0], [1], [0, 0, 1, 1], [], []>} : vector<8x128xf32>, vector<128x128xf32>, vector<8x128xf32> -> vector<8x128xf32>
    %36 = arith.addf %31, %35 : vector<8x128xf32>
    %37 = vector.extract_strided_slice %15 {offsets = [32, 0], sizes = [8, 128], strides = [1, 1]} : vector<200x128xf32> to vector<8x128xf32>
    %c4 = arith.constant 4 : index
    %c0_21 = arith.constant 0 : index
    %c0_22 = arith.constant 0 : index
    %38 = vector.load %arg4[%c4, %c0_21, %c0_22] : memref<25x128x128xf32, #tpu.memory_space<vmem>>, vector<1x128x128xf32>
    %39 = vector.shape_cast %38 : vector<1x128x128xf32> to vector<128x128xf32>
    %cst_23 = arith.constant dense<0.000000e+00> : vector<8x128xf32>
    %40 = tpu.matmul %37, %39, %cst_23 {dimension_numbers = #tpu.dot_dimension_numbers<[1], [0], [0], [1], [0, 0, 1, 1], [], []>} : vector<8x128xf32>, vector<128x128xf32>, vector<8x128xf32> -> vector<8x128xf32>
    %41 = arith.addf %36, %40 : vector<8x128xf32>
    %42 = vector.extract_strided_slice %15 {offsets = [40, 0], sizes = [8, 128], strides = [1, 1]} : vector<200x128xf32> to vector<8x128xf32>
    %c5 = arith.constant 5 : index
    %c0_24 = arith.constant 0 : index
    %c0_25 = arith.constant 0 : index
    %43 = vector.load %arg4[%c5, %c0_24, %c0_25] : memref<25x128x128xf32, #tpu.memory_space<vmem>>, vector<1x128x128xf32>
    %44 = vector.shape_cast %43 : vector<1x128x128xf32> to vector<128x128xf32>
    %cst_26 = arith.constant dense<0.000000e+00> : vector<8x128xf32>
    %45 = tpu.matmul %42, %44, %cst_26 {dimension_numbers = #tpu.dot_dimension_numbers<[1], [0], [0], [1], [0, 0, 1, 1], [], []>} : vector<8x128xf32>, vector<128x128xf32>, vector<8x128xf32> -> vector<8x128xf32>
    %46 = arith.addf %41, %45 : vector<8x128xf32>
    %47 = vector.extract_strided_slice %15 {offsets = [48, 0], sizes = [8, 128], strides = [1, 1]} : vector<200x128xf32> to vector<8x128xf32>
    %c6 = arith.constant 6 : index
    %c0_27 = arith.constant 0 : index
    %c0_28 = arith.constant 0 : index
    %48 = vector.load %arg4[%c6, %c0_27, %c0_28] : memref<25x128x128xf32, #tpu.memory_space<vmem>>, vector<1x128x128xf32>
    %49 = vector.shape_cast %48 : vector<1x128x128xf32> to vector<128x128xf32>
    %cst_29 = arith.constant dense<0.000000e+00> : vector<8x128xf32>
    %50 = tpu.matmul %47, %49, %cst_29 {dimension_numbers = #tpu.dot_dimension_numbers<[1], [0], [0], [1], [0, 0, 1, 1], [], []>} : vector<8x128xf32>, vector<128x128xf32>, vector<8x128xf32> -> vector<8x128xf32>
    %51 = arith.addf %46, %50 : vector<8x128xf32>
    %52 = vector.extract_strided_slice %15 {offsets = [56, 0], sizes = [8, 128], strides = [1, 1]} : vector<200x128xf32> to vector<8x128xf32>
    %c7 = arith.constant 7 : index
    %c0_30 = arith.constant 0 : index
    %c0_31 = arith.constant 0 : index
    %53 = vector.load %arg4[%c7, %c0_30, %c0_31] : memref<25x128x128xf32, #tpu.memory_space<vmem>>, vector<1x128x128xf32>
    %54 = vector.shape_cast %53 : vector<1x128x128xf32> to vector<128x128xf32>
    %cst_32 = arith.constant dense<0.000000e+00> : vector<8x128xf32>
    %55 = tpu.matmul %52, %54, %cst_32 {dimension_numbers = #tpu.dot_dimension_numbers<[1], [0], [0], [1], [0, 0, 1, 1], [], []>} : vector<8x128xf32>, vector<128x128xf32>, vector<8x128xf32> -> vector<8x128xf32>
    %56 = arith.addf %51, %55 : vector<8x128xf32>
    %57 = vector.extract_strided_slice %15 {offsets = [64, 0], sizes = [8, 128], strides = [1, 1]} : vector<200x128xf32> to vector<8x128xf32>
    %c8 = arith.constant 8 : index
    %c0_33 = arith.constant 0 : index
    %c0_34 = arith.constant 0 : index
    %58 = vector.load %arg4[%c8, %c0_33, %c0_34] : memref<25x128x128xf32, #tpu.memory_space<vmem>>, vector<1x128x128xf32>
    %59 = vector.shape_cast %58 : vector<1x128x128xf32> to vector<128x128xf32>
    %cst_35 = arith.constant dense<0.000000e+00> : vector<8x128xf32>
    %60 = tpu.matmul %57, %59, %cst_35 {dimension_numbers = #tpu.dot_dimension_numbers<[1], [0], [0], [1], [0, 0, 1, 1], [], []>} : vector<8x128xf32>, vector<128x128xf32>, vector<8x128xf32> -> vector<8x128xf32>
    %61 = arith.addf %56, %60 : vector<8x128xf32>
    %62 = vector.extract_strided_slice %15 {offsets = [72, 0], sizes = [8, 128], strides = [1, 1]} : vector<200x128xf32> to vector<8x128xf32>
    %c9 = arith.constant 9 : index
    %c0_36 = arith.constant 0 : index
    %c0_37 = arith.constant 0 : index
    %63 = vector.load %arg4[%c9, %c0_36, %c0_37] : memref<25x128x128xf32, #tpu.memory_space<vmem>>, vector<1x128x128xf32>
    %64 = vector.shape_cast %63 : vector<1x128x128xf32> to vector<128x128xf32>
    %cst_38 = arith.constant dense<0.000000e+00> : vector<8x128xf32>
    %65 = tpu.matmul %62, %64, %cst_38 {dimension_numbers = #tpu.dot_dimension_numbers<[1], [0], [0], [1], [0, 0, 1, 1], [], []>} : vector<8x128xf32>, vector<128x128xf32>, vector<8x128xf32> -> vector<8x128xf32>
    %66 = arith.addf %61, %65 : vector<8x128xf32>
    %67 = vector.extract_strided_slice %15 {offsets = [80, 0], sizes = [8, 128], strides = [1, 1]} : vector<200x128xf32> to vector<8x128xf32>
    %c10 = arith.constant 10 : index
    %c0_39 = arith.constant 0 : index
    %c0_40 = arith.constant 0 : index
    %68 = vector.load %arg4[%c10, %c0_39, %c0_40] : memref<25x128x128xf32, #tpu.memory_space<vmem>>, vector<1x128x128xf32>
    %69 = vector.shape_cast %68 : vector<1x128x128xf32> to vector<128x128xf32>
    %cst_41 = arith.constant dense<0.000000e+00> : vector<8x128xf32>
    %70 = tpu.matmul %67, %69, %cst_41 {dimension_numbers = #tpu.dot_dimension_numbers<[1], [0], [0], [1], [0, 0, 1, 1], [], []>} : vector<8x128xf32>, vector<128x128xf32>, vector<8x128xf32> -> vector<8x128xf32>
    %71 = arith.addf %66, %70 : vector<8x128xf32>
    %72 = vector.extract_strided_slice %15 {offsets = [88, 0], sizes = [8, 128], strides = [1, 1]} : vector<200x128xf32> to vector<8x128xf32>
    %c11 = arith.constant 11 : index
    %c0_42 = arith.constant 0 : index
    %c0_43 = arith.constant 0 : index
    %73 = vector.load %arg4[%c11, %c0_42, %c0_43] : memref<25x128x128xf32, #tpu.memory_space<vmem>>, vector<1x128x128xf32>
    %74 = vector.shape_cast %73 : vector<1x128x128xf32> to vector<128x128xf32>
    %cst_44 = arith.constant dense<0.000000e+00> : vector<8x128xf32>
    %75 = tpu.matmul %72, %74, %cst_44 {dimension_numbers = #tpu.dot_dimension_numbers<[1], [0], [0], [1], [0, 0, 1, 1], [], []>} : vector<8x128xf32>, vector<128x128xf32>, vector<8x128xf32> -> vector<8x128xf32>
    %76 = arith.addf %71, %75 : vector<8x128xf32>
    %77 = vector.extract_strided_slice %15 {offsets = [96, 0], sizes = [8, 128], strides = [1, 1]} : vector<200x128xf32> to vector<8x128xf32>
    %c12 = arith.constant 12 : index
    %c0_45 = arith.constant 0 : index
    %c0_46 = arith.constant 0 : index
    %78 = vector.load %arg4[%c12, %c0_45, %c0_46] : memref<25x128x128xf32, #tpu.memory_space<vmem>>, vector<1x128x128xf32>
    %79 = vector.shape_cast %78 : vector<1x128x128xf32> to vector<128x128xf32>
    %cst_47 = arith.constant dense<0.000000e+00> : vector<8x128xf32>
    %80 = tpu.matmul %77, %79, %cst_47 {dimension_numbers = #tpu.dot_dimension_numbers<[1], [0], [0], [1], [0, 0, 1, 1], [], []>} : vector<8x128xf32>, vector<128x128xf32>, vector<8x128xf32> -> vector<8x128xf32>
    %81 = arith.addf %76, %80 : vector<8x128xf32>
    %82 = vector.extract_strided_slice %15 {offsets = [104, 0], sizes = [8, 128], strides = [1, 1]} : vector<200x128xf32> to vector<8x128xf32>
    %c13 = arith.constant 13 : index
    %c0_48 = arith.constant 0 : index
    %c0_49 = arith.constant 0 : index
    %83 = vector.load %arg4[%c13, %c0_48, %c0_49] : memref<25x128x128xf32, #tpu.memory_space<vmem>>, vector<1x128x128xf32>
    %84 = vector.shape_cast %83 : vector<1x128x128xf32> to vector<128x128xf32>
    %cst_50 = arith.constant dense<0.000000e+00> : vector<8x128xf32>
    %85 = tpu.matmul %82, %84, %cst_50 {dimension_numbers = #tpu.dot_dimension_numbers<[1], [0], [0], [1], [0, 0, 1, 1], [], []>} : vector<8x128xf32>, vector<128x128xf32>, vector<8x128xf32> -> vector<8x128xf32>
    %86 = arith.addf %81, %85 : vector<8x128xf32>
    %87 = vector.extract_strided_slice %15 {offsets = [112, 0], sizes = [8, 128], strides = [1, 1]} : vector<200x128xf32> to vector<8x128xf32>
    %c14 = arith.constant 14 : index
    %c0_51 = arith.constant 0 : index
    %c0_52 = arith.constant 0 : index
    %88 = vector.load %arg4[%c14, %c0_51, %c0_52] : memref<25x128x128xf32, #tpu.memory_space<vmem>>, vector<1x128x128xf32>
    %89 = vector.shape_cast %88 : vector<1x128x128xf32> to vector<128x128xf32>
    %cst_53 = arith.constant dense<0.000000e+00> : vector<8x128xf32>
    %90 = tpu.matmul %87, %89, %cst_53 {dimension_numbers = #tpu.dot_dimension_numbers<[1], [0], [0], [1], [0, 0, 1, 1], [], []>} : vector<8x128xf32>, vector<128x128xf32>, vector<8x128xf32> -> vector<8x128xf32>
    %91 = arith.addf %86, %90 : vector<8x128xf32>
    %92 = vector.extract_strided_slice %15 {offsets = [120, 0], sizes = [8, 128], strides = [1, 1]} : vector<200x128xf32> to vector<8x128xf32>
    %c15 = arith.constant 15 : index
    %c0_54 = arith.constant 0 : index
    %c0_55 = arith.constant 0 : index
    %93 = vector.load %arg4[%c15, %c0_54, %c0_55] : memref<25x128x128xf32, #tpu.memory_space<vmem>>, vector<1x128x128xf32>
    %94 = vector.shape_cast %93 : vector<1x128x128xf32> to vector<128x128xf32>
    %cst_56 = arith.constant dense<0.000000e+00> : vector<8x128xf32>
    %95 = tpu.matmul %92, %94, %cst_56 {dimension_numbers = #tpu.dot_dimension_numbers<[1], [0], [0], [1], [0, 0, 1, 1], [], []>} : vector<8x128xf32>, vector<128x128xf32>, vector<8x128xf32> -> vector<8x128xf32>
    %96 = arith.addf %91, %95 : vector<8x128xf32>
    %97 = vector.extract_strided_slice %15 {offsets = [128, 0], sizes = [8, 128], strides = [1, 1]} : vector<200x128xf32> to vector<8x128xf32>
    %c16 = arith.constant 16 : index
    %c0_57 = arith.constant 0 : index
    %c0_58 = arith.constant 0 : index
    %98 = vector.load %arg4[%c16, %c0_57, %c0_58] : memref<25x128x128xf32, #tpu.memory_space<vmem>>, vector<1x128x128xf32>
    %99 = vector.shape_cast %98 : vector<1x128x128xf32> to vector<128x128xf32>
    %cst_59 = arith.constant dense<0.000000e+00> : vector<8x128xf32>
    %100 = tpu.matmul %97, %99, %cst_59 {dimension_numbers = #tpu.dot_dimension_numbers<[1], [0], [0], [1], [0, 0, 1, 1], [], []>} : vector<8x128xf32>, vector<128x128xf32>, vector<8x128xf32> -> vector<8x128xf32>
    %101 = arith.addf %96, %100 : vector<8x128xf32>
    %102 = vector.extract_strided_slice %15 {offsets = [136, 0], sizes = [8, 128], strides = [1, 1]} : vector<200x128xf32> to vector<8x128xf32>
    %c17 = arith.constant 17 : index
    %c0_60 = arith.constant 0 : index
    %c0_61 = arith.constant 0 : index
    %103 = vector.load %arg4[%c17, %c0_60, %c0_61] : memref<25x128x128xf32, #tpu.memory_space<vmem>>, vector<1x128x128xf32>
    %104 = vector.shape_cast %103 : vector<1x128x128xf32> to vector<128x128xf32>
    %cst_62 = arith.constant dense<0.000000e+00> : vector<8x128xf32>
    %105 = tpu.matmul %102, %104, %cst_62 {dimension_numbers = #tpu.dot_dimension_numbers<[1], [0], [0], [1], [0, 0, 1, 1], [], []>} : vector<8x128xf32>, vector<128x128xf32>, vector<8x128xf32> -> vector<8x128xf32>
    %106 = arith.addf %101, %105 : vector<8x128xf32>
    %107 = vector.extract_strided_slice %15 {offsets = [144, 0], sizes = [8, 128], strides = [1, 1]} : vector<200x128xf32> to vector<8x128xf32>
    %c18 = arith.constant 18 : index
    %c0_63 = arith.constant 0 : index
    %c0_64 = arith.constant 0 : index
    %108 = vector.load %arg4[%c18, %c0_63, %c0_64] : memref<25x128x128xf32, #tpu.memory_space<vmem>>, vector<1x128x128xf32>
    %109 = vector.shape_cast %108 : vector<1x128x128xf32> to vector<128x128xf32>
    %cst_65 = arith.constant dense<0.000000e+00> : vector<8x128xf32>
    %110 = tpu.matmul %107, %109, %cst_65 {dimension_numbers = #tpu.dot_dimension_numbers<[1], [0], [0], [1], [0, 0, 1, 1], [], []>} : vector<8x128xf32>, vector<128x128xf32>, vector<8x128xf32> -> vector<8x128xf32>
    %111 = arith.addf %106, %110 : vector<8x128xf32>
    %112 = vector.extract_strided_slice %15 {offsets = [152, 0], sizes = [8, 128], strides = [1, 1]} : vector<200x128xf32> to vector<8x128xf32>
    %c19 = arith.constant 19 : index
    %c0_66 = arith.constant 0 : index
    %c0_67 = arith.constant 0 : index
    %113 = vector.load %arg4[%c19, %c0_66, %c0_67] : memref<25x128x128xf32, #tpu.memory_space<vmem>>, vector<1x128x128xf32>
    %114 = vector.shape_cast %113 : vector<1x128x128xf32> to vector<128x128xf32>
    %cst_68 = arith.constant dense<0.000000e+00> : vector<8x128xf32>
    %115 = tpu.matmul %112, %114, %cst_68 {dimension_numbers = #tpu.dot_dimension_numbers<[1], [0], [0], [1], [0, 0, 1, 1], [], []>} : vector<8x128xf32>, vector<128x128xf32>, vector<8x128xf32> -> vector<8x128xf32>
    %116 = arith.addf %111, %115 : vector<8x128xf32>
    %117 = vector.extract_strided_slice %15 {offsets = [160, 0], sizes = [8, 128], strides = [1, 1]} : vector<200x128xf32> to vector<8x128xf32>
    %c20 = arith.constant 20 : index
    %c0_69 = arith.constant 0 : index
    %c0_70 = arith.constant 0 : index
    %118 = vector.load %arg4[%c20, %c0_69, %c0_70] : memref<25x128x128xf32, #tpu.memory_space<vmem>>, vector<1x128x128xf32>
    %119 = vector.shape_cast %118 : vector<1x128x128xf32> to vector<128x128xf32>
    %cst_71 = arith.constant dense<0.000000e+00> : vector<8x128xf32>
    %120 = tpu.matmul %117, %119, %cst_71 {dimension_numbers = #tpu.dot_dimension_numbers<[1], [0], [0], [1], [0, 0, 1, 1], [], []>} : vector<8x128xf32>, vector<128x128xf32>, vector<8x128xf32> -> vector<8x128xf32>
    %121 = arith.addf %116, %120 : vector<8x128xf32>
    %122 = vector.extract_strided_slice %15 {offsets = [168, 0], sizes = [8, 128], strides = [1, 1]} : vector<200x128xf32> to vector<8x128xf32>
    %c21 = arith.constant 21 : index
    %c0_72 = arith.constant 0 : index
    %c0_73 = arith.constant 0 : index
    %123 = vector.load %arg4[%c21, %c0_72, %c0_73] : memref<25x128x128xf32, #tpu.memory_space<vmem>>, vector<1x128x128xf32>
    %124 = vector.shape_cast %123 : vector<1x128x128xf32> to vector<128x128xf32>
    %cst_74 = arith.constant dense<0.000000e+00> : vector<8x128xf32>
    %125 = tpu.matmul %122, %124, %cst_74 {dimension_numbers = #tpu.dot_dimension_numbers<[1], [0], [0], [1], [0, 0, 1, 1], [], []>} : vector<8x128xf32>, vector<128x128xf32>, vector<8x128xf32> -> vector<8x128xf32>
    %126 = arith.addf %121, %125 : vector<8x128xf32>
    %127 = vector.extract_strided_slice %15 {offsets = [176, 0], sizes = [8, 128], strides = [1, 1]} : vector<200x128xf32> to vector<8x128xf32>
    %c22 = arith.constant 22 : index
    %c0_75 = arith.constant 0 : index
    %c0_76 = arith.constant 0 : index
    %128 = vector.load %arg4[%c22, %c0_75, %c0_76] : memref<25x128x128xf32, #tpu.memory_space<vmem>>, vector<1x128x128xf32>
    %129 = vector.shape_cast %128 : vector<1x128x128xf32> to vector<128x128xf32>
    %cst_77 = arith.constant dense<0.000000e+00> : vector<8x128xf32>
    %130 = tpu.matmul %127, %129, %cst_77 {dimension_numbers = #tpu.dot_dimension_numbers<[1], [0], [0], [1], [0, 0, 1, 1], [], []>} : vector<8x128xf32>, vector<128x128xf32>, vector<8x128xf32> -> vector<8x128xf32>
    %131 = arith.addf %126, %130 : vector<8x128xf32>
    %132 = vector.extract_strided_slice %15 {offsets = [184, 0], sizes = [8, 128], strides = [1, 1]} : vector<200x128xf32> to vector<8x128xf32>
    %c23 = arith.constant 23 : index
    %c0_78 = arith.constant 0 : index
    %c0_79 = arith.constant 0 : index
    %133 = vector.load %arg4[%c23, %c0_78, %c0_79] : memref<25x128x128xf32, #tpu.memory_space<vmem>>, vector<1x128x128xf32>
    %134 = vector.shape_cast %133 : vector<1x128x128xf32> to vector<128x128xf32>
    %cst_80 = arith.constant dense<0.000000e+00> : vector<8x128xf32>
    %135 = tpu.matmul %132, %134, %cst_80 {dimension_numbers = #tpu.dot_dimension_numbers<[1], [0], [0], [1], [0, 0, 1, 1], [], []>} : vector<8x128xf32>, vector<128x128xf32>, vector<8x128xf32> -> vector<8x128xf32>
    %136 = arith.addf %131, %135 : vector<8x128xf32>
    %137 = vector.extract_strided_slice %15 {offsets = [192, 0], sizes = [8, 128], strides = [1, 1]} : vector<200x128xf32> to vector<8x128xf32>
    %c24 = arith.constant 24 : index
    %c0_81 = arith.constant 0 : index
    %c0_82 = arith.constant 0 : index
    %138 = vector.load %arg4[%c24, %c0_81, %c0_82] : memref<25x128x128xf32, #tpu.memory_space<vmem>>, vector<1x128x128xf32>
    %139 = vector.shape_cast %138 : vector<1x128x128xf32> to vector<128x128xf32>
    %cst_83 = arith.constant dense<0.000000e+00> : vector<8x128xf32>
    %140 = tpu.matmul %137, %139, %cst_83 {dimension_numbers = #tpu.dot_dimension_numbers<[1], [0], [0], [1], [0, 0, 1, 1], [], []>} : vector<8x128xf32>, vector<128x128xf32>, vector<8x128xf32> -> vector<8x128xf32>
    %141 = arith.addf %136, %140 : vector<8x128xf32>
    %c0_84 = arith.constant 0 : index
    %c0_85 = arith.constant 0 : index
    %142 = vector.load %arg5[%c0_84, %c0_85] : memref<1x128xf32, #tpu.memory_space<vmem>>, vector<1x128xf32>
    %143 = vector.broadcast %142 : vector<1x128xf32> to vector<8x128xf32>
    %144 = arith.addf %141, %143 : vector<8x128xf32>
    %cst_86 = arith.constant 0.000000e+00 : f32
    %145 = vector.broadcast %cst_86 : f32 to vector<8x128xf32>
    %146 = arith.maximumf %144, %145 : vector<8x128xf32>
    %c0_87 = arith.constant 0 : index
    %c0_88 = arith.constant 0 : index
    %147 = vector.load %arg6[%c0_87, %c0_88] : memref<128x128xf32, #tpu.memory_space<vmem>>, vector<128x128xf32>
    %cst_89 = arith.constant dense<0.000000e+00> : vector<8x128xf32>
    %148 = tpu.matmul %146, %147, %cst_89 {dimension_numbers = #tpu.dot_dimension_numbers<[1], [0], [0], [1], [0, 0, 1, 1], [], []>} : vector<8x128xf32>, vector<128x128xf32>, vector<8x128xf32> -> vector<8x128xf32>
    %c0_90 = arith.constant 0 : index
    %c0_91 = arith.constant 0 : index
    %149 = vector.load %arg7[%c0_90, %c0_91] : memref<1x128xf32, #tpu.memory_space<vmem>>, vector<1x128xf32>
    %150 = vector.broadcast %149 : vector<1x128xf32> to vector<8x128xf32>
    %151 = arith.addf %148, %150 : vector<8x128xf32>
    %cst_92 = arith.constant 0.000000e+00 : f32
    %152 = vector.broadcast %cst_92 : f32 to vector<8x128xf32>
    %153 = arith.maximumf %151, %152 : vector<8x128xf32>
    %c0_93 = arith.constant 0 : index
    %c0_94 = arith.constant 0 : index
    %154 = vector.load %arg8[%c0_93, %c0_94] : memref<128x128xf32, #tpu.memory_space<vmem>>, vector<128x128xf32>
    %cst_95 = arith.constant dense<0.000000e+00> : vector<8x128xf32>
    %155 = tpu.matmul %153, %154, %cst_95 {dimension_numbers = #tpu.dot_dimension_numbers<[1], [0], [0], [1], [0, 0, 1, 1], [], []>} : vector<8x128xf32>, vector<128x128xf32>, vector<8x128xf32> -> vector<8x128xf32>
    %c0_96 = arith.constant 0 : index
    %c0_97 = arith.constant 0 : index
    %156 = vector.load %arg9[%c0_96, %c0_97] : memref<1x128xf32, #tpu.memory_space<vmem>>, vector<1x128xf32>
    %157 = vector.broadcast %156 : vector<1x128xf32> to vector<8x128xf32>
    %158 = arith.addf %155, %157 : vector<8x128xf32>
    %c0_98 = arith.constant 0 : index
    %c0_99 = arith.constant 0 : index
    %159 = vector.load %arg10[%c0_98, %c0_99] : memref<8x128xf32, #tpu.memory_space<vmem>>, vector<8x128xf32>
    tpu.vector_store %arg10[%c0_98, %c0_99], %158 {strides = array<i32>} : memref<8x128xf32, #tpu.memory_space<vmem>>, vector<8x128xf32>,
    return
  }
  func.func @transform_0(%arg0: i32) -> (i32, i32, i32) {
    %c0_i32 = arith.constant 0 : i32
    %c0_i32_0 = arith.constant 0 : i32
    %c0_i32_1 = arith.constant 0 : i32
    return %c0_i32, %arg0, %c0_i32_0 : i32, i32, i32
  }
  func.func @transform_1(%arg0: i32) -> (i32, i32) {
    %c0_i32 = arith.constant 0 : i32
    %c0_i32_0 = arith.constant 0 : i32
    %c0_i32_1 = arith.constant 0 : i32
    return %c0_i32, %c0_i32_0 : i32, i32
  }
  func.func @transform_2(%arg0: i32) -> (i32, i32) {
    %c0_i32 = arith.constant 0 : i32
    %c0_i32_0 = arith.constant 0 : i32
    %c0_i32_1 = arith.constant 0 : i32
    return %c0_i32, %c0_i32_0 : i32, i32
  }
  func.func @transform_3(%arg0: i32) -> (i32, i32, i32) {
    %c0_i32 = arith.constant 0 : i32
    %c0_i32_0 = arith.constant 0 : i32
    %c0_i32_1 = arith.constant 0 : i32
    %c0_i32_2 = arith.constant 0 : i32
    return %c0_i32, %c0_i32_0, %c0_i32_1 : i32, i32, i32
  }
  func.func @transform_4(%arg0: i32) -> (i32, i32) {
    %c0_i32 = arith.constant 0 : i32
    %c0_i32_0 = arith.constant 0 : i32
    %c0_i32_1 = arith.constant 0 : i32
    return %c0_i32, %c0_i32_0 : i32, i32
  }
  func.func @transform_5(%arg0: i32) -> (i32, i32) {
    %c0_i32 = arith.constant 0 : i32
    %c0_i32_0 = arith.constant 0 : i32
    %c0_i32_1 = arith.constant 0 : i32
    return %c0_i32, %c0_i32_0 : i32, i32
  }
  func.func @transform_6(%arg0: i32) -> (i32, i32) {
    %c0_i32 = arith.constant 0 : i32
    %c0_i32_0 = arith.constant 0 : i32
    %c0_i32_1 = arith.constant 0 : i32
    return %c0_i32, %c0_i32_0 : i32, i32
  }
  func.func @transform_7(%arg0: i32) -> (i32, i32) {
    %c0_i32 = arith.constant 0 : i32
    %c0_i32_0 = arith.constant 0 : i32
    %c0_i32_1 = arith.constant 0 : i32
    return %c0_i32, %c0_i32_0 : i32, i32
  }
  func.func @transform_8(%arg0: i32) -> (i32, i32) {
    %c0_i32 = arith.constant 0 : i32
    %c0_i32_0 = arith.constant 0 : i32
    %c0_i32_1 = arith.constant 0 : i32
    return %c0_i32, %c0_i32_0 : i32, i32
  }
  func.func @transform_9(%arg0: i32) -> (i32, i32) {
    %c0_i32 = arith.constant 0 : i32
    %c0_i32_0 = arith.constant 0 : i32
    return %arg0, %c0_i32 : i32, i32
  }
}

</mosaic_0001>

<bundles_post_ra>
// kernel: forward.2
= control target key start
LH: loop header
LB: loop body
LE: loop exit
PB: predicated region body
PF: predicated region fallthrough
CT: control target
= control target key end

     0   :  { %s4018_s1 = inlined_call_operand.vmem [shape: f32[128,128], index: 1, kind: input, shape index: {}]   ;;  %s4019_s0 = inlined_call_operand.vmem [shape: f32[4,392,128], index: 0, kind: input, shape index: {}]   ;;  %s4020_s2 = inlined_call_operand.vmem [shape: f32[1,128], index: 2, kind: input, shape index: {}]   ;;  %s4021_s3 = inlined_call_operand.vmem [shape: f32[392,128], index: 3, kind: output, shape index: {}]  }
   0x1   :  { %v225_v0 = vld [vmem:[%s4018_s1 + $0x78] sm:$0xff]  ;;  %v224_v1 = vld [vmem:[%s4018_s1 + $0x70] sm:$0xff]  ;;  %v223_v2 = vld [vmem:[%s4018_s1 + $0x68] sm:$0xff] }
   0x2   :  { %1887 = vmatprep.subr.mxu0 %v225_v0  ;;  %2213 = vmatprep.subr.mxu1 %v225_v0  ;;  %v222_v3 = vld [vmem:[%s4018_s1 + $0x60] sm:$0xff]  ;;  %v221_v4 = vld [vmem:[%s4018_s1 + $0x58] sm:$0xff]  ;;  %v220_v5 = vld [vmem:[%s4018_s1 + $0x50] sm:$0xff] }
   0x3   :  { %1888 = vmatpush3.msra.mxu0 %v225_v0  ;;  %2229 = vmatpush3.msra.mxu1 %v225_v0  ;;  %v219_v6 = vld [vmem:[%s4018_s1 + $0x48] sm:$0xff]  ;;  %v218_v7 = vld [vmem:[%s4018_s1 + $0x40] sm:$0xff]  ;;  %v217_v8 = vld [vmem:[%s4018_s1 + $0x38] sm:$0xff] }
   0x4   :  { %1889 = vmatprep.subr.mxu0 %v224_v1  ;;  %2214 = vmatprep.subr.mxu1 %v224_v1  ;;  %v216_v9 = vld [vmem:[%s4018_s1 + $0x30] sm:$0xff]  ;;  %v215_v10 = vld [vmem:[%s4018_s1 + $0x28] sm:$0xff]  ;;  %v214_v11 = vld [vmem:[%s4018_s1 + $0x20] sm:$0xff] }
   0x5   :  { %1890 = vmatpush3.msra.mxu0 %v224_v1  ;;  %2230 = vmatpush3.msra.mxu1 %v224_v1  ;;  %v213_v12 = vld [vmem:[%s4018_s1 + $0x18] sm:$0xff]  ;;  %v212_v13 = vld [vmem:[%s4018_s1 + $0x10] sm:$0xff]  ;;  %v211_v14 = vld [vmem:[%s4018_s1 + $0x8] sm:$0xff] }
   0x6   :  { %1891 = vmatprep.subr.mxu0 %v223_v2  ;;  %2215 = vmatprep.subr.mxu1 %v223_v2  ;;  %v210_v15 = vld [vmem:[%s4018_s1] sm:$0xff]  ;;  %v112_v17 = vld [vmem:[%s4019_s0 + $0x310] sm:$0xff]  ;;  %v15_v18 = vld [vmem:[%s4019_s0 + $0x8] sm:$0xff] }
   0x7   :  { %1892 = vmatpush3.msra.mxu0 %v223_v2  ;;  %2231 = vmatpush3.msra.mxu1 %v223_v2  ;;  %v14_v16 = vld [vmem:[%s4019_s0] sm:$0xff]  ;;  %v113_v19 = vld [vmem:[%s4019_s0 + $0x318] sm:$0xff]  ;;  %v16_v20 = vld [vmem:[%s4019_s0 + $0x10] sm:$0xff] }
   0x8   :  { %1893 = vmatprep.subr.mxu0 %v222_v3  ;;  %2216 = vmatprep.subr.mxu1 %v222_v3  ;;  %v114_v21 = vld [vmem:[%s4019_s0 + $0x320] sm:$0xff]  ;;  %v17_v22 = vld [vmem:[%s4019_s0 + $0x18] sm:$0xff]  ;;  %v115_v23 = vld [vmem:[%s4019_s0 + $0x328] sm:$0xff] }
   0x9   :  { %1894 = vmatpush3.msra.mxu0 %v222_v3  ;;  %2232 = vmatpush3.msra.mxu1 %v222_v3  ;;  %v18_v24 = vld [vmem:[%s4019_s0 + $0x20] sm:$0xff]  ;;  %v116_v25 = vld [vmem:[%s4019_s0 + $0x330] sm:$0xff]  ;;  %v19_v26 = vld [vmem:[%s4019_s0 + $0x28] sm:$0xff] }
   0xa   :  { %1895 = vmatprep.subr.mxu0 %v221_v4  ;;  %2217 = vmatprep.subr.mxu1 %v221_v4  ;;  %v117_v27 = vld [vmem:[%s4019_s0 + $0x338] sm:$0xff]  ;;  %v20_v28 = vld [vmem:[%s4019_s0 + $0x30] sm:$0xff]  ;;  %v118_v29 = vld [vmem:[%s4019_s0 + $0x340] sm:$0xff] }
   0xb   :  { %1896 = vmatpush3.msra.mxu0 %v221_v4  ;;  %2233 = vmatpush3.msra.mxu1 %v221_v4  ;;  %v21_v30 = vld [vmem:[%s4019_s0 + $0x38] sm:$0xff]  ;;  %v119_v31 = vld [vmem:[%s4019_s0 + $0x348] sm:$0xff]  ;;  %v22_v32 = vld [vmem:[%s4019_s0 + $0x40] sm:$0xff] }
   0xc   :  { %1897 = vmatprep.subr.mxu0 %v220_v5  ;;  %2218 = vmatprep.subr.mxu1 %v220_v5  ;;  %v120_v33 = vld [vmem:[%s4019_s0 + $0x350] sm:$0xff]  ;;  %v23_v34 = vld [vmem:[%s4019_s0 + $0x48] sm:$0xff]  ;;  %v121_v35 = vld [vmem:[%s4019_s0 + $0x358] sm:$0xff] }
   0xd   :  { %1898 = vmatpush3.msra.mxu0 %v220_v5  ;;  %2234 = vmatpush3.msra.mxu1 %v220_v5  ;;  %v24_v36 = vld [vmem:[%s4019_s0 + $0x50] sm:$0xff]  ;;  %v122_v37 = vld [vmem:[%s4019_s0 + $0x360] sm:$0xff]  ;;  %v25_v38 = vld [vmem:[%s4019_s0 + $0x58] sm:$0xff] }
   0xe   :  { %1899 = vmatprep.subr.mxu0 %v219_v6  ;;  %2219 = vmatprep.subr.mxu1 %v219_v6  ;;  %v123_v39 = vld [vmem:[%s4019_s0 + $0x368] sm:$0xff]  ;;  %v26_v40 = vld [vmem:[%s4019_s0 + $0x60] sm:$0xff]  ;;  %v124_v41 = vld [vmem:[%s4019_s0 + $0x370] sm:$0xff] }
   0xf   :  { %1900 = vmatpush3.msra.mxu0 %v219_v6  ;;  %2235 = vmatpush3.msra.mxu1 %v219_v6  ;;  %v27_v42 = vld [vmem:[%s4019_s0 + $0x68] sm:$0xff]  ;;  %v125_v43 = vld [vmem:[%s4019_s0 + $0x378] sm:$0xff]  ;;  %v28_v44 = vld [vmem:[%s4019_s0 + $0x70] sm:$0xff] }
  0x10   :  { %1901 = vmatprep.subr.mxu0 %v218_v7  ;;  %2220 = vmatprep.subr.mxu1 %v218_v7  ;;  %v126_v45 = vld [vmem:[%s4019_s0 + $0x380] sm:$0xff]  ;;  %v29_v46 = vld [vmem:[%s4019_s0 + $0x78] sm:$0xff]  ;;  %v127_v47 = vld [vmem:[%s4019_s0 + $0x388] sm:$0xff] }
  0x11   :  { %1902 = vmatpush3.msra.mxu0 %v218_v7  ;;  %2236 = vmatpush3.msra.mxu1 %v218_v7  ;;  %v30_v48 = vld [vmem:[%s4019_s0 + $0x80] sm:$0xff]  ;;  %v128_v49 = vld [vmem:[%s4019_s0 + $0x390] sm:$0xff]  ;;  %v31_v50 = vld [vmem:[%s4019_s0 + $0x88] sm:$0xff] }
  0x12   :  { %1903 = vmatprep.subr.mxu0 %v217_v8  ;;  %2221 = vmatprep.subr.mxu1 %v217_v8  ;;  %v129_v51 = vld [vmem:[%s4019_s0 + $0x398] sm:$0xff]  ;;  %v32_v52 = vld [vmem:[%s4019_s0 + $0x90] sm:$0xff]  ;;  %v130_v53 = vld [vmem:[%s4019_s0 + $0x3a0] sm:$0xff] }
  0x13   :  { %1904 = vmatpush3.msra.mxu0 %v217_v8  ;;  %2237 = vmatpush3.msra.mxu1 %v217_v8  ;;  %v33_v54 = vld [vmem:[%s4019_s0 + $0x98] sm:$0xff]  ;;  %v131_v55 = vld [vmem:[%s4019_s0 + $0x3a8] sm:$0xff]  ;;  %v34_v56 = vld [vmem:[%s4019_s0 + $0xa0] sm:$0xff] }
  0x14   :  { %1905 = vmatprep.subr.mxu0 %v216_v9  ;;  %2222 = vmatprep.subr.mxu1 %v216_v9  ;;  %v132_v57 = vld [vmem:[%s4019_s0 + $0x3b0] sm:$0xff]  ;;  %v35_v58 = vld [vmem:[%s4019_s0 + $0xa8] sm:$0xff]  ;;  %v133_v59 = vld [vmem:[%s4019_s0 + $0x3b8] sm:$0xff] }
  0x15   :  { %1906 = vmatpush3.msra.mxu0 %v216_v9  ;;  %2238 = vmatpush3.msra.mxu1 %v216_v9  ;;  %v36_v60 = vld [vmem:[%s4019_s0 + $0xb0] sm:$0xff]  ;;  %v134_v61 = vld [vmem:[%s4019_s0 + $0x3c0] sm:$0xff]  ;;  %v37_v62 = vld [vmem:[%s4019_s0 + $0xb8] sm:$0xff] }
  0x16   :  { %1907 = vmatprep.subr.mxu0 %v215_v10  ;;  %2223 = vmatprep.subr.mxu1 %v215_v10  ;;  %v135_v63 = vld [vmem:[%s4019_s0 + $0x3c8] sm:$0xff]  ;;  %v38_v0 = vld [vmem:[%s4019_s0 + $0xc0] sm:$0xff]  ;;  %v136_v1 = vld [vmem:[%s4019_s0 + $0x3d0] sm:$0xff] }
  0x17   :  { %1908 = vmatpush3.msra.mxu0 %v215_v10  ;;  %2239 = vmatpush3.msra.mxu1 %v215_v10  ;;  %v39_v2 = vld [vmem:[%s4019_s0 + $0xc8] sm:$0xff]  ;;  %v137_v3 = vld [vmem:[%s4019_s0 + $0x3d8] sm:$0xff]  ;;  %v40_v4 = vld [vmem:[%s4019_s0 + $0xd0] sm:$0xff] }
  0x18   :  { %1909 = vmatprep.subr.mxu0 %v214_v11  ;;  %2224 = vmatprep.subr.mxu1 %v214_v11  ;;  %v138_v5 = vld [vmem:[%s4019_s0 + $0x3e0] sm:$0xff]  ;;  %v41_v6 = vld [vmem:[%s4019_s0 + $0xd8] sm:$0xff]  ;;  %v139_v7 = vld [vmem:[%s4019_s0 + $0x3e8] sm:$0xff] }
  0x19   :  { %1910 = vmatpush3.msra.mxu0 %v214_v11  ;;  %2240 = vmatpush3.msra.mxu1 %v214_v11  ;;  %v42_v8 = vld [vmem:[%s4019_s0 + $0xe0] sm:$0xff]  ;;  %v140_v9 = vld [vmem:[%s4019_s0 + $0x3f0] sm:$0xff]  ;;  %v43_v10 = vld [vmem:[%s4019_s0 + $0xe8] sm:$0xff] }
  0x1a   :  { %1911 = vmatprep.subr.mxu0 %v213_v12  ;;  %2225 = vmatprep.subr.mxu1 %v213_v12  ;;  %v141_v11 = vld [vmem:[%s4019_s0 + $0x3f8] sm:$0xff] }
  0x1b   :  { %1912 = vmatpush3.msra.mxu0 %v213_v12  ;;  %2241 = vmatpush3.msra.mxu1 %v213_v12  ;;  %v44_v12 = vld [vmem:[%s4019_s0 + $0xf0] sm:$0xff] }
  0x1c   :  { %1913 = vmatprep.subr.mxu0 %v212_v13  ;;  %2226 = vmatprep.subr.mxu1 %v212_v13 }
  0x1d   :  { %1914 = vmatpush3.msra.mxu0 %v212_v13  ;;  %2242 = vmatpush3.msra.mxu1 %v212_v13  ;;  %v142_v13 = vld [vmem:[%s4019_s0 + $0x400] sm:$0xff] }
  0x1e   :  { %1915 = vmatprep.subr.mxu0 %v211_v14  ;;  %2227 = vmatprep.subr.mxu1 %v211_v14 }
  0x1f   :  { %1916 = vmatpush3.msra.mxu0 %v211_v14  ;;  %2243 = vmatpush3.msra.mxu1 %v211_v14  ;;  %v45_v14 = vld [vmem:[%s4019_s0 + $0xf8] sm:$0xff] }
  0x20   :  { %1917 = vmatprep.subr.mxu0 %v210_v15  ;;  %2228 = vmatprep.subr.mxu1 %v210_v15 }
  0x21   :  { %1918 = vmatpush3.msra.mxu0 %v210_v15  ;;  %2244 = vmatpush3.msra.mxu1 %v210_v15  ;;  %v143_v15 = vld [vmem:[%s4019_s0 + $0x408] sm:$0xff] }
  0x22   :  { %1919 = vmatprep.mubr.f32.mxu0 %v14_v16  ;;  %2066 = vmatprep.mubr.f32.mxu1 %v112_v17  ;;  %v46_v16 = vld [vmem:[%s4019_s0 + $0x100] sm:$0xff]  ;;  %v144_v17 = vld [vmem:[%s4019_s0 + $0x410] sm:$0xff] }
  0x23   :  { %1920 = vmatmul.mubr.f32.vlgmr.msra.gmra.mxu0 %v15_v18  ;;  %2067 = vmatmul.mubr.f32.vlgmr.msra.gmra.mxu1 %v113_v19  ;;  %v47_v18 = vld [vmem:[%s4019_s0 + $0x108] sm:$0xff]  ;;  %v145_v19 = vld [vmem:[%s4019_s0 + $0x418] sm:$0xff] }
  0x24   :  { %1922 = vmatprep.mubr.f32.mxu0 %v16_v20  ;;  %2069 = vmatprep.mubr.f32.mxu1 %v114_v21  ;;  %v48_v20 = vld [vmem:[%s4019_s0 + $0x110] sm:$0xff]  ;;  %v146_v21 = vld [vmem:[%s4019_s0 + $0x420] sm:$0xff] }
  0x27   :  { %1923 = vmatmul.mubr.f32.gmra.mxu0 %v17_v22  ;;  %2070 = vmatmul.mubr.f32.gmra.mxu1 %v115_v23  ;;  %v49_v22 = vld [vmem:[%s4019_s0 + $0x118] sm:$0xff]  ;;  %v147_v23 = vld [vmem:[%s4019_s0 + $0x428] sm:$0xff] }
  0x28   :  { %1925 = vmatprep.mubr.f32.mxu0 %v18_v24  ;;  %2072 = vmatprep.mubr.f32.mxu1 %v116_v25  ;;  %v50_v24 = vld [vmem:[%s4019_s0 + $0x120] sm:$0xff]  ;;  %v148_v25 = vld [vmem:[%s4019_s0 + $0x430] sm:$0xff] }
  0x2b   :  { %1926 = vmatmul.mubr.f32.gmra.mxu0 %v19_v26  ;;  %2073 = vmatmul.mubr.f32.gmra.mxu1 %v117_v27  ;;  %v51_v26 = vld [vmem:[%s4019_s0 + $0x128] sm:$0xff]  ;;  %v149_v27 = vld [vmem:[%s4019_s0 + $0x438] sm:$0xff] }
  0x2c   :  { %1928 = vmatprep.mubr.f32.mxu0 %v20_v28  ;;  %2075 = vmatprep.mubr.f32.mxu1 %v118_v29  ;;  %v52_v28 = vld [vmem:[%s4019_s0 + $0x130] sm:$0xff]  ;;  %v150_v29 = vld [vmem:[%s4019_s0 + $0x440] sm:$0xff] }
  0x2f   :  { %1929 = vmatmul.mubr.f32.gmra.mxu0 %v21_v30  ;;  %2076 = vmatmul.mubr.f32.gmra.mxu1 %v119_v31  ;;  %v53_v30 = vld [vmem:[%s4019_s0 + $0x138] sm:$0xff]  ;;  %v151_v31 = vld [vmem:[%s4019_s0 + $0x448] sm:$0xff] }
  0x30   :  { %1931 = vmatprep.mubr.f32.mxu0 %v22_v32  ;;  %2078 = vmatprep.mubr.f32.mxu1 %v120_v33  ;;  %v54_v32 = vld [vmem:[%s4019_s0 + $0x140] sm:$0xff]  ;;  %v152_v33 = vld [vmem:[%s4019_s0 + $0x450] sm:$0xff] }
  0x33   :  { %1932 = vmatmul.mubr.f32.gmra.mxu0 %v23_v34  ;;  %2079 = vmatmul.mubr.f32.gmra.mxu1 %v121_v35  ;;  %v55_v34 = vld [vmem:[%s4019_s0 + $0x148] sm:$0xff]  ;;  %v153_v35 = vld [vmem:[%s4019_s0 + $0x458] sm:$0xff] }
  0x34   :  { %1934 = vmatprep.mubr.f32.mxu0 %v24_v36  ;;  %2081 = vmatprep.mubr.f32.mxu1 %v122_v37  ;;  %v56_v36 = vld [vmem:[%s4019_s0 + $0x150] sm:$0xff]  ;;  %v154_v37 = vld [vmem:[%s4019_s0 + $0x460] sm:$0xff] }
  0x37   :  { %1935 = vmatmul.mubr.f32.gmra.mxu0 %v25_v38  ;;  %2082 = vmatmul.mubr.f32.gmra.mxu1 %v123_v39  ;;  %v57_v38 = vld [vmem:[%s4019_s0 + $0x158] sm:$0xff]  ;;  %v155_v39 = vld [vmem:[%s4019_s0 + $0x468] sm:$0xff] }
  0x38   :  { %1937 = vmatprep.mubr.f32.mxu0 %v26_v40  ;;  %2084 = vmatprep.mubr.f32.mxu1 %v124_v41  ;;  %v58_v40 = vld [vmem:[%s4019_s0 + $0x160] sm:$0xff]  ;;  %v156_v41 = vld [vmem:[%s4019_s0 + $0x470] sm:$0xff] }
  0x3b   :  { %1938 = vmatmul.mubr.f32.gmra.mxu0 %v27_v42  ;;  %2085 = vmatmul.mubr.f32.gmra.mxu1 %v125_v43  ;;  %v59_v42 = vld [vmem:[%s4019_s0 + $0x168] sm:$0xff]  ;;  %v157_v43 = vld [vmem:[%s4019_s0 + $0x478] sm:$0xff] }
  0x3c   :  { %1940 = vmatprep.mubr.f32.mxu0 %v28_v44  ;;  %2087 = vmatprep.mubr.f32.mxu1 %v126_v45  ;;  %v60_v44 = vld [vmem:[%s4019_s0 + $0x170] sm:$0xff]  ;;  %v158_v45 = vld [vmem:[%s4019_s0 + $0x480] sm:$0xff] }
  0x3f   :  { %1941 = vmatmul.mubr.f32.gmra.mxu0 %v29_v46  ;;  %2088 = vmatmul.mubr.f32.gmra.mxu1 %v127_v47  ;;  %v61_v46 = vld [vmem:[%s4019_s0 + $0x178] sm:$0xff]  ;;  %v159_v47 = vld [vmem:[%s4019_s0 + $0x488] sm:$0xff] }
  0x40   :  { %1943 = vmatprep.mubr.f32.mxu0 %v30_v48  ;;  %2090 = vmatprep.mubr.f32.mxu1 %v128_v49  ;;  %v62_v48 = vld [vmem:[%s4019_s0 + $0x180] sm:$0xff]  ;;  %v160_v49 = vld [vmem:[%s4019_s0 + $0x490] sm:$0xff] }
  0x43   :  { %1944 = vmatmul.mubr.f32.gmra.mxu0 %v31_v50  ;;  %2091 = vmatmul.mubr.f32.gmra.mxu1 %v129_v51  ;;  %v63_v50 = vld [vmem:[%s4019_s0 + $0x188] sm:$0xff]  ;;  %v161_v51 = vld [vmem:[%s4019_s0 + $0x498] sm:$0xff] }
  0x44   :  { %1946 = vmatprep.mubr.f32.mxu0 %v32_v52  ;;  %2093 = vmatprep.mubr.f32.mxu1 %v130_v53  ;;  %v64_v52 = vld [vmem:[%s4019_s0 + $0x190] sm:$0xff]  ;;  %v162_v53 = vld [vmem:[%s4019_s0 + $0x4a0] sm:$0xff] }
  0x47   :  { %1947 = vmatmul.mubr.f32.gmra.mxu0 %v33_v54  ;;  %2094 = vmatmul.mubr.f32.gmra.mxu1 %v131_v55  ;;  %v65_v54 = vld [vmem:[%s4019_s0 + $0x198] sm:$0xff]  ;;  %v163_v55 = vld [vmem:[%s4019_s0 + $0x4a8] sm:$0xff] }
  0x48   :  { %1949 = vmatprep.mubr.f32.mxu0 %v34_v56  ;;  %2096 = vmatprep.mubr.f32.mxu1 %v132_v57  ;;  %v66_v56 = vld [vmem:[%s4019_s0 + $0x1a0] sm:$0xff]  ;;  %v164_v57 = vld [vmem:[%s4019_s0 + $0x4b0] sm:$0xff] }
  0x4b   :  { %1950 = vmatmul.mubr.f32.gmra.mxu0 %v35_v58  ;;  %2097 = vmatmul.mubr.f32.gmra.mxu1 %v133_v59  ;;  %v67_v58 = vld [vmem:[%s4019_s0 + $0x1a8] sm:$0xff]  ;;  %v165_v59 = vld [vmem:[%s4019_s0 + $0x4b8] sm:$0xff] }
  0x4c   :  { %1952 = vmatprep.mubr.f32.mxu0 %v36_v60  ;;  %2099 = vmatprep.mubr.f32.mxu1 %v134_v61  ;;  %v68_v60 = vld [vmem:[%s4019_s0 + $0x1b0] sm:$0xff]  ;;  %v166_v61 = vld [vmem:[%s4019_s0 + $0x4c0] sm:$0xff] }
  0x4f   :  { %1953 = vmatmul.mubr.f32.gmra.mxu0 %v37_v62  ;;  %2100 = vmatmul.mubr.f32.gmra.mxu1 %v135_v63  ;;  %v69_v62 = vld [vmem:[%s4019_s0 + $0x1b8] sm:$0xff]  ;;  %v167_v63 = vld [vmem:[%s4019_s0 + $0x4c8] sm:$0xff] }
  0x50   :  { %1955 = vmatprep.mubr.f32.mxu0 %v38_v0  ;;  %2102 = vmatprep.mubr.f32.mxu1 %v136_v1  ;;  %v70_v0 = vld [vmem:[%s4019_s0 + $0x1c0] sm:$0xff]  ;;  %v168_v1 = vld [vmem:[%s4019_s0 + $0x4d0] sm:$0xff] }
  0x53   :  { %1956 = vmatmul.mubr.f32.gmra.mxu0 %v39_v2  ;;  %2103 = vmatmul.mubr.f32.gmra.mxu1 %v137_v3  ;;  %v71_v2 = vld [vmem:[%s4019_s0 + $0x1c8] sm:$0xff]  ;;  %v169_v3 = vld [vmem:[%s4019_s0 + $0x4d8] sm:$0xff] }
  0x54   :  { %1958 = vmatprep.mubr.f32.mxu0 %v40_v4  ;;  %2105 = vmatprep.mubr.f32.mxu1 %v138_v5  ;;  %v72_v4 = vld [vmem:[%s4019_s0 + $0x1d0] sm:$0xff]  ;;  %v170_v5 = vld [vmem:[%s4019_s0 + $0x4e0] sm:$0xff] }
  0x57   :  { %1959 = vmatmul.mubr.f32.gmra.mxu0 %v41_v6  ;;  %2106 = vmatmul.mubr.f32.gmra.mxu1 %v139_v7  ;;  %v73_v6 = vld [vmem:[%s4019_s0 + $0x1d8] sm:$0xff]  ;;  %v171_v7 = vld [vmem:[%s4019_s0 + $0x4e8] sm:$0xff] }
  0x58   :  { %1961 = vmatprep.mubr.f32.mxu0 %v42_v8  ;;  %2108 = vmatprep.mubr.f32.mxu1 %v140_v9  ;;  %v74_v8 = vld [vmem:[%s4019_s0 + $0x1e0] sm:$0xff]  ;;  %v172_v9 = vld [vmem:[%s4019_s0 + $0x4f0] sm:$0xff] }
  0x5b   :  { %1962 = vmatmul.mubr.f32.gmra.mxu0 %v43_v10  ;;  %2109 = vmatmul.mubr.f32.gmra.mxu1 %v141_v11  ;;  %v75_v10 = vld [vmem:[%s4019_s0 + $0x1e8] sm:$0xff]  ;;  %v173_v11 = vld [vmem:[%s4019_s0 + $0x4f8] sm:$0xff] }
  0x5c   :  { %1964 = vmatprep.mubr.f32.mxu0 %v44_v12  ;;  %2111 = vmatprep.mubr.f32.mxu1 %v142_v13  ;;  %v76_v12 = vld [vmem:[%s4019_s0 + $0x1f0] sm:$0xff]  ;;  %v174_v13 = vld [vmem:[%s4019_s0 + $0x500] sm:$0xff] }
  0x5f   :  { %1965 = vmatmul.mubr.f32.gmra.mxu0 %v45_v14  ;;  %2112 = vmatmul.mubr.f32.gmra.mxu1 %v143_v15  ;;  %v77_v14 = vld [vmem:[%s4019_s0 + $0x1f8] sm:$0xff]  ;;  %v175_v15 = vld [vmem:[%s4019_s0 + $0x508] sm:$0xff] }
  0x60   :  { %1967 = vmatprep.mubr.f32.mxu0 %v46_v16  ;;  %2114 = vmatprep.mubr.f32.mxu1 %v144_v17  ;;  %v78_v16 = vld [vmem:[%s4019_s0 + $0x200] sm:$0xff]  ;;  %v176_v17 = vld [vmem:[%s4019_s0 + $0x510] sm:$0xff] }
  0x63   :  { %1968 = vmatmul.mubr.f32.gmra.mxu0 %v47_v18  ;;  %2115 = vmatmul.mubr.f32.gmra.mxu1 %v145_v19  ;;  %v79_v18 = vld [vmem:[%s4019_s0 + $0x208] sm:$0xff]  ;;  %v177_v19 = vld [vmem:[%s4019_s0 + $0x518] sm:$0xff] }
  0x64   :  { %1970 = vmatprep.mubr.f32.mxu0 %v48_v20  ;;  %2117 = vmatprep.mubr.f32.mxu1 %v146_v21  ;;  %v80_v20 = vld [vmem:[%s4019_s0 + $0x210] sm:$0xff]  ;;  %v178_v21 = vld [vmem:[%s4019_s0 + $0x520] sm:$0xff] }
  0x67   :  { %1971 = vmatmul.mubr.f32.gmra.mxu0 %v49_v22  ;;  %2118 = vmatmul.mubr.f32.gmra.mxu1 %v147_v23  ;;  %v81_v22 = vld [vmem:[%s4019_s0 + $0x218] sm:$0xff]  ;;  %v179_v23 = vld [vmem:[%s4019_s0 + $0x528] sm:$0xff] }
  0x68   :  { %1973 = vmatprep.mubr.f32.mxu0 %v50_v24  ;;  %2120 = vmatprep.mubr.f32.mxu1 %v148_v25  ;;  %v82_v24 = vld [vmem:[%s4019_s0 + $0x220] sm:$0xff]  ;;  %v180_v25 = vld [vmem:[%s4019_s0 + $0x530] sm:$0xff] }
  0x6b   :  { %1974 = vmatmul.mubr.f32.gmra.mxu0 %v51_v26  ;;  %2121 = vmatmul.mubr.f32.gmra.mxu1 %v149_v27  ;;  %v83_v26 = vld [vmem:[%s4019_s0 + $0x228] sm:$0xff]  ;;  %v181_v27 = vld [vmem:[%s4019_s0 + $0x538] sm:$0xff] }
  0x6c   :  { %1976 = vmatprep.mubr.f32.mxu0 %v52_v28  ;;  %2123 = vmatprep.mubr.f32.mxu1 %v150_v29  ;;  %v84_v28 = vld [vmem:[%s4019_s0 + $0x230] sm:$0xff]  ;;  %v182_v29 = vld [vmem:[%s4019_s0 + $0x540] sm:$0xff] }
  0x6f   :  { %1977 = vmatmul.mubr.f32.gmra.mxu0 %v53_v30  ;;  %2124 = vmatmul.mubr.f32.gmra.mxu1 %v151_v31  ;;  %v85_v30 = vld [vmem:[%s4019_s0 + $0x238] sm:$0xff]  ;;  %v183_v31 = vld [vmem:[%s4019_s0 + $0x548] sm:$0xff] }
  0x70   :  { %1979 = vmatprep.mubr.f32.mxu0 %v54_v32  ;;  %2126 = vmatprep.mubr.f32.mxu1 %v152_v33  ;;  %v86_v32 = vld [vmem:[%s4019_s0 + $0x240] sm:$0xff]  ;;  %v184_v33 = vld [vmem:[%s4019_s0 + $0x550] sm:$0xff] }
  0x73   :  { %1980 = vmatmul.mubr.f32.gmra.mxu0 %v55_v34  ;;  %2127 = vmatmul.mubr.f32.gmra.mxu1 %v153_v35  ;;  %v87_v34 = vld [vmem:[%s4019_s0 + $0x248] sm:$0xff]  ;;  %v185_v35 = vld [vmem:[%s4019_s0 + $0x558] sm:$0xff] }
  0x74   :  { %1982 = vmatprep.mubr.f32.mxu0 %v56_v36  ;;  %2129 = vmatprep.mubr.f32.mxu1 %v154_v37  ;;  %v88_v36 = vld [vmem:[%s4019_s0 + $0x250] sm:$0xff]  ;;  %v186_v37 = vld [vmem:[%s4019_s0 + $0x560] sm:$0xff] }
  0x77   :  { %1983 = vmatmul.mubr.f32.gmra.mxu0 %v57_v38  ;;  %2130 = vmatmul.mubr.f32.gmra.mxu1 %v155_v39  ;;  %v89_v38 = vld [vmem:[%s4019_s0 + $0x258] sm:$0xff]  ;;  %v187_v39 = vld [vmem:[%s4019_s0 + $0x568] sm:$0xff] }
  0x78   :  { %1985 = vmatprep.mubr.f32.mxu0 %v58_v40  ;;  %2132 = vmatprep.mubr.f32.mxu1 %v156_v41  ;;  %v90_v40 = vld [vmem:[%s4019_s0 + $0x260] sm:$0xff]  ;;  %v188_v41 = vld [vmem:[%s4019_s0 + $0x570] sm:$0xff] }
  0x7b   :  { %1986 = vmatmul.mubr.f32.gmra.mxu0 %v59_v42  ;;  %2133 = vmatmul.mubr.f32.gmra.mxu1 %v157_v43  ;;  %v91_v42 = vld [vmem:[%s4019_s0 + $0x268] sm:$0xff]  ;;  %v189_v43 = vld [vmem:[%s4019_s0 + $0x578] sm:$0xff] }
  0x7c   :  { %1988 = vmatprep.mubr.f32.mxu0 %v60_v44  ;;  %2135 = vmatprep.mubr.f32.mxu1 %v158_v45  ;;  %v92_v44 = vld [vmem:[%s4019_s0 + $0x270] sm:$0xff]  ;;  %v190_v45 = vld [vmem:[%s4019_s0 + $0x580] sm:$0xff] }
  0x7f   :  { %1989 = vmatmul.mubr.f32.gmra.mxu0 %v61_v46  ;;  %2136 = vmatmul.mubr.f32.gmra.mxu1 %v159_v47  ;;  %v93_v46 = vld [vmem:[%s4019_s0 + $0x278] sm:$0xff]  ;;  %v191_v47 = vld [vmem:[%s4019_s0 + $0x588] sm:$0xff] }
  0x80   :  { %1991 = vmatprep.mubr.f32.mxu0 %v62_v48  ;;  %2138 = vmatprep.mubr.f32.mxu1 %v160_v49  ;;  %v94_v48 = vld [vmem:[%s4019_s0 + $0x280] sm:$0xff]  ;;  %v192_v49 = vld [vmem:[%s4019_s0 + $0x590] sm:$0xff] }
  0x83   :  { %1992 = vmatmul.mubr.f32.gmra.mxu0 %v63_v50  ;;  %2139 = vmatmul.mubr.f32.gmra.mxu1 %v161_v51  ;;  %v95_v50 = vld [vmem:[%s4019_s0 + $0x288] sm:$0xff]  ;;  %v193_v51 = vld [vmem:[%s4019_s0 + $0x598] sm:$0xff] }
  0x84   :  { %1994 = vmatprep.mubr.f32.mxu0 %v64_v52  ;;  %2141 = vmatprep.mubr.f32.mxu1 %v162_v53  ;;  %v96_v52 = vld [vmem:[%s4019_s0 + $0x290] sm:$0xff]  ;;  %v194_v53 = vld [vmem:[%s4019_s0 + $0x5a0] sm:$0xff] }
  0x87   :  { %1995 = vmatmul.mubr.f32.gmra.mxu0 %v65_v54  ;;  %2142 = vmatmul.mubr.f32.gmra.mxu1 %v163_v55  ;;  %v97_v54 = vld [vmem:[%s4019_s0 + $0x298] sm:$0xff]  ;;  %v195_v55 = vld [vmem:[%s4019_s0 + $0x5a8] sm:$0xff] }
  0x88   :  { %1997 = vmatprep.mubr.f32.mxu0 %v66_v56  ;;  %2144 = vmatprep.mubr.f32.mxu1 %v164_v57  ;;  %v98_v56 = vld [vmem:[%s4019_s0 + $0x2a0] sm:$0xff]  ;;  %v196_v57 = vld [vmem:[%s4019_s0 + $0x5b0] sm:$0xff] }
  0x8b   :  { %1998 = vmatmul.mubr.f32.gmra.mxu0 %v67_v58  ;;  %2145 = vmatmul.mubr.f32.gmra.mxu1 %v165_v59  ;;  %v99_v58 = vld [vmem:[%s4019_s0 + $0x2a8] sm:$0xff]  ;;  %v197_v59 = vld [vmem:[%s4019_s0 + $0x5b8] sm:$0xff] }
  0x8c   :  { %2000 = vmatprep.mubr.f32.mxu0 %v68_v60  ;;  %2147 = vmatprep.mubr.f32.mxu1 %v166_v61  ;;  %v100_v60 = vld [vmem:[%s4019_s0 + $0x2b0] sm:$0xff]  ;;  %v198_v61 = vld [vmem:[%s4019_s0 + $0x5c0] sm:$0xff] }
  0x8f   :  { %2001 = vmatmul.mubr.f32.gmra.mxu0 %v69_v62  ;;  %2148 = vmatmul.mubr.f32.gmra.mxu1 %v167_v63  ;;  %v101_v62 = vld [vmem:[%s4019_s0 + $0x2b8] sm:$0xff]  ;;  %v199_v63 = vld [vmem:[%s4019_s0 + $0x5c8] sm:$0xff] }
  0x90   :  { %2003 = vmatprep.mubr.f32.mxu0 %v70_v0  ;;  %2150 = vmatprep.mubr.f32.mxu1 %v168_v1  ;;  %v102_v0 = vld [vmem:[%s4019_s0 + $0x2c0] sm:$0xff]  ;;  %v200_v1 = vld [vmem:[%s4019_s0 + $0x5d0] sm:$0xff] }
  0x93   :  { %2004 = vmatmul.mubr.f32.gmra.mxu0 %v71_v2  ;;  %2151 = vmatmul.mubr.f32.gmra.mxu1 %v169_v3  ;;  %v103_v2 = vld [vmem:[%s4019_s0 + $0x2c8] sm:$0xff]  ;;  %v201_v3 = vld [vmem:[%s4019_s0 + $0x5d8] sm:$0xff] }
  0x94   :  { %2006 = vmatprep.mubr.f32.mxu0 %v72_v4  ;;  %2153 = vmatprep.mubr.f32.mxu1 %v170_v5  ;;  %v104_v4 = vld [vmem:[%s4019_s0 + $0x2d0] sm:$0xff]  ;;  %v202_v5 = vld [vmem:[%s4019_s0 + $0x5e0] sm:$0xff] }
  0x97   :  { %2007 = vmatmul.mubr.f32.gmra.mxu0 %v73_v6  ;;  %2154 = vmatmul.mubr.f32.gmra.mxu1 %v171_v7  ;;  %v105_v6 = vld [vmem:[%s4019_s0 + $0x2d8] sm:$0xff]  ;;  %v203_v7 = vld [vmem:[%s4019_s0 + $0x5e8] sm:$0xff] }
  0x98   :  { %2009 = vmatprep.mubr.f32.mxu0 %v74_v8  ;;  %2156 = vmatprep.mubr.f32.mxu1 %v172_v9  ;;  %v106_v8 = vld [vmem:[%s4019_s0 + $0x2e0] sm:$0xff]  ;;  %v204_v9 = vld [vmem:[%s4019_s0 + $0x5f0] sm:$0xff] }
  0x9b   :  { %2010 = vmatmul.mubr.f32.gmra.mxu0 %v75_v10  ;;  %2157 = vmatmul.mubr.f32.gmra.mxu1 %v173_v11  ;;  %v107_v10 = vld [vmem:[%s4019_s0 + $0x2e8] sm:$0xff]  ;;  %v205_v11 = vld [vmem:[%s4019_s0 + $0x5f8] sm:$0xff] }
  0x9c   :  { %2012 = vmatprep.mubr.f32.mxu0 %v76_v12  ;;  %2159 = vmatprep.mubr.f32.mxu1 %v174_v13  ;;  %v108_v12 = vld [vmem:[%s4019_s0 + $0x2f0] sm:$0xff]  ;;  %v206_v13 = vld [vmem:[%s4019_s0 + $0x600] sm:$0xff] }
  0x9f   :  { %2013 = vmatmul.mubr.f32.gmra.mxu0 %v77_v14  ;;  %2160 = vmatmul.mubr.f32.gmra.mxu1 %v175_v15  ;;  %v109_v14 = vld [vmem:[%s4019_s0 + $0x2f8] sm:$0xff]  ;;  %v207_v15 = vld [vmem:[%s4019_s0 + $0x608] sm:$0xff] }
  0xa0   :  { %2015 = vmatprep.mubr.f32.mxu0 %v78_v16  ;;  %2162 = vmatprep.mubr.f32.mxu1 %v176_v17  ;;  %v110_v16 = vld [vmem:[%s4019_s0 + $0x300] sm:$0xff]  ;;  %v208_v17 = vld [vmem:[%s4019_s0 + $0x610] sm:$0xff] }
  0xa3   :  { %2016 = vmatmul.mubr.f32.gmra.mxu0 %v79_v18  ;;  %2163 = vmatmul.mubr.f32.gmra.mxu1 %v177_v19  ;;  %v111_v18 = vld [vmem:[%s4019_s0 + $0x308] sm:$0xff]  ;;  %v209_v19 = vld [vmem:[%s4019_s0 + $0x618] sm:$0xff] }
  0xa4   :  { %2018 = vmatprep.mubr.f32.mxu0 %v80_v20  ;;  %2165 = vmatprep.mubr.f32.mxu1 %v178_v21 }
  0xa7   :  { %2019 = vmatmul.mubr.f32.gmra.mxu0 %v81_v22  ;;  %2166 = vmatmul.mubr.f32.gmra.mxu1 %v179_v23 }
  0xa8   :  { %2021 = vmatprep.mubr.f32.mxu0 %v82_v24  ;;  %2168 = vmatprep.mubr.f32.mxu1 %v180_v25 }
  0xab   :  { %2022 = vmatmul.mubr.f32.gmra.mxu0 %v83_v26  ;;  %2169 = vmatmul.mubr.f32.gmra.mxu1 %v181_v27 }
  0xac   :  { %2024 = vmatprep.mubr.f32.mxu0 %v84_v28  ;;  %2171 = vmatprep.mubr.f32.mxu1 %v182_v29 }
  0xaf   :  { %2025 = vmatmul.mubr.f32.gmra.mxu0 %v85_v30  ;;  %2172 = vmatmul.mubr.f32.gmra.mxu1 %v183_v31 }
  0xb0   :  { %2027 = vmatprep.mubr.f32.mxu0 %v86_v32  ;;  %2174 = vmatprep.mubr.f32.mxu1 %v184_v33 }
  0xb3   :  { %2028 = vmatmul.mubr.f32.gmra.mxu0 %v87_v34  ;;  %2175 = vmatmul.mubr.f32.gmra.mxu1 %v185_v35 }
  0xb4   :  { %2030 = vmatprep.mubr.f32.mxu0 %v88_v36  ;;  %2177 = vmatprep.mubr.f32.mxu1 %v186_v37 }
  0xb7   :  { %2031 = vmatmul.mubr.f32.gmra.mxu0 %v89_v38  ;;  %2178 = vmatmul.mubr.f32.gmra.mxu1 %v187_v39 }
  0xb8   :  { %2033 = vmatprep.mubr.f32.mxu0 %v90_v40  ;;  %2180 = vmatprep.mubr.f32.mxu1 %v188_v41 }
  0xbb   :  { %2034 = vmatmul.mubr.f32.gmra.mxu0 %v91_v42  ;;  %2181 = vmatmul.mubr.f32.gmra.mxu1 %v189_v43 }
  0xbc   :  { %2036 = vmatprep.mubr.f32.mxu0 %v92_v44  ;;  %2183 = vmatprep.mubr.f32.mxu1 %v190_v45 }
  0xbf   :  { %2037 = vmatmul.mubr.f32.gmra.mxu0 %v93_v46  ;;  %2184 = vmatmul.mubr.f32.gmra.mxu1 %v191_v47 }
  0xc0   :  { %2039 = vmatprep.mubr.f32.mxu0 %v94_v48  ;;  %2186 = vmatprep.mubr.f32.mxu1 %v192_v49 }
  0xc3   :  { %2040 = vmatmul.mubr.f32.gmra.mxu0 %v95_v50  ;;  %2187 = vmatmul.mubr.f32.gmra.mxu1 %v193_v51 }
  0xc4   :  { %2042 = vmatprep.mubr.f32.mxu0 %v96_v52  ;;  %2189 = vmatprep.mubr.f32.mxu1 %v194_v53 }
  0xc7   :  { %2043 = vmatmul.mubr.f32.gmra.mxu0 %v97_v54  ;;  %2190 = vmatmul.mubr.f32.gmra.mxu1 %v195_v55 }
  0xc8   :  { %2045 = vmatprep.mubr.f32.mxu0 %v98_v56  ;;  %2192 = vmatprep.mubr.f32.mxu1 %v196_v57 }
  0xcb   :  { %2046 = vmatmul.mubr.f32.gmra.mxu0 %v99_v58  ;;  %2193 = vmatmul.mubr.f32.gmra.mxu1 %v197_v59 }
  0xcc   :  { %2048 = vmatprep.mubr.f32.mxu0 %v100_v60  ;;  %2195 = vmatprep.mubr.f32.mxu1 %v198_v61 }
  0xcf   :  { %2049 = vmatmul.mubr.f32.gmra.mxu0 %v101_v62  ;;  %2196 = vmatmul.mubr.f32.gmra.mxu1 %v199_v63 }
  0xd0   :  { %2051 = vmatprep.mubr.f32.mxu0 %v102_v0  ;;  %2198 = vmatprep.mubr.f32.mxu1 %v200_v1 }
  0xd3   :  { %2052 = vmatmul.mubr.f32.gmra.mxu0 %v103_v2  ;;  %2199 = vmatmul.mubr.f32.gmra.mxu1 %v201_v3 }
  0xd4   :  { %2054 = vmatprep.mubr.f32.mxu0 %v104_v4  ;;  %2201 = vmatprep.mubr.f32.mxu1 %v202_v5 }
  0xd7   :  { %2055 = vmatmul.mubr.f32.gmra.mxu0 %v105_v6  ;;  %2202 = vmatmul.mubr.f32.gmra.mxu1 %v203_v7 }
  0xd8   :  { %2057 = vmatprep.mubr.f32.mxu0 %v106_v8  ;;  %2204 = vmatprep.mubr.f32.mxu1 %v204_v9 }
  0xdb   :  { %2058 = vmatmul.mubr.f32.gmra.mxu0 %v107_v10  ;;  %2205 = vmatmul.mubr.f32.gmra.mxu1 %v205_v11 }
  0xdc   :  { %2060 = vmatprep.mubr.f32.mxu0 %v108_v12  ;;  %2207 = vmatprep.mubr.f32.mxu1 %v206_v13 }
  0xdf   :  { %2061 = vmatmul.mubr.f32.gmra.mxu0 %v109_v14  ;;  %2208 = vmatmul.mubr.f32.gmra.mxu1 %v207_v15 }
  0xe0   :  { %2063 = vmatprep.mubr.f32.mxu0 %v110_v16  ;;  %2210 = vmatprep.mubr.f32.mxu1 %v208_v17  ;;  %v3025_v16 = vld [vmem:[%s4020_s2] ss:$0 sm:$0xff] }
  0xe3   :  { %v2902_v20 = vpop.f32.mrf.mxu0  ;;  %2064 = vmatmul.mubr.f32.gmra.mxu0 %v111_v18  ;;  %v2904_v21 = vpop.f32.mrf.mxu1  ;;  %2211 = vmatmul.mubr.f32.gmra.mxu1 %v209_v19 }
  0xe5   :  { %v2906_v22 = vpop.f32.mrf.mxu0  ;;  %v2908_v23 = vpop.f32.mrf.mxu1 }
  0xe7   :  { %v2910_v24 = vpop.f32.mrf.mxu0  ;;  %v2912_v25 = vpop.f32.mrf.mxu1 }
  0xe9   :  { %v2914_v26 = vpop.f32.mrf.mxu0  ;;  %v2916_v27 = vpop.f32.mrf.mxu1 }
  0xeb   :  { %v2918_v28 = vpop.f32.mrf.mxu0  ;;  %v2920_v29 = vpop.f32.mrf.mxu1 }
  0xed   :  { %v2922_v30 = vpop.f32.mrf.mxu0  ;;  %v2924_v31 = vpop.f32.mrf.mxu1 }
  0xef   :  { %v2926_v32 = vpop.f32.mrf.mxu0  ;;  %v2928_v33 = vpop.f32.mrf.mxu1 }
  0xf1   :  { %v2930_v34 = vpop.f32.mrf.mxu0  ;;  %v2932_v35 = vpop.f32.mrf.mxu1 }
  0xf3   :  { %v2934_v36 = vpop.f32.mrf.mxu0  ;;  %v2936_v37 = vpop.f32.mrf.mxu1 }
  0xf5   :  { %v2938_v38 = vpop.f32.mrf.mxu0  ;;  %v2940_v39 = vpop.f32.mrf.mxu1 }
  0xf7   :  { %v2942_v40 = vpop.f32.mrf.mxu0  ;;  %v2944_v41 = vpop.f32.mrf.mxu1 }
  0xf9   :  { %v2946_v42 = vpop.f32.mrf.mxu0  ;;  %v2948_v43 = vpop.f32.mrf.mxu1 }
  0xfb   :  { %v2950_v44 = vpop.f32.mrf.mxu0  ;;  %v2952_v45 = vpop.f32.mrf.mxu1 }
  0xfd   :  { %v2954_v46 = vpop.f32.mrf.mxu0  ;;  %v2956_v47 = vpop.f32.mrf.mxu1 }
  0xff   :  { %v2958_v48 = vpop.f32.mrf.mxu0  ;;  %v2960_v49 = vpop.f32.mrf.mxu1 }
 0x101   :  { %v2962_v50 = vpop.f32.mrf.mxu0  ;;  %v2964_v51 = vpop.f32.mrf.mxu1 }
 0x103   :  { %v2966_v52 = vpop.f32.mrf.mxu0  ;;  %v2968_v53 = vpop.f32.mrf.mxu1 }
 0x105   :  { %v2970_v54 = vpop.f32.mrf.mxu0  ;;  %v2972_v55 = vpop.f32.mrf.mxu1 }
 0x107   :  { %v2974_v56 = vpop.f32.mrf.mxu0  ;;  %v2976_v57 = vpop.f32.mrf.mxu1 }
 0x109   :  { %v2978_v58 = vpop.f32.mrf.mxu0  ;;  %v2980_v59 = vpop.f32.mrf.mxu1 }
 0x10b   :  { %v2982_v60 = vpop.f32.mrf.mxu0  ;;  %v2984_v61 = vpop.f32.mrf.mxu1 }
 0x10d   :  { %v2986_v62 = vpop.f32.mrf.mxu0  ;;  %v2988_v63 = vpop.f32.mrf.mxu1 }
 0x10f   :  { %v2990_v0 = vpop.f32.mrf.mxu0  ;;  %v2992_v1 = vpop.f32.mrf.mxu1 }
 0x111   :  { %v2994_v2 = vpop.f32.mrf.mxu0  ;;  %v2996_v3 = vpop.f32.mrf.mxu1 }
 0x113   :  { %v2998_v4 = vpop.f32.mrf.mxu0  ;;  %v3000_v5 = vpop.f32.mrf.mxu1 }
 0x115   :  { %v3002_v6 = vpop.f32.mrf.mxu0  ;;  %v3004_v7 = vpop.f32.mrf.mxu1 }
 0x117   :  { %v3006_v8 = vpop.f32.mrf.mxu0  ;;  %v3008_v9 = vpop.f32.mrf.mxu1 }
 0x119   :  { %v3010_v10 = vpop.f32.mrf.mxu0  ;;  %v3012_v11 = vpop.f32.mrf.mxu1 }
 0x11a   :  { %4062 = vst [vmem:[#allocation2_spill] sm:$0xff] %v3012_v11 }
 0x11b   :  { %v3014_v12 = vpop.f32.mrf.mxu0  ;;  %v3016_v13 = vpop.f32.mrf.mxu1 }
 0x11c   :  { %4063 = vst [vmem:[#allocation3_spill] sm:$0xff] %v3014_v12  ;;  %4064 = vst [vmem:[#allocation4_spill] sm:$0xff] %v3016_v13  ;;  %v3037_v13 = vadd.f32 %v2902_v20, %v3025_v16  ;;  %v3057_v20 = vadd.f32 %v2910_v24, %v3025_v16  ;;  %v3078_v24 = vadd.f32 %v2918_v28, %v3025_v16 }
 0x11d   :  { %v3018_v14 = vpop.f32.mrf.mxu0  ;;  %v3020_v15 = vpop.f32.mrf.mxu1  ;;  %v3096_v28 = vadd.f32 %v2926_v32, %v3025_v16  ;;  %v3113_v32 = vadd.f32 %v3025_v16, %v2930_v34  ;;  %v3150_v34 = vadd.f32 %v2942_v40, %v3025_v16 }
 0x11e   :  { %4065 = vst [vmem:[#allocation5_spill] sm:$0xff] %v3018_v14  ;;  %4066 = vst [vmem:[#allocation6_spill] sm:$0xff] %v3020_v15  ;;  %v3041_v15 = vadd.f32 %v2904_v21, %v3025_v16  ;;  %v3045_v14 = vadd.f32 %v3025_v16, %v2906_v22  ;;  %v3061_v21 = vadd.f32 %v2912_v25, %v3025_v16 }
 0x11f   :  { %v3027_v17 = vpop.f32.mrf.mxu0  ;;  %v3029_v18 = vpop.f32.mrf.mxu1  ;;  %4070 = vst [vmem:[#allocation10_spill] sm:$0xff] %v3037_v13  ;;  %4075 = vst [vmem:[#allocation15_spill] sm:$0xff] %v3057_v20  ;;  %v3065_v22 = vadd.f32 %v3025_v16, %v2914_v26  ;;  %v3082_v25 = vadd.f32 %v2920_v29, %v3025_v16  ;;  %v3086_v26 = vadd.f32 %v3025_v16, %v2922_v30 }
 0x120   :  { %4067 = vst [vmem:[#allocation7_spill] sm:$0xff] %v3027_v17  ;;  %4071 = vst [vmem:[#allocation11_spill] sm:$0xff] %v3041_v15  ;;  %v3138_v20 = vadd.f32 %v3025_v16, %v2938_v38  ;;  %v3158_v38 = vadd.f32 %v3025_v16, %v2946_v42  ;;  %v3174_v42 = vadd.f32 %v2950_v44, %v3025_v16 }
 0x121   :  { %v3031_v19 = vpop.f32.mrf.mxu0  ;;  %v3033_v11 = vpop.f32.mrf.mxu1  ;;  %4072 = vst [vmem:[#allocation12_spill] sm:$0xff] %v3045_v14  ;;  %4076 = vst [vmem:[#allocation16_spill] sm:$0xff] %v3061_v21  ;;  %v3117_v14 = vadd.f32 %v3025_v16, %v2932_v35  ;;  %v3134_v35 = vadd.f32 %v2936_v37, %v3025_v16  ;;  %v3154_v37 = vadd.f32 %v2944_v41, %v3025_v16 }
 0x122   :  { %4068 = vst [vmem:[#allocation8_spill] sm:$0xff] %v3031_v19  ;;  %4069 = vst [vmem:[#allocation9_spill] sm:$0xff] %v3033_v11  ;;  %v3053_v19 = vadd.f32 %v3025_v16, %v2908_v23  ;;  %v3178_v21 = vadd.f32 %v2952_v45, %v3025_v16  ;;  %v3192_v44 = vadd.f32 %v2958_v48, %v3025_v16 }
 0x123   :  { %v3047_v12 = vpop.f32.mrf.mxu0  ;;  %v3049_v17 = vpop.f32.mrf.mxu1  ;;  %4079 = vst [vmem:[#allocation19_spill] sm:$0xff] %v3082_v25  ;;  %4080 = vst [vmem:[#allocation20_spill] sm:$0xff] %v3096_v28  ;;  %v3182_v28 = vadd.f32 %v3025_v16, %v2954_v46  ;;  %v3209_v48 = vadd.f32 %v3025_v16, %v2962_v50  ;;  %v3246_v50 = vadd.f32 %v2974_v56, %v3025_v16 }
 0x124   :  { %4073 = vst [vmem:[#allocation13_spill] sm:$0xff] %v3047_v12  ;;  %4074 = vst [vmem:[#allocation14_spill] sm:$0xff] %v3049_v17  ;;  %v3069_v12 = vadd.f32 %v3025_v16, %v2916_v27 }
 0x125   :  { %v3071_v17 = vpop.f32.mrf.mxu0  ;;  %v3073_v23 = vpop.f32.mrf.mxu1  ;;  %4083 = vst [vmem:[#allocation23_spill] sm:$0xff] %v3134_v35  ;;  %4084 = vst [vmem:[#allocation24_spill] sm:$0xff] %v3138_v20  ;;  %v3213_v20 = vadd.f32 %v3025_v16, %v2964_v51  ;;  %v3230_v51 = vadd.f32 %v2968_v53, %v3025_v16  ;;  %v3250_v53 = vadd.f32 %v2976_v57, %v3025_v16 }
 0x126   :  { %4077 = vst [vmem:[#allocation17_spill] sm:$0xff] %v3071_v17  ;;  %4078 = vst [vmem:[#allocation18_spill] sm:$0xff] %v3073_v23  ;;  %v3092_v23 = vadd.f32 %v3025_v16, %v2924_v31  ;;  %v3109_v31 = vadd.f32 %v2928_v33, %v3025_v16  ;;  %v3128_v33 = vadd.f32 %v2934_v36, %v3025_v16  ;;  %v4115_v17 = vld [vmem:[#allocation5_spill] sm:$0xff] }
 0x127   :  { %v3098_v11 = vpop.f32.mrf.mxu0  ;;  %v3100_v29 = vpop.f32.mrf.mxu1  ;;  %v3146_v36 = vadd.f32 %v3025_v16, %v2940_v39  ;;  %4085 = vst [vmem:[#allocation25_spill] sm:$0xff] %v3150_v34  ;;  %4086 = vst [vmem:[#allocation26_spill] sm:$0xff] %v3154_v37  ;;  %v3165_v39 = vadd.f32 %v3025_v16, %v2948_v43  ;;  %v3234_v34 = vadd.f32 %v3025_v16, %v2970_v54 }
 0x128   :  { %4081 = vst [vmem:[#allocation21_spill] sm:$0xff] %v3109_v31  ;;  %4082 = vst [vmem:[#allocation22_spill] sm:$0xff] %v3128_v33  ;;  %v3188_v31 = vadd.f32 %v3025_v16, %v2956_v47  ;;  %v3205_v47 = vadd.f32 %v2960_v49, %v3025_v16  ;;  %v3224_v49 = vadd.f32 %v2966_v52, %v3025_v16 }
 0x129   :  { %v3119_v13 = vpop.f32.mrf.mxu0  ;;  %v3121_v30 = vpop.f32.mrf.mxu1  ;;  %4087 = vst [vmem:[#allocation27_spill] sm:$0xff] %v3192_v44  ;;  %4089 = vst [vmem:[#allocation29_spill] sm:$0xff] %v3230_v51  ;;  %v3242_v52 = vadd.f32 %v3025_v16, %v2972_v55  ;;  %v3254_v54 = vadd.f32 %v3025_v16, %v2978_v58  ;;  %v3261_v55 = vadd.f32 %v3025_v16, %v2980_v59 }
 0x12a   :  { %4088 = vst [vmem:[#allocation28_spill] sm:$0xff] %v3224_v49  ;;  %v3270_v58 = vadd.f32 %v2982_v60, %v3025_v16  ;;  %v3274_v37 = vadd.f32 %v2984_v61, %v3025_v16  ;;  %v3278_v44 = vadd.f32 %v3025_v16, %v2986_v62  ;;  %v3288_v60 = vadd.f32 %v2990_v0, %v3025_v16 }
 0x12b   :  { %v3140_v27 = vpop.f32.mrf.mxu0  ;;  %v3142_v15 = vpop.f32.mrf.mxu1  ;;  %v3305_v0 = vadd.f32 %v3025_v16, %v2994_v2  ;;  %v3342_v2 = vadd.f32 %v3006_v8, %v3025_v16 }
 0x12c   :  { %4092 = vst [vmem:[#allocation32_spill] sm:$0xff] %v3270_v58  ;;  %4093 = vst [vmem:[#allocation33_spill] sm:$0xff] %v3274_v37  ;;  %v4116_v37 = vld [vmem:[#allocation6_spill] sm:$0xff] }
 0x12d   :  { %v3167_v40 = vpop.f32.mrf.mxu0  ;;  %v3169_v25 = vpop.f32.mrf.mxu1  ;;  %4094 = vst [vmem:[#allocation34_spill] sm:$0xff] %v3288_v60  ;;  %4105 = vst [vmem:[#allocation45_spill] sm:$0xff] %v3342_v2  ;;  %v4111_v60 = vld [vmem:[#allocation3_spill] sm:$0xff] }
 0x12f   :  { %v3194_v41 = vpop.f32.mrf.mxu0  ;;  %v3196_v45 = vpop.f32.mrf.mxu1 }
 0x131   :  { %v3215_v33 = vpop.f32.mrf.mxu0  ;;  %v3217_v46 = vpop.f32.mrf.mxu1 }
 0x133   :  { %v3236_v43 = vpop.f32.mrf.mxu0  ;;  %v3238_v35 = vpop.f32.mrf.mxu1 }
 0x134   :  { %4090 = vst [vmem:[#allocation30_spill] sm:$0xff] %v3238_v35 }
 0x135   :  { %v3263_v56 = vpop.f32.mrf.mxu0  ;;  %v3265_v35 = vpop.f32.mrf.mxu1 }
 0x136   :  { %4091 = vst [vmem:[#allocation31_spill] sm:$0xff] %v3265_v35  ;;  %v3284_v35 = vadd.f32 %v3025_v16, %v2988_v63  ;;  %v3301_v63 = vadd.f32 %v2992_v1, %v3025_v16  ;;  %v3320_v1 = vadd.f32 %v2998_v4, %v3025_v16  ;;  %v3338_v4 = vadd.f32 %v3025_v16, %v3004_v7  ;;  %v4107_v7 = vld [vmem:[#allocation2_spill] sm:$0xff] }
 0x137   :  { %v3290_v57 = vpop.f32.mrf.mxu0  ;;  %v3292_v61 = vpop.f32.mrf.mxu1 }
 0x138   :  { %4095 = vst [vmem:[#allocation35_spill] sm:$0xff] %v3290_v57  ;;  %4096 = vst [vmem:[#allocation36_spill] sm:$0xff] %v3292_v61  ;;  %v3309_v61 = vadd.f32 %v3025_v16, %v2996_v3  ;;  %v3326_v3 = vadd.f32 %v3000_v5, %v3025_v16  ;;  %v3346_v5 = vadd.f32 %v3008_v9, %v3025_v16  ;;  %v4113_v57 = vld [vmem:[#allocation4_spill] sm:$0xff]  ;;  %v4118_v9 = vld [vmem:[#allocation7_spill] sm:$0xff] }
 0x139   :  { %4097 = vst [vmem:[#allocation37_spill] sm:$0xff] %v3301_v63  ;;  %v3311_v49 = vpop.f32.mrf.mxu0  ;;  %v3313_v62 = vpop.f32.mrf.mxu1  ;;  %4100 = vst [vmem:[#allocation40_spill] sm:$0xff] %v3320_v1  ;;  %v3370_v63 = vadd.f32 %v4113_v57, %v3025_v16 }
 0x13a   :  { %4098 = vst [vmem:[#allocation38_spill] sm:$0xff] %v3311_v49  ;;  %4099 = vst [vmem:[#allocation39_spill] sm:$0xff] %v3313_v62  ;;  %v3330_v62 = vadd.f32 %v3025_v16, %v3002_v6  ;;  %v3350_v6 = vadd.f32 %v3025_v16, %v3010_v10  ;;  %v3366_v10 = vadd.f32 %v4111_v60, %v3025_v16 }
 0x13b   :  { %4101 = vst [vmem:[#allocation41_spill] sm:$0xff] %v3326_v3  ;;  %v3332_v59 = vpop.f32.mrf.mxu0  ;;  %v3334_v51 = vpop.f32.mrf.mxu1  ;;  %4106 = vst [vmem:[#allocation46_spill] sm:$0xff] %v3346_v5  ;;  %v3384_v60 = vadd.f32 %v4118_v9, %v3025_v16  ;;  %v4123_v9 = vld [vmem:[#allocation8_spill] sm:$0xff] }
 0x13c   :  { %4102 = vst [vmem:[#allocation42_spill] sm:$0xff] %v3330_v62  ;;  %4103 = vst [vmem:[#allocation43_spill] sm:$0xff] %v3332_v59  ;;  %v3357_v59 = vadd.f32 %v3025_v16, %v4107_v7  ;;  %v3401_v62 = vadd.f32 %v3025_v16, %v4123_v9 }
 0x13d   :  { %4104 = vst [vmem:[#allocation44_spill] sm:$0xff] %v3334_v51  ;;  %v3359_v8 = vpop.f32.mrf.mxu0  ;;  %v3361_v49 = vpop.f32.mrf.mxu1  ;;  %4112 = vst [vmem:[#allocation3_spill] sm:$0xff] %v3366_v10  ;;  %v3374_v51 = vadd.f32 %v3025_v16, %v4115_v17  ;;  %v3443_v10 = vadd.f32 %v3100_v29, %v3025_v16  ;;  %v3458_v29 = vadd.f32 %v3025_v16, %v3121_v30 }
 0x13e   :  { %4108 = vst [vmem:[#allocation2_spill] sm:$0xff] %v3357_v59  ;;  %4109 = vst [vmem:[#allocation47_spill] sm:$0xff] %v3359_v8  ;;  %v3473_v30 = vadd.f32 %v3142_v15, %v3025_v16 }
 0x13f   :  { %4110 = vst [vmem:[#allocation48_spill] sm:$0xff] %v3361_v49  ;;  %4114 = vst [vmem:[#allocation4_spill] sm:$0xff] %v3370_v63  ;;  %v3380_v49 = vadd.f32 %v3025_v16, %v4116_v37  ;;  %v3386_v1 = vpop.f32.mrf.mxu0  ;;  %v3388_v57 = vpop.f32.mrf.mxu1  ;;  %v3397_v37 = vadd.f32 %v3029_v18, %v3025_v16  ;;  %v4128_v18 = vld [vmem:[#allocation13_spill] sm:$0xff]  ;;  %v4134_v63 = vld [vmem:[#allocation18_spill] sm:$0xff] }
 0x140   :  { %4119 = vst [vmem:[#allocation6_spill] sm:$0xff] %v3384_v60  ;;  %4120 = vst [vmem:[#allocation7_spill] sm:$0xff] %v3386_v1  ;;  %v4124_v1 = vld [vmem:[#allocation9_spill] sm:$0xff]  ;;  %v3416_v5 = vadd.f32 %v4128_v18, %v3025_v16  ;;  %v3430_v8 = vadd.f32 %v3025_v16, %v4134_v63  ;;  %v3434_v18 = vadd.f32 %v3098_v11, %v3025_v16  ;;  %v4143_v60 = vmax.f32 %v3053_v19, 0.0 }
 0x141   :  { %4117 = vst [vmem:[#allocation5_spill] sm:$0xff] %v3380_v49  ;;  %4121 = vst [vmem:[#allocation49_spill] sm:$0xff] %v3388_v57  ;;  %v3405_v57 = vadd.f32 %v3025_v16, %v4124_v1  ;;  %v3407_v58 = vpop.f32.mrf.mxu0  ;;  %v3409_v17 = vpop.f32.mrf.mxu1  ;;  %v4130_v1 = vld [vmem:[#allocation14_spill] sm:$0xff] }
 0x142   :  { %4122 = vst [vmem:[#allocation50_spill] sm:$0xff] %v3397_v37  ;;  %4126 = vst [vmem:[#allocation9_spill] sm:$0xff] %v3407_v58  ;;  %v3422_v59 = vadd.f32 %v4130_v1, %v3025_v16  ;;  %v4132_v58 = vld [vmem:[#allocation17_spill] sm:$0xff] }
 0x143   :  { %4125 = vst [vmem:[#allocation8_spill] sm:$0xff] %v3405_v57  ;;  %4127 = vst [vmem:[#allocation51_spill] sm:$0xff] %v3409_v17  ;;  %v3426_v17 = vadd.f32 %v3025_v16, %v4132_v58  ;;  %v1993_v7 = vpop.f32.mrf.mxu0  ;;  %v2140_v3 = vpop.f32.mrf.mxu1 }
 0x144   :  { %4129 = vst [vmem:[#allocation13_spill] sm:$0xff] %v3416_v5  ;;  %4131 = vst [vmem:[#allocation14_spill] sm:$0xff] %v3422_v59  ;;  %v545_v2 = vadd.f32 %v1993_v7, %v3025_v16  ;;  %v1035_v9 = vadd.f32 %v2140_v3, %v3025_v16  ;;  %v3452_v7 = vadd.f32 %v3025_v16, %v3119_v13 }
 0x145   :  { %4133 = vst [vmem:[#allocation17_spill] sm:$0xff] %v3426_v17  ;;  %4135 = vst [vmem:[#allocation18_spill] sm:$0xff] %v3434_v18  ;;  %v3445_v63 = vpop.f32.mrf.mxu0  ;;  %v3447_v49 = vpop.f32.mrf.mxu1 }
 0x146   :  { %4136 = vst [vmem:[#allocation52_spill] sm:$0xff] %v3443_v10  ;;  %4137 = vst [vmem:[#allocation53_spill] sm:$0xff] %v3445_v63  ;;  %v1327_v3 = vmax.f32 %v545_v2, 0.0  ;;  %v1425_v1 = vmax.f32 %v1035_v9, 0.0  ;;  %v3462_v63 = vadd.f32 %v3140_v27, %v3025_v16  ;;  %v4141_v2 = vld [vmem:[#allocation12_spill] sm:$0xff] }
 0x147   :  { %4138 = vst [vmem:[#allocation54_spill] sm:$0xff] %v3447_v49  ;;  %4139 = vst [vmem:[#allocation55_spill] sm:$0xff] %v3458_v29  ;;  %v1996_v49 = vpop.f32.mrf.mxu0  ;;  %v2143_v11 = vpop.f32.mrf.mxu1  ;;  %v4142_v9 = vmax.f32 %v4141_v2, 0.0 }
 0x148   :  { %4140 = vst [vmem:[#allocation56_spill] sm:$0xff] %v3462_v63  ;;  %v1523_v58 = vmax.f32 %v4143_v60, %v1425_v1  ;;  %4144 = vst [vmem:[#allocation12_spill] sm:$0xff] %v3473_v30  ;;  %v555_v27 = vadd.f32 %v1996_v49, %v3025_v16  ;;  %v1045_v17 = vadd.f32 %v2143_v11, %v3025_v16  ;;  %v4146_v1 = vmax.f32 %v3069_v12, 0.0 }
 0x149   :  { %v1474_v37 = vmax.f32 %v4142_v9, %v1327_v3  ;;  %v549_v57 = vpop.f32.mrf.mxu0  ;;  %v1039_v5 = vpop.f32.mrf.mxu1 }
 0x14a   :  { %v550_v3 = vadd.f32 %v3025_v16, %v549_v57  ;;  %v1040_v19 = vadd.f32 %v3025_v16, %v1039_v5  ;;  %v1329_v2 = vmax.f32 %v555_v27, 0.0  ;;  %v1427_v15 = vmax.f32 %v1045_v17, 0.0 }
 0x14b   :  { %v1572_v18 = vmax.f32 %v1474_v37, %v1523_v58  ;;  %v1999_v9 = vpop.f32.mrf.mxu0  ;;  %v2146_v59 = vpop.f32.mrf.mxu1  ;;  %v3490_v58 = vadd.f32 %v3025_v16, %v3167_v40  ;;  %v4145_v17 = vmax.f32 %v3065_v22, 0.0  ;;  %v3502_v40 = vadd.f32 %v3025_v16, %v3169_v25 }
 0x14c   :  { %v1328_v49 = vmax.f32 %v550_v3, 0.0  ;;  %v1426_v11 = vmax.f32 %v1040_v19, 0.0  ;;  %v565_v37 = vadd.f32 %v1999_v9, %v3025_v16  ;;  %v1055_v57 = vadd.f32 %v2146_v59, %v3025_v16  ;;  %v4147_v3 = vld [vmem:[#allocation10_spill] sm:$0xff]  ;;  %v4149_v9 = vld [vmem:[#allocation11_spill] sm:$0xff] }
 0x14d   :  { %1621 = vst [vmem:[%s4021_s3] sm:$0xff] %v1572_v18  ;;  %v1476_v27 = vmax.f32 %v4145_v17, %v1329_v2  ;;  %v1525_v60 = vmax.f32 %v4146_v1, %v1427_v15  ;;  %v559_v13 = vpop.f32.mrf.mxu0  ;;  %v1049_v18 = vpop.f32.mrf.mxu1  ;;  %v4148_v19 = vmax.f32 %v4147_v3, 0.0  ;;  %v4150_v10 = vmax.f32 %v4149_v9, 0.0  ;;  %v4155_v9 = vld [vmem:[#allocation16_spill] sm:$0xff] }
 0x14e   :  { %v1331_v29 = vmax.f32 %v565_v37, 0.0  ;;  %v1429_v5 = vmax.f32 %v1055_v57, 0.0  ;;  %v560_v22 = vadd.f32 %v3025_v16, %v559_v13  ;;  %v1050_v12 = vadd.f32 %v3025_v16, %v1049_v18  ;;  %v4153_v18 = vld [vmem:[#allocation15_spill] sm:$0xff] }
 0x14f   :  { %v1475_v63 = vmax.f32 %v4148_v19, %v1328_v49  ;;  %v1524_v59 = vmax.f32 %v4150_v10, %v1426_v11  ;;  %v1574_v30 = vmax.f32 %v1476_v27, %v1525_v60  ;;  %v2002_v1 = vpop.f32.mrf.mxu0  ;;  %v2149_v2 = vpop.f32.mrf.mxu1  ;;  %v4151_v17 = vmax.f32 %v3086_v26, 0.0 }
 0x150   :  { %v4152_v3 = vmax.f32 %v3092_v23, 0.0  ;;  %v575_v11 = vadd.f32 %v2002_v1, %v3025_v16  ;;  %v1314_v37 = vmax.f32 %v3490_v58, 0.0  ;;  %v1330_v25 = vmax.f32 %v560_v22, 0.0  ;;  %v4258_v58 = vld [vmem:[#allocation18_spill] sm:$0xff] }
 0x151   :  { %v1573_v15 = vmax.f32 %v1475_v63, %v1524_v59  ;;  %v1478_v49 = vmax.f32 %v4151_v17, %v1331_v29  ;;  %1623 = vst [vmem:[%s4021_s3 + $0x10] sm:$0xff] %v1574_v30  ;;  %v1428_v13 = vmax.f32 %v1050_v12, 0.0  ;;  %v1065_v60 = vadd.f32 %v2149_v2, %v3025_v16  ;;  %v569_v57 = vpop.f32.mrf.mxu0  ;;  %v1059_v63 = vpop.f32.mrf.mxu1 }
 0x152   :  { %v1527_v10 = vmax.f32 %v4152_v3, %v1429_v5  ;;  %v1333_v26 = vmax.f32 %v575_v11, 0.0  ;;  %v570_v29 = vadd.f32 %v3025_v16, %v569_v57  ;;  %v1060_v5 = vadd.f32 %v3025_v16, %v1059_v63 }
 0x153   :  { %1622 = vst [vmem:[%s4021_s3 + $0x8] sm:$0xff] %v1573_v15  ;;  %v1412_v27 = vmax.f32 %v3502_v40, 0.0  ;;  %v4154_v30 = vmax.f32 %v4153_v18, 0.0  ;;  %v4156_v59 = vmax.f32 %v4155_v9, 0.0  ;;  %v1431_v12 = vmax.f32 %v1065_v60, 0.0  ;;  %v2005_v1 = vpop.f32.mrf.mxu0  ;;  %v2152_v2 = vpop.f32.mrf.mxu1 }
 0x154   :  { %v1576_v23 = vmax.f32 %v1478_v49, %v1527_v10  ;;  %v4157_v15 = vmax.f32 %v3113_v32, 0.0  ;;  %v1332_v49 = vmax.f32 %v570_v29, 0.0  ;;  %v1430_v3 = vmax.f32 %v1060_v5, 0.0 }
 0x155   :  { %v1477_v19 = vmax.f32 %v4154_v30, %v1330_v25  ;;  %v1526_v22 = vmax.f32 %v4156_v59, %v1428_v13  ;;  %v585_v10 = vadd.f32 %v2005_v1, %v3025_v16  ;;  %v3534_v11 = vadd.f32 %v3194_v41, %v3025_v16  ;;  %v579_v63 = vpop.f32.mrf.mxu0  ;;  %v1069_v18 = vpop.f32.mrf.mxu1  ;;  %v4162_v1 = vld [vmem:[#allocation24_spill] sm:$0xff] }
 0x156   :  { %1625 = vst [vmem:[%s4021_s3 + $0x20] sm:$0xff] %v1576_v23  ;;  %v1480_v17 = vmax.f32 %v4157_v15, %v1333_v26  ;;  %v4158_v13 = vmax.f32 %v3117_v14, 0.0  ;;  %v1075_v57 = vadd.f32 %v2152_v2, %v3025_v16  ;;  %v4159_v23 = vmax.f32 %v3078_v24, 0.0  ;;  %v4160_v26 = vld [vmem:[#allocation19_spill] sm:$0xff] }
 0x157   :  { %v1575_v25 = vmax.f32 %v1477_v19, %v1526_v22  ;;  %v4161_v29 = vmax.f32 %v4160_v26, 0.0  ;;  %v1335_v30 = vmax.f32 %v585_v10, 0.0  ;;  %v580_v9 = vadd.f32 %v3025_v16, %v579_v63  ;;  %v2008_v24 = vpop.f32.mrf.mxu0  ;;  %v2155_v22 = vpop.f32.mrf.mxu1  ;;  %v4165_v63 = vld [vmem:[#allocation20_spill] sm:$0xff] }
 0x158   :  { %v1529_v60 = vmax.f32 %v4158_v13, %v1431_v12  ;;  %v1479_v32 = vmax.f32 %v4159_v23, %v1332_v49  ;;  %v3546_v41 = vadd.f32 %v3196_v45, %v3025_v16  ;;  %v1433_v19 = vmax.f32 %v1075_v57, 0.0 }
 0x159   :  { %v1528_v5 = vmax.f32 %v4161_v29, %v1430_v3  ;;  %1624 = vst [vmem:[%s4021_s3 + $0x18] sm:$0xff] %v1575_v25  ;;  %v1070_v59 = vadd.f32 %v3025_v16, %v1069_v18  ;;  %v4163_v2 = vmax.f32 %v4162_v1, 0.0  ;;  %v1334_v49 = vmax.f32 %v580_v9, 0.0  ;;  %v1079_v57 = vpop.f32.mrf.mxu1 }
 0x15a   :  { %v1578_v14 = vmax.f32 %v1480_v17, %v1529_v60  ;;  %v595_v3 = vadd.f32 %v2008_v24, %v3025_v16  ;;  %v1317_v45 = vmax.f32 %v3534_v11, 0.0  ;;  %v4164_v17 = vmax.f32 %v3146_v36, 0.0  ;;  %v589_v60 = vpop.f32.mrf.mxu0 }
 0x15b   :  { %v1577_v12 = vmax.f32 %v1479_v32, %v1528_v5  ;;  %v1482_v15 = vmax.f32 %v4163_v2, %v1335_v30  ;;  %v1432_v25 = vmax.f32 %v1070_v59, 0.0  ;;  %v1085_v13 = vadd.f32 %v2155_v22, %v3025_v16  ;;  %v4167_v30 = vld [vmem:[#allocation21_spill] sm:$0xff]  ;;  %v2158_v24 = vpop.f32.mrf.mxu1 }
 0x15c   :  { %1627 = vst [vmem:[%s4021_s3 + $0x30] sm:$0xff] %v1578_v14  ;;  %v1531_v10 = vmax.f32 %v4164_v17, %v1433_v19  ;;  %v4166_v18 = vmax.f32 %v4165_v63, 0.0  ;;  %v1337_v32 = vmax.f32 %v595_v3, 0.0  ;;  %v590_v26 = vadd.f32 %v3025_v16, %v589_v60  ;;  %v2011_v59 = vpop.f32.mrf.mxu0  ;;  %v4171_v60 = vld [vmem:[#allocation22_spill] sm:$0xff] }
 0x15d   :  { %1626 = vst [vmem:[%s4021_s3 + $0x28] sm:$0xff] %v1577_v12  ;;  %v1080_v29 = vadd.f32 %v3025_v16, %v1079_v57  ;;  %v1415_v36 = vmax.f32 %v3546_v41, 0.0  ;;  %v4168_v9 = vmax.f32 %v4167_v30, 0.0  ;;  %v1435_v19 = vmax.f32 %v1085_v13, 0.0  ;;  %v1089_v13 = vpop.f32.mrf.mxu1 }
 0x15e   :  { %v1481_v23 = vmax.f32 %v4166_v18, %v1334_v49  ;;  %v1580_v5 = vmax.f32 %v1482_v15, %v1531_v10  ;;  %v4169_v22 = vmax.f32 %v3158_v38, 0.0  ;;  %v1336_v1 = vmax.f32 %v590_v26, 0.0  ;;  %v599_v38 = vpop.f32.mrf.mxu0  ;;  %v4173_v18 = vld [vmem:[#allocation23_spill] sm:$0xff] }
 0x15f   :  { %v1530_v14 = vmax.f32 %v4168_v9, %v1432_v25  ;;  %v1434_v2 = vmax.f32 %v1080_v29, 0.0  ;;  %v605_v49 = vadd.f32 %v2011_v59, %v3025_v16  ;;  %v3577_v3 = vadd.f32 %v3025_v16, %v3215_v33 }
 0x160   :  { %v1484_v12 = vmax.f32 %v4169_v22, %v1337_v32  ;;  %1629 = vst [vmem:[%s4021_s3 + $0x40] sm:$0xff] %v1580_v5  ;;  %v4170_v17 = vmax.f32 %v3165_v39, 0.0  ;;  %v1095_v25 = vadd.f32 %v2158_v24, %v3025_v16  ;;  %v4172_v57 = vmax.f32 %v4171_v60, 0.0  ;;  %v2014_v9 = vpop.f32.mrf.mxu0 }
 0x161   :  { %v1579_v15 = vmax.f32 %v1481_v23, %v1530_v14  ;;  %v4174_v32 = vmax.f32 %v4173_v18, 0.0  ;;  %v1339_v33 = vmax.f32 %v605_v49, 0.0  ;;  %v600_v29 = vadd.f32 %v3025_v16, %v599_v38  ;;  %v2161_v14 = vpop.f32.mrf.mxu1  ;;  %v4179_v18 = vld [vmem:[#allocation26_spill] sm:$0xff] }
 0x162   :  { %v1533_v10 = vmax.f32 %v4170_v17, %v1435_v19  ;;  %v1483_v63 = vmax.f32 %v4172_v57, %v1336_v1  ;;  %v3592_v5 = vadd.f32 %v3025_v16, %v3217_v46  ;;  %v1437_v23 = vmax.f32 %v1095_v25, 0.0  ;;  %v609_v17 = vpop.f32.mrf.mxu0 }
 0x163   :  { %v1532_v26 = vmax.f32 %v4174_v32, %v1434_v2  ;;  %1628 = vst [vmem:[%s4021_s3 + $0x38] sm:$0xff] %v1579_v15  ;;  %v1090_v30 = vadd.f32 %v3025_v16, %v1089_v13  ;;  %v4175_v59 = vmax.f32 %v3182_v28, 0.0  ;;  %v1338_v22 = vmax.f32 %v600_v29, 0.0  ;;  %v4177_v28 = vld [vmem:[#allocation25_spill] sm:$0xff] }
 0x164   :  { %v1582_v39 = vmax.f32 %v1484_v12, %v1533_v10  ;;  %v615_v1 = vadd.f32 %v2014_v9, %v3025_v16  ;;  %v1316_v46 = vmax.f32 %v3577_v3, 0.0  ;;  %v4176_v12 = vmax.f32 %v3188_v31, 0.0  ;;  %v1099_v10 = vpop.f32.mrf.mxu1  ;;  %v2017_v29 = vpop.f32.mrf.mxu0 }
 0x165   :  { %v1581_v19 = vmax.f32 %v1483_v63, %v1532_v26  ;;  %v1486_v24 = vmax.f32 %v4175_v59, %v1339_v33  ;;  %v1436_v49 = vmax.f32 %v1090_v30, 0.0  ;;  %v1105_v15 = vadd.f32 %v2161_v14, %v3025_v16 }
 0x166   :  { %1631 = vst [vmem:[%s4021_s3 + $0x50] sm:$0xff] %v1582_v39  ;;  %v1535_v2 = vmax.f32 %v4176_v12, %v1437_v23  ;;  %v4178_v25 = vmax.f32 %v4177_v28, 0.0  ;;  %v1341_v13 = vmax.f32 %v615_v1, 0.0  ;;  %v610_v60 = vadd.f32 %v3025_v16, %v609_v17  ;;  %v2164_v39 = vpop.f32.mrf.mxu1 }
 0x167   :  { %1630 = vst [vmem:[%s4021_s3 + $0x48] sm:$0xff] %v1581_v19  ;;  %v1100_v57 = vadd.f32 %v3025_v16, %v1099_v10  ;;  %v1414_v31 = vmax.f32 %v3592_v5, 0.0  ;;  %v4180_v32 = vmax.f32 %v4179_v18, 0.0  ;;  %v1439_v33 = vmax.f32 %v1105_v15, 0.0 }
 0x168   :  { %v1485_v38 = vmax.f32 %v4178_v25, %v1338_v22  ;;  %v1584_v63 = vmax.f32 %v1486_v24, %v1535_v2  ;;  %v4181_v23 = vmax.f32 %v3209_v48, 0.0  ;;  %v1340_v9 = vmax.f32 %v610_v60, 0.0  ;;  %v619_v48 = vpop.f32.mrf.mxu0  ;;  %v1109_v2 = vpop.f32.mrf.mxu1  ;;  %v4185_v25 = vld [vmem:[#allocation30_spill] sm:$0xff] }
 0x169   :  { %v1534_v26 = vmax.f32 %v4180_v32, %v1436_v49  ;;  %v1438_v14 = vmax.f32 %v1100_v57, 0.0  ;;  %v625_v19 = vadd.f32 %v2017_v29, %v3025_v16  ;;  %v3623_v59 = vadd.f32 %v3236_v43, %v3025_v16 }
 0x16a   :  { %v1488_v30 = vmax.f32 %v4181_v23, %v1341_v13  ;;  %1633 = vst [vmem:[%s4021_s3 + $0x60] sm:$0xff] %v1584_v63  ;;  %v4182_v22 = vmax.f32 %v3213_v20, 0.0  ;;  %v1115_v12 = vadd.f32 %v2164_v39, %v3025_v16  ;;  %v4183_v49 = vmax.f32 %v3174_v42, 0.0  ;;  %v2020_v42 = vpop.f32.mrf.mxu0  ;;  %v2167_v57 = vpop.f32.mrf.mxu1 }
 0x16b   :  { %v1583_v24 = vmax.f32 %v1485_v38, %v1534_v26  ;;  %v4184_v17 = vmax.f32 %v3178_v21, 0.0  ;;  %v1343_v43 = vmax.f32 %v625_v19, 0.0  ;;  %v620_v28 = vadd.f32 %v3025_v16, %v619_v48 }
 0x16c   :  { %v1537_v1 = vmax.f32 %v4182_v22, %v1439_v33  ;;  %v1487_v15 = vmax.f32 %v4183_v49, %v1340_v9  ;;  %v3638_v13 = vadd.f32 %v4185_v25, %v3025_v16  ;;  %v1441_v38 = vmax.f32 %v1115_v12, 0.0  ;;  %v629_v9 = vpop.f32.mrf.mxu0 }
 0x16d   :  { %v1536_v10 = vmax.f32 %v4184_v17, %v1438_v14  ;;  %1632 = vst [vmem:[%s4021_s3 + $0x58] sm:$0xff] %v1583_v24  ;;  %v1110_v60 = vadd.f32 %v3025_v16, %v1109_v2  ;;  %v4186_v21 = vmax.f32 %v3234_v34, 0.0  ;;  %v1342_v32 = vmax.f32 %v620_v28, 0.0  ;;  %v1119_v14 = vpop.f32.mrf.mxu1  ;;  %v4188_v34 = vld [vmem:[#allocation27_spill] sm:$0xff] }
 0x16e   :  { %v1586_v20 = vmax.f32 %v1488_v30, %v1537_v1  ;;  %v635_v26 = vadd.f32 %v2020_v42, %v3025_v16  ;;  %v1319_v33 = vmax.f32 %v3623_v59, 0.0  ;;  %v4187_v29 = vmax.f32 %v3242_v52, 0.0  ;;  %v2023_v17 = vpop.f32.mrf.mxu0 }
 0x16f   :  { %v1585_v63 = vmax.f32 %v1487_v15, %v1536_v10  ;;  %v1490_v18 = vmax.f32 %v4186_v21, %v1343_v43  ;;  %v1440_v23 = vmax.f32 %v1110_v60, 0.0  ;;  %v1125_v30 = vadd.f32 %v2167_v57, %v3025_v16  ;;  %v2170_v10 = vpop.f32.mrf.mxu1 }
 0x170   :  { %1635 = vst [vmem:[%s4021_s3 + $0x70] sm:$0xff] %v1586_v20  ;;  %v1539_v39 = vmax.f32 %v4187_v29, %v1441_v38  ;;  %v4189_v19 = vmax.f32 %v4188_v34, 0.0  ;;  %v1345_v22 = vmax.f32 %v635_v26, 0.0  ;;  %v630_v1 = vadd.f32 %v3025_v16, %v629_v9  ;;  %v4195_v29 = vld [vmem:[#allocation29_spill] sm:$0xff]  ;;  %v4197_v9 = vld [vmem:[#allocation31_spill] sm:$0xff] }
 0x171   :  { %1634 = vst [vmem:[%s4021_s3 + $0x68] sm:$0xff] %v1585_v63  ;;  %v1120_v12 = vadd.f32 %v3025_v16, %v1119_v14  ;;  %v1417_v52 = vmax.f32 %v3638_v13, 0.0  ;;  %v4190_v2 = vmax.f32 %v3205_v47, 0.0  ;;  %v1443_v15 = vmax.f32 %v1125_v30, 0.0  ;;  %v1129_v21 = vpop.f32.mrf.mxu1 }
 0x172   :  { %v1489_v24 = vmax.f32 %v4189_v19, %v1342_v32  ;;  %v1588_v48 = vmax.f32 %v1490_v18, %v1539_v39  ;;  %v4191_v43 = vmax.f32 %v3254_v54, 0.0  ;;  %v1344_v25 = vmax.f32 %v630_v1, 0.0  ;;  %v639_v54 = vpop.f32.mrf.mxu0  ;;  %v4193_v18 = vld [vmem:[#allocation28_spill] sm:$0xff] }
 0x173   :  { %v1538_v49 = vmax.f32 %v4190_v2, %v1440_v23  ;;  %v1442_v20 = vmax.f32 %v1120_v12, 0.0  ;;  %v645_v38 = vadd.f32 %v2023_v17, %v3025_v16  ;;  %v3669_v60 = vadd.f32 %v3025_v16, %v3263_v56 }
 0x174   :  { %v1492_v28 = vmax.f32 %v4191_v43, %v1345_v22  ;;  %1637 = vst [vmem:[%s4021_s3 + $0x80] sm:$0xff] %v1588_v48  ;;  %v4192_v42 = vmax.f32 %v3261_v55, 0.0  ;;  %v1135_v63 = vadd.f32 %v2170_v10, %v3025_v16  ;;  %v4194_v32 = vmax.f32 %v4193_v18, 0.0  ;;  %v2173_v22 = vpop.f32.mrf.mxu1 }
 0x175   :  { %v1587_v47 = vmax.f32 %v1489_v24, %v1538_v49  ;;  %v4196_v39 = vmax.f32 %v4195_v29, 0.0  ;;  %v1347_v56 = vmax.f32 %v645_v38, 0.0  ;;  %v640_v30 = vadd.f32 %v3025_v16, %v639_v54  ;;  %v2026_v24 = vpop.f32.mrf.mxu0 }
 0x176   :  { %v1541_v57 = vmax.f32 %v4192_v42, %v1443_v15  ;;  %v1491_v26 = vmax.f32 %v4194_v32, %v1344_v25  ;;  %v3684_v14 = vadd.f32 %v3025_v16, %v4197_v9  ;;  %v1445_v34 = vmax.f32 %v1135_v63, 0.0 }
 0x177   :  { %v1540_v23 = vmax.f32 %v4196_v39, %v1442_v20  ;;  %1636 = vst [vmem:[%s4021_s3 + $0x78] sm:$0xff] %v1587_v47  ;;  %v1130_v19 = vadd.f32 %v3025_v16, %v1129_v21  ;;  %v4198_v12 = vmax.f32 %v3278_v44, 0.0  ;;  %v1346_v2 = vmax.f32 %v640_v30, 0.0  ;;  %v649_v25 = vpop.f32.mrf.mxu0  ;;  %v1139_v20 = vpop.f32.mrf.mxu1  ;;  %v4203_v30 = vld [vmem:[#allocation35_spill] sm:$0xff] }
 0x178   :  { %v1590_v55 = vmax.f32 %v1492_v28, %v1541_v57  ;;  %v655_v49 = vadd.f32 %v2026_v24, %v3025_v16  ;;  %v1318_v15 = vmax.f32 %v3669_v60, 0.0  ;;  %v4199_v17 = vmax.f32 %v3284_v35, 0.0 }
 0x179   :  { %v1589_v1 = vmax.f32 %v1491_v26, %v1540_v23  ;;  %v1494_v48 = vmax.f32 %v4198_v12, %v1347_v56  ;;  %v1444_v43 = vmax.f32 %v1130_v19, 0.0  ;;  %v1145_v28 = vadd.f32 %v2173_v22, %v3025_v16  ;;  %v2029_v32 = vpop.f32.mrf.mxu0  ;;  %v2176_v26 = vpop.f32.mrf.mxu1  ;;  %v4205_v22 = vld [vmem:[#allocation32_spill] sm:$0xff] }
 0x17a   :  { %1639 = vst [vmem:[%s4021_s3 + $0x90] sm:$0xff] %v1590_v55  ;;  %v1543_v10 = vmax.f32 %v4199_v17, %v1445_v34  ;;  %v4200_v44 = vmax.f32 %v3246_v50, 0.0  ;;  %v1349_v47 = vmax.f32 %v655_v49, 0.0  ;;  %v650_v42 = vadd.f32 %v3025_v16, %v649_v25 }
 0x17b   :  { %1638 = vst [vmem:[%s4021_s3 + $0x88] sm:$0xff] %v1589_v1  ;;  %v1140_v57 = vadd.f32 %v3025_v16, %v1139_v20  ;;  %v1416_v35 = vmax.f32 %v3684_v14, 0.0  ;;  %v4201_v54 = vmax.f32 %v3250_v53, 0.0  ;;  %v1447_v18 = vmax.f32 %v1145_v28, 0.0  ;;  %v1149_v24 = vpop.f32.mrf.mxu1 }
 0x17c   :  { %v1493_v38 = vmax.f32 %v4200_v44, %v1346_v2  ;;  %v1592_v63 = vmax.f32 %v1494_v48, %v1543_v10  ;;  %v4202_v29 = vmax.f32 %v3305_v0, 0.0  ;;  %v1348_v23 = vmax.f32 %v650_v42, 0.0  ;;  %v659_v0 = vpop.f32.mrf.mxu0  ;;  %v4207_v48 = vld [vmem:[#allocation33_spill] sm:$0xff]  ;;  %v4210_v42 = vld [vmem:[#allocation42_spill] sm:$0xff] }
 0x17d   :  { %v1542_v21 = vmax.f32 %v4201_v54, %v1444_v43  ;;  %v1446_v50 = vmax.f32 %v1140_v57, 0.0  ;;  %v665_v56 = vadd.f32 %v2029_v32, %v3025_v16  ;;  %v3715_v9 = vadd.f32 %v4203_v30, %v3025_v16  ;;  %v4209_v43 = vld [vmem:[#allocation36_spill] sm:$0xff] }
 0x17e   :  { %v1496_v39 = vmax.f32 %v4202_v29, %v1349_v47  ;;  %1641 = vst [vmem:[%s4021_s3 + $0xa0] sm:$0xff] %v1592_v63  ;;  %v4204_v55 = vmax.f32 %v3309_v61, 0.0  ;;  %v1155_v19 = vadd.f32 %v2176_v26, %v3025_v16  ;;  %v4206_v1 = vmax.f32 %v4205_v22, 0.0  ;;  %v2032_v44 = vpop.f32.mrf.mxu0 }
 0x17f   :  { %v1591_v53 = vmax.f32 %v1493_v38, %v1542_v21  ;;  %v4208_v2 = vmax.f32 %v4207_v48, 0.0  ;;  %v1351_v17 = vmax.f32 %v665_v56, 0.0  ;;  %v660_v10 = vadd.f32 %v3025_v16, %v659_v0  ;;  %v2179_v38 = vpop.f32.mrf.mxu1  ;;  %v4213_v56 = vld [vmem:[#allocation34_spill] sm:$0xff] }
 0x180   :  { %v1545_v34 = vmax.f32 %v4204_v55, %v1447_v18  ;;  %v1495_v12 = vmax.f32 %v4206_v1, %v1348_v23  ;;  %v3730_v28 = vadd.f32 %v4209_v43, %v3025_v16  ;;  %v1449_v25 = vmax.f32 %v1155_v19, 0.0  ;;  %v669_v23 = vpop.f32.mrf.mxu0 }
 0x181   :  { %v1544_v49 = vmax.f32 %v4208_v2, %v1446_v50  ;;  %1640 = vst [vmem:[%s4021_s3 + $0x98] sm:$0xff] %v1591_v53  ;;  %v1150_v20 = vadd.f32 %v3025_v16, %v1149_v24  ;;  %v4211_v57 = vmax.f32 %v4210_v42, 0.0  ;;  %v1350_v54 = vmax.f32 %v660_v10, 0.0  ;;  %v1159_v50 = vpop.f32.mrf.mxu1  ;;  %v4215_v24 = vld [vmem:[#allocation37_spill] sm:$0xff] }
 0x182   :  { %v1594_v61 = vmax.f32 %v1496_v39, %v1545_v34  ;;  %v675_v21 = vadd.f32 %v2032_v44, %v3025_v16  ;;  %v1321_v18 = vmax.f32 %v3715_v9, 0.0  ;;  %v4212_v32 = vmax.f32 %v3338_v4, 0.0  ;;  %v2035_v48 = vpop.f32.mrf.mxu0 }
 0x183   :  { %v1593_v47 = vmax.f32 %v1495_v12, %v1544_v49  ;;  %v1498_v63 = vmax.f32 %v4211_v57, %v1351_v17  ;;  %v1448_v29 = vmax.f32 %v1150_v20, 0.0  ;;  %v1165_v39 = vadd.f32 %v2179_v38, %v3025_v16  ;;  %v2182_v2 = vpop.f32.mrf.mxu1  ;;  %v4219_v38 = vld [vmem:[#allocation2_spill] sm:$0xff] }
 0x184   :  { %1643 = vst [vmem:[%s4021_s3 + $0xb0] sm:$0xff] %v1594_v61  ;;  %v1547_v26 = vmax.f32 %v4212_v32, %v1449_v25  ;;  %v4214_v30 = vmax.f32 %v4213_v56, 0.0  ;;  %v1353_v55 = vmax.f32 %v675_v21, 0.0  ;;  %v670_v34 = vadd.f32 %v3025_v16, %v669_v23  ;;  %v4218_v25 = vld [vmem:[#allocation38_spill] sm:$0xff]  ;;  %v4225_v56 = vld [vmem:[#allocation39_spill] sm:$0xff] }
 0x185   :  { %1642 = vst [vmem:[%s4021_s3 + $0xa8] sm:$0xff] %v1593_v47  ;;  %v1160_v19 = vadd.f32 %v3025_v16, %v1159_v50  ;;  %v1419_v4 = vmax.f32 %v3730_v28, 0.0  ;;  %v4216_v22 = vmax.f32 %v4215_v24, 0.0  ;;  %v1451_v12 = vmax.f32 %v1165_v39, 0.0 }
 0x186   :  { %v1497_v53 = vmax.f32 %v4214_v30, %v1350_v54  ;;  %v1596_v0 = vmax.f32 %v1498_v63, %v1547_v26  ;;  %v4217_v49 = vmax.f32 %v3350_v6, 0.0  ;;  %v1352_v10 = vmax.f32 %v670_v34, 0.0  ;;  %v679_v6 = vpop.f32.mrf.mxu0  ;;  %v1169_v63 = vpop.f32.mrf.mxu1  ;;  %v4221_v54 = vld [vmem:[#allocation40_spill] sm:$0xff]  ;;  %v4223_v26 = vld [vmem:[#allocation41_spill] sm:$0xff] }
 0x187   :  { %v1546_v1 = vmax.f32 %v4216_v22, %v1448_v29  ;;  %v1450_v43 = vmax.f32 %v1160_v19, 0.0  ;;  %v685_v61 = vadd.f32 %v2035_v48, %v3025_v16  ;;  %v3761_v20 = vadd.f32 %v3025_v16, %v4218_v25 }
 0x188   :  { %v1500_v17 = vmax.f32 %v4217_v49, %v1353_v55  ;;  %1645 = vst [vmem:[%s4021_s3 + $0xc0] sm:$0xff] %v1596_v0  ;;  %v4220_v47 = vmax.f32 %v4219_v38, 0.0  ;;  %v1175_v57 = vadd.f32 %v2182_v2, %v3025_v16  ;;  %v4222_v21 = vmax.f32 %v4221_v54, 0.0  ;;  %v2038_v19 = vpop.f32.mrf.mxu0  ;;  %v2185_v0 = vpop.f32.mrf.mxu1  ;;  %v4227_v49 = vld [vmem:[#allocation5_spill] sm:$0xff] }
 0x189   :  { %v1595_v44 = vmax.f32 %v1497_v53, %v1546_v1  ;;  %v4224_v29 = vmax.f32 %v4223_v26, 0.0  ;;  %v1355_v23 = vmax.f32 %v685_v61, 0.0  ;;  %v680_v50 = vadd.f32 %v3025_v16, %v679_v6 }
 0x18a   :  { %v1549_v42 = vmax.f32 %v4220_v47, %v1451_v12  ;;  %v1499_v32 = vmax.f32 %v4222_v21, %v1352_v10  ;;  %v3776_v30 = vadd.f32 %v3025_v16, %v4225_v56  ;;  %v1453_v55 = vmax.f32 %v1175_v57, 0.0  ;;  %v689_v25 = vpop.f32.mrf.mxu0  ;;  %v4231_v21 = vld [vmem:[#allocation46_spill] sm:$0xff] }
 0x18b   :  { %v1548_v39 = vmax.f32 %v4224_v29, %v1450_v43  ;;  %1644 = vst [vmem:[%s4021_s3 + $0xb8] sm:$0xff] %v1595_v44  ;;  %v1170_v34 = vadd.f32 %v3025_v16, %v1169_v63  ;;  %v4226_v22 = vmax.f32 %v3374_v51, 0.0  ;;  %v1354_v12 = vmax.f32 %v680_v50, 0.0  ;;  %v1179_v44 = vpop.f32.mrf.mxu1  ;;  %v4229_v51 = vld [vmem:[#allocation45_spill] sm:$0xff] }
 0x18c   :  { %v1598_v53 = vmax.f32 %v1500_v17, %v1549_v42  ;;  %v695_v48 = vadd.f32 %v2038_v19, %v3025_v16  ;;  %v1320_v2 = vmax.f32 %v3761_v20, 0.0  ;;  %v4228_v17 = vmax.f32 %v4227_v49, 0.0  ;;  %v4234_v19 = vld [vmem:[#allocation43_spill] sm:$0xff] }
 0x18d   :  { %v1597_v24 = vmax.f32 %v1499_v32, %v1548_v39  ;;  %v1502_v1 = vmax.f32 %v4226_v22, %v1355_v23  ;;  %v1452_v43 = vmax.f32 %v1170_v34, 0.0  ;;  %v1185_v61 = vadd.f32 %v2185_v0, %v3025_v16  ;;  %v2041_v39 = vpop.f32.mrf.mxu0  ;;  %v2188_v23 = vpop.f32.mrf.mxu1  ;;  %v3807_v34 = vld [vmem:[%s4020_s2] ss:$0 sm:$0xff] }
 0x18e   :  { %1647 = vst [vmem:[%s4021_s3 + $0xd0] sm:$0xff] %v1598_v53  ;;  %v1551_v10 = vmax.f32 %v4228_v17, %v1453_v55  ;;  %v4230_v38 = vmax.f32 %v4229_v51, 0.0  ;;  %v1357_v42 = vmax.f32 %v695_v48, 0.0  ;;  %v690_v57 = vadd.f32 %v3025_v16, %v689_v25  ;;  %v4237_v17 = vld [vmem:[#allocation3_spill] sm:$0xff] }
 0x18f   :  { %1646 = vst [vmem:[%s4021_s3 + $0xc8] sm:$0xff] %v1597_v24  ;;  %v1180_v6 = vadd.f32 %v3025_v16, %v1179_v44  ;;  %v1418_v63 = vmax.f32 %v3776_v30, 0.0  ;;  %v4232_v32 = vmax.f32 %v4231_v21, 0.0  ;;  %v1455_v29 = vmax.f32 %v1185_v61, 0.0  ;;  %v699_v48 = vpop.f32.mrf.mxu0  ;;  %v1189_v49 = vpop.f32.mrf.mxu1  ;;  %v4239_v61 = vld [vmem:[#allocation4_spill] sm:$0xff] }
 0x190   :  { %v1501_v47 = vmax.f32 %v4230_v38, %v1354_v12  ;;  %v1600_v54 = vmax.f32 %v1502_v1, %v1551_v10  ;;  %v4233_v50 = vmax.f32 %v3401_v62, 0.0  ;;  %v1356_v53 = vmax.f32 %v690_v57, 0.0  ;;  %v4235_v62 = vld [vmem:[#allocation8_spill] sm:$0xff] }
 0x191   :  { %v1550_v26 = vmax.f32 %v4232_v32, %v1452_v43  ;;  %v1454_v55 = vmax.f32 %v1180_v6, 0.0  ;;  %v705_v16 = vadd.f32 %v3807_v34, %v2041_v39  ;;  %v3812_v0 = vadd.f32 %v3807_v34, %v4234_v19  ;;  %v2044_v21 = vpop.f32.mrf.mxu0  ;;  %v2191_v32 = vpop.f32.mrf.mxu1 }
 0x192   :  { %v1504_v56 = vmax.f32 %v4233_v50, %v1357_v42  ;;  %1649 = vst [vmem:[%s4021_s3 + $0xe0] sm:$0xff] %v1600_v54  ;;  %v4236_v22 = vmax.f32 %v4235_v62, 0.0  ;;  %v1195_v12 = vadd.f32 %v3807_v34, %v2188_v23  ;;  %v4238_v10 = vmax.f32 %v4237_v17, 0.0  ;;  %v4241_v42 = vld [vmem:[#allocation44_spill] sm:$0xff] }
 0x193   :  { %v1599_v24 = vmax.f32 %v1501_v47, %v1550_v26  ;;  %v4240_v25 = vmax.f32 %v4239_v61, 0.0  ;;  %v1359_v51 = vmax.f32 %v705_v16, 0.0  ;;  %v700_v38 = vadd.f32 %v3807_v34, %v699_v48  ;;  %v709_v62 = vpop.f32.mrf.mxu0  ;;  %v4247_v61 = vld [vmem:[#allocation50_spill] sm:$0xff] }
 0x194   :  { %v1553_v1 = vmax.f32 %v4236_v22, %v1455_v29  ;;  %v1503_v43 = vmax.f32 %v4238_v10, %v1356_v53  ;;  %v3827_v57 = vadd.f32 %v3807_v34, %v4241_v42  ;;  %v1457_v6 = vmax.f32 %v1195_v12, 0.0  ;;  %v4242_v29 = vld [vmem:[#allocation17_spill] sm:$0xff]  ;;  %v1199_v22 = vpop.f32.mrf.mxu1 }
 0x195   :  { %v1552_v44 = vmax.f32 %v4240_v25, %v1454_v55  ;;  %1648 = vst [vmem:[%s4021_s3 + $0xd8] sm:$0xff] %v1599_v24  ;;  %v1190_v54 = vadd.f32 %v3807_v34, %v1189_v49  ;;  %v4243_v39 = vmax.f32 %v4242_v29, 0.0  ;;  %v1358_v50 = vmax.f32 %v700_v38, 0.0  ;;  %v2047_v38 = vpop.f32.mrf.mxu0 }
 0x196   :  { %v1602_v47 = vmax.f32 %v1504_v56, %v1553_v1  ;;  %v715_v53 = vadd.f32 %v3807_v34, %v2044_v21  ;;  %v1323_v55 = vmax.f32 %v3812_v0, 0.0  ;;  %v4244_v56 = vmax.f32 %v3430_v8, 0.0  ;;  %v4245_v1 = vld [vmem:[#allocation6_spill] sm:$0xff]  ;;  %v2194_v42 = vpop.f32.mrf.mxu1 }
 0x197   :  { %v1601_v26 = vmax.f32 %v1503_v43, %v1552_v44  ;;  %v1506_v23 = vmax.f32 %v4243_v39, %v1359_v51  ;;  %v1456_v19 = vmax.f32 %v1190_v54, 0.0  ;;  %v1205_v24 = vadd.f32 %v3807_v34, %v2191_v32 }
 0x198   :  { %1651 = vst [vmem:[%s4021_s3 + $0xf0] sm:$0xff] %v1602_v47  ;;  %v1555_v16 = vmax.f32 %v4244_v56, %v1457_v6  ;;  %v4246_v12 = vmax.f32 %v4245_v1, 0.0  ;;  %v1361_v49 = vmax.f32 %v715_v53, 0.0  ;;  %v710_v17 = vadd.f32 %v3807_v34, %v709_v62 }
 0x199   :  { %1650 = vst [vmem:[%s4021_s3 + $0xe8] sm:$0xff] %v1601_v26  ;;  %v1200_v10 = vadd.f32 %v3807_v34, %v1199_v22  ;;  %v1421_v8 = vmax.f32 %v3827_v57, 0.0  ;;  %v4248_v25 = vmax.f32 %v4247_v61, 0.0  ;;  %v1459_v51 = vmax.f32 %v1205_v24, 0.0  ;;  %v4250_v26 = vld [vmem:[#allocation47_spill] sm:$0xff]  ;;  %v4255_v22 = vld [vmem:[#allocation14_spill] sm:$0xff] }
 0x19a   :  { %v1505_v48 = vmax.f32 %v4246_v12, %v1358_v50  ;;  %v1604_v43 = vmax.f32 %v1506_v23, %v1555_v16  ;;  %v4249_v47 = vmax.f32 %v3452_v7, 0.0  ;;  %v1360_v54 = vmax.f32 %v710_v17, 0.0  ;;  %v4251_v23 = vld [vmem:[#allocation55_spill] sm:$0xff]  ;;  %v719_v7 = vpop.f32.mrf.mxu0  ;;  %v1209_v16 = vpop.f32.mrf.mxu1 }
 0x19b   :  { %v1554_v44 = vmax.f32 %v4248_v25, %v1456_v19  ;;  %v1458_v21 = vmax.f32 %v1200_v10, 0.0  ;;  %v725_v32 = vadd.f32 %v3807_v34, %v2047_v38  ;;  %v3858_v29 = vadd.f32 %v3807_v34, %v4250_v26  ;;  %v4253_v19 = vld [vmem:[#allocation13_spill] sm:$0xff]  ;;  %v4257_v10 = vld [vmem:[#allocation48_spill] sm:$0xff] }
 0x19c   :  { %v1508_v6 = vmax.f32 %v4249_v47, %v1361_v49  ;;  %1653 = vst [vmem:[%s4021_s3 + $0x100] sm:$0xff] %v1604_v43  ;;  %v4252_v50 = vmax.f32 %v4251_v23, 0.0  ;;  %v1215_v56 = vadd.f32 %v3807_v34, %v2194_v42  ;;  %v4254_v24 = vmax.f32 %v4253_v19, 0.0 }
 0x19d   :  { %v1603_v39 = vmax.f32 %v1505_v48, %v1554_v44  ;;  %v4256_v1 = vmax.f32 %v4255_v22, 0.0  ;;  %v1363_v49 = vmax.f32 %v725_v32, 0.0  ;;  %v720_v17 = vadd.f32 %v3807_v34, %v719_v7  ;;  %v2050_v44 = vpop.f32.mrf.mxu0 }
 0x19e   :  { %v1557_v53 = vmax.f32 %v4252_v50, %v1459_v51  ;;  %v1507_v62 = vmax.f32 %v4254_v24, %v1360_v54  ;;  %v3873_v43 = vadd.f32 %v3807_v34, %v4257_v10  ;;  %v1461_v61 = vmax.f32 %v1215_v56, 0.0  ;;  %v2197_v51 = vpop.f32.mrf.mxu1 }
 0x19f   :  { %v1556_v12 = vmax.f32 %v4256_v1, %v1458_v21  ;;  %1652 = vst [vmem:[%s4021_s3 + $0xf8] sm:$0xff] %v1603_v39  ;;  %v1210_v25 = vadd.f32 %v3807_v34, %v1209_v16  ;;  %v1510_v42 = vmax.f32 %v1314_v37, %v1363_v49  ;;  %v1362_v47 = vmax.f32 %v720_v17, 0.0  ;;  %v729_v39 = vpop.f32.mrf.mxu0  ;;  %v4260_v16 = vld [vmem:[#allocation52_spill] sm:$0xff] }
 0x1a0   :  { %v1606_v48 = vmax.f32 %v1508_v6, %v1557_v53  ;;  %v735_v54 = vadd.f32 %v3807_v34, %v2050_v44  ;;  %v1322_v21 = vmax.f32 %v3858_v29, 0.0  ;;  %v1559_v6 = vmax.f32 %v1412_v27, %v1461_v61  ;;  %v1219_v23 = vpop.f32.mrf.mxu1 }
 0x1a1   :  { %v1605_v38 = vmax.f32 %v1507_v62, %v1556_v12  ;;  %v1460_v32 = vmax.f32 %v1210_v25, 0.0  ;;  %v1225_v26 = vadd.f32 %v3807_v34, %v2197_v51  ;;  %v4259_v37 = vmax.f32 %v4258_v58, 0.0  ;;  %v2053_v22 = vpop.f32.mrf.mxu0 }
 0x1a2   :  { %1655 = vst [vmem:[%s4021_s3 + $0x110] sm:$0xff] %v1606_v48  ;;  %v1365_v53 = vmax.f32 %v735_v54, 0.0  ;;  %v730_v56 = vadd.f32 %v3807_v34, %v729_v39  ;;  %v1220_v7 = vadd.f32 %v3807_v34, %v1219_v23  ;;  %v1420_v40 = vmax.f32 %v3873_v43, 0.0  ;;  %v2200_v1 = vpop.f32.mrf.mxu1  ;;  %v4262_v48 = vld [vmem:[#allocation7_spill] sm:$0xff]  ;;  %v4265_v54 = vld [vmem:[#allocation12_spill] sm:$0xff]  ;;  %v4267_v23 = vld [vmem:[#allocation49_spill] sm:$0xff] }
 0x1a3   :  { %1654 = vst [vmem:[%s4021_s3 + $0x108] sm:$0xff] %v1605_v38  ;;  %v1509_v50 = vmax.f32 %v4259_v37, %v1362_v47  ;;  %v1608_v27 = vmax.f32 %v1510_v42, %v1559_v6  ;;  %v4261_v19 = vmax.f32 %v4260_v16, 0.0  ;;  %v1463_v62 = vmax.f32 %v1225_v26, 0.0  ;;  %v739_v3 = vpop.f32.mrf.mxu0  ;;  %v4263_v38 = vld [vmem:[#allocation56_spill] sm:$0xff] }
 0x1a4   :  { %v1512_v12 = vmax.f32 %v1316_v46, %v1365_v53  ;;  %v1364_v49 = vmax.f32 %v730_v56, 0.0  ;;  %v1462_v17 = vmax.f32 %v1220_v7, 0.0  ;;  %v745_v10 = vadd.f32 %v3807_v34, %v2053_v22  ;;  %v1229_v46 = vpop.f32.mrf.mxu1 }
 0x1a5   :  { %v1558_v24 = vmax.f32 %v4261_v19, %v1460_v32  ;;  %v3904_v61 = vadd.f32 %v3807_v34, %v4262_v48  ;;  %1657 = vst [vmem:[%s4021_s3 + $0x120] sm:$0xff] %v1608_v27  ;;  %v1561_v44 = vmax.f32 %v1414_v31, %v1463_v62  ;;  %v1235_v51 = vadd.f32 %v3807_v34, %v2200_v1  ;;  %v4268_v19 = vld [vmem:[#allocation9_spill] sm:$0xff]  ;;  %v4269_v48 = vld [vmem:[#allocation51_spill] sm:$0xff] }
 0x1a6   :  { %v4264_v42 = vmax.f32 %v4263_v38, 0.0  ;;  %v4266_v6 = vmax.f32 %v4265_v54, 0.0  ;;  %v1367_v26 = vmax.f32 %v745_v10, 0.0  ;;  %v740_v39 = vadd.f32 %v3807_v34, %v739_v3  ;;  %v2203_v53 = vpop.f32.mrf.mxu1 }
 0x1a7   :  { %v1607_v25 = vmax.f32 %v1509_v50, %v1558_v24  ;;  %v3919_v58 = vadd.f32 %v3807_v34, %v4267_v23  ;;  %v1610_v5 = vmax.f32 %v1512_v12, %v1561_v44  ;;  %v1465_v31 = vmax.f32 %v1235_v51, 0.0  ;;  %v2056_v50 = vpop.f32.mrf.mxu0 }
 0x1a8   :  { %v1511_v47 = vmax.f32 %v4264_v42, %v1364_v49  ;;  %v1560_v32 = vmax.f32 %v4266_v6, %v1462_v17  ;;  %v1230_v37 = vadd.f32 %v3807_v34, %v1229_v46  ;;  %v1514_v7 = vmax.f32 %v1318_v15, %v1367_v26  ;;  %v1239_v60 = vpop.f32.mrf.mxu1 }
 0x1a9   :  { %1656 = vst [vmem:[%s4021_s3 + $0x118] sm:$0xff] %v1607_v25  ;;  %v1366_v27 = vmax.f32 %v740_v39, 0.0  ;;  %v755_v16 = vadd.f32 %v3807_v34, %v2056_v50  ;;  %v3930_v24 = vadd.f32 %v3807_v34, %v4268_v19  ;;  %1659 = vst [vmem:[%s4021_s3 + $0x130] sm:$0xff] %v1610_v5  ;;  %v1563_v62 = vmax.f32 %v1416_v35, %v1465_v31  ;;  %v749_v12 = vpop.f32.mrf.mxu0 }
 0x1aa   :  { %v1609_v56 = vmax.f32 %v1511_v47, %v1560_v32  ;;  %v1464_v22 = vmax.f32 %v1230_v37, 0.0  ;;  %v1245_v1 = vadd.f32 %v3807_v34, %v2203_v53  ;;  %v750_v17 = vadd.f32 %v3807_v34, %v749_v12  ;;  %v2206_v3 = vpop.f32.mrf.mxu1 }
 0x1ab   :  { %v1513_v15 = vmax.f32 %v1317_v45, %v1366_v27  ;;  %v1369_v49 = vmax.f32 %v755_v16, 0.0  ;;  %v1240_v10 = vadd.f32 %v3807_v34, %v1239_v60  ;;  %v1020_v14 = vadd.f32 %v3807_v34, %v4269_v48  ;;  %v2059_v51 = vpop.f32.mrf.mxu0 }
 0x1ac   :  { %1658 = vst [vmem:[%s4021_s3 + $0x128] sm:$0xff] %v1609_v56  ;;  %v1612_v35 = vmax.f32 %v1514_v7, %v1563_v62  ;;  %v1562_v25 = vmax.f32 %v1415_v36, %v1464_v22  ;;  %v1467_v44 = vmax.f32 %v1245_v1, 0.0  ;;  %v1368_v11 = vmax.f32 %v750_v17, 0.0  ;;  %v1249_v6 = vpop.f32.mrf.mxu1  ;;  %v4271_v62 = vld [vmem:[#allocation54_spill] sm:$0xff] }
 0x1ad   :  { %v1516_v46 = vmax.f32 %v1320_v2, %v1369_v49  ;;  %v1466_v45 = vmax.f32 %v1240_v10, 0.0  ;;  %v765_v38 = vadd.f32 %v3807_v34, %v2059_v51  ;;  %v1324_v42 = vmax.f32 %v3930_v24, 0.0  ;;  %v759_v54 = vpop.f32.mrf.mxu0 }
 0x1ae   :  { %1661 = vst [vmem:[%s4021_s3 + $0x140] sm:$0xff] %v1612_v35  ;;  %v1611_v47 = vmax.f32 %v1513_v15, %v1562_v25  ;;  %v1565_v41 = vmax.f32 %v1418_v63, %v1467_v44  ;;  %v1255_v36 = vadd.f32 %v3807_v34, %v2206_v3  ;;  %v1515_v20 = vmax.f32 %v1319_v33, %v1368_v11  ;;  %v2209_v31 = vpop.f32.mrf.mxu1 }
 0x1af   :  { %v1564_v2 = vmax.f32 %v1417_v52, %v1466_v45  ;;  %v1371_v32 = vmax.f32 %v765_v38, 0.0  ;;  %v760_v26 = vadd.f32 %v3807_v34, %v759_v54  ;;  %v1422_v39 = vmax.f32 %v1020_v14, 0.0  ;;  %v2062_v5 = vpop.f32.mrf.mxu0  ;;  %v4270_v52 = vld [vmem:[#allocation53_spill] sm:$0xff] }
 0x1b0   :  { %1660 = vst [vmem:[%s4021_s3 + $0x138] sm:$0xff] %v1611_v47  ;;  %v1614_v30 = vmax.f32 %v1516_v46, %v1565_v41  ;;  %v1469_v63 = vmax.f32 %v1255_v36, 0.0  ;;  %v1250_v23 = vadd.f32 %v3807_v34, %v1249_v6  ;;  %v775_v33 = vadd.f32 %v3807_v34, %v2062_v5  ;;  %v1259_v16 = vpop.f32.mrf.mxu1 }
 0x1b1   :  { %v1613_v37 = vmax.f32 %v1515_v20, %v1564_v2  ;;  %v1518_v59 = vmax.f32 %v1322_v21, %v1371_v32  ;;  %v1370_v13 = vmax.f32 %v760_v26, 0.0  ;;  %v540_v50 = vadd.f32 %v3807_v34, %v4270_v52  ;;  %v769_v27 = vpop.f32.mrf.mxu0 }
 0x1b2   :  { %1663 = vst [vmem:[%s4021_s3 + $0x150] sm:$0xff] %v1614_v30  ;;  %v1567_v53 = vmax.f32 %v1420_v40, %v1469_v63  ;;  %v1468_v56 = vmax.f32 %v1250_v23, 0.0  ;;  %v1265_v7 = vadd.f32 %v3807_v34, %v2209_v31  ;;  %v1373_v21 = vmax.f32 %v775_v33, 0.0  ;;  %v2212_v60 = vpop.f32.mrf.mxu1 }
 0x1b3   :  { %1662 = vst [vmem:[%s4021_s3 + $0x148] sm:$0xff] %v1613_v37  ;;  %v1517_v29 = vmax.f32 %v1321_v18, %v1370_v13  ;;  %v770_v19 = vadd.f32 %v3807_v34, %v769_v27  ;;  %v1260_v24 = vadd.f32 %v3807_v34, %v1259_v16  ;;  %v1030_v43 = vadd.f32 %v3807_v34, %v4271_v62  ;;  %v2065_v12 = vpop.f32.mrf.mxu0 }
 0x1b4   :  { %v1616_v40 = vmax.f32 %v1518_v59, %v1567_v53  ;;  %v1566_v22 = vmax.f32 %v1419_v4, %v1468_v56  ;;  %v1471_v1 = vmax.f32 %v1265_v7, 0.0  ;;  %v1520_v15 = vmax.f32 %v1324_v42, %v1373_v21  ;;  %v1269_v28 = vpop.f32.mrf.mxu1 }
 0x1b5   :  { %v1372_v49 = vmax.f32 %v770_v19, 0.0  ;;  %v1470_v17 = vmax.f32 %v1260_v24, 0.0  ;;  %v785_v9 = vadd.f32 %v3807_v34, %v2065_v12  ;;  %v1326_v18 = vmax.f32 %v540_v50, 0.0  ;;  %v779_v35 = vpop.f32.mrf.mxu0 }
 0x1b6   :  { %1665 = vst [vmem:[%s4021_s3 + $0x160] sm:$0xff] %v1616_v40  ;;  %v1615_v10 = vmax.f32 %v1517_v29, %v1566_v22  ;;  %v1569_v48 = vmax.f32 %v1422_v39, %v1471_v1  ;;  %v1275_v14 = vadd.f32 %v3807_v34, %v2212_v60  ;;  %v780_v51 = vadd.f32 %v3807_v34, %v779_v35 }
 0x1b7   :  { %v1519_v4 = vmax.f32 %v1323_v55, %v1372_v49  ;;  %v1568_v25 = vmax.f32 %v1421_v8, %v1470_v17  ;;  %v1375_v44 = vmax.f32 %v785_v9, 0.0  ;;  %v1424_v3 = vmax.f32 %v1030_v43, 0.0 }
 0x1b8   :  { %1664 = vst [vmem:[%s4021_s3 + $0x158] sm:$0xff] %v1615_v10  ;;  %v1618_v46 = vmax.f32 %v1520_v15, %v1569_v48  ;;  %v1473_v11 = vmax.f32 %v1275_v14, 0.0  ;;  %v1270_v45 = vadd.f32 %v3807_v34, %v1269_v28  ;;  %v1325_v38 = vmax.f32 %v3904_v61, 0.0 }
 0x1b9   :  { %v1617_v42 = vmax.f32 %v1519_v4, %v1568_v25  ;;  %v1522_v0 = vmax.f32 %v1326_v18, %v1375_v44  ;;  %v1374_v55 = vmax.f32 %v780_v51, 0.0  ;;  %v1423_v57 = vmax.f32 %v3919_v58, 0.0 }
 0x1ba   :  { %1667 = vst [vmem:[%s4021_s3 + $0x170] sm:$0xff] %v1618_v46  ;;  %v1571_v8 = vmax.f32 %v1424_v3, %v1473_v11  ;;  %v1472_v47 = vmax.f32 %v1270_v45, 0.0 }
 0x1bb   :  { %1666 = vst [vmem:[%s4021_s3 + $0x168] sm:$0xff] %v1617_v42  ;;  %v1521_v41 = vmax.f32 %v1325_v38, %v1374_v55 }
 0x1bc   :  { %v1620_v36 = vmax.f32 %v1522_v0, %v1571_v8  ;;  %v1570_v34 = vmax.f32 %v1423_v57, %v1472_v47 }
 0x1be   :  { %1669 = vst [vmem:[%s4021_s3 + $0x180] sm:$0xff] %v1620_v36  ;;  %v1619_v61 = vmax.f32 %v1521_v41, %v1570_v34 }
 0x1c0   :  { %1668 = vst [vmem:[%s4021_s3 + $0x178] sm:$0xff] %v1619_v61 }

// kernel: forward.3
= control target key start
LH: loop header
LB: loop body
LE: loop exit
PB: predicated region body
PF: predicated region fallthrough
CT: control target
= control target key end

     0   :  { %v8282_v0 = vmov 0.0   ;;  %vm5205_vm0 = vmmov 0   ;;  %s8272_s1 = inlined_call_operand.vmem [shape: f32[256,128], index: 1, kind: input, shape index: {}]   ;;  %s8273_s0 = inlined_call_operand.vmem [shape: f32[4,200,256], index: 0, kind: input, shape index: {}]   ;;  %s8274_s2 = inlined_call_operand.vmem [shape: f32[1,128], index: 2, kind: input, shape index: {}]   ;;  %s8275_s3 = inlined_call_operand.vmem [shape: f32[25,128,128], index: 3, kind: input, shape index: {}]   ;;  %s8276_s5 = inlined_call_operand.vmem [shape: f32[128,128], index: 5, kind: input, shape index: {}]   ;;  %s8277_s7 = inlined_call_operand.vmem [shape: f32[128,128], index: 7, kind: input, shape index: {}]   ;;  %s8278_s4 = inlined_call_operand.vmem [shape: f32[1,128], index: 4, kind: input, shape index: {}]   ;;  %s8279_s6 = inlined_call_operand.vmem [shape: f32[1,128], index: 6, kind: input, shape index: {}]   ;;  %s8280_s8 = inlined_call_operand.vmem [shape: f32[1,128], index: 8, kind: input, shape index: {}]   ;;  %s8281_s9 = inlined_call_operand.vmem [shape: f32[8,128], index: 9, kind: output, shape index: {}]  }
   0x1   :  { %271 = vmatprep.subr.mxu0 %v8282_v0  ;;  %v247_v1 = vld [vmem:[%s8272_s1 + $0x78] sm:$0xff]  ;;  %v246_v2 = vld [vmem:[%s8272_s1 + $0x70] sm:$0xff]  ;;  %4256 = vmatprep.subr.mxu1 %v8282_v0  ;;  %v245_v3 = vld [vmem:[%s8272_s1 + $0x68] sm:$0xff] }
   0x2   :  { %272 = vmatpush1.msra.mxu0 %v247_v1  ;;  %v244_v4 = vld [vmem:[%s8272_s1 + $0x60] sm:$0xff]  ;;  %v243_v5 = vld [vmem:[%s8272_s1 + $0x58] sm:$0xff]  ;;  %v242_v6 = vld [vmem:[%s8272_s1 + $0x50] sm:$0xff]  ;;  %4288 = vmatprep.mubr.msk.f32.mxu1 %vm5205_vm0, %v8282_v0 }
   0x3   :  { %273 = vmatprep.subr.mxu0 %v8282_v0  ;;  %v241_v7 = vld [vmem:[%s8272_s1 + $0x48] sm:$0xff]  ;;  %v240_v9 = vld [vmem:[%s8272_s1 + $0x40] sm:$0xff]  ;;  %v239_v10 = vld [vmem:[%s8272_s1 + $0x38] sm:$0xff] }
   0x4   :  { %274 = vmatpush1.msra.mxu0 %v246_v2  ;;  %v33_v8 = vld [vmem:[%s8273_s0 + $0x8] sm:$0xff]  ;;  %v238_v11 = vld [vmem:[%s8272_s1 + $0x30] sm:$0xff]  ;;  %v236_v13 = vld [vmem:[%s8272_s1 + $0x20] sm:$0xff] }
   0x5   :  { %275 = vmatprep.subr.mxu0 %v8282_v0  ;;  %335 = vmatprep.mubr.f32.mxu0 %v33_v8  ;;  %v237_v12 = vld [vmem:[%s8272_s1 + $0x28] sm:$0xff]  ;;  %v235_v14 = vld [vmem:[%s8272_s1 + $0x18] sm:$0xff]  ;;  %v234_v15 = vld [vmem:[%s8272_s1 + $0x10] sm:$0xff] }
   0x6   :  { %276 = vmatpush1.msra.mxu0 %v245_v3  ;;  %v233_v16 = vld [vmem:[%s8272_s1 + $0x8] sm:$0xff]  ;;  %v232_v17 = vld [vmem:[%s8272_s1] sm:$0xff]  ;;  %v263_v18 = vld [vmem:[%s8272_s1 + $0xf8] sm:$0xff] }
   0x7   :  { %277 = vmatprep.subr.mxu0 %v8282_v0  ;;  %v262_v19 = vld [vmem:[%s8272_s1 + $0xf0] sm:$0xff]  ;;  %v261_v20 = vld [vmem:[%s8272_s1 + $0xe8] sm:$0xff]  ;;  %v260_v21 = vld [vmem:[%s8272_s1 + $0xe0] sm:$0xff] }
   0x8   :  { %278 = vmatpush1.msra.mxu0 %v244_v4  ;;  %v259_v22 = vld [vmem:[%s8272_s1 + $0xd8] sm:$0xff]  ;;  %v258_v23 = vld [vmem:[%s8272_s1 + $0xd0] sm:$0xff]  ;;  %v257_v24 = vld [vmem:[%s8272_s1 + $0xc8] sm:$0xff] }
   0x9   :  { %279 = vmatprep.subr.mxu0 %v8282_v0  ;;  %v256_v25 = vld [vmem:[%s8272_s1 + $0xc0] sm:$0xff]  ;;  %v255_v26 = vld [vmem:[%s8272_s1 + $0xb8] sm:$0xff]  ;;  %v254_v27 = vld [vmem:[%s8272_s1 + $0xb0] sm:$0xff] }
   0xa   :  { %280 = vmatpush1.msra.mxu0 %v243_v5  ;;  %v253_v28 = vld [vmem:[%s8272_s1 + $0xa8] sm:$0xff]  ;;  %v252_v29 = vld [vmem:[%s8272_s1 + $0xa0] sm:$0xff]  ;;  %v251_v30 = vld [vmem:[%s8272_s1 + $0x98] sm:$0xff] }
   0xb   :  { %281 = vmatprep.subr.mxu0 %v8282_v0  ;;  %v250_v31 = vld [vmem:[%s8272_s1 + $0x90] sm:$0xff]  ;;  %v249_v32 = vld [vmem:[%s8272_s1 + $0x88] sm:$0xff]  ;;  %v248_v33 = vld [vmem:[%s8272_s1 + $0x80] sm:$0xff] }
   0xc   :  { %282 = vmatpush1.msra.mxu0 %v242_v6  ;;  %v32_v34 = vld [vmem:[%s8273_s0] sm:$0xff]  ;;  %v35_v35 = vld [vmem:[%s8273_s0 + $0x18] sm:$0xff]  ;;  %v34_v36 = vld [vmem:[%s8273_s0 + $0x10] sm:$0xff] }
   0xd   :  { %283 = vmatprep.subr.mxu0 %v8282_v0  ;;  %v37_v37 = vld [vmem:[%s8273_s0 + $0x28] sm:$0xff]  ;;  %v36_v38 = vld [vmem:[%s8273_s0 + $0x20] sm:$0xff]  ;;  %v39_v39 = vld [vmem:[%s8273_s0 + $0x38] sm:$0xff] }
   0xe   :  { %284 = vmatpush1.msra.mxu0 %v241_v7  ;;  %v38_v40 = vld [vmem:[%s8273_s0 + $0x30] sm:$0xff]  ;;  %v41_v41 = vld [vmem:[%s8273_s0 + $0x48] sm:$0xff]  ;;  %v40_v42 = vld [vmem:[%s8273_s0 + $0x40] sm:$0xff] }
   0xf   :  { %285 = vmatprep.subr.mxu0 %v8282_v0  ;;  %v43_v43 = vld [vmem:[%s8273_s0 + $0x58] sm:$0xff]  ;;  %v42_v44 = vld [vmem:[%s8273_s0 + $0x50] sm:$0xff]  ;;  %v45_v45 = vld [vmem:[%s8273_s0 + $0x68] sm:$0xff] }
  0x10   :  { %286 = vmatpush1.msra.mxu0 %v240_v9  ;;  %v44_v46 = vld [vmem:[%s8273_s0 + $0x60] sm:$0xff]  ;;  %v47_v47 = vld [vmem:[%s8273_s0 + $0x78] sm:$0xff]  ;;  %v46_v48 = vld [vmem:[%s8273_s0 + $0x70] sm:$0xff] }
  0x11   :  { %287 = vmatprep.subr.mxu0 %v8282_v0  ;;  %v49_v49 = vld [vmem:[%s8273_s0 + $0x88] sm:$0xff]  ;;  %v48_v50 = vld [vmem:[%s8273_s0 + $0x80] sm:$0xff]  ;;  %v51_v51 = vld [vmem:[%s8273_s0 + $0x98] sm:$0xff] }
  0x12   :  { %288 = vmatpush1.msra.mxu0 %v239_v10  ;;  %v50_v52 = vld [vmem:[%s8273_s0 + $0x90] sm:$0xff]  ;;  %v53_v53 = vld [vmem:[%s8273_s0 + $0xa8] sm:$0xff]  ;;  %v52_v54 = vld [vmem:[%s8273_s0 + $0xa0] sm:$0xff] }
  0x13   :  { %289 = vmatprep.subr.mxu0 %v8282_v0  ;;  %v55_v55 = vld [vmem:[%s8273_s0 + $0xb8] sm:$0xff]  ;;  %v54_v56 = vld [vmem:[%s8273_s0 + $0xb0] sm:$0xff]  ;;  %v57_v57 = vld [vmem:[%s8273_s0 + $0xc8] sm:$0xff] }
  0x14   :  { %290 = vmatpush1.msra.mxu0 %v238_v11  ;;  %v56_v58 = vld [vmem:[%s8273_s0 + $0xc0] sm:$0xff]  ;;  %v59_v59 = vld [vmem:[%s8273_s0 + $0xd8] sm:$0xff]  ;;  %v58_v60 = vld [vmem:[%s8273_s0 + $0xd0] sm:$0xff] }
  0x15   :  { %291 = vmatprep.subr.mxu0 %v8282_v0  ;;  %v61_v61 = vld [vmem:[%s8273_s0 + $0xe8] sm:$0xff]  ;;  %v60_v62 = vld [vmem:[%s8273_s0 + $0xe0] sm:$0xff]  ;;  %v63_v63 = vld [vmem:[%s8273_s0 + $0xf8] sm:$0xff] }
  0x16   :  { %292 = vmatpush1.msra.mxu0 %v237_v12  ;;  %v62_v1 = vld [vmem:[%s8273_s0 + $0xf0] sm:$0xff]  ;;  %v65_v2 = vld [vmem:[%s8273_s0 + $0x108] sm:$0xff]  ;;  %v64_v3 = vld [vmem:[%s8273_s0 + $0x100] sm:$0xff] }
  0x17   :  { %293 = vmatprep.subr.mxu0 %v8282_v0  ;;  %v67_v4 = vld [vmem:[%s8273_s0 + $0x118] sm:$0xff]  ;;  %v66_v5 = vld [vmem:[%s8273_s0 + $0x110] sm:$0xff]  ;;  %v69_v6 = vld [vmem:[%s8273_s0 + $0x128] sm:$0xff] }
  0x18   :  { %294 = vmatpush1.msra.mxu0 %v236_v13  ;;  %v68_v7 = vld [vmem:[%s8273_s0 + $0x120] sm:$0xff]  ;;  %v71_v8 = vld [vmem:[%s8273_s0 + $0x138] sm:$0xff]  ;;  %v70_v9 = vld [vmem:[%s8273_s0 + $0x130] sm:$0xff] }
  0x19   :  { %295 = vmatprep.subr.mxu0 %v8282_v0  ;;  %v73_v10 = vld [vmem:[%s8273_s0 + $0x148] sm:$0xff]  ;;  %v72_v11 = vld [vmem:[%s8273_s0 + $0x140] sm:$0xff]  ;;  %v75_v12 = vld [vmem:[%s8273_s0 + $0x158] sm:$0xff] }
  0x1a   :  { %296 = vmatpush1.msra.mxu0 %v235_v14  ;;  %v74_v13 = vld [vmem:[%s8273_s0 + $0x150] sm:$0xff]  ;;  %v77_v14 = vld [vmem:[%s8273_s0 + $0x168] sm:$0xff] }
  0x1b   :  { %297 = vmatprep.subr.mxu0 %v8282_v0 }
  0x1c   :  { %298 = vmatpush1.msra.mxu0 %v234_v15  ;;  %v76_v15 = vld [vmem:[%s8273_s0 + $0x160] sm:$0xff] }
  0x1d   :  { %299 = vmatprep.subr.mxu0 %v8282_v0 }
  0x1e   :  { %300 = vmatpush1.msra.mxu0 %v233_v16  ;;  %v79_v16 = vld [vmem:[%s8273_s0 + $0x178] sm:$0xff] }
  0x1f   :  { %301 = vmatprep.subr.mxu0 %v8282_v0 }
  0x20   :  { %302 = vmatpush1.msra.mxu0 %v232_v17  ;;  %v78_v17 = vld [vmem:[%s8273_s0 + $0x170] sm:$0xff] }
  0x21   :  { %303 = vmatprep.subr.mxu0 %v8282_v0 }
  0x22   :  { %304 = vmatpush2.msra.mxu0 %v263_v18  ;;  %v81_v18 = vld [vmem:[%s8273_s0 + $0x188] sm:$0xff] }
  0x23   :  { %305 = vmatprep.subr.mxu0 %v8282_v0 }
  0x24   :  { %306 = vmatpush2.msra.mxu0 %v262_v19  ;;  %v80_v19 = vld [vmem:[%s8273_s0 + $0x180] sm:$0xff] }
  0x25   :  { %307 = vmatprep.subr.mxu0 %v8282_v0 }
  0x26   :  { %308 = vmatpush2.msra.mxu0 %v261_v20  ;;  %v83_v20 = vld [vmem:[%s8273_s0 + $0x198] sm:$0xff] }
  0x27   :  { %309 = vmatprep.subr.mxu0 %v8282_v0 }
  0x28   :  { %310 = vmatpush2.msra.mxu0 %v260_v21  ;;  %v82_v21 = vld [vmem:[%s8273_s0 + $0x190] sm:$0xff] }
  0x29   :  { %311 = vmatprep.subr.mxu0 %v8282_v0 }
  0x2a   :  { %312 = vmatpush2.msra.mxu0 %v259_v22  ;;  %v85_v22 = vld [vmem:[%s8273_s0 + $0x1a8] sm:$0xff] }
  0x2b   :  { %313 = vmatprep.subr.mxu0 %v8282_v0 }
  0x2c   :  { %314 = vmatpush2.msra.mxu0 %v258_v23  ;;  %v84_v23 = vld [vmem:[%s8273_s0 + $0x1a0] sm:$0xff] }
  0x2d   :  { %315 = vmatprep.subr.mxu0 %v8282_v0 }
  0x2e   :  { %316 = vmatpush2.msra.mxu0 %v257_v24  ;;  %v87_v24 = vld [vmem:[%s8273_s0 + $0x1b8] sm:$0xff] }
  0x2f   :  { %317 = vmatprep.subr.mxu0 %v8282_v0 }
  0x30   :  { %318 = vmatpush2.msra.mxu0 %v256_v25  ;;  %v86_v25 = vld [vmem:[%s8273_s0 + $0x1b0] sm:$0xff] }
  0x31   :  { %319 = vmatprep.subr.mxu0 %v8282_v0 }
  0x32   :  { %320 = vmatpush2.msra.mxu0 %v255_v26  ;;  %v89_v26 = vld [vmem:[%s8273_s0 + $0x1c8] sm:$0xff] }
  0x33   :  { %321 = vmatprep.subr.mxu0 %v8282_v0 }
  0x34   :  { %322 = vmatpush2.msra.mxu0 %v254_v27  ;;  %v88_v27 = vld [vmem:[%s8273_s0 + $0x1c0] sm:$0xff] }
  0x35   :  { %323 = vmatprep.subr.mxu0 %v8282_v0 }
  0x36   :  { %324 = vmatpush2.msra.mxu0 %v253_v28  ;;  %v91_v28 = vld [vmem:[%s8273_s0 + $0x1d8] sm:$0xff] }
  0x37   :  { %325 = vmatprep.subr.mxu0 %v8282_v0 }
  0x38   :  { %326 = vmatpush2.msra.mxu0 %v252_v29  ;;  %v90_v29 = vld [vmem:[%s8273_s0 + $0x1d0] sm:$0xff] }
  0x39   :  { %327 = vmatprep.subr.mxu0 %v8282_v0 }
  0x3a   :  { %328 = vmatpush2.msra.mxu0 %v251_v30  ;;  %v93_v30 = vld [vmem:[%s8273_s0 + $0x1e8] sm:$0xff] }
  0x3b   :  { %329 = vmatprep.subr.mxu0 %v8282_v0 }
  0x3c   :  { %330 = vmatpush2.msra.mxu0 %v250_v31  ;;  %v92_v31 = vld [vmem:[%s8273_s0 + $0x1e0] sm:$0xff] }
  0x3d   :  { %331 = vmatprep.subr.mxu0 %v8282_v0 }
  0x3e   :  { %332 = vmatpush2.msra.mxu0 %v249_v32  ;;  %v95_v32 = vld [vmem:[%s8273_s0 + $0x1f8] sm:$0xff] }
  0x3f   :  { %333 = vmatprep.subr.mxu0 %v8282_v0 }
  0x40   :  { %334 = vmatpush2.msra.mxu0 %v248_v33  ;;  %v94_v33 = vld [vmem:[%s8273_s0 + $0x1f0] sm:$0xff] }
  0x41   :  { %336 = vmatmul.mubr.f32.vlgmr.msra.gmra.mxu0 %v32_v34  ;;  %4746 = vmatprep.subr.mxu0 %v8282_v0  ;;  %v97_v34 = vld [vmem:[%s8273_s0 + $0x208] sm:$0xff] }
  0x42   :  { %340 = vmatprep.mubr.f32.mxu0 %v35_v35  ;;  %v96_v35 = vld [vmem:[%s8273_s0 + $0x200] sm:$0xff] }
  0x45   :  { %341 = vmatmul.mubr.f32.gmra.mxu0 %v34_v36  ;;  %v99_v36 = vld [vmem:[%s8273_s0 + $0x218] sm:$0xff] }
  0x46   :  { %345 = vmatprep.mubr.f32.mxu0 %v37_v37  ;;  %v98_v37 = vld [vmem:[%s8273_s0 + $0x210] sm:$0xff] }
  0x49   :  { %346 = vmatmul.mubr.f32.gmra.mxu0 %v36_v38  ;;  %v101_v38 = vld [vmem:[%s8273_s0 + $0x228] sm:$0xff] }
  0x4a   :  { %350 = vmatprep.mubr.f32.mxu0 %v39_v39  ;;  %v100_v39 = vld [vmem:[%s8273_s0 + $0x220] sm:$0xff] }
  0x4d   :  { %351 = vmatmul.mubr.f32.gmra.mxu0 %v38_v40  ;;  %v103_v40 = vld [vmem:[%s8273_s0 + $0x238] sm:$0xff] }
  0x4e   :  { %355 = vmatprep.mubr.f32.mxu0 %v41_v41  ;;  %v102_v41 = vld [vmem:[%s8273_s0 + $0x230] sm:$0xff] }
  0x51   :  { %356 = vmatmul.mubr.f32.gmra.mxu0 %v40_v42  ;;  %v105_v42 = vld [vmem:[%s8273_s0 + $0x248] sm:$0xff] }
  0x52   :  { %360 = vmatprep.mubr.f32.mxu0 %v43_v43  ;;  %v104_v43 = vld [vmem:[%s8273_s0 + $0x240] sm:$0xff] }
  0x55   :  { %361 = vmatmul.mubr.f32.gmra.mxu0 %v42_v44  ;;  %v107_v44 = vld [vmem:[%s8273_s0 + $0x258] sm:$0xff] }
  0x56   :  { %365 = vmatprep.mubr.f32.mxu0 %v45_v45  ;;  %v106_v45 = vld [vmem:[%s8273_s0 + $0x250] sm:$0xff] }
  0x59   :  { %366 = vmatmul.mubr.f32.gmra.mxu0 %v44_v46  ;;  %v109_v46 = vld [vmem:[%s8273_s0 + $0x268] sm:$0xff] }
  0x5a   :  { %370 = vmatprep.mubr.f32.mxu0 %v47_v47  ;;  %v108_v47 = vld [vmem:[%s8273_s0 + $0x260] sm:$0xff] }
  0x5d   :  { %371 = vmatmul.mubr.f32.gmra.mxu0 %v46_v48  ;;  %v111_v48 = vld [vmem:[%s8273_s0 + $0x278] sm:$0xff] }
  0x5e   :  { %375 = vmatprep.mubr.f32.mxu0 %v49_v49  ;;  %v110_v49 = vld [vmem:[%s8273_s0 + $0x270] sm:$0xff] }
  0x61   :  { %376 = vmatmul.mubr.f32.gmra.mxu0 %v48_v50  ;;  %v113_v50 = vld [vmem:[%s8273_s0 + $0x288] sm:$0xff] }
  0x62   :  { %380 = vmatprep.mubr.f32.mxu0 %v51_v51  ;;  %v112_v51 = vld [vmem:[%s8273_s0 + $0x280] sm:$0xff] }
  0x65   :  { %381 = vmatmul.mubr.f32.gmra.mxu0 %v50_v52  ;;  %v115_v52 = vld [vmem:[%s8273_s0 + $0x298] sm:$0xff] }
  0x66   :  { %385 = vmatprep.mubr.f32.mxu0 %v53_v53  ;;  %v114_v53 = vld [vmem:[%s8273_s0 + $0x290] sm:$0xff] }
  0x69   :  { %386 = vmatmul.mubr.f32.gmra.mxu0 %v52_v54  ;;  %v117_v54 = vld [vmem:[%s8273_s0 + $0x2a8] sm:$0xff] }
  0x6a   :  { %390 = vmatprep.mubr.f32.mxu0 %v55_v55  ;;  %v116_v55 = vld [vmem:[%s8273_s0 + $0x2a0] sm:$0xff] }
  0x6d   :  { %391 = vmatmul.mubr.f32.gmra.mxu0 %v54_v56  ;;  %v119_v56 = vld [vmem:[%s8273_s0 + $0x2b8] sm:$0xff] }
  0x6e   :  { %395 = vmatprep.mubr.f32.mxu0 %v57_v57  ;;  %v118_v57 = vld [vmem:[%s8273_s0 + $0x2b0] sm:$0xff] }
  0x71   :  { %396 = vmatmul.mubr.f32.gmra.mxu0 %v56_v58  ;;  %v121_v58 = vld [vmem:[%s8273_s0 + $0x2c8] sm:$0xff] }
  0x72   :  { %400 = vmatprep.mubr.f32.mxu0 %v59_v59  ;;  %v120_v59 = vld [vmem:[%s8273_s0 + $0x2c0] sm:$0xff] }
  0x75   :  { %401 = vmatmul.mubr.f32.gmra.mxu0 %v58_v60  ;;  %v123_v60 = vld [vmem:[%s8273_s0 + $0x2d8] sm:$0xff] }
  0x76   :  { %405 = vmatprep.mubr.f32.mxu0 %v61_v61  ;;  %v122_v61 = vld [vmem:[%s8273_s0 + $0x2d0] sm:$0xff] }
  0x79   :  { %406 = vmatmul.mubr.f32.gmra.mxu0 %v60_v62  ;;  %v125_v62 = vld [vmem:[%s8273_s0 + $0x2e8] sm:$0xff] }
  0x7a   :  { %410 = vmatprep.mubr.f32.mxu0 %v63_v63  ;;  %v124_v63 = vld [vmem:[%s8273_s0 + $0x2e0] sm:$0xff] }
  0x7d   :  { %411 = vmatmul.mubr.f32.gmra.mxu0 %v62_v1  ;;  %v127_v1 = vld [vmem:[%s8273_s0 + $0x2f8] sm:$0xff] }
  0x7e   :  { %415 = vmatprep.mubr.f32.mxu0 %v65_v2  ;;  %v126_v2 = vld [vmem:[%s8273_s0 + $0x2f0] sm:$0xff] }
  0x81   :  { %416 = vmatmul.mubr.f32.gmra.mxu0 %v64_v3  ;;  %v129_v3 = vld [vmem:[%s8273_s0 + $0x308] sm:$0xff] }
  0x82   :  { %420 = vmatprep.mubr.f32.mxu0 %v67_v4  ;;  %v128_v4 = vld [vmem:[%s8273_s0 + $0x300] sm:$0xff] }
  0x85   :  { %421 = vmatmul.mubr.f32.gmra.mxu0 %v66_v5  ;;  %v131_v5 = vld [vmem:[%s8273_s0 + $0x318] sm:$0xff] }
  0x86   :  { %425 = vmatprep.mubr.f32.mxu0 %v69_v6 }
  0x89   :  { %426 = vmatmul.mubr.f32.gmra.mxu0 %v68_v7  ;;  %v130_v7 = vld [vmem:[%s8273_s0 + $0x310] sm:$0xff] }
  0x8a   :  { %430 = vmatprep.mubr.f32.mxu0 %v71_v8 }
  0x8d   :  { %431 = vmatmul.mubr.f32.gmra.mxu0 %v70_v9  ;;  %v133_v9 = vld [vmem:[%s8273_s0 + $0x328] sm:$0xff] }
  0x8e   :  { %435 = vmatprep.mubr.f32.mxu0 %v73_v10 }
  0x91   :  { %436 = vmatmul.mubr.f32.gmra.mxu0 %v72_v11  ;;  %v132_v11 = vld [vmem:[%s8273_s0 + $0x320] sm:$0xff] }
  0x92   :  { %440 = vmatprep.mubr.f32.mxu0 %v75_v12 }
  0x95   :  { %441 = vmatmul.mubr.f32.gmra.mxu0 %v74_v13  ;;  %v135_v13 = vld [vmem:[%s8273_s0 + $0x338] sm:$0xff] }
  0x96   :  { %445 = vmatprep.mubr.f32.mxu0 %v77_v14 }
  0x99   :  { %446 = vmatmul.mubr.f32.gmra.mxu0 %v76_v15  ;;  %v134_v15 = vld [vmem:[%s8273_s0 + $0x330] sm:$0xff] }
  0x9a   :  { %450 = vmatprep.mubr.f32.mxu0 %v79_v16 }
  0x9d   :  { %451 = vmatmul.mubr.f32.gmra.mxu0 %v78_v17  ;;  %v137_v17 = vld [vmem:[%s8273_s0 + $0x348] sm:$0xff] }
  0x9e   :  { %455 = vmatprep.mubr.f32.mxu0 %v81_v18 }
  0xa1   :  { %456 = vmatmul.mubr.f32.gmra.mxu0 %v80_v19  ;;  %v136_v19 = vld [vmem:[%s8273_s0 + $0x340] sm:$0xff] }
  0xa2   :  { %460 = vmatprep.mubr.f32.mxu0 %v83_v20 }
  0xa5   :  { %461 = vmatmul.mubr.f32.gmra.mxu0 %v82_v21  ;;  %v139_v21 = vld [vmem:[%s8273_s0 + $0x358] sm:$0xff] }
  0xa6   :  { %465 = vmatprep.mubr.f32.mxu0 %v85_v22 }
  0xa9   :  { %466 = vmatmul.mubr.f32.gmra.mxu0 %v84_v23  ;;  %v138_v23 = vld [vmem:[%s8273_s0 + $0x350] sm:$0xff] }
  0xaa   :  { %470 = vmatprep.mubr.f32.mxu0 %v87_v24 }
  0xad   :  { %471 = vmatmul.mubr.f32.gmra.mxu0 %v86_v25  ;;  %v141_v25 = vld [vmem:[%s8273_s0 + $0x368] sm:$0xff] }
  0xae   :  { %475 = vmatprep.mubr.f32.mxu0 %v89_v26 }
  0xb1   :  { %476 = vmatmul.mubr.f32.gmra.mxu0 %v88_v27  ;;  %v140_v27 = vld [vmem:[%s8273_s0 + $0x360] sm:$0xff] }
  0xb2   :  { %480 = vmatprep.mubr.f32.mxu0 %v91_v28 }
  0xb5   :  { %481 = vmatmul.mubr.f32.gmra.mxu0 %v90_v29  ;;  %v143_v29 = vld [vmem:[%s8273_s0 + $0x378] sm:$0xff] }
  0xb6   :  { %485 = vmatprep.mubr.f32.mxu0 %v93_v30 }
  0xb9   :  { %486 = vmatmul.mubr.f32.gmra.mxu0 %v92_v31  ;;  %v142_v31 = vld [vmem:[%s8273_s0 + $0x370] sm:$0xff] }
  0xba   :  { %490 = vmatprep.mubr.f32.mxu0 %v95_v32 }
  0xbd   :  { %491 = vmatmul.mubr.f32.gmra.mxu0 %v94_v33  ;;  %v145_v33 = vld [vmem:[%s8273_s0 + $0x388] sm:$0xff] }
  0xbe   :  { %495 = vmatprep.mubr.f32.mxu0 %v97_v34 }
  0xc1   :  { %496 = vmatmul.mubr.f32.gmra.mxu0 %v96_v35  ;;  %v144_v35 = vld [vmem:[%s8273_s0 + $0x380] sm:$0xff] }
  0xc2   :  { %500 = vmatprep.mubr.f32.mxu0 %v99_v36 }
  0xc5   :  { %501 = vmatmul.mubr.f32.gmra.mxu0 %v98_v37  ;;  %v147_v37 = vld [vmem:[%s8273_s0 + $0x398] sm:$0xff] }
  0xc6   :  { %505 = vmatprep.mubr.f32.mxu0 %v101_v38 }
  0xc9   :  { %506 = vmatmul.mubr.f32.gmra.mxu0 %v100_v39  ;;  %v146_v39 = vld [vmem:[%s8273_s0 + $0x390] sm:$0xff] }
  0xca   :  { %510 = vmatprep.mubr.f32.mxu0 %v103_v40 }
  0xcd   :  { %511 = vmatmul.mubr.f32.gmra.mxu0 %v102_v41  ;;  %v149_v41 = vld [vmem:[%s8273_s0 + $0x3a8] sm:$0xff] }
  0xce   :  { %515 = vmatprep.mubr.f32.mxu0 %v105_v42 }
  0xd1   :  { %516 = vmatmul.mubr.f32.gmra.mxu0 %v104_v43  ;;  %v148_v43 = vld [vmem:[%s8273_s0 + $0x3a0] sm:$0xff] }
  0xd2   :  { %520 = vmatprep.mubr.f32.mxu0 %v107_v44 }
  0xd5   :  { %521 = vmatmul.mubr.f32.gmra.mxu0 %v106_v45  ;;  %v151_v45 = vld [vmem:[%s8273_s0 + $0x3b8] sm:$0xff] }
  0xd6   :  { %525 = vmatprep.mubr.f32.mxu0 %v109_v46 }
  0xd9   :  { %526 = vmatmul.mubr.f32.gmra.mxu0 %v108_v47  ;;  %v150_v47 = vld [vmem:[%s8273_s0 + $0x3b0] sm:$0xff] }
  0xda   :  { %530 = vmatprep.mubr.f32.mxu0 %v111_v48 }
  0xdd   :  { %531 = vmatmul.mubr.f32.gmra.mxu0 %v110_v49  ;;  %v153_v49 = vld [vmem:[%s8273_s0 + $0x3c8] sm:$0xff] }
  0xde   :  { %535 = vmatprep.mubr.f32.mxu0 %v113_v50 }
  0xe1   :  { %536 = vmatmul.mubr.f32.gmra.mxu0 %v112_v51  ;;  %v152_v51 = vld [vmem:[%s8273_s0 + $0x3c0] sm:$0xff] }
  0xe2   :  { %540 = vmatprep.mubr.f32.mxu0 %v115_v52 }
  0xe5   :  { %541 = vmatmul.mubr.f32.gmra.mxu0 %v114_v53  ;;  %v155_v53 = vld [vmem:[%s8273_s0 + $0x3d8] sm:$0xff] }
  0xe6   :  { %545 = vmatprep.mubr.f32.mxu0 %v117_v54 }
  0xe9   :  { %546 = vmatmul.mubr.f32.gmra.mxu0 %v116_v55  ;;  %v154_v55 = vld [vmem:[%s8273_s0 + $0x3d0] sm:$0xff] }
  0xea   :  { %550 = vmatprep.mubr.f32.mxu0 %v119_v56 }
  0xed   :  { %551 = vmatmul.mubr.f32.gmra.mxu0 %v118_v57  ;;  %v157_v57 = vld [vmem:[%s8273_s0 + $0x3e8] sm:$0xff] }
  0xee   :  { %555 = vmatprep.mubr.f32.mxu0 %v121_v58 }
  0xf1   :  { %556 = vmatmul.mubr.f32.gmra.mxu0 %v120_v59  ;;  %v156_v59 = vld [vmem:[%s8273_s0 + $0x3e0] sm:$0xff] }
  0xf2   :  { %560 = vmatprep.mubr.f32.mxu0 %v123_v60 }
  0xf5   :  { %561 = vmatmul.mubr.f32.gmra.mxu0 %v122_v61  ;;  %v159_v61 = vld [vmem:[%s8273_s0 + $0x3f8] sm:$0xff] }
  0xf6   :  { %565 = vmatprep.mubr.f32.mxu0 %v125_v62 }
  0xf9   :  { %566 = vmatmul.mubr.f32.gmra.mxu0 %v124_v63  ;;  %v158_v63 = vld [vmem:[%s8273_s0 + $0x3f0] sm:$0xff] }
  0xfa   :  { %570 = vmatprep.mubr.f32.mxu0 %v127_v1 }
  0xfd   :  { %571 = vmatmul.mubr.f32.gmra.mxu0 %v126_v2  ;;  %v161_v2 = vld [vmem:[%s8273_s0 + $0x408] sm:$0xff] }
  0xfe   :  { %575 = vmatprep.mubr.f32.mxu0 %v129_v3 }
 0x101   :  { %v5683_v6 = vpop.f32.mrf.mxu0  ;;  %576 = vmatmul.mubr.f32.gmra.mxu0 %v128_v4  ;;  %v160_v4 = vld [vmem:[%s8273_s0 + $0x400] sm:$0xff] }
 0x102   :  { %580 = vmatprep.mubr.f32.mxu0 %v131_v5 }
 0x103   :  { %v339_v8 = vpop.f32.mrf.mxu0 }
 0x105   :  { %v5691_v10 = vpop.f32.mrf.mxu0  ;;  %581 = vmatmul.mubr.f32.gmra.mxu0 %v130_v7  ;;  %v163_v7 = vld [vmem:[%s8273_s0 + $0x418] sm:$0xff] }
 0x106   :  { %585 = vmatprep.mubr.f32.mxu0 %v133_v9  ;;  %v162_v9 = vld [vmem:[%s8273_s0 + $0x410] sm:$0xff] }
 0x107   :  { %v344_v12 = vpop.f32.mrf.mxu0 }
 0x108   :  { %v165_v12 = vld [vmem:[%s8273_s0 + $0x428] sm:$0xff] }
 0x109   :  { %v5699_v14 = vpop.f32.mrf.mxu0  ;;  %586 = vmatmul.mubr.f32.gmra.mxu0 %v132_v11 }
 0x10a   :  { %590 = vmatprep.mubr.f32.mxu0 %v135_v13 }
 0x10b   :  { %v349_v16 = vpop.f32.mrf.mxu0 }
 0x10d   :  { %v5707_v18 = vpop.f32.mrf.mxu0  ;;  %591 = vmatmul.mubr.f32.gmra.mxu0 %v134_v15  ;;  %v164_v15 = vld [vmem:[%s8273_s0 + $0x420] sm:$0xff] }
 0x10e   :  { %595 = vmatprep.mubr.f32.mxu0 %v137_v17  ;;  %v167_v17 = vld [vmem:[%s8273_s0 + $0x438] sm:$0xff] }
 0x10f   :  { %v354_v20 = vpop.f32.mrf.mxu0 }
 0x110   :  { %v166_v20 = vld [vmem:[%s8273_s0 + $0x430] sm:$0xff] }
 0x111   :  { %v5715_v22 = vpop.f32.mrf.mxu0  ;;  %596 = vmatmul.mubr.f32.gmra.mxu0 %v136_v19 }
 0x112   :  { %600 = vmatprep.mubr.f32.mxu0 %v139_v21 }
 0x113   :  { %v359_v24 = vpop.f32.mrf.mxu0 }
 0x115   :  { %v5723_v26 = vpop.f32.mrf.mxu0  ;;  %601 = vmatmul.mubr.f32.gmra.mxu0 %v138_v23  ;;  %v169_v23 = vld [vmem:[%s8273_s0 + $0x448] sm:$0xff] }
 0x116   :  { %605 = vmatprep.mubr.f32.mxu0 %v141_v25  ;;  %v168_v25 = vld [vmem:[%s8273_s0 + $0x440] sm:$0xff] }
 0x117   :  { %v364_v28 = vpop.f32.mrf.mxu0 }
 0x118   :  { %v171_v28 = vld [vmem:[%s8273_s0 + $0x458] sm:$0xff] }
 0x119   :  { %v5731_v30 = vpop.f32.mrf.mxu0  ;;  %606 = vmatmul.mubr.f32.gmra.mxu0 %v140_v27 }
 0x11a   :  { %610 = vmatprep.mubr.f32.mxu0 %v143_v29 }
 0x11b   :  { %v369_v32 = vpop.f32.mrf.mxu0 }
 0x11d   :  { %v5739_v34 = vpop.f32.mrf.mxu0  ;;  %611 = vmatmul.mubr.f32.gmra.mxu0 %v142_v31  ;;  %v170_v31 = vld [vmem:[%s8273_s0 + $0x450] sm:$0xff] }
 0x11e   :  { %615 = vmatprep.mubr.f32.mxu0 %v145_v33  ;;  %v173_v33 = vld [vmem:[%s8273_s0 + $0x468] sm:$0xff] }
 0x11f   :  { %v374_v36 = vpop.f32.mrf.mxu0 }
 0x120   :  { %v172_v36 = vld [vmem:[%s8273_s0 + $0x460] sm:$0xff] }
 0x121   :  { %v5747_v38 = vpop.f32.mrf.mxu0  ;;  %616 = vmatmul.mubr.f32.gmra.mxu0 %v144_v35 }
 0x122   :  { %620 = vmatprep.mubr.f32.mxu0 %v147_v37 }
 0x123   :  { %v379_v40 = vpop.f32.mrf.mxu0 }
 0x125   :  { %v5755_v42 = vpop.f32.mrf.mxu0  ;;  %621 = vmatmul.mubr.f32.gmra.mxu0 %v146_v39  ;;  %v175_v39 = vld [vmem:[%s8273_s0 + $0x478] sm:$0xff] }
 0x126   :  { %625 = vmatprep.mubr.f32.mxu0 %v149_v41  ;;  %v174_v41 = vld [vmem:[%s8273_s0 + $0x470] sm:$0xff] }
 0x127   :  { %v384_v44 = vpop.f32.mrf.mxu0 }
 0x128   :  { %v177_v44 = vld [vmem:[%s8273_s0 + $0x488] sm:$0xff] }
 0x129   :  { %v5763_v46 = vpop.f32.mrf.mxu0  ;;  %626 = vmatmul.mubr.f32.gmra.mxu0 %v148_v43 }
 0x12a   :  { %630 = vmatprep.mubr.f32.mxu0 %v151_v45 }
 0x12b   :  { %v389_v48 = vpop.f32.mrf.mxu0 }
 0x12d   :  { %v5771_v50 = vpop.f32.mrf.mxu0  ;;  %631 = vmatmul.mubr.f32.gmra.mxu0 %v150_v47  ;;  %v176_v47 = vld [vmem:[%s8273_s0 + $0x480] sm:$0xff] }
 0x12e   :  { %635 = vmatprep.mubr.f32.mxu0 %v153_v49  ;;  %v179_v49 = vld [vmem:[%s8273_s0 + $0x498] sm:$0xff] }
 0x12f   :  { %v394_v52 = vpop.f32.mrf.mxu0 }
 0x131   :  { %v5779_v54 = vpop.f32.mrf.mxu0  ;;  %636 = vmatmul.mubr.f32.gmra.mxu0 %v152_v51  ;;  %v5878_v51 = vld [vmem:[%s8274_s2] ss:$0 sm:$0xff] }
 0x132   :  { %640 = vmatprep.mubr.f32.mxu0 %v155_v53  ;;  %v178_v53 = vld [vmem:[%s8273_s0 + $0x490] sm:$0xff] }
 0x133   :  { %v399_v56 = vpop.f32.mrf.mxu0 }
 0x134   :  { %v181_v56 = vld [vmem:[%s8273_s0 + $0x4a8] sm:$0xff] }
 0x135   :  { %v5787_v58 = vpop.f32.mrf.mxu0  ;;  %641 = vmatmul.mubr.f32.gmra.mxu0 %v154_v55 }
 0x136   :  { %645 = vmatprep.mubr.f32.mxu0 %v157_v57  ;;  %v338_v57 = vadd.f32 %v5878_v51, %v5683_v6 }
 0x137   :  { %v404_v60 = vpop.f32.mrf.mxu0 }
 0x139   :  { %v5795_v62 = vpop.f32.mrf.mxu0  ;;  %646 = vmatmul.mubr.f32.gmra.mxu0 %v156_v59 }
 0x13a   :  { %650 = vmatprep.mubr.f32.mxu0 %v159_v61  ;;  %v180_v61 = vld [vmem:[%s8273_s0 + $0x4a0] sm:$0xff] }
 0x13b   :  { %v409_v1 = vpop.f32.mrf.mxu0 }
 0x13c   :  { %v183_v1 = vld [vmem:[%s8273_s0 + $0x4b8] sm:$0xff] }
 0x13d   :  { %v5803_v3 = vpop.f32.mrf.mxu0  ;;  %651 = vmatmul.mubr.f32.gmra.mxu0 %v158_v63 }
 0x13e   :  { %655 = vmatprep.mubr.f32.mxu0 %v161_v2  ;;  %v836_v2 = vmax.f32 %v338_v57, 0.0  ;;  %v191_v57 = vld [vmem:[%s8273_s0 + $0x4f8] sm:$0xff] }
 0x13f   :  { %v414_v5 = vpop.f32.mrf.mxu0 }
 0x141   :  { %v5811_v8 = vpop.f32.mrf.mxu0  ;;  %656 = vmatmul.mubr.f32.gmra.mxu0 %v160_v4  ;;  %v343_v4 = vadd.f32 %v5878_v51, %v5691_v10  ;;  %v348_v10 = vadd.f32 %v5878_v51, %v5699_v14  ;;  %v353_v14 = vadd.f32 %v5878_v51, %v5707_v18  ;;  %v358_v18 = vadd.f32 %v5878_v51, %v5715_v22 }
 0x142   :  { %660 = vmatprep.mubr.f32.mxu0 %v163_v7  ;;  %v363_v22 = vadd.f32 %v5878_v51, %v5723_v26  ;;  %v368_v26 = vadd.f32 %v5878_v51, %v5731_v30  ;;  %v373_v30 = vadd.f32 %v5878_v51, %v5739_v34  ;;  %v378_v34 = vadd.f32 %v5878_v51, %v5747_v38 }
 0x143   :  { %v419_v11 = vpop.f32.mrf.mxu0  ;;  %v383_v38 = vadd.f32 %v5878_v51, %v5755_v42  ;;  %v388_v42 = vadd.f32 %v5878_v51, %v5763_v46  ;;  %v393_v46 = vadd.f32 %v5878_v51, %v5771_v50  ;;  %v398_v50 = vadd.f32 %v5878_v51, %v5779_v54 }
 0x144   :  { %v182_v11 = vld [vmem:[%s8273_s0 + $0x4b0] sm:$0xff]  ;;  %v403_v54 = vadd.f32 %v5878_v51, %v5787_v58  ;;  %v209_v58 = vld [vmem:[%s8273_s0 + $0x588] sm:$0xff] }
 0x145   :  { %v5819_v13 = vpop.f32.mrf.mxu0  ;;  %661 = vmatmul.mubr.f32.gmra.mxu0 %v162_v9 }
 0x146   :  { %665 = vmatprep.mubr.f32.mxu0 %v165_v12 }
 0x147   :  { %v424_v16 = vpop.f32.mrf.mxu0 }
 0x148   :  { %v837_v16 = vmax.f32 %v343_v4, 0.0 }
 0x149   :  { %v5827_v19 = vpop.f32.mrf.mxu0  ;;  %666 = vmatmul.mubr.f32.gmra.mxu0 %v164_v15  ;;  %v185_v15 = vld [vmem:[%s8273_s0 + $0x4c8] sm:$0xff] }
 0x14a   :  { %670 = vmatprep.mubr.f32.mxu0 %v167_v17 }
 0x14b   :  { %v429_v21 = vpop.f32.mrf.mxu0 }
 0x14d   :  { %v5835_v24 = vpop.f32.mrf.mxu0  ;;  %671 = vmatmul.mubr.f32.gmra.mxu0 %v166_v20 }
 0x14e   :  { %675 = vmatprep.mubr.f32.mxu0 %v169_v23 }
 0x14f   :  { %v434_v27 = vpop.f32.mrf.mxu0 }
 0x151   :  { %v5843_v29 = vpop.f32.mrf.mxu0  ;;  %676 = vmatmul.mubr.f32.gmra.mxu0 %v168_v25  ;;  %v184_v25 = vld [vmem:[%s8273_s0 + $0x4c0] sm:$0xff] }
 0x152   :  { %680 = vmatprep.mubr.f32.mxu0 %v171_v28  ;;  %v187_v28 = vld [vmem:[%s8273_s0 + $0x4d8] sm:$0xff] }
 0x153   :  { %v439_v32 = vpop.f32.mrf.mxu0 }
 0x155   :  { %v5851_v35 = vpop.f32.mrf.mxu0  ;;  %681 = vmatmul.mubr.f32.gmra.mxu0 %v170_v31  ;;  %v838_v31 = vmax.f32 %v348_v10, 0.0 }
 0x156   :  { %685 = vmatprep.mubr.f32.mxu0 %v173_v33 }
 0x157   :  { %v444_v37 = vpop.f32.mrf.mxu0 }
 0x159   :  { %v5859_v40 = vpop.f32.mrf.mxu0  ;;  %686 = vmatmul.mubr.f32.gmra.mxu0 %v172_v36 }
 0x15a   :  { %690 = vmatprep.mubr.f32.mxu0 %v175_v39  ;;  %v186_v39 = vld [vmem:[%s8273_s0 + $0x4d0] sm:$0xff] }
 0x15b   :  { %v449_v43 = vpop.f32.mrf.mxu0 }
 0x15c   :  { %v189_v43 = vld [vmem:[%s8273_s0 + $0x4e8] sm:$0xff] }
 0x15d   :  { %v5867_v45 = vpop.f32.mrf.mxu0  ;;  %691 = vmatmul.mubr.f32.gmra.mxu0 %v174_v41 }
 0x15e   :  { %695 = vmatprep.mubr.f32.mxu0 %v177_v44  ;;  %v839_v44 = vmax.f32 %v353_v14, 0.0 }
 0x15f   :  { %v454_v48 = vpop.f32.mrf.mxu0 }
 0x161   :  { %v5880_v52 = vpop.f32.mrf.mxu0  ;;  %696 = vmatmul.mubr.f32.gmra.mxu0 %v176_v47 }
 0x162   :  { %700 = vmatprep.mubr.f32.mxu0 %v179_v49 }
 0x163   :  { %v459_v55 = vpop.f32.mrf.mxu0 }
 0x164   :  { %v188_v55 = vld [vmem:[%s8273_s0 + $0x4e0] sm:$0xff] }
 0x165   :  { %v462_v59 = vpop.f32.mrf.mxu0  ;;  %701 = vmatmul.mubr.f32.gmra.mxu0 %v178_v53 }
 0x166   :  { %v463_v60 = vadd.f32 %v5878_v51, %v462_v59  ;;  %705 = vmatprep.mubr.f32.mxu0 %v181_v56  ;;  %v840_v59 = vmax.f32 %v358_v18, 0.0 }
 0x167   :  { %v464_v63 = vpop.f32.mrf.mxu0 }
 0x168   :  { %v861_v5 = vmax.f32 %v463_v60, 0.0 }
 0x169   :  { %v467_v6 = vpop.f32.mrf.mxu0  ;;  %706 = vmatmul.mubr.f32.gmra.mxu0 %v180_v61 }
 0x16a   :  { %v5899_v7 = vmax.f32 %v836_v2, %v861_v5  ;;  %v468_v9 = vadd.f32 %v5878_v51, %v467_v6  ;;  %710 = vmatprep.mubr.f32.mxu0 %v183_v1  ;;  %v190_v2 = vld [vmem:[%s8273_s0 + $0x4f0] sm:$0xff]  ;;  %v193_v5 = vld [vmem:[%s8273_s0 + $0x508] sm:$0xff]  ;;  %v841_v6 = vmax.f32 %v363_v22, 0.0 }
 0x16b   :  { %v469_v12 = vpop.f32.mrf.mxu0 }
 0x16c   :  { %v862_v17 = vmax.f32 %v468_v9, 0.0 }
 0x16d   :  { %v472_v20 = vpop.f32.mrf.mxu0  ;;  %711 = vmatmul.mubr.f32.gmra.mxu0 %v182_v11 }
 0x16e   :  { %v5910_v21 = vmax.f32 %v837_v16, %v862_v17  ;;  %v473_v23 = vadd.f32 %v5878_v51, %v472_v20  ;;  %715 = vmatprep.mubr.f32.mxu0 %v185_v15  ;;  %v192_v16 = vld [vmem:[%s8273_s0 + $0x500] sm:$0xff]  ;;  %v195_v17 = vld [vmem:[%s8273_s0 + $0x518] sm:$0xff]  ;;  %v842_v20 = vmax.f32 %v368_v26, 0.0 }
 0x16f   :  { %v474_v27 = vpop.f32.mrf.mxu0 }
 0x170   :  { %v863_v32 = vmax.f32 %v473_v23, 0.0 }
 0x171   :  { %v477_v33 = vpop.f32.mrf.mxu0  ;;  %716 = vmatmul.mubr.f32.gmra.mxu0 %v184_v25 }
 0x172   :  { %v5921_v36 = vmax.f32 %v838_v31, %v863_v32  ;;  %v478_v37 = vadd.f32 %v5878_v51, %v477_v33  ;;  %720 = vmatprep.mubr.f32.mxu0 %v187_v28  ;;  %v194_v31 = vld [vmem:[%s8273_s0 + $0x510] sm:$0xff]  ;;  %v197_v32 = vld [vmem:[%s8273_s0 + $0x528] sm:$0xff]  ;;  %v843_v33 = vmax.f32 %v373_v30, 0.0 }
 0x173   :  { %v479_v41 = vpop.f32.mrf.mxu0 }
 0x174   :  { %v864_v47 = vmax.f32 %v478_v37, 0.0 }
 0x175   :  { %v482_v48 = vpop.f32.mrf.mxu0  ;;  %721 = vmatmul.mubr.f32.gmra.mxu0 %v186_v39 }
 0x176   :  { %v5932_v49 = vmax.f32 %v839_v44, %v864_v47  ;;  %v483_v53 = vadd.f32 %v5878_v51, %v482_v48  ;;  %725 = vmatprep.mubr.f32.mxu0 %v189_v43  ;;  %v196_v44 = vld [vmem:[%s8273_s0 + $0x520] sm:$0xff]  ;;  %v199_v47 = vld [vmem:[%s8273_s0 + $0x538] sm:$0xff]  ;;  %v844_v48 = vmax.f32 %v378_v34, 0.0 }
 0x177   :  { %v484_v56 = vpop.f32.mrf.mxu0 }
 0x178   :  { %v865_v60 = vmax.f32 %v483_v53, 0.0 }
 0x179   :  { %v487_v61 = vpop.f32.mrf.mxu0  ;;  %726 = vmatmul.mubr.f32.gmra.mxu0 %v188_v55 }
 0x17a   :  { %v5943_v63 = vmax.f32 %v840_v59, %v865_v60  ;;  %v488_v1 = vadd.f32 %v5878_v51, %v487_v61  ;;  %730 = vmatprep.mubr.f32.mxu0 %v191_v57  ;;  %v198_v59 = vld [vmem:[%s8273_s0 + $0x530] sm:$0xff]  ;;  %v201_v60 = vld [vmem:[%s8273_s0 + $0x548] sm:$0xff]  ;;  %v845_v61 = vmax.f32 %v383_v38, 0.0 }
 0x17b   :  { %v489_v4 = vpop.f32.mrf.mxu0  ;;  %v206_v38 = vld [vmem:[%s8273_s0 + $0x570] sm:$0xff] }
 0x17c   :  { %v866_v9 = vmax.f32 %v488_v1, 0.0 }
 0x17d   :  { %v492_v11 = vpop.f32.mrf.mxu0  ;;  %731 = vmatmul.mubr.f32.gmra.mxu0 %v190_v2 }
 0x17e   :  { %v5954_v12 = vmax.f32 %v841_v6, %v866_v9  ;;  %v493_v15 = vadd.f32 %v5878_v51, %v492_v11  ;;  %735 = vmatprep.mubr.f32.mxu0 %v193_v5  ;;  %v200_v6 = vld [vmem:[%s8273_s0 + $0x540] sm:$0xff]  ;;  %v203_v9 = vld [vmem:[%s8273_s0 + $0x558] sm:$0xff]  ;;  %v846_v11 = vmax.f32 %v388_v42, 0.0 }
 0x17f   :  { %v494_v10 = vpop.f32.mrf.mxu0 }
 0x180   :  { %v867_v23 = vmax.f32 %v493_v15, 0.0 }
 0x181   :  { %v497_v25 = vpop.f32.mrf.mxu0  ;;  %736 = vmatmul.mubr.f32.gmra.mxu0 %v192_v16 }
 0x182   :  { %v5965_v27 = vmax.f32 %v842_v20, %v867_v23  ;;  %v498_v28 = vadd.f32 %v5878_v51, %v497_v25  ;;  %740 = vmatprep.mubr.f32.mxu0 %v195_v17  ;;  %v202_v20 = vld [vmem:[%s8273_s0 + $0x550] sm:$0xff]  ;;  %v205_v23 = vld [vmem:[%s8273_s0 + $0x568] sm:$0xff]  ;;  %v847_v25 = vmax.f32 %v393_v46, 0.0 }
 0x183   :  { %v499_v14 = vpop.f32.mrf.mxu0 }
 0x184   :  { %v868_v37 = vmax.f32 %v498_v28, 0.0 }
 0x185   :  { %v502_v39 = vpop.f32.mrf.mxu0  ;;  %741 = vmatmul.mubr.f32.gmra.mxu0 %v194_v31 }
 0x186   :  { %v5976_v41 = vmax.f32 %v843_v33, %v868_v37  ;;  %v503_v43 = vadd.f32 %v5878_v51, %v502_v39  ;;  %745 = vmatprep.mubr.f32.mxu0 %v197_v32  ;;  %v204_v33 = vld [vmem:[%s8273_s0 + $0x560] sm:$0xff]  ;;  %v207_v37 = vld [vmem:[%s8273_s0 + $0x578] sm:$0xff]  ;;  %v848_v39 = vmax.f32 %v398_v50, 0.0  ;;  %v418_v50 = vadd.f32 %v5878_v51, %v5811_v8 }
 0x187   :  { %v504_v18 = vpop.f32.mrf.mxu0 }
 0x188   :  { %v869_v53 = vmax.f32 %v503_v43, 0.0  ;;  %v3425_v18 = vld [vmem:[%s8275_s3 + $0xf8] sm:$0xff] }
 0x189   :  { %v507_v55 = vpop.f32.mrf.mxu0  ;;  %746 = vmatmul.mubr.f32.gmra.mxu0 %v196_v44  ;;  %4257 = vmatpush3.msra.mxu1 %v3425_v18 }
 0x18a   :  { %v5987_v56 = vmax.f32 %v844_v48, %v869_v53  ;;  %v508_v57 = vadd.f32 %v5878_v51, %v507_v55  ;;  %750 = vmatprep.mubr.f32.mxu0 %v199_v47  ;;  %4258 = vmatprep.subr.mxu1 %v8282_v0  ;;  %v3424_v55 = vld [vmem:[%s8275_s3 + $0xf0] sm:$0xff] }
 0x18b   :  { %v509_v22 = vpop.f32.mrf.mxu0  ;;  %4259 = vmatpush3.msra.mxu1 %v3424_v55  ;;  %v214_v55 = vld [vmem:[%s8273_s0 + $0x5b0] sm:$0xff] }
 0x18c   :  { %v870_v1 = vmax.f32 %v508_v57, 0.0  ;;  %v849_v57 = vmax.f32 %v403_v54, 0.0  ;;  %4260 = vmatprep.subr.mxu1 %v8282_v0  ;;  %v3418_v54 = vld [vmem:[%s8275_s3 + $0xc0] sm:$0xff] }
 0x18d   :  { %v512_v2 = vpop.f32.mrf.mxu0  ;;  %751 = vmatmul.mubr.f32.gmra.mxu0 %v198_v59  ;;  %v408_v59 = vadd.f32 %v5878_v51, %v5795_v62 }
 0x18e   :  { %v5998_v4 = vmax.f32 %v845_v61, %v870_v1  ;;  %v513_v5 = vadd.f32 %v5878_v51, %v512_v2  ;;  %755 = vmatprep.mubr.f32.mxu0 %v201_v60  ;;  %v3423_v61 = vld [vmem:[%s8275_s3 + $0xe8] sm:$0xff]  ;;  %v208_v2 = vld [vmem:[%s8273_s0 + $0x580] sm:$0xff] }
 0x18f   :  { %v514_v26 = vpop.f32.mrf.mxu0  ;;  %4261 = vmatpush3.msra.mxu1 %v3423_v61 }
 0x190   :  { %v871_v15 = vmax.f32 %v513_v5, 0.0  ;;  %v211_v5 = vld [vmem:[%s8273_s0 + $0x598] sm:$0xff]  ;;  %4262 = vmatprep.subr.mxu1 %v8282_v0  ;;  %v850_v26 = vmax.f32 %v408_v59, 0.0  ;;  %v3416_v59 = vld [vmem:[%s8275_s3 + $0xb0] sm:$0xff] }
 0x191   :  { %v517_v16 = vpop.f32.mrf.mxu0  ;;  %756 = vmatmul.mubr.f32.gmra.mxu0 %v200_v6  ;;  %v3422_v6 = vld [vmem:[%s8275_s3 + $0xe0] sm:$0xff] }
 0x192   :  { %v6009_v10 = vmax.f32 %v846_v11, %v871_v15  ;;  %v518_v17 = vadd.f32 %v5878_v51, %v517_v16  ;;  %760 = vmatprep.mubr.f32.mxu0 %v203_v9  ;;  %v413_v9 = vadd.f32 %v5878_v51, %v5803_v3  ;;  %4263 = vmatpush3.msra.mxu1 %v3422_v6  ;;  %v3421_v15 = vld [vmem:[%s8275_s3 + $0xd8] sm:$0xff]  ;;  %v216_v6 = vld [vmem:[%s8273_s0 + $0x5c0] sm:$0xff] }
 0x193   :  { %v519_v30 = vpop.f32.mrf.mxu0  ;;  %4264 = vmatprep.subr.mxu1 %v8282_v0 }
 0x194   :  { %v872_v28 = vmax.f32 %v518_v17, 0.0  ;;  %4265 = vmatpush3.msra.mxu1 %v3421_v15  ;;  %v213_v30 = vld [vmem:[%s8273_s0 + $0x5a8] sm:$0xff] }
 0x195   :  { %v522_v31 = vpop.f32.mrf.mxu0  ;;  %761 = vmatmul.mubr.f32.gmra.mxu0 %v202_v20  ;;  %v210_v20 = vld [vmem:[%s8273_s0 + $0x590] sm:$0xff]  ;;  %4266 = vmatprep.subr.mxu1 %v8282_v0 }
 0x196   :  { %v6020_v14 = vmax.f32 %v847_v25, %v872_v28  ;;  %v523_v32 = vadd.f32 %v5878_v51, %v522_v31  ;;  %765 = vmatprep.mubr.f32.mxu0 %v205_v23  ;;  %v3420_v23 = vld [vmem:[%s8275_s3 + $0xd0] sm:$0xff]  ;;  %v851_v25 = vmax.f32 %v413_v9, 0.0  ;;  %v3414_v9 = vld [vmem:[%s8275_s3 + $0xa0] sm:$0xff] }
 0x197   :  { %v524_v34 = vpop.f32.mrf.mxu0  ;;  %4267 = vmatpush3.msra.mxu1 %v3420_v23  ;;  %v218_v23 = vld [vmem:[%s8273_s0 + $0x5d0] sm:$0xff] }
 0x198   :  { %v873_v43 = vmax.f32 %v523_v32, 0.0  ;;  %4268 = vmatprep.subr.mxu1 %v8282_v0  ;;  %v3419_v32 = vld [vmem:[%s8275_s3 + $0xc8] sm:$0xff] }
 0x199   :  { %v527_v44 = vpop.f32.mrf.mxu0  ;;  %766 = vmatmul.mubr.f32.gmra.mxu0 %v204_v33  ;;  %4269 = vmatpush3.msra.mxu1 %v3419_v32 }
 0x19a   :  { %v6034_v47 = vmax.f32 %v848_v39, %v873_v43  ;;  %v528_v48 = vadd.f32 %v5878_v51, %v527_v44  ;;  %770 = vmatprep.mubr.f32.mxu0 %v207_v37  ;;  %v212_v37 = vld [vmem:[%s8273_s0 + $0x5a0] sm:$0xff]  ;;  %v215_v39 = vld [vmem:[%s8273_s0 + $0x5b8] sm:$0xff]  ;;  %4270 = vmatprep.subr.mxu1 %v8282_v0  ;;  %v852_v43 = vmax.f32 %v418_v50, 0.0  ;;  %v423_v44 = vadd.f32 %v5878_v51, %v5819_v13  ;;  %v3412_v50 = vld [vmem:[%s8275_s3 + $0x90] sm:$0xff] }
 0x19b   :  { %v529_v53 = vpop.f32.mrf.mxu0  ;;  %4271 = vmatpush3.msra.mxu1 %v3418_v54  ;;  %v220_v54 = vld [vmem:[%s8273_s0 + $0x5e0] sm:$0xff] }
 0x19c   :  { %v874_v22 = vmax.f32 %v528_v48, 0.0  ;;  %4272 = vmatprep.subr.mxu1 %v8282_v0 }
 0x19d   :  { %v532_v60 = vpop.f32.mrf.mxu0  ;;  %771 = vmatmul.mubr.f32.gmra.mxu0 %v206_v38  ;;  %v3417_v38 = vld [vmem:[%s8275_s3 + $0xb8] sm:$0xff] }
 0x19e   :  { %v6053_v42 = vmax.f32 %v849_v57, %v874_v22  ;;  %v533_v1 = vadd.f32 %v5878_v51, %v532_v60  ;;  %775 = vmatprep.mubr.f32.mxu0 %v209_v58  ;;  %4273 = vmatpush3.msra.mxu1 %v3417_v38  ;;  %v217_v57 = vld [vmem:[%s8273_s0 + $0x5c8] sm:$0xff]  ;;  %v853_v22 = vmax.f32 %v423_v44, 0.0  ;;  %v428_v60 = vadd.f32 %v5878_v51, %v5827_v19  ;;  %v3410_v44 = vld [vmem:[%s8275_s3 + $0x80] sm:$0xff] }
 0x19f   :  { %v534_v62 = vpop.f32.mrf.mxu0  ;;  %4274 = vmatprep.subr.mxu1 %v8282_v0 }
 0x1a0   :  { %v875_v11 = vmax.f32 %v533_v1, 0.0  ;;  %4275 = vmatpush3.msra.mxu1 %v3416_v59  ;;  %v225_v59 = vld [vmem:[%s8273_s0 + $0x608] sm:$0xff] }
 0x1a1   :  { %v537_v46 = vpop.f32.mrf.mxu0  ;;  %776 = vmatmul.mubr.f32.gmra.mxu0 %v208_v2  ;;  %4276 = vmatprep.subr.mxu1 %v8282_v0  ;;  %v3415_v2 = vld [vmem:[%s8275_s3 + $0xa8] sm:$0xff] }
 0x1a2   :  { %v6072_v16 = vmax.f32 %v850_v26, %v875_v11  ;;  %v538_v17 = vadd.f32 %v5878_v51, %v537_v46  ;;  %780 = vmatprep.mubr.f32.mxu0 %v211_v5  ;;  %4277 = vmatpush3.msra.mxu1 %v3415_v2  ;;  %v219_v26 = vld [vmem:[%s8273_s0 + $0x5d8] sm:$0xff]  ;;  %v854_v11 = vmax.f32 %v428_v60, 0.0  ;;  %v433_v46 = vadd.f32 %v5878_v51, %v5835_v24 }
 0x1a3   :  { %v539_v3 = vpop.f32.mrf.mxu0  ;;  %4278 = vmatprep.subr.mxu1 %v8282_v0  ;;  %v448_v60 = vadd.f32 %v5878_v51, %v5859_v40  ;;  %v453_v40 = vadd.f32 %v5878_v51, %v5867_v45  ;;  %v458_v45 = vadd.f32 %v5878_v51, %v5880_v52 }
 0x1a4   :  { %v876_v28 = vmax.f32 %v538_v17, 0.0  ;;  %4279 = vmatpush3.msra.mxu1 %v3414_v9 }
 0x1a5   :  { %v542_v31 = vpop.f32.mrf.mxu0  ;;  %781 = vmatmul.mubr.f32.gmra.mxu0 %v210_v20  ;;  %4280 = vmatprep.subr.mxu1 %v8282_v0  ;;  %v3413_v20 = vld [vmem:[%s8275_s3 + $0x98] sm:$0xff]  ;;  %v858_v9 = vmax.f32 %v448_v60, 0.0 }
 0x1a6   :  { %v6091_v33 = vmax.f32 %v851_v25, %v876_v28  ;;  %v543_v34 = vadd.f32 %v5878_v51, %v542_v31  ;;  %785 = vmatprep.mubr.f32.mxu0 %v213_v30  ;;  %4281 = vmatpush3.msra.mxu1 %v3413_v20  ;;  %v221_v25 = vld [vmem:[%s8273_s0 + $0x5e8] sm:$0xff]  ;;  %v855_v28 = vmax.f32 %v433_v46, 0.0  ;;  %v438_v31 = vadd.f32 %v5878_v51, %v5843_v29  ;;  %v226_v20 = vld [vmem:[%s8273_s0 + $0x610] sm:$0xff]  ;;  %v3629_v60 = vld [vmem:[%s8275_s3 + $0x758] sm:$0xff] }
 0x1a7   :  { %v544_v8 = vpop.f32.mrf.mxu0  ;;  %4282 = vmatprep.subr.mxu1 %v8282_v0 }
 0x1a8   :  { %v877_v18 = vmax.f32 %v543_v34, 0.0  ;;  %4283 = vmatpush3.msra.mxu1 %v3412_v50 }
 0x1a9   :  { %v547_v48 = vpop.f32.mrf.mxu0  ;;  %786 = vmatmul.mubr.f32.gmra.mxu0 %v212_v37  ;;  %4284 = vmatprep.subr.mxu1 %v8282_v0  ;;  %v3411_v37 = vld [vmem:[%s8275_s3 + $0x88] sm:$0xff] }
 0x1aa   :  { %v6110_v53 = vmax.f32 %v852_v43, %v877_v18  ;;  %v548_v58 = vadd.f32 %v5878_v51, %v547_v48  ;;  %790 = vmatprep.mubr.f32.mxu0 %v215_v39  ;;  %4285 = vmatpush3.msra.mxu1 %v3411_v37  ;;  %v223_v43 = vld [vmem:[%s8273_s0 + $0x5f8] sm:$0xff]  ;;  %v856_v18 = vmax.f32 %v438_v31, 0.0  ;;  %v443_v48 = vadd.f32 %v5878_v51, %v5851_v35 }
 0x1ab   :  { %v549_v13 = vpop.f32.mrf.mxu0  ;;  %4286 = vmatprep.subr.mxu1 %v8282_v0  ;;  %v231_v37 = vld [vmem:[%s8273_s0 + $0x638] sm:$0xff] }
 0x1ac   :  { %v878_v61 = vmax.f32 %v548_v58, 0.0  ;;  %4287 = vmatpush3.msra.mxu1 %v3410_v44 }
 0x1ad   :  { %v552_v1 = vpop.f32.mrf.mxu0  ;;  %791 = vmatmul.mubr.f32.gmra.mxu0 %v214_v55  ;;  %4291 = vmatprep.subr.mxu1 %v8282_v0 }
 0x1ae   :  { %v6129_v62 = vmax.f32 %v853_v22, %v878_v61  ;;  %v553_v5 = vadd.f32 %v5878_v51, %v552_v1  ;;  %795 = vmatprep.mubr.f32.mxu0 %v217_v57  ;;  %v222_v57 = vld [vmem:[%s8273_s0 + $0x5f0] sm:$0xff]  ;;  %v857_v22 = vmax.f32 %v443_v48, 0.0  ;;  %v3633_v48 = vld [vmem:[%s8275_s3 + $0x778] sm:$0xff] }
 0x1af   :  { %v554_v19 = vpop.f32.mrf.mxu0  ;;  %4747 = vmatpush3.msra.mxu0 %v3633_v48 }
 0x1b0   :  { %v879_v15 = vmax.f32 %v553_v5, 0.0  ;;  %4748 = vmatprep.subr.mxu0 %v8282_v0 }
 0x1b1   :  { %v557_v17 = vpop.f32.mrf.mxu0  ;;  %796 = vmatmul.mubr.f32.gmra.mxu0 %v216_v6  ;;  %v224_v6 = vld [vmem:[%s8273_s0 + $0x600] sm:$0xff] }
 0x1b2   :  { %v6148_v3 = vmax.f32 %v854_v11, %v879_v15  ;;  %v558_v30 = vadd.f32 %v5878_v51, %v557_v17  ;;  %800 = vmatprep.mubr.f32.mxu0 %v219_v26  ;;  %v227_v26 = vld [vmem:[%s8273_s0 + $0x618] sm:$0xff] }
 0x1b3   :  { %v559_v24 = vpop.f32.mrf.mxu0 }
 0x1b4   :  { %v880_v32 = vmax.f32 %v558_v30, 0.0  ;;  %v859_v24 = vmax.f32 %v453_v40, 0.0  ;;  %v3625_v40 = vld [vmem:[%s8275_s3 + $0x738] sm:$0xff] }
 0x1b5   :  { %v562_v34 = vpop.f32.mrf.mxu0  ;;  %801 = vmatmul.mubr.f32.gmra.mxu0 %v218_v23  ;;  %v229_v23 = vld [vmem:[%s8273_s0 + $0x628] sm:$0xff] }
 0x1b6   :  { %v6167_v8 = vmax.f32 %v855_v28, %v880_v32  ;;  %v563_v39 = vadd.f32 %v5878_v51, %v562_v34  ;;  %805 = vmatprep.mubr.f32.mxu0 %v221_v25  ;;  %v228_v32 = vld [vmem:[%s8273_s0 + $0x620] sm:$0xff] }
 0x1b7   :  { %v564_v29 = vpop.f32.mrf.mxu0 }
 0x1b8   :  { %v881_v38 = vmax.f32 %v563_v39, 0.0  ;;  %v860_v39 = vmax.f32 %v458_v45, 0.0  ;;  %v3621_v45 = vld [vmem:[%s8275_s3 + $0x718] sm:$0xff] }
 0x1b9   :  { %v567_v58 = vpop.f32.mrf.mxu0  ;;  %806 = vmatmul.mubr.f32.gmra.mxu0 %v220_v54 }
 0x1ba   :  { %v6184_v55 = vmax.f32 %v856_v18, %v881_v38  ;;  %v568_v13 = vadd.f32 %v5878_v51, %v567_v58  ;;  %810 = vmatprep.mubr.f32.mxu0 %v223_v43  ;;  %v230_v43 = vld [vmem:[%s8273_s0 + $0x630] sm:$0xff] }
 0x1bb   :  { %v569_v35 = vpop.f32.mrf.mxu0  ;;  %v3632_v58 = vld [vmem:[%s8275_s3 + $0x770] sm:$0xff] }
 0x1bc   :  { %v882_v61 = vmax.f32 %v568_v13, 0.0  ;;  %4749 = vmatpush3.msra.mxu0 %v3632_v58 }
 0x1bd   :  { %v572_v1 = vpop.f32.mrf.mxu0  ;;  %811 = vmatmul.mubr.f32.gmra.mxu0 %v222_v57  ;;  %4750 = vmatprep.subr.mxu0 %v8282_v0  ;;  %v3631_v57 = vld [vmem:[%s8275_s3 + $0x768] sm:$0xff] }
 0x1be   :  { %v6196_v2 = vmax.f32 %v857_v22, %v882_v61  ;;  %v573_v5 = vadd.f32 %v5878_v51, %v572_v1  ;;  %815 = vmatprep.mubr.f32.mxu0 %v225_v59  ;;  %4751 = vmatpush3.msra.mxu0 %v3631_v57  ;;  %v3630_v59 = vld [vmem:[%s8275_s3 + $0x760] sm:$0xff]  ;;  %v3628_v1 = vld [vmem:[%s8275_s3 + $0x750] sm:$0xff] }
 0x1bf   :  { %v574_v19 = vpop.f32.mrf.mxu0  ;;  %4752 = vmatprep.subr.mxu0 %v8282_v0 }
 0x1c0   :  { %v883_v11 = vmax.f32 %v573_v5, 0.0  ;;  %4753 = vmatpush3.msra.mxu0 %v3630_v59 }
 0x1c1   :  { %v577_v46 = vpop.f32.mrf.mxu0  ;;  %816 = vmatmul.mubr.f32.gmra.mxu0 %v224_v6  ;;  %4754 = vmatprep.subr.mxu0 %v8282_v0  ;;  %v3627_v6 = vld [vmem:[%s8275_s3 + $0x748] sm:$0xff] }
 0x1c2   :  { %v6207_v15 = vmax.f32 %v858_v9, %v883_v11  ;;  %v578_v17 = vadd.f32 %v5878_v51, %v577_v46  ;;  %820 = vmatprep.mubr.f32.mxu0 %v227_v26  ;;  %4755 = vmatpush3.msra.mxu0 %v3629_v60  ;;  %v3626_v26 = vld [vmem:[%s8275_s3 + $0x740] sm:$0xff]  ;;  %v3624_v46 = vld [vmem:[%s8275_s3 + $0x730] sm:$0xff] }
 0x1c3   :  { %v579_v30 = vpop.f32.mrf.mxu0  ;;  %4756 = vmatprep.subr.mxu0 %v8282_v0 }
 0x1c4   :  { %v884_v25 = vmax.f32 %v578_v17, 0.0  ;;  %4757 = vmatpush3.msra.mxu0 %v3628_v1 }
 0x1c5   :  { %v582_v50 = vpop.f32.mrf.mxu0  ;;  %821 = vmatmul.mubr.f32.gmra.mxu0 %v226_v20  ;;  %4758 = vmatprep.subr.mxu0 %v8282_v0  ;;  %v3623_v20 = vld [vmem:[%s8275_s3 + $0x728] sm:$0xff] }
 0x1c6   :  { %v6218_v28 = vmax.f32 %v859_v24, %v884_v25  ;;  %v583_v31 = vadd.f32 %v5878_v51, %v582_v50  ;;  %825 = vmatprep.mubr.f32.mxu0 %v229_v23  ;;  %4759 = vmatpush3.msra.mxu0 %v3627_v6  ;;  %v3622_v23 = vld [vmem:[%s8275_s3 + $0x720] sm:$0xff]  ;;  %v3620_v50 = vld [vmem:[%s8275_s3 + $0x710] sm:$0xff] }
 0x1c7   :  { %v584_v34 = vpop.f32.mrf.mxu0  ;;  %4760 = vmatprep.subr.mxu0 %v8282_v0 }
 0x1c8   :  { %v885_v54 = vmax.f32 %v583_v31, 0.0  ;;  %4761 = vmatpush3.msra.mxu0 %v3626_v26 }
 0x1c9   :  { %v6227_v52 = vpop.f32.mrf.mxu0  ;;  %826 = vmatmul.mubr.f32.gmra.mxu0 %v228_v32  ;;  %4762 = vmatprep.subr.mxu0 %v8282_v0  ;;  %v3619_v32 = vld [vmem:[%s8275_s3 + $0x708] sm:$0xff] }
 0x1ca   :  { %v6229_v29 = vmax.f32 %v860_v39, %v885_v54  ;;  %830 = vmatprep.mubr.f32.mxu0 %v231_v37  ;;  %4763 = vmatpush3.msra.mxu0 %v3625_v40  ;;  %v3618_v37 = vld [vmem:[%s8275_s3 + $0x700] sm:$0xff] }
 0x1cb   :  { %v589_v44 = vpop.f32.mrf.mxu0  ;;  %4764 = vmatprep.subr.mxu0 %v8282_v0 }
 0x1cc   :  { %8285 = vst [vmem:[#allocation2_spill] sm:$0xff] %v6229_v29  ;;  %4765 = vmatpush3.msra.mxu0 %v3624_v46 }
 0x1cd   :  { %v6234_v18 = vpop.f32.mrf.mxu0  ;;  %831 = vmatmul.mubr.f32.gmra.mxu0 %v230_v43  ;;  %4766 = vmatprep.subr.mxu0 %v8282_v0 }
 0x1ce   :  { %4778 = vmatprep.mubr.msk.f32.mxu0 %vm5205_vm0, %v8282_v0  ;;  %4767 = vmatpush3.msra.mxu0 %v3623_v20 }
 0x1cf   :  { %v594_v38 = vpop.f32.mrf.mxu0  ;;  %4768 = vmatprep.subr.mxu0 %v8282_v0 }
 0x1d0   :  { %4769 = vmatpush3.msra.mxu0 %v3622_v23 }
 0x1d1   :  { %v6245_v13 = vpop.f32.mrf.mxu0  ;;  %4770 = vmatprep.subr.mxu0 %v8282_v0 }
 0x1d2   :  { %4771 = vmatpush3.msra.mxu0 %v3621_v45 }
 0x1d3   :  { %v599_v35 = vpop.f32.mrf.mxu0  ;;  %4772 = vmatprep.subr.mxu0 %v8282_v0 }
 0x1d4   :  { %4773 = vmatpush3.msra.mxu0 %v3620_v50 }
 0x1d5   :  { %v6255_v22 = vpop.f32.mrf.mxu0  ;;  %4774 = vmatprep.subr.mxu0 %v8282_v0 }
 0x1d6   :  { %4775 = vmatpush3.msra.mxu0 %v3619_v32 }
 0x1d7   :  { %v604_v61 = vpop.f32.mrf.mxu0  ;;  %4776 = vmatprep.subr.mxu0 %v8282_v0 }
 0x1d8   :  { %4777 = vmatpush3.msra.mxu0 %v3618_v37 }
 0x1d9   :  { %v6265_v5 = vpop.f32.mrf.mxu0  ;;  %4816 = vmatprep.subr.mxu0 %v8282_v0 }
 0x1db   :  { %v609_v19 = vpop.f32.mrf.mxu0 }
 0x1dd   :  { %v6275_v9 = vpop.f32.mrf.mxu0 }
 0x1df   :  { %v614_v11 = vpop.f32.mrf.mxu0 }
 0x1e1   :  { %v6285_v17 = vpop.f32.mrf.mxu0 }
 0x1e3   :  { %v619_v30 = vpop.f32.mrf.mxu0 }
 0x1e5   :  { %v6295_v24 = vpop.f32.mrf.mxu0 }
 0x1e7   :  { %v624_v25 = vpop.f32.mrf.mxu0 }
 0x1e9   :  { %v6305_v31 = vpop.f32.mrf.mxu0 }
 0x1eb   :  { %v629_v34 = vpop.f32.mrf.mxu0 }
 0x1ed   :  { %v6315_v39 = vpop.f32.mrf.mxu0 }
 0x1ef   :  { %v634_v54 = vpop.f32.mrf.mxu0 }
 0x1f1   :  { %v6318_v43 = vpop.f32.mrf.mxu0 }
 0x1f3   :  { %v639_v44 = vpop.f32.mrf.mxu0 }
 0x1f5   :  { %v6320_v48 = vpop.f32.mrf.mxu0 }
 0x1f7   :  { %v644_v38 = vpop.f32.mrf.mxu0 }
 0x1f9   :  { %v6322_v58 = vpop.f32.mrf.mxu0 }
 0x1fb   :  { %v649_v57 = vpop.f32.mrf.mxu0 }
 0x1fd   :  { %v6324_v35 = vpop.f32.mrf.mxu0 }
 0x1ff   :  { %v654_v59 = vpop.f32.mrf.mxu0 }
 0x200   :  { %v588_v59 = vadd.f32 %v5878_v51, %v6227_v52 }
 0x201   :  { %v6326_v60 = vpop.f32.mrf.mxu0 }
 0x203   :  { %v659_v61 = vpop.f32.mrf.mxu0 }
 0x205   :  { %v6328_v1 = vpop.f32.mrf.mxu0 }
 0x207   :  { %v664_v6 = vpop.f32.mrf.mxu0 }
 0x209   :  { %v6330_v19 = vpop.f32.mrf.mxu0 }
 0x20b   :  { %v669_v26 = vpop.f32.mrf.mxu0 }
 0x20d   :  { %v6332_v40 = vpop.f32.mrf.mxu0 }
 0x20f   :  { %v674_v11 = vpop.f32.mrf.mxu0 }
 0x210   :  { %v886_v11 = vmax.f32 %v588_v59, 0.0 }
 0x211   :  { %v6334_v46 = vpop.f32.mrf.mxu0 }
 0x213   :  { %v679_v20 = vpop.f32.mrf.mxu0 }
 0x214   :  { %v593_v20 = vadd.f32 %v5878_v51, %v6234_v18 }
 0x215   :  { %v6336_v30 = vpop.f32.mrf.mxu0 }
 0x216   :  { %v887_v0 = vmax.f32 %v593_v20, 0.0 }
 0x217   :  { %v684_v23 = vpop.f32.mrf.mxu0 }
 0x219   :  { %v6338_v45 = vpop.f32.mrf.mxu0 }
 0x21b   :  { %v689_v25 = vpop.f32.mrf.mxu0 }
 0x21d   :  { %v6340_v50 = vpop.f32.mrf.mxu0 }
 0x21f   :  { %v694_v32 = vpop.f32.mrf.mxu0 }
 0x221   :  { %v6342_v34 = vpop.f32.mrf.mxu0 }
 0x223   :  { %v699_v37 = vpop.f32.mrf.mxu0 }
 0x225   :  { %v6344_v54 = vpop.f32.mrf.mxu0 }
 0x227   :  { %v704_v44 = vpop.f32.mrf.mxu0 }
 0x229   :  { %v6346_v38 = vpop.f32.mrf.mxu0 }
 0x22b   :  { %v709_v57 = vpop.f32.mrf.mxu0 }
 0x22c   :  { %v598_v57 = vadd.f32 %v5878_v51, %v6245_v13  ;;  %v1026_v13 = vld [vmem:[%s8275_s3 + $0x78] sm:$0xff] }
 0x22d   :  { %v712_v61 = vpop.f32.mrf.mxu0 }
 0x22e   :  { %v713_v6 = vadd.f32 %v5878_v51, %v712_v61 }
 0x22f   :  { %v714_v26 = vpop.f32.mrf.mxu0 }
 0x230   :  { %v911_v23 = vmax.f32 %v713_v6, 0.0  ;;  %v888_v6 = vmax.f32 %v598_v57, 0.0 }
 0x231   :  { %v717_v25 = vpop.f32.mrf.mxu0 }
 0x232   :  { %v6353_v32 = vmax.f32 %v886_v11, %v911_v23  ;;  %v718_v37 = vadd.f32 %v5878_v51, %v717_v25  ;;  %v603_v11 = vadd.f32 %v5878_v51, %v6255_v22  ;;  %v8286_v22 = vmov 0.0  }
 0x233   :  { %v719_v44 = vpop.f32.mrf.mxu0 }
 0x234   :  { %v986_v52 = vmax.f32 %v5899_v7, %v6353_v32  ;;  %v912_v61 = vmax.f32 %v718_v37, 0.0  ;;  %v3439_v32 = vld [vmem:[%s8275_s3 + $0x168] sm:$0xff] }
 0x235   :  { %v722_v26 = vpop.f32.mrf.mxu0 }
 0x236   :  { %v962_v59 = vmax.f32 %v887_v0, %v912_v61  ;;  %v723_v29 = vadd.f32 %v5878_v51, %v722_v26  ;;  %v1025_v0 = vld [vmem:[%s8275_s3 + $0x70] sm:$0xff] }
 0x237   :  { %v724_v18 = vpop.f32.mrf.mxu0 }
 0x238   :  { %v913_v23 = vmax.f32 %v723_v29, 0.0  ;;  %v987_v25 = vmax.f32 %v5910_v21, %v962_v59  ;;  %v889_v21 = vmax.f32 %v603_v11, 0.0  ;;  %v608_v29 = vadd.f32 %v5878_v51, %v6265_v5  ;;  %v1024_v59 = vld [vmem:[%s8275_s3 + $0x68] sm:$0xff]  ;;  %v1023_v5 = vld [vmem:[%s8275_s3 + $0x60] sm:$0xff] }
 0x239   :  { %v727_v20 = vpop.f32.mrf.mxu0 }
 0x23a   :  { %v6367_v44 = vmax.f32 %v888_v6, %v913_v23  ;;  %v728_v37 = vadd.f32 %v5878_v51, %v727_v20  ;;  %4289 = vmatmul.mubr.f32.vlgmr.msra.gmra.mxu1 %v987_v25  ;;  %v890_v25 = vmax.f32 %v608_v29, 0.0 }
 0x23b   :  { %4292 = vmatpush3.msra.mxu1 %v1026_v13  ;;  %v729_v57 = vpop.f32.mrf.mxu0  ;;  %4323 = vmatprep.mubr.msk.f32.mxu1 %vm5205_vm0, %v8286_v22  ;;  %v613_v13 = vadd.f32 %v5878_v51, %v6275_v9  ;;  %v1021_v9 = vld [vmem:[%s8275_s3 + $0x50] sm:$0xff] }
 0x23c   :  { %v988_v61 = vmax.f32 %v5921_v36, %v6367_v44  ;;  %v914_v26 = vmax.f32 %v728_v37, 0.0  ;;  %4293 = vmatprep.subr.mxu1 %v8286_v22 }
 0x23d   :  { %4294 = vmatpush3.msra.mxu1 %v1025_v0  ;;  %v732_v18 = vpop.f32.mrf.mxu0  ;;  %v1022_v0 = vld [vmem:[%s8275_s3 + $0x58] sm:$0xff] }
 0x23e   :  { %v6383_v6 = vmax.f32 %v889_v21, %v914_v26  ;;  %v733_v23 = vadd.f32 %v5878_v51, %v732_v18  ;;  %4295 = vmatprep.subr.mxu1 %v8286_v22  ;;  %v618_v18 = vadd.f32 %v5878_v51, %v6285_v17  ;;  %v1019_v17 = vld [vmem:[%s8275_s3 + $0x40] sm:$0xff] }
 0x23f   :  { %4296 = vmatpush3.msra.mxu1 %v1024_v59  ;;  %v734_v11 = vpop.f32.mrf.mxu0  ;;  %v891_v59 = vmax.f32 %v613_v13, 0.0 }
 0x240   :  { %v989_v20 = vmax.f32 %v5932_v49, %v6383_v6  ;;  %v915_v37 = vmax.f32 %v733_v23, 0.0  ;;  %4297 = vmatprep.subr.mxu1 %v8286_v22  ;;  %v1020_v11 = vld [vmem:[%s8275_s3 + $0x48] sm:$0xff]  ;;  %v3689_v6 = vld [vmem:[%s8275_s3 + $0x938] sm:$0xff] }
 0x241   :  { %4298 = vmatpush3.msra.mxu1 %v1023_v5  ;;  %v737_v57 = vpop.f32.mrf.mxu0  ;;  %v3471_v49 = vld [vmem:[%s8275_s3 + $0x268] sm:$0xff] }
 0x242   :  { %v6398_v21 = vmax.f32 %v890_v25, %v915_v37  ;;  %v738_v26 = vadd.f32 %v5878_v51, %v737_v57  ;;  %4299 = vmatprep.subr.mxu1 %v8286_v22  ;;  %v892_v57 = vmax.f32 %v618_v18, 0.0  ;;  %v6433_v18 = vld [vmem:[%s8274_s2] ss:$0 sm:$0xff] }
 0x243   :  { %4300 = vmatpush3.msra.mxu1 %v1022_v0  ;;  %v739_v29 = vpop.f32.mrf.mxu0 }
 0x244   :  { %v990_v23 = vmax.f32 %v5943_v63, %v6398_v21  ;;  %v916_v5 = vmax.f32 %v738_v26, 0.0  ;;  %4301 = vmatprep.subr.mxu1 %v8286_v22  ;;  %v623_v26 = vadd.f32 %v5878_v51, %v6295_v24  ;;  %v1017_v24 = vld [vmem:[%s8275_s3 + $0x30] sm:$0xff]  ;;  %v3487_v63 = vld [vmem:[%s8275_s3 + $0x2e8] sm:$0xff]  ;;  %v3721_v21 = vld [vmem:[%s8275_s3 + $0xa38] sm:$0xff] }
 0x245   :  { %4302 = vmatpush3.msra.mxu1 %v1021_v9  ;;  %v742_v25 = vpop.f32.mrf.mxu0 }
 0x246   :  { %v6413_v37 = vmax.f32 %v891_v59, %v916_v5  ;;  %v743_v0 = vadd.f32 %v5878_v51, %v742_v25  ;;  %4303 = vmatprep.subr.mxu1 %v8286_v22  ;;  %v1018_v59 = vld [vmem:[%s8275_s3 + $0x38] sm:$0xff] }
 0x247   :  { %4304 = vmatpush3.msra.mxu1 %v1020_v11  ;;  %v744_v13 = vpop.f32.mrf.mxu0 }
 0x248   :  { %v917_v29 = vmax.f32 %v743_v0, 0.0  ;;  %4305 = vmatprep.subr.mxu1 %v8286_v22  ;;  %v893_v0 = vmax.f32 %v623_v26, 0.0 }
 0x249   :  { %4306 = vmatpush3.msra.mxu1 %v1019_v17  ;;  %v747_v5 = vpop.f32.mrf.mxu0  ;;  %v628_v17 = vadd.f32 %v6433_v18, %v6305_v31  ;;  %v1015_v31 = vld [vmem:[%s8275_s3 + $0x20] sm:$0xff] }
 0x24a   :  { %v6428_v25 = vmax.f32 %v892_v57, %v917_v29  ;;  %v748_v51 = vadd.f32 %v6433_v18, %v747_v5  ;;  %4307 = vmatprep.subr.mxu1 %v8286_v22  ;;  %v1016_v29 = vld [vmem:[%s8275_s3 + $0x28] sm:$0xff] }
 0x24b   :  { %4308 = vmatpush3.msra.mxu1 %v1018_v59  ;;  %v749_v11 = vpop.f32.mrf.mxu0 }
 0x24c   :  { %v918_v57 = vmax.f32 %v748_v51, 0.0  ;;  %4309 = vmatprep.subr.mxu1 %v8286_v22  ;;  %v894_v51 = vmax.f32 %v628_v17, 0.0  ;;  %v633_v11 = vadd.f32 %v6433_v18, %v6315_v39  ;;  %v1013_v39 = vld [vmem:[%s8275_s3 + $0x10] sm:$0xff] }
 0x24d   :  { %4310 = vmatpush3.msra.mxu1 %v1017_v24  ;;  %v752_v5 = vpop.f32.mrf.mxu0 }
 0x24e   :  { %v6448_v9 = vmax.f32 %v893_v0, %v918_v57  ;;  %v753_v59 = vadd.f32 %v6433_v18, %v752_v5  ;;  %4311 = vmatprep.subr.mxu1 %v8286_v22  ;;  %v1014_v0 = vld [vmem:[%s8275_s3 + $0x18] sm:$0xff] }
 0x24f   :  { %4312 = vmatpush3.msra.mxu1 %v1016_v29  ;;  %v754_v26 = vpop.f32.mrf.mxu0 }
 0x250   :  { %v919_v13 = vmax.f32 %v753_v59, 0.0  ;;  %4313 = vmatprep.subr.mxu1 %v8286_v22  ;;  %v895_v59 = vmax.f32 %v633_v11, 0.0  ;;  %v638_v26 = vadd.f32 %v6433_v18, %v6318_v43  ;;  %v1011_v43 = vld [vmem:[%s8275_s3] sm:$0xff] }
 0x251   :  { %4314 = vmatpush3.msra.mxu1 %v1015_v31  ;;  %v757_v57 = vpop.f32.mrf.mxu0 }
 0x252   :  { %v6463_v5 = vmax.f32 %v894_v51, %v919_v13  ;;  %v758_v29 = vadd.f32 %v6433_v18, %v757_v57  ;;  %4315 = vmatprep.subr.mxu1 %v8286_v22  ;;  %v1012_v13 = vld [vmem:[%s8275_s3 + $0x8] sm:$0xff] }
 0x253   :  { %4316 = vmatpush3.msra.mxu1 %v1014_v0  ;;  %v759_v17 = vpop.f32.mrf.mxu0 }
 0x254   :  { %v920_v24 = vmax.f32 %v758_v29, 0.0  ;;  %4317 = vmatprep.subr.mxu1 %v8286_v22  ;;  %v896_v29 = vmax.f32 %v638_v26, 0.0  ;;  %v643_v17 = vadd.f32 %v6433_v18, %v6320_v48  ;;  %v3440_v48 = vld [vmem:[%s8275_s3 + $0x170] sm:$0xff] }
 0x255   :  { %4318 = vmatpush3.msra.mxu1 %v1013_v39  ;;  %v762_v51 = vpop.f32.mrf.mxu0 }
 0x256   :  { %v6478_v57 = vmax.f32 %v895_v59, %v920_v24  ;;  %v763_v0 = vadd.f32 %v6433_v18, %v762_v51  ;;  %4319 = vmatprep.subr.mxu1 %v8286_v22  ;;  %v3441_v24 = vld [vmem:[%s8275_s3 + $0x178] sm:$0xff] }
 0x257   :  { %4320 = vmatpush3.msra.mxu1 %v1012_v13  ;;  %v764_v11 = vpop.f32.mrf.mxu0 }
 0x258   :  { %v995_v39 = vmax.f32 %v5998_v4, %v6478_v57  ;;  %v921_v31 = vmax.f32 %v763_v0, 0.0  ;;  %4321 = vmatprep.subr.mxu1 %v8286_v22  ;;  %v897_v0 = vmax.f32 %v643_v17, 0.0  ;;  %v3566_v4 = vld [vmem:[%s8275_s3 + $0x560] sm:$0xff]  ;;  %v3565_v57 = vld [vmem:[%s8275_s3 + $0x558] sm:$0xff] }
 0x259   :  { %4322 = vmatpush3.msra.mxu1 %v1011_v43  ;;  %v767_v59 = vpop.f32.mrf.mxu0 }
 0x25a   :  { %v6493_v51 = vmax.f32 %v896_v29, %v921_v31  ;;  %v768_v13 = vadd.f32 %v6433_v18, %v767_v59  ;;  %4324 = vmatmul.mubr.f32.vlgmr.msra.gmra.mxu1 %v986_v52  ;;  %4326 = vmatprep.subr.mxu1 %v8286_v22  ;;  %v648_v31 = vadd.f32 %v6433_v18, %v6322_v58  ;;  %v3438_v58 = vld [vmem:[%s8275_s3 + $0x160] sm:$0xff] }
 0x25b   :  { %4327 = vmatpush3.msra.mxu1 %v3441_v24  ;;  %v769_v26 = vpop.f32.mrf.mxu0  ;;  %4358 = vmatprep.mubr.msk.f32.mxu1 %vm5205_vm0, %v8286_v22  ;;  %v653_v59 = vadd.f32 %v6433_v18, %v6324_v35  ;;  %v3436_v35 = vld [vmem:[%s8275_s3 + $0x150] sm:$0xff] }
 0x25c   :  { %v996_v43 = vmax.f32 %v6009_v10, %v6493_v51  ;;  %v922_v7 = vmax.f32 %v768_v13, 0.0  ;;  %4328 = vmatprep.subr.mxu1 %v8286_v22  ;;  %v898_v24 = vmax.f32 %v648_v31, 0.0  ;;  %v3437_v26 = vld [vmem:[%s8275_s3 + $0x158] sm:$0xff]  ;;  %v3582_v10 = vld [vmem:[%s8275_s3 + $0x5e0] sm:$0xff] }
 0x25d   :  { %4329 = vmatpush3.msra.mxu1 %v3440_v48  ;;  %v772_v52 = vpop.f32.mrf.mxu0  ;;  %v3581_v51 = vld [vmem:[%s8275_s3 + $0x5d8] sm:$0xff] }
 0x25e   :  { %v6513_v11 = vmax.f32 %v897_v0, %v922_v7  ;;  %v773_v29 = vadd.f32 %v6433_v18, %v772_v52  ;;  %4330 = vmatprep.subr.mxu1 %v8286_v22  ;;  %v899_v52 = vmax.f32 %v653_v59, 0.0 }
 0x25f   :  { %4331 = vmatpush3.msra.mxu1 %v3439_v32  ;;  %v774_v17 = vpop.f32.mrf.mxu0 }
 0x260   :  { %v923_v48 = vmax.f32 %v773_v29, 0.0  ;;  %4332 = vmatprep.subr.mxu1 %v8286_v22  ;;  %v658_v29 = vadd.f32 %v6433_v18, %v6326_v60  ;;  %v3434_v60 = vld [vmem:[%s8275_s3 + $0x140] sm:$0xff] }
 0x261   :  { %4333 = vmatpush3.msra.mxu1 %v3438_v58  ;;  %v777_v0 = vpop.f32.mrf.mxu0 }
 0x262   :  { %v6528_v7 = vmax.f32 %v898_v24, %v923_v48  ;;  %v778_v32 = vadd.f32 %v6433_v18, %v777_v0  ;;  %4334 = vmatprep.subr.mxu1 %v8286_v22  ;;  %v3435_v24 = vld [vmem:[%s8275_s3 + $0x148] sm:$0xff] }
 0x263   :  { %4335 = vmatpush3.msra.mxu1 %v3437_v26  ;;  %v779_v31 = vpop.f32.mrf.mxu0 }
 0x264   :  { %v924_v17 = vmax.f32 %v778_v32, 0.0  ;;  %4336 = vmatprep.subr.mxu1 %v8286_v22  ;;  %v900_v32 = vmax.f32 %v658_v29, 0.0  ;;  %v663_v31 = vadd.f32 %v6433_v18, %v6328_v1  ;;  %v3432_v1 = vld [vmem:[%s8275_s3 + $0x130] sm:$0xff] }
 0x265   :  { %4337 = vmatpush3.msra.mxu1 %v3436_v35  ;;  %v782_v48 = vpop.f32.mrf.mxu0 }
 0x266   :  { %v6543_v0 = vmax.f32 %v899_v52, %v924_v17  ;;  %v783_v26 = vadd.f32 %v6433_v18, %v782_v48  ;;  %4338 = vmatprep.subr.mxu1 %v8286_v22  ;;  %v3433_v52 = vld [vmem:[%s8275_s3 + $0x138] sm:$0xff] }
 0x267   :  { %4339 = vmatpush3.msra.mxu1 %v3435_v24  ;;  %v784_v59 = vpop.f32.mrf.mxu0 }
 0x268   :  { %v925_v58 = vmax.f32 %v783_v26, 0.0  ;;  %4340 = vmatprep.subr.mxu1 %v8286_v22  ;;  %v901_v26 = vmax.f32 %v663_v31, 0.0  ;;  %v668_v59 = vadd.f32 %v6433_v18, %v6330_v19  ;;  %v3664_v19 = vld [vmem:[%s8275_s3 + $0x870] sm:$0xff] }
 0x269   :  { %4341 = vmatpush3.msra.mxu1 %v3434_v60  ;;  %v787_v17 = vpop.f32.mrf.mxu0  ;;  %v3665_v60 = vld [vmem:[%s8275_s3 + $0x878] sm:$0xff] }
 0x26a   :  { %v975_v48 = vmax.f32 %v900_v32, %v925_v58  ;;  %v788_v24 = vadd.f32 %v6433_v18, %v787_v17  ;;  %4342 = vmatprep.subr.mxu1 %v8286_v22  ;;  %v3431_v58 = vld [vmem:[%s8275_s3 + $0x128] sm:$0xff] }
 0x26b   :  { %4343 = vmatpush3.msra.mxu1 %v3433_v52  ;;  %v789_v29 = vpop.f32.mrf.mxu0 }
 0x26c   :  { %v1000_v35 = vmax.f32 %v6072_v16, %v975_v48  ;;  %v926_v13 = vmax.f32 %v788_v24, 0.0  ;;  %4344 = vmatprep.subr.mxu1 %v8286_v22  ;;  %v3430_v16 = vld [vmem:[%s8275_s3 + $0x120] sm:$0xff]  ;;  %v902_v48 = vmax.f32 %v668_v59, 0.0  ;;  %v3663_v29 = vld [vmem:[%s8275_s3 + $0x868] sm:$0xff] }
 0x26d   :  { %4345 = vmatpush3.msra.mxu1 %v3432_v1  ;;  %v792_v32 = vpop.f32.mrf.mxu0 }
 0x26e   :  { %v6573_v52 = vmax.f32 %v901_v26, %v926_v13  ;;  %v793_v31 = vadd.f32 %v6433_v18, %v792_v32  ;;  %4346 = vmatprep.subr.mxu1 %v8286_v22  ;;  %4779 = vmatmul.mubr.f32.vlgmr.msra.gmra.mxu0 %v1000_v35  ;;  %v673_v13 = vadd.f32 %v6433_v18, %v6332_v40  ;;  %v3429_v35 = vld [vmem:[%s8275_s3 + $0x118] sm:$0xff] }
 0x26f   :  { %4347 = vmatpush3.msra.mxu1 %v3431_v58  ;;  %4817 = vmatpush3.msra.mxu0 %v3665_v60  ;;  %v794_v17 = vpop.f32.mrf.mxu0  ;;  %v3428_v58 = vld [vmem:[%s8275_s3 + $0x110] sm:$0xff]  ;;  %v3662_v60 = vld [vmem:[%s8275_s3 + $0x860] sm:$0xff] }
 0x270   :  { %v1001_v24 = vmax.f32 %v6091_v33, %v6573_v52  ;;  %v927_v1 = vmax.f32 %v793_v31, 0.0  ;;  %4348 = vmatprep.subr.mxu1 %v8286_v22  ;;  %4818 = vmatprep.subr.mxu0 %v8286_v22  ;;  %v903_v31 = vmax.f32 %v673_v13, 0.0  ;;  %v3678_v33 = vld [vmem:[%s8275_s3 + $0x8e0] sm:$0xff]  ;;  %v3677_v52 = vld [vmem:[%s8275_s3 + $0x8d8] sm:$0xff] }
 0x271   :  { %4349 = vmatpush3.msra.mxu1 %v3430_v16  ;;  %4819 = vmatpush3.msra.mxu0 %v3664_v19  ;;  %v797_v26 = vpop.f32.mrf.mxu0  ;;  %v678_v16 = vadd.f32 %v6433_v18, %v6334_v46 }
 0x272   :  { %v6595_v40 = vmax.f32 %v902_v48, %v927_v1  ;;  %v798_v59 = vadd.f32 %v6433_v18, %v797_v26  ;;  %4350 = vmatprep.subr.mxu1 %v8286_v22  ;;  %4820 = vmatprep.subr.mxu0 %v8286_v22  ;;  %v3427_v48 = vld [vmem:[%s8275_s3 + $0x108] sm:$0xff]  ;;  %v3661_v1 = vld [vmem:[%s8275_s3 + $0x858] sm:$0xff]  ;;  %v3660_v26 = vld [vmem:[%s8275_s3 + $0x850] sm:$0xff] }
 0x273   :  { %4351 = vmatpush3.msra.mxu1 %v3429_v35  ;;  %4821 = vmatpush3.msra.mxu0 %v3663_v29  ;;  %v799_v32 = vpop.f32.mrf.mxu0  ;;  %v3426_v29 = vld [vmem:[%s8275_s3 + $0x100] sm:$0xff] }
 0x274   :  { %v1002_v19 = vmax.f32 %v6110_v53, %v6595_v40  ;;  %v928_v17 = vmax.f32 %v798_v59, 0.0  ;;  %4352 = vmatprep.subr.mxu1 %v8286_v22  ;;  %4822 = vmatprep.subr.mxu0 %v8286_v22  ;;  %v3445_v53 = vld [vmem:[%s8275_s3 + $0x198] sm:$0xff] }
 0x275   :  { %4353 = vmatpush3.msra.mxu1 %v3428_v58  ;;  %4823 = vmatpush3.msra.mxu0 %v3662_v60  ;;  %v802_v13 = vpop.f32.mrf.mxu0  ;;  %v904_v58 = vmax.f32 %v678_v16, 0.0  ;;  %v683_v60 = vadd.f32 %v6433_v18, %v6336_v30  ;;  %v3659_v16 = vld [vmem:[%s8275_s3 + $0x848] sm:$0xff] }
 0x276   :  { %v6618_v46 = vmax.f32 %v903_v31, %v928_v17  ;;  %v803_v35 = vadd.f32 %v6433_v18, %v802_v13  ;;  %4354 = vmatprep.subr.mxu1 %v8286_v22  ;;  %4824 = vmatprep.subr.mxu0 %v8286_v22  ;;  %v3457_v17 = vld [vmem:[%s8275_s3 + $0x1f8] sm:$0xff]  ;;  %v3456_v13 = vld [vmem:[%s8275_s3 + $0x1f0] sm:$0xff] }
 0x277   :  { %4355 = vmatpush3.msra.mxu1 %v3427_v48  ;;  %4825 = vmatpush3.msra.mxu0 %v3661_v1  ;;  %v804_v59 = vpop.f32.mrf.mxu0 }
 0x278   :  { %v1003_v32 = vmax.f32 %v6129_v62, %v6618_v46  ;;  %v929_v31 = vmax.f32 %v803_v35, 0.0  ;;  %4356 = vmatprep.subr.mxu1 %v8286_v22  ;;  %4826 = vmatprep.subr.mxu0 %v8286_v22  ;;  %v688_v59 = vadd.f32 %v6433_v18, %v6338_v45  ;;  %v3710_v62 = vld [vmem:[%s8275_s3 + $0x9e0] sm:$0xff]  ;;  %v3709_v46 = vld [vmem:[%s8275_s3 + $0x9d8] sm:$0xff] }
 0x279   :  { %4357 = vmatpush3.msra.mxu1 %v3426_v29  ;;  %4827 = vmatpush3.msra.mxu0 %v3660_v26  ;;  %v807_v48 = vpop.f32.mrf.mxu0  ;;  %v3658_v29 = vld [vmem:[%s8275_s3 + $0x840] sm:$0xff]  ;;  %v905_v26 = vmax.f32 %v683_v60, 0.0  ;;  %v3657_v60 = vld [vmem:[%s8275_s3 + $0x838] sm:$0xff] }
 0x27a   :  { %v6641_v30 = vmax.f32 %v904_v58, %v929_v31  ;;  %v808_v1 = vadd.f32 %v6433_v18, %v807_v48  ;;  %4359 = vmatmul.mubr.f32.vlgmr.msra.gmra.mxu1 %v988_v61  ;;  %4361 = vmatprep.subr.mxu1 %v8286_v22  ;;  %v3455_v61 = vld [vmem:[%s8275_s3 + $0x1e8] sm:$0xff] }
 0x27b   :  { %4828 = vmatprep.subr.mxu0 %v8286_v22  ;;  %4362 = vmatpush3.msra.mxu1 %v3457_v17  ;;  %v809_v35 = vpop.f32.mrf.mxu0  ;;  %v3454_v17 = vld [vmem:[%s8275_s3 + $0x1e0] sm:$0xff] }
 0x27c   :  { %v1004_v36 = vmax.f32 %v6148_v3, %v6641_v30  ;;  %v930_v44 = vmax.f32 %v808_v1, 0.0  ;;  %4829 = vmatpush3.msra.mxu0 %v3659_v16  ;;  %4363 = vmatprep.subr.mxu1 %v8286_v22  ;;  %v3656_v16 = vld [vmem:[%s8275_s3 + $0x830] sm:$0xff]  ;;  %v906_v1 = vmax.f32 %v688_v59, 0.0  ;;  %v3655_v59 = vld [vmem:[%s8275_s3 + $0x828] sm:$0xff] }
 0x27d   :  { %4830 = vmatprep.subr.mxu0 %v8286_v22  ;;  %4364 = vmatpush3.msra.mxu1 %v3456_v13  ;;  %v812_v58 = vpop.f32.mrf.mxu0  ;;  %v693_v13 = vadd.f32 %v6433_v18, %v6340_v50  ;;  %v3727_v3 = vld [vmem:[%s8275_s3 + $0xa68] sm:$0xff]  ;;  %v3460_v30 = vld [vmem:[%s8275_s3 + $0x210] sm:$0xff] }
 0x27e   :  { %v6667_v45 = vmax.f32 %v905_v26, %v930_v44  ;;  %4831 = vmatpush3.msra.mxu0 %v3658_v29  ;;  %v813_v31 = vadd.f32 %v6433_v18, %v812_v58  ;;  %4365 = vmatprep.subr.mxu1 %v8286_v22  ;;  %v3453_v26 = vld [vmem:[%s8275_s3 + $0x1d8] sm:$0xff]  ;;  %v3452_v58 = vld [vmem:[%s8275_s3 + $0x1d0] sm:$0xff] }
 0x27f   :  { %4832 = vmatprep.subr.mxu0 %v8286_v22  ;;  %4366 = vmatpush3.msra.mxu1 %v3455_v61  ;;  %v814_v48 = vpop.f32.mrf.mxu0 }
 0x280   :  { %v1005_v35 = vmax.f32 %v6167_v8, %v6667_v45  ;;  %v931_v29 = vmax.f32 %v813_v31, 0.0  ;;  %4833 = vmatpush3.msra.mxu0 %v3657_v60  ;;  %4367 = vmatprep.subr.mxu1 %v8286_v22  ;;  %v3654_v31 = vld [vmem:[%s8275_s3 + $0x820] sm:$0xff]  ;;  %v698_v48 = vadd.f32 %v6433_v18, %v6342_v34  ;;  %v3741_v45 = vld [vmem:[%s8275_s3 + $0xad8] sm:$0xff] }
 0x281   :  { %4834 = vmatprep.subr.mxu0 %v8286_v22  ;;  %4368 = vmatpush3.msra.mxu1 %v3454_v17  ;;  %v817_v44 = vpop.f32.mrf.mxu0  ;;  %v907_v17 = vmax.f32 %v693_v13, 0.0  ;;  %v3653_v13 = vld [vmem:[%s8275_s3 + $0x818] sm:$0xff]  ;;  %v3742_v8 = vld [vmem:[%s8275_s3 + $0xae0] sm:$0xff] }
 0x282   :  { %v6690_v50 = vmax.f32 %v906_v1, %v931_v29  ;;  %4835 = vmatpush3.msra.mxu0 %v3656_v16  ;;  %v818_v61 = vadd.f32 %v6433_v18, %v817_v44  ;;  %4369 = vmatprep.subr.mxu1 %v8286_v22  ;;  %v3451_v29 = vld [vmem:[%s8275_s3 + $0x1c8] sm:$0xff] }
 0x283   :  { %4836 = vmatprep.subr.mxu0 %v8286_v22  ;;  %4370 = vmatpush3.msra.mxu1 %v3453_v26  ;;  %v819_v60 = vpop.f32.mrf.mxu0 }
 0x284   :  { %v1006_v16 = vmax.f32 %v6184_v55, %v6690_v50  ;;  %v932_v1 = vmax.f32 %v818_v61, 0.0  ;;  %4837 = vmatpush3.msra.mxu0 %v3655_v59  ;;  %4371 = vmatprep.subr.mxu1 %v8286_v22  ;;  %v3450_v59 = vld [vmem:[%s8275_s3 + $0x1c0] sm:$0xff]  ;;  %v908_v60 = vmax.f32 %v698_v48, 0.0  ;;  %v3651_v48 = vld [vmem:[%s8275_s3 + $0x808] sm:$0xff]  ;;  %v3476_v50 = vld [vmem:[%s8275_s3 + $0x290] sm:$0xff] }
 0x285   :  { %4838 = vmatprep.subr.mxu0 %v8286_v22  ;;  %4372 = vmatpush3.msra.mxu1 %v3452_v58  ;;  %v822_v26 = vpop.f32.mrf.mxu0  ;;  %v3652_v58 = vld [vmem:[%s8275_s3 + $0x810] sm:$0xff]  ;;  %v3759_v55 = vld [vmem:[%s8275_s3 + $0xb68] sm:$0xff] }
 0x286   :  { %v6713_v34 = vmax.f32 %v907_v17, %v932_v1  ;;  %4839 = vmatpush3.msra.mxu0 %v3654_v31  ;;  %v823_v44 = vadd.f32 %v6433_v18, %v822_v26  ;;  %4373 = vmatprep.subr.mxu1 %v8286_v22  ;;  %v703_v31 = vadd.f32 %v6433_v18, %v6344_v54 }
 0x287   :  { %4840 = vmatprep.subr.mxu0 %v8286_v22  ;;  %4374 = vmatpush3.msra.mxu1 %v3451_v29  ;;  %v824_v61 = vpop.f32.mrf.mxu0  ;;  %v3449_v29 = vld [vmem:[%s8275_s3 + $0x1b8] sm:$0xff] }
 0x288   :  { %v933_v1 = vmax.f32 %v823_v44, 0.0  ;;  %4841 = vmatpush3.msra.mxu0 %v3653_v13  ;;  %4375 = vmatprep.subr.mxu1 %v8286_v22  ;;  %v3448_v13 = vld [vmem:[%s8275_s3 + $0x1b0] sm:$0xff]  ;;  %v3650_v61 = vld [vmem:[%s8275_s3 + $0x800] sm:$0xff]  ;;  %v909_v17 = vmax.f32 %v703_v31, 0.0  ;;  %v3697_v31 = vld [vmem:[%s8275_s3 + $0x978] sm:$0xff] }
 0x289   :  { %4842 = vmatprep.subr.mxu0 %v8286_v22  ;;  %4376 = vmatpush3.msra.mxu1 %v3450_v59  ;;  %v827_v26 = vpop.f32.mrf.mxu0 }
 0x28a   :  { %v6736_v54 = vmax.f32 %v908_v60, %v933_v1  ;;  %4843 = vmatpush3.msra.mxu0 %v3652_v58  ;;  %v828_v44 = vadd.f32 %v6433_v18, %v827_v26  ;;  %4377 = vmatprep.subr.mxu1 %v8286_v22  ;;  %v708_v58 = vadd.f32 %v6433_v18, %v6346_v38  ;;  %v3447_v26 = vld [vmem:[%s8275_s3 + $0x1a8] sm:$0xff] }
 0x28b   :  { %4844 = vmatprep.subr.mxu0 %v8286_v22  ;;  %4378 = vmatpush3.msra.mxu1 %v3449_v29  ;;  %v829_v59 = vpop.f32.mrf.mxu0 }
 0x28c   :  { %v1008_v60 = vmax.f32 %v6207_v15, %v6736_v54  ;;  %v934_v1 = vmax.f32 %v828_v44, 0.0  ;;  %4845 = vmatpush3.msra.mxu0 %v3651_v48  ;;  %4379 = vmatprep.subr.mxu1 %v8286_v22  ;;  %v910_v44 = vmax.f32 %v708_v58, 0.0  ;;  %v3444_v58 = vld [vmem:[%s8275_s3 + $0x190] sm:$0xff]  ;;  %v3791_v15 = vld [vmem:[%s8275_s3 + $0xc68] sm:$0xff] }
 0x28d   :  { %4846 = vmatprep.subr.mxu0 %v8286_v22  ;;  %4380 = vmatpush3.msra.mxu1 %v3448_v13  ;;  %v832_v29 = vpop.f32.mrf.mxu0  ;;  %v3492_v54 = vld [vmem:[%s8275_s3 + $0x310] sm:$0xff] }
 0x28e   :  { %v6756_v59 = vmax.f32 %v909_v17, %v934_v1  ;;  %4847 = vmatpush3.msra.mxu0 %v3650_v61  ;;  %4848 = vmatprep.mubr.msk.f32.mxu0 %vm5205_vm0, %v8286_v22  ;;  %v833_v38 = vadd.f32 %v6433_v18, %v832_v29  ;;  %v3446_v17 = vld [vmem:[%s8275_s3 + $0x1a0] sm:$0xff]  ;;  %v3696_v61 = vld [vmem:[%s8275_s3 + $0x970] sm:$0xff] }
 0x28f   :  { %4381 = vmatprep.subr.mxu1 %v8286_v22  ;;  %4849 = vmatmul.mubr.f32.vlgmr.msra.gmra.mxu0 %v1002_v19  ;;  %v834_v48 = vpop.f32.mrf.mxu0  ;;  %v3695_v19 = vld [vmem:[%s8275_s3 + $0x968] sm:$0xff]  ;;  %v8287_v1 = vld [vmem:[#allocation2_spill] sm:$0xff] }
 0x290   :  { %v1009_v13 = vmax.f32 %v6218_v28, %v6756_v59  ;;  %v935_v18 = vmax.f32 %v833_v38, 0.0  ;;  %4886 = vmatprep.subr.mxu0 %v8286_v22  ;;  %4382 = vmatpush3.msra.mxu1 %v3447_v26  ;;  %v3694_v26 = vld [vmem:[%s8275_s3 + $0x960] sm:$0xff]  ;;  %v3443_v38 = vld [vmem:[%s8275_s3 + $0x188] sm:$0xff]  ;;  %v3692_v48 = vld [vmem:[%s8275_s3 + $0x950] sm:$0xff] }
 0x291   :  { %4887 = vmatpush3.msra.mxu0 %v3697_v31  ;;  %4383 = vmatprep.subr.mxu1 %v8286_v22  ;;  %v3693_v31 = vld [vmem:[%s8275_s3 + $0x958] sm:$0xff]  ;;  %v3230_v28 = vld [vmem:[%s8276_s5 + $0x68] sm:$0xff]  ;;  %v3229_v59 = vld [vmem:[%s8276_s5 + $0x60] sm:$0xff] }
 0x292   :  { %v6781_v40 = vmax.f32 %v910_v44, %v935_v18  ;;  %4888 = vmatprep.subr.mxu0 %v8286_v22  ;;  %4384 = vmatpush3.msra.mxu1 %v3446_v17  ;;  %v3442_v17 = vld [vmem:[%s8275_s3 + $0x180] sm:$0xff]  ;;  %v3473_v44 = vld [vmem:[%s8275_s3 + $0x278] sm:$0xff]  ;;  %v3691_v18 = vld [vmem:[%s8275_s3 + $0x948] sm:$0xff] }
 0x293   :  { %4889 = vmatpush3.msra.mxu0 %v3696_v61  ;;  %4385 = vmatprep.subr.mxu1 %v8286_v22  ;;  %v3472_v61 = vld [vmem:[%s8275_s3 + $0x270] sm:$0xff] }
 0x294   :  { %v1010_v29 = vmax.f32 %v8287_v1, %v6781_v40  ;;  %4890 = vmatprep.subr.mxu0 %v8286_v22  ;;  %4386 = vmatpush3.msra.mxu1 %v3445_v53  ;;  %v3690_v53 = vld [vmem:[%s8275_s3 + $0x940] sm:$0xff]  ;;  %v3508_v40 = vld [vmem:[%s8275_s3 + $0x390] sm:$0xff] }
 0x295   :  { %4891 = vmatpush3.msra.mxu0 %v3695_v19  ;;  %4387 = vmatprep.subr.mxu1 %v8286_v22  ;;  %v3688_v19 = vld [vmem:[%s8275_s3 + $0x930] sm:$0xff] }
 0x296   :  { %4892 = vmatprep.subr.mxu0 %v8286_v22  ;;  %4388 = vmatpush3.msra.mxu1 %v3444_v58  ;;  %v3469_v58 = vld [vmem:[%s8275_s3 + $0x258] sm:$0xff] }
 0x297   :  { %4893 = vmatpush3.msra.mxu0 %v3694_v26  ;;  %4389 = vmatprep.subr.mxu1 %v8286_v22  ;;  %v3687_v26 = vld [vmem:[%s8275_s3 + $0x928] sm:$0xff] }
 0x298   :  { %4894 = vmatprep.subr.mxu0 %v8286_v22  ;;  %4390 = vmatpush3.msra.mxu1 %v3443_v38  ;;  %v3468_v38 = vld [vmem:[%s8275_s3 + $0x250] sm:$0xff] }
 0x299   :  { %4895 = vmatpush3.msra.mxu0 %v3693_v31  ;;  %4391 = vmatprep.subr.mxu1 %v8286_v22  ;;  %v3686_v31 = vld [vmem:[%s8275_s3 + $0x920] sm:$0xff] }
 0x29a   :  { %4896 = vmatprep.subr.mxu0 %v8286_v22  ;;  %4392 = vmatpush3.msra.mxu1 %v3442_v17  ;;  %v3467_v17 = vld [vmem:[%s8275_s3 + $0x248] sm:$0xff] }
 0x29b   :  { %4393 = vmatprep.mubr.msk.f32.mxu1 %vm5205_vm0, %v8286_v22  ;;  %4897 = vmatpush3.msra.mxu0 %v3692_v48  ;;  %v3685_v48 = vld [vmem:[%s8275_s3 + $0x918] sm:$0xff] }
 0x29c   :  { %4394 = vmatmul.mubr.f32.vlgmr.msra.gmra.mxu1 %v989_v20  ;;  %4396 = vmatprep.subr.mxu1 %v8286_v22  ;;  %v3470_v20 = vld [vmem:[%s8275_s3 + $0x260] sm:$0xff] }
 0x29d   :  { %4898 = vmatprep.subr.mxu0 %v8286_v22  ;;  %4397 = vmatpush3.msra.mxu1 %v3473_v44  ;;  %v3466_v44 = vld [vmem:[%s8275_s3 + $0x240] sm:$0xff] }
 0x29e   :  { %4899 = vmatpush3.msra.mxu0 %v3691_v18  ;;  %4398 = vmatprep.subr.mxu1 %v8286_v22  ;;  %v3684_v18 = vld [vmem:[%s8275_s3 + $0x910] sm:$0xff] }
 0x29f   :  { %4900 = vmatprep.subr.mxu0 %v8286_v22  ;;  %4399 = vmatpush3.msra.mxu1 %v3472_v61  ;;  %v3465_v61 = vld [vmem:[%s8275_s3 + $0x238] sm:$0xff] }
 0x2a0   :  { %4901 = vmatpush3.msra.mxu0 %v3690_v53  ;;  %4400 = vmatprep.subr.mxu1 %v8286_v22  ;;  %v3683_v53 = vld [vmem:[%s8275_s3 + $0x908] sm:$0xff] }
 0x2a1   :  { %4902 = vmatprep.subr.mxu0 %v8286_v22  ;;  %4401 = vmatpush3.msra.mxu1 %v3471_v49  ;;  %v3464_v49 = vld [vmem:[%s8275_s3 + $0x230] sm:$0xff] }
 0x2a2   :  { %4903 = vmatpush3.msra.mxu0 %v3689_v6  ;;  %4402 = vmatprep.subr.mxu1 %v8286_v22  ;;  %v3682_v6 = vld [vmem:[%s8275_s3 + $0x900] sm:$0xff] }
 0x2a3   :  { %4904 = vmatprep.subr.mxu0 %v8286_v22  ;;  %4403 = vmatpush3.msra.mxu1 %v3470_v20  ;;  %v3463_v20 = vld [vmem:[%s8275_s3 + $0x228] sm:$0xff] }
 0x2a4   :  { %4905 = vmatpush3.msra.mxu0 %v3688_v19  ;;  %4404 = vmatprep.subr.mxu1 %v8286_v22  ;;  %v3729_v19 = vld [vmem:[%s8275_s3 + $0xa78] sm:$0xff] }
 0x2a5   :  { %4906 = vmatprep.subr.mxu0 %v8286_v22  ;;  %4405 = vmatpush3.msra.mxu1 %v3469_v58  ;;  %v3462_v58 = vld [vmem:[%s8275_s3 + $0x220] sm:$0xff] }
 0x2a6   :  { %4907 = vmatpush3.msra.mxu0 %v3687_v26  ;;  %4406 = vmatprep.subr.mxu1 %v8286_v22  ;;  %v3728_v26 = vld [vmem:[%s8275_s3 + $0xa70] sm:$0xff] }
 0x2a7   :  { %4908 = vmatprep.subr.mxu0 %v8286_v22  ;;  %4407 = vmatpush3.msra.mxu1 %v3468_v38  ;;  %v3461_v38 = vld [vmem:[%s8275_s3 + $0x218] sm:$0xff] }
 0x2a8   :  { %4909 = vmatpush3.msra.mxu0 %v3686_v31  ;;  %4408 = vmatprep.subr.mxu1 %v8286_v22  ;;  %v3459_v31 = vld [vmem:[%s8275_s3 + $0x208] sm:$0xff] }
 0x2a9   :  { %4910 = vmatprep.subr.mxu0 %v8286_v22  ;;  %4409 = vmatpush3.msra.mxu1 %v3467_v17  ;;  %v3725_v17 = vld [vmem:[%s8275_s3 + $0xa58] sm:$0xff] }
 0x2aa   :  { %4911 = vmatpush3.msra.mxu0 %v3685_v48  ;;  %4410 = vmatprep.subr.mxu1 %v8286_v22  ;;  %v3458_v48 = vld [vmem:[%s8275_s3 + $0x200] sm:$0xff] }
 0x2ab   :  { %4912 = vmatprep.subr.mxu0 %v8286_v22  ;;  %4411 = vmatpush3.msra.mxu1 %v3466_v44  ;;  %v3724_v44 = vld [vmem:[%s8275_s3 + $0xa50] sm:$0xff] }
 0x2ac   :  { %4913 = vmatpush3.msra.mxu0 %v3684_v18  ;;  %4412 = vmatprep.subr.mxu1 %v8286_v22  ;;  %v3489_v18 = vld [vmem:[%s8275_s3 + $0x2f8] sm:$0xff] }
 0x2ad   :  { %4914 = vmatprep.subr.mxu0 %v8286_v22  ;;  %4413 = vmatpush3.msra.mxu1 %v3465_v61  ;;  %v3723_v61 = vld [vmem:[%s8275_s3 + $0xa48] sm:$0xff] }
 0x2ae   :  { %4915 = vmatpush3.msra.mxu0 %v3683_v53  ;;  %4414 = vmatprep.subr.mxu1 %v8286_v22  ;;  %v3488_v53 = vld [vmem:[%s8275_s3 + $0x2f0] sm:$0xff] }
 0x2af   :  { %4916 = vmatprep.subr.mxu0 %v8286_v22  ;;  %4415 = vmatpush3.msra.mxu1 %v3464_v49  ;;  %v3722_v49 = vld [vmem:[%s8275_s3 + $0xa40] sm:$0xff] }
 0x2b0   :  { %4917 = vmatpush3.msra.mxu0 %v3682_v6  ;;  %4918 = vmatprep.mubr.msk.f32.mxu0 %vm5205_vm0, %v8286_v22  ;;  %v3720_v6 = vld [vmem:[%s8275_s3 + $0xa30] sm:$0xff] }
 0x2b1   :  { %4416 = vmatprep.subr.mxu1 %v8286_v22  ;;  %4919 = vmatmul.mubr.f32.vlgmr.msra.gmra.mxu0 %v1004_v36  ;;  %v3726_v36 = vld [vmem:[%s8275_s3 + $0xa60] sm:$0xff] }
 0x2b2   :  { %4956 = vmatprep.subr.mxu0 %v8286_v22  ;;  %4417 = vmatpush3.msra.mxu1 %v3463_v20  ;;  %v3485_v20 = vld [vmem:[%s8275_s3 + $0x2d8] sm:$0xff] }
 0x2b3   :  { %4957 = vmatpush3.msra.mxu0 %v3729_v19  ;;  %4418 = vmatprep.subr.mxu1 %v8286_v22  ;;  %v3719_v19 = vld [vmem:[%s8275_s3 + $0xa28] sm:$0xff] }
 0x2b4   :  { %4958 = vmatprep.subr.mxu0 %v8286_v22  ;;  %4419 = vmatpush3.msra.mxu1 %v3462_v58  ;;  %v3484_v58 = vld [vmem:[%s8275_s3 + $0x2d0] sm:$0xff] }
 0x2b5   :  { %4959 = vmatpush3.msra.mxu0 %v3728_v26  ;;  %4420 = vmatprep.subr.mxu1 %v8286_v22  ;;  %v3718_v26 = vld [vmem:[%s8275_s3 + $0xa20] sm:$0xff] }
 0x2b6   :  { %4960 = vmatprep.subr.mxu0 %v8286_v22  ;;  %4421 = vmatpush3.msra.mxu1 %v3461_v38  ;;  %v3483_v38 = vld [vmem:[%s8275_s3 + $0x2c8] sm:$0xff] }
 0x2b7   :  { %4961 = vmatpush3.msra.mxu0 %v3727_v3  ;;  %4422 = vmatprep.subr.mxu1 %v8286_v22  ;;  %v3717_v3 = vld [vmem:[%s8275_s3 + $0xa18] sm:$0xff] }
 0x2b8   :  { %4962 = vmatprep.subr.mxu0 %v8286_v22  ;;  %4423 = vmatpush3.msra.mxu1 %v3460_v30  ;;  %v3482_v30 = vld [vmem:[%s8275_s3 + $0x2c0] sm:$0xff] }
 0x2b9   :  { %4963 = vmatpush3.msra.mxu0 %v3726_v36  ;;  %4424 = vmatprep.subr.mxu1 %v8286_v22  ;;  %v3716_v36 = vld [vmem:[%s8275_s3 + $0xa10] sm:$0xff] }
 0x2ba   :  { %4964 = vmatprep.subr.mxu0 %v8286_v22  ;;  %4425 = vmatpush3.msra.mxu1 %v3459_v31  ;;  %v3481_v31 = vld [vmem:[%s8275_s3 + $0x2b8] sm:$0xff] }
 0x2bb   :  { %4965 = vmatpush3.msra.mxu0 %v3725_v17  ;;  %4426 = vmatprep.subr.mxu1 %v8286_v22  ;;  %v3715_v17 = vld [vmem:[%s8275_s3 + $0xa08] sm:$0xff] }
 0x2bc   :  { %4966 = vmatprep.subr.mxu0 %v8286_v22  ;;  %4427 = vmatpush3.msra.mxu1 %v3458_v48  ;;  %v3480_v48 = vld [vmem:[%s8275_s3 + $0x2b0] sm:$0xff] }
 0x2bd   :  { %4428 = vmatprep.mubr.msk.f32.mxu1 %vm5205_vm0, %v8286_v22  ;;  %4967 = vmatpush3.msra.mxu0 %v3724_v44  ;;  %v3714_v44 = vld [vmem:[%s8275_s3 + $0xa00] sm:$0xff] }
 0x2be   :  { %4429 = vmatmul.mubr.f32.vlgmr.msra.gmra.mxu1 %v990_v23  ;;  %4431 = vmatprep.subr.mxu1 %v8286_v22  ;;  %v3486_v23 = vld [vmem:[%s8275_s3 + $0x2e0] sm:$0xff] }
 0x2bf   :  { %4968 = vmatprep.subr.mxu0 %v8286_v22  ;;  %4432 = vmatpush3.msra.mxu1 %v3489_v18  ;;  %v3479_v18 = vld [vmem:[%s8275_s3 + $0x2a8] sm:$0xff] }
 0x2c0   :  { %4969 = vmatpush3.msra.mxu0 %v3723_v61  ;;  %4433 = vmatprep.subr.mxu1 %v8286_v22  ;;  %v3761_v61 = vld [vmem:[%s8275_s3 + $0xb78] sm:$0xff] }
 0x2c1   :  { %4970 = vmatprep.subr.mxu0 %v8286_v22  ;;  %4434 = vmatpush3.msra.mxu1 %v3488_v53  ;;  %v3478_v53 = vld [vmem:[%s8275_s3 + $0x2a0] sm:$0xff] }
 0x2c2   :  { %4971 = vmatpush3.msra.mxu0 %v3722_v49  ;;  %4435 = vmatprep.subr.mxu1 %v8286_v22  ;;  %v3760_v49 = vld [vmem:[%s8275_s3 + $0xb70] sm:$0xff] }
 0x2c3   :  { %4972 = vmatprep.subr.mxu0 %v8286_v22  ;;  %4436 = vmatpush3.msra.mxu1 %v3487_v63  ;;  %v3477_v63 = vld [vmem:[%s8275_s3 + $0x298] sm:$0xff] }
 0x2c4   :  { %4973 = vmatpush3.msra.mxu0 %v3721_v21  ;;  %4437 = vmatprep.subr.mxu1 %v8286_v22  ;;  %v3475_v21 = vld [vmem:[%s8275_s3 + $0x288] sm:$0xff] }
 0x2c5   :  { %4974 = vmatprep.subr.mxu0 %v8286_v22  ;;  %4438 = vmatpush3.msra.mxu1 %v3486_v23  ;;  %v3757_v23 = vld [vmem:[%s8275_s3 + $0xb58] sm:$0xff] }
 0x2c6   :  { %4975 = vmatpush3.msra.mxu0 %v3720_v6  ;;  %4439 = vmatprep.subr.mxu1 %v8286_v22  ;;  %v3474_v6 = vld [vmem:[%s8275_s3 + $0x280] sm:$0xff] }
 0x2c7   :  { %4976 = vmatprep.subr.mxu0 %v8286_v22  ;;  %4440 = vmatpush3.msra.mxu1 %v3485_v20  ;;  %v3756_v20 = vld [vmem:[%s8275_s3 + $0xb50] sm:$0xff] }
 0x2c8   :  { %4977 = vmatpush3.msra.mxu0 %v3719_v19  ;;  %4441 = vmatprep.subr.mxu1 %v8286_v22  ;;  %v3505_v19 = vld [vmem:[%s8275_s3 + $0x378] sm:$0xff] }
 0x2c9   :  { %4978 = vmatprep.subr.mxu0 %v8286_v22  ;;  %4442 = vmatpush3.msra.mxu1 %v3484_v58  ;;  %v3755_v58 = vld [vmem:[%s8275_s3 + $0xb48] sm:$0xff] }
 0x2ca   :  { %4979 = vmatpush3.msra.mxu0 %v3718_v26  ;;  %4443 = vmatprep.subr.mxu1 %v8286_v22  ;;  %v8288_v26 = vmax.f32 %v5954_v12, %v6413_v37  ;;  %v3503_v12 = vld [vmem:[%s8275_s3 + $0x368] sm:$0xff]  ;;  %v3753_v37 = vld [vmem:[%s8275_s3 + $0xb38] sm:$0xff] }
 0x2cb   :  { %4980 = vmatprep.subr.mxu0 %v8286_v22  ;;  %4444 = vmatpush3.msra.mxu1 %v3483_v38  ;;  %v3504_v38 = vld [vmem:[%s8275_s3 + $0x370] sm:$0xff] }
 0x2cc   :  { %4981 = vmatpush3.msra.mxu0 %v3717_v3  ;;  %4445 = vmatprep.subr.mxu1 %v8286_v22  ;;  %v3754_v3 = vld [vmem:[%s8275_s3 + $0xb40] sm:$0xff] }
 0x2cd   :  { %4982 = vmatprep.subr.mxu0 %v8286_v22  ;;  %4446 = vmatpush3.msra.mxu1 %v3482_v30  ;;  %v3502_v30 = vld [vmem:[%s8275_s3 + $0x360] sm:$0xff] }
 0x2ce   :  { %4983 = vmatpush3.msra.mxu0 %v3716_v36  ;;  %4447 = vmatprep.subr.mxu1 %v8286_v22  ;;  %v3752_v36 = vld [vmem:[%s8275_s3 + $0xb30] sm:$0xff] }
 0x2cf   :  { %4984 = vmatprep.subr.mxu0 %v8286_v22  ;;  %4448 = vmatpush3.msra.mxu1 %v3481_v31  ;;  %v3501_v31 = vld [vmem:[%s8275_s3 + $0x358] sm:$0xff] }
 0x2d0   :  { %4985 = vmatpush3.msra.mxu0 %v3715_v17  ;;  %4449 = vmatprep.subr.mxu1 %v8286_v22  ;;  %v3751_v17 = vld [vmem:[%s8275_s3 + $0xb28] sm:$0xff] }
 0x2d1   :  { %4986 = vmatprep.subr.mxu0 %v8286_v22  ;;  %4450 = vmatpush3.msra.mxu1 %v3480_v48  ;;  %v3500_v48 = vld [vmem:[%s8275_s3 + $0x350] sm:$0xff] }
 0x2d2   :  { %4987 = vmatpush3.msra.mxu0 %v3714_v44  ;;  %4988 = vmatprep.mubr.msk.f32.mxu0 %vm5205_vm0, %v8286_v22  ;;  %v3750_v44 = vld [vmem:[%s8275_s3 + $0xb20] sm:$0xff] }
 0x2d3   :  { %4451 = vmatprep.subr.mxu1 %v8286_v22  ;;  %4989 = vmatmul.mubr.f32.vlgmr.msra.gmra.mxu0 %v1006_v16  ;;  %v3758_v16 = vld [vmem:[%s8275_s3 + $0xb60] sm:$0xff] }
 0x2d4   :  { %5026 = vmatprep.subr.mxu0 %v8286_v22  ;;  %4452 = vmatpush3.msra.mxu1 %v3479_v18  ;;  %v3499_v18 = vld [vmem:[%s8275_s3 + $0x348] sm:$0xff] }
 0x2d5   :  { %5027 = vmatpush3.msra.mxu0 %v3761_v61  ;;  %4453 = vmatprep.subr.mxu1 %v8286_v22  ;;  %v3749_v61 = vld [vmem:[%s8275_s3 + $0xb18] sm:$0xff] }
 0x2d6   :  { %5028 = vmatprep.subr.mxu0 %v8286_v22  ;;  %4454 = vmatpush3.msra.mxu1 %v3478_v53  ;;  %v3498_v53 = vld [vmem:[%s8275_s3 + $0x340] sm:$0xff] }
 0x2d7   :  { %5029 = vmatpush3.msra.mxu0 %v3760_v49  ;;  %4455 = vmatprep.subr.mxu1 %v8286_v22  ;;  %v3748_v49 = vld [vmem:[%s8275_s3 + $0xb10] sm:$0xff] }
 0x2d8   :  { %5030 = vmatprep.subr.mxu0 %v8286_v22  ;;  %4456 = vmatpush3.msra.mxu1 %v3477_v63  ;;  %v3497_v63 = vld [vmem:[%s8275_s3 + $0x338] sm:$0xff] }
 0x2d9   :  { %5031 = vmatpush3.msra.mxu0 %v3759_v55  ;;  %4457 = vmatprep.subr.mxu1 %v8286_v22  ;;  %v3747_v55 = vld [vmem:[%s8275_s3 + $0xb08] sm:$0xff] }
 0x2da   :  { %5032 = vmatprep.subr.mxu0 %v8286_v22  ;;  %4458 = vmatpush3.msra.mxu1 %v3476_v50  ;;  %v3496_v50 = vld [vmem:[%s8275_s3 + $0x330] sm:$0xff] }
 0x2db   :  { %5033 = vmatpush3.msra.mxu0 %v3758_v16  ;;  %4459 = vmatprep.subr.mxu1 %v8286_v22  ;;  %v3746_v16 = vld [vmem:[%s8275_s3 + $0xb00] sm:$0xff] }
 0x2dc   :  { %5034 = vmatprep.subr.mxu0 %v8286_v22  ;;  %4460 = vmatpush3.msra.mxu1 %v3475_v21  ;;  %v3495_v21 = vld [vmem:[%s8275_s3 + $0x328] sm:$0xff] }
 0x2dd   :  { %5035 = vmatpush3.msra.mxu0 %v3757_v23  ;;  %4461 = vmatprep.subr.mxu1 %v8286_v22  ;;  %v3793_v23 = vld [vmem:[%s8275_s3 + $0xc78] sm:$0xff] }
 0x2de   :  { %5036 = vmatprep.subr.mxu0 %v8286_v22  ;;  %4462 = vmatpush3.msra.mxu1 %v3474_v6  ;;  %v3494_v6 = vld [vmem:[%s8275_s3 + $0x320] sm:$0xff] }
 0x2df   :  { %4463 = vmatprep.mubr.msk.f32.mxu1 %vm5205_vm0, %v8286_v22  ;;  %5037 = vmatpush3.msra.mxu0 %v3756_v20  ;;  %v3792_v20 = vld [vmem:[%s8275_s3 + $0xc70] sm:$0xff] }
 0x2e0   :  { %4464 = vmatmul.mubr.f32.vlgmr.msra.gmra.mxu1 %v8288_v26  ;;  %4466 = vmatprep.subr.mxu1 %v8286_v22  ;;  %v3491_v26 = vld [vmem:[%s8275_s3 + $0x308] sm:$0xff] }
 0x2e1   :  { %5038 = vmatprep.subr.mxu0 %v8286_v22  ;;  %4467 = vmatpush3.msra.mxu1 %v3505_v19  ;;  %v3493_v19 = vld [vmem:[%s8275_s3 + $0x318] sm:$0xff] }
 0x2e2   :  { %5039 = vmatpush3.msra.mxu0 %v3755_v58  ;;  %4468 = vmatprep.subr.mxu1 %v8286_v22 }
 0x2e3   :  { %5040 = vmatprep.subr.mxu0 %v8286_v22  ;;  %4469 = vmatpush3.msra.mxu1 %v3504_v38  ;;  %v3789_v38 = vld [vmem:[%s8275_s3 + $0xc58] sm:$0xff] }
 0x2e4   :  { %5041 = vmatpush3.msra.mxu0 %v3754_v3  ;;  %4470 = vmatprep.subr.mxu1 %v8286_v22 }
 0x2e5   :  { %5042 = vmatprep.subr.mxu0 %v8286_v22  ;;  %4471 = vmatpush3.msra.mxu1 %v3503_v12  ;;  %v3490_v12 = vld [vmem:[%s8275_s3 + $0x300] sm:$0xff] }
 0x2e6   :  { %5043 = vmatpush3.msra.mxu0 %v3753_v37  ;;  %4472 = vmatprep.subr.mxu1 %v8286_v22  ;;  %v3788_v37 = vld [vmem:[%s8275_s3 + $0xc50] sm:$0xff] }
 0x2e7   :  { %5044 = vmatprep.subr.mxu0 %v8286_v22  ;;  %4473 = vmatpush3.msra.mxu1 %v3502_v30  ;;  %v3521_v30 = vld [vmem:[%s8275_s3 + $0x3f8] sm:$0xff] }
 0x2e8   :  { %5045 = vmatpush3.msra.mxu0 %v3752_v36  ;;  %4474 = vmatprep.subr.mxu1 %v8286_v22  ;;  %v3787_v36 = vld [vmem:[%s8275_s3 + $0xc48] sm:$0xff] }
 0x2e9   :  { %5046 = vmatprep.subr.mxu0 %v8286_v22  ;;  %4475 = vmatpush3.msra.mxu1 %v3501_v31  ;;  %v8289_v31 = vmax.f32 %v5965_v27, %v6428_v25  ;;  %v3519_v27 = vld [vmem:[%s8275_s3 + $0x3e8] sm:$0xff]  ;;  %v3785_v25 = vld [vmem:[%s8275_s3 + $0xc38] sm:$0xff] }
 0x2ea   :  { %5047 = vmatpush3.msra.mxu0 %v3751_v17  ;;  %4476 = vmatprep.subr.mxu1 %v8286_v22  ;;  %v3520_v17 = vld [vmem:[%s8275_s3 + $0x3f0] sm:$0xff] }
 0x2eb   :  { %5048 = vmatprep.subr.mxu0 %v8286_v22  ;;  %4477 = vmatpush3.msra.mxu1 %v3500_v48  ;;  %v3786_v48 = vld [vmem:[%s8275_s3 + $0xc40] sm:$0xff] }
 0x2ec   :  { %5049 = vmatpush3.msra.mxu0 %v3750_v44  ;;  %4478 = vmatprep.subr.mxu1 %v8286_v22  ;;  %v3518_v44 = vld [vmem:[%s8275_s3 + $0x3e0] sm:$0xff] }
 0x2ed   :  { %5050 = vmatprep.subr.mxu0 %v8286_v22  ;;  %4479 = vmatpush3.msra.mxu1 %v3499_v18  ;;  %v3784_v18 = vld [vmem:[%s8275_s3 + $0xc30] sm:$0xff] }
 0x2ee   :  { %5051 = vmatpush3.msra.mxu0 %v3749_v61  ;;  %4480 = vmatprep.subr.mxu1 %v8286_v22  ;;  %v3517_v61 = vld [vmem:[%s8275_s3 + $0x3d8] sm:$0xff] }
 0x2ef   :  { %5052 = vmatprep.subr.mxu0 %v8286_v22  ;;  %4481 = vmatpush3.msra.mxu1 %v3498_v53  ;;  %v3783_v53 = vld [vmem:[%s8275_s3 + $0xc28] sm:$0xff] }
 0x2f0   :  { %5053 = vmatpush3.msra.mxu0 %v3748_v49  ;;  %4482 = vmatprep.subr.mxu1 %v8286_v22  ;;  %v3516_v49 = vld [vmem:[%s8275_s3 + $0x3d0] sm:$0xff] }
 0x2f1   :  { %5054 = vmatprep.subr.mxu0 %v8286_v22  ;;  %4483 = vmatpush3.msra.mxu1 %v3497_v63  ;;  %v3782_v63 = vld [vmem:[%s8275_s3 + $0xc20] sm:$0xff] }
 0x2f2   :  { %5055 = vmatpush3.msra.mxu0 %v3747_v55  ;;  %4484 = vmatprep.subr.mxu1 %v8286_v22  ;;  %v3515_v55 = vld [vmem:[%s8275_s3 + $0x3c8] sm:$0xff] }
 0x2f3   :  { %5056 = vmatprep.subr.mxu0 %v8286_v22  ;;  %4485 = vmatpush3.msra.mxu1 %v3496_v50  ;;  %v3781_v50 = vld [vmem:[%s8275_s3 + $0xc18] sm:$0xff] }
 0x2f4   :  { %5057 = vmatpush3.msra.mxu0 %v3746_v16  ;;  %5058 = vmatprep.mubr.msk.f32.mxu0 %vm5205_vm0, %v8286_v22  ;;  %v3514_v16 = vld [vmem:[%s8275_s3 + $0x3c0] sm:$0xff] }
 0x2f5   :  { %4486 = vmatprep.subr.mxu1 %v8286_v22  ;;  %5059 = vmatmul.mubr.f32.vlgmr.msra.gmra.mxu0 %v1008_v60  ;;  %v3790_v60 = vld [vmem:[%s8275_s3 + $0xc60] sm:$0xff] }
 0x2f6   :  { %5096 = vmatprep.subr.mxu0 %v8286_v22  ;;  %4487 = vmatpush3.msra.mxu1 %v3495_v21  ;;  %v3780_v21 = vld [vmem:[%s8275_s3 + $0xc10] sm:$0xff] }
 0x2f7   :  { %5097 = vmatpush3.msra.mxu0 %v3793_v23  ;;  %4488 = vmatprep.subr.mxu1 %v8286_v22  ;;  %v3513_v23 = vld [vmem:[%s8275_s3 + $0x3b8] sm:$0xff] }
 0x2f8   :  { %5098 = vmatprep.subr.mxu0 %v8286_v22  ;;  %4489 = vmatpush3.msra.mxu1 %v3494_v6  ;;  %v3779_v6 = vld [vmem:[%s8275_s3 + $0xc08] sm:$0xff] }
 0x2f9   :  { %5099 = vmatpush3.msra.mxu0 %v3792_v20  ;;  %4490 = vmatprep.subr.mxu1 %v8286_v22  ;;  %v3512_v20 = vld [vmem:[%s8275_s3 + $0x3b0] sm:$0xff] }
 0x2fa   :  { %5100 = vmatprep.subr.mxu0 %v8286_v22  ;;  %4491 = vmatpush3.msra.mxu1 %v3493_v19  ;;  %v7211_v58 = vpop.f32.mrf.mxu1  ;;  %v3778_v19 = vld [vmem:[%s8275_s3 + $0xc00] sm:$0xff] }
 0x2fb   :  { %5101 = vmatpush3.msra.mxu0 %v3791_v15  ;;  %4492 = vmatprep.subr.mxu1 %v8286_v22  ;;  %v3511_v15 = vld [vmem:[%s8275_s3 + $0x3a8] sm:$0xff] }
 0x2fc   :  { %5102 = vmatprep.subr.mxu0 %v8286_v22  ;;  %4493 = vmatpush3.msra.mxu1 %v3492_v54  ;;  %v4290_v3 = vpop.f32.mrf.mxu1  ;;  %v3510_v54 = vld [vmem:[%s8275_s3 + $0x3a0] sm:$0xff] }
 0x2fd   :  { %5103 = vmatpush3.msra.mxu0 %v3790_v60  ;;  %4494 = vmatprep.subr.mxu1 %v8286_v22  ;;  %v3509_v60 = vld [vmem:[%s8275_s3 + $0x398] sm:$0xff]  ;;  %v3506_v3 = vld [vmem:[%s8275_s3 + $0x380] sm:$0xff] }
 0x2fe   :  { %5104 = vmatprep.subr.mxu0 %v8286_v22  ;;  %4495 = vmatpush3.msra.mxu1 %v3491_v26 }
 0x2ff   :  { %5105 = vmatpush3.msra.mxu0 %v3789_v38  ;;  %4496 = vmatprep.subr.mxu1 %v8286_v22  ;;  %v3507_v38 = vld [vmem:[%s8275_s3 + $0x388] sm:$0xff] }
 0x300   :  { %5106 = vmatprep.subr.mxu0 %v8286_v22  ;;  %4497 = vmatpush3.msra.mxu1 %v3490_v12  ;;  %v8290_v12 = vmax.f32 %v5976_v41, %v6448_v9  ;;  %v3534_v41 = vld [vmem:[%s8275_s3 + $0x460] sm:$0xff]  ;;  %v3533_v9 = vld [vmem:[%s8275_s3 + $0x458] sm:$0xff] }
 0x301   :  { %4498 = vmatprep.mubr.msk.f32.mxu1 %vm5205_vm0, %v8286_v22  ;;  %5107 = vmatpush3.msra.mxu0 %v3788_v37  ;;  %v3536_v37 = vld [vmem:[%s8275_s3 + $0x470] sm:$0xff] }
 0x302   :  { %4499 = vmatmul.mubr.f32.vlgmr.msra.gmra.mxu1 %v8289_v31  ;;  %4501 = vmatprep.subr.mxu1 %v8286_v22  ;;  %v3531_v31 = vld [vmem:[%s8275_s3 + $0x448] sm:$0xff] }
 0x303   :  { %5108 = vmatprep.subr.mxu0 %v8286_v22  ;;  %4502 = vmatpush3.msra.mxu1 %v3521_v30  ;;  %v3535_v30 = vld [vmem:[%s8275_s3 + $0x468] sm:$0xff] }
 0x304   :  { %5109 = vmatpush3.msra.mxu0 %v3787_v36  ;;  %4503 = vmatprep.subr.mxu1 %v8286_v22  ;;  %v3532_v36 = vld [vmem:[%s8275_s3 + $0x450] sm:$0xff] }
 0x305   :  { %5110 = vmatprep.subr.mxu0 %v8286_v22  ;;  %4504 = vmatpush3.msra.mxu1 %v3520_v17 }
 0x306   :  { %5111 = vmatpush3.msra.mxu0 %v3786_v48  ;;  %4505 = vmatprep.subr.mxu1 %v8286_v22  ;;  %v3530_v48 = vld [vmem:[%s8275_s3 + $0x440] sm:$0xff] }
 0x307   :  { %5112 = vmatprep.subr.mxu0 %v8286_v22  ;;  %4506 = vmatpush3.msra.mxu1 %v3519_v27 }
 0x308   :  { %5113 = vmatpush3.msra.mxu0 %v3785_v25  ;;  %4507 = vmatprep.subr.mxu1 %v8286_v22  ;;  %v3529_v25 = vld [vmem:[%s8275_s3 + $0x438] sm:$0xff] }
 0x309   :  { %5114 = vmatprep.subr.mxu0 %v8286_v22  ;;  %4508 = vmatpush3.msra.mxu1 %v3518_v44  ;;  %v3528_v44 = vld [vmem:[%s8275_s3 + $0x430] sm:$0xff] }
 0x30a   :  { %5115 = vmatpush3.msra.mxu0 %v3784_v18  ;;  %4509 = vmatprep.subr.mxu1 %v8286_v22  ;;  %v3527_v18 = vld [vmem:[%s8275_s3 + $0x428] sm:$0xff] }
 0x30b   :  { %5116 = vmatprep.subr.mxu0 %v8286_v22  ;;  %4510 = vmatpush3.msra.mxu1 %v3517_v61  ;;  %v3526_v61 = vld [vmem:[%s8275_s3 + $0x420] sm:$0xff] }
 0x30c   :  { %5117 = vmatpush3.msra.mxu0 %v3783_v53  ;;  %4511 = vmatprep.subr.mxu1 %v8286_v22  ;;  %v3525_v53 = vld [vmem:[%s8275_s3 + $0x418] sm:$0xff] }
 0x30d   :  { %5118 = vmatprep.subr.mxu0 %v8286_v22  ;;  %4512 = vmatpush3.msra.mxu1 %v3516_v49 }
 0x30e   :  { %5119 = vmatpush3.msra.mxu0 %v3782_v63  ;;  %4513 = vmatprep.subr.mxu1 %v8286_v22  ;;  %v3524_v63 = vld [vmem:[%s8275_s3 + $0x410] sm:$0xff] }
 0x30f   :  { %5120 = vmatprep.subr.mxu0 %v8286_v22  ;;  %4514 = vmatpush3.msra.mxu1 %v3515_v55 }
 0x310   :  { %5121 = vmatpush3.msra.mxu0 %v3781_v50  ;;  %4515 = vmatprep.subr.mxu1 %v8286_v22 }
 0x311   :  { %5122 = vmatprep.subr.mxu0 %v8286_v22  ;;  %4516 = vmatpush3.msra.mxu1 %v3514_v16  ;;  %v3523_v16 = vld [vmem:[%s8275_s3 + $0x408] sm:$0xff] }
 0x312   :  { %5123 = vmatpush3.msra.mxu0 %v3780_v21  ;;  %4517 = vmatprep.subr.mxu1 %v8286_v22  ;;  %v3522_v21 = vld [vmem:[%s8275_s3 + $0x400] sm:$0xff] }
 0x313   :  { %5124 = vmatprep.subr.mxu0 %v8286_v22  ;;  %4518 = vmatpush3.msra.mxu1 %v3513_v23  ;;  %v3553_v23 = vld [vmem:[%s8275_s3 + $0x4f8] sm:$0xff] }
 0x314   :  { %5125 = vmatpush3.msra.mxu0 %v3779_v6  ;;  %4519 = vmatprep.subr.mxu1 %v8286_v22  ;;  %v8291_v6 = vmax.f32 %v5987_v56, %v6463_v5  ;;  %v3550_v56 = vld [vmem:[%s8275_s3 + $0x4e0] sm:$0xff]  ;;  %v3549_v5 = vld [vmem:[%s8275_s3 + $0x4d8] sm:$0xff] }
 0x315   :  { %5126 = vmatprep.subr.mxu0 %v8286_v22  ;;  %4520 = vmatpush3.msra.mxu1 %v3512_v20  ;;  %v3552_v20 = vld [vmem:[%s8275_s3 + $0x4f0] sm:$0xff] }
 0x316   :  { %5127 = vmatpush3.msra.mxu0 %v3778_v19  ;;  %5128 = vmatprep.mubr.msk.f32.mxu0 %vm5205_vm0, %v8286_v22  ;;  %v3551_v19 = vld [vmem:[%s8275_s3 + $0x4e8] sm:$0xff] }
 0x317   :  { %4521 = vmatprep.subr.mxu1 %v8286_v22  ;;  %5129 = vmatmul.mubr.f32.vlgmr.msra.gmra.mxu0 %v1010_v29 }
 0x318   :  { %4522 = vmatpush3.msra.mxu1 %v3511_v15  ;;  %4533 = vmatprep.mubr.msk.f32.mxu1 %vm5205_vm0, %v8286_v22  ;;  %v3548_v15 = vld [vmem:[%s8275_s3 + $0x4d0] sm:$0xff] }
 0x319   :  { %4523 = vmatprep.subr.mxu1 %v8286_v22  ;;  %5166 = vmatprep.subr.mxu0 %v8286_v22 }
 0x31a   :  { %4524 = vmatpush3.msra.mxu1 %v3510_v54  ;;  %v1180_v26 = vpop.f32.mrf.mxu1  ;;  %5198 = vmatprep.mubr.msk.f32.mxu0 %vm5205_vm0, %v8286_v22  ;;  %v3547_v54 = vld [vmem:[%s8275_s3 + $0x4c8] sm:$0xff] }
 0x31b   :  { %4525 = vmatprep.subr.mxu1 %v8286_v22  ;;  %v1181_v1 = vadd.f32 %v1180_v26, %v7211_v58  ;;  %v3537_v58 = vld [vmem:[%s8275_s3 + $0x478] sm:$0xff] }
 0x31c   :  { %4526 = vmatpush3.msra.mxu1 %v3509_v60  ;;  %v4325_v29 = vpop.f32.mrf.mxu1  ;;  %v3546_v60 = vld [vmem:[%s8275_s3 + $0x4c0] sm:$0xff] }
 0x31d   :  { %4527 = vmatprep.subr.mxu1 %v8286_v22  ;;  %v3544_v29 = vld [vmem:[%s8275_s3 + $0x4b0] sm:$0xff] }
 0x31e   :  { %4528 = vmatpush3.msra.mxu1 %v3508_v40  ;;  %v3545_v40 = vld [vmem:[%s8275_s3 + $0x4b8] sm:$0xff] }
 0x31f   :  { %4529 = vmatprep.subr.mxu1 %v8286_v22 }
 0x320   :  { %4530 = vmatpush3.msra.mxu1 %v3507_v38  ;;  %v3543_v38 = vld [vmem:[%s8275_s3 + $0x4a8] sm:$0xff] }
 0x321   :  { %4531 = vmatprep.subr.mxu1 %v8286_v22 }
 0x322   :  { %4532 = vmatpush3.msra.mxu1 %v3506_v3  ;;  %v3542_v3 = vld [vmem:[%s8275_s3 + $0x4a0] sm:$0xff] }
 0x323   :  { %4534 = vmatmul.mubr.f32.vlgmr.msra.gmra.mxu1 %v8290_v12  ;;  %4536 = vmatprep.subr.mxu1 %v8286_v22  ;;  %v3540_v12 = vld [vmem:[%s8275_s3 + $0x490] sm:$0xff] }
 0x324   :  { %4537 = vmatpush3.msra.mxu1 %v3537_v58  ;;  %4568 = vmatprep.mubr.msk.f32.mxu1 %vm5205_vm0, %v8286_v22  ;;  %v3541_v58 = vld [vmem:[%s8275_s3 + $0x498] sm:$0xff] }
 0x325   :  { %4538 = vmatprep.subr.mxu1 %v8286_v22 }
 0x326   :  { %4539 = vmatpush3.msra.mxu1 %v3536_v37 }
 0x327   :  { %4540 = vmatprep.subr.mxu1 %v8286_v22 }
 0x328   :  { %4541 = vmatpush3.msra.mxu1 %v3535_v30  ;;  %v3539_v30 = vld [vmem:[%s8275_s3 + $0x488] sm:$0xff] }
 0x329   :  { %4542 = vmatprep.subr.mxu1 %v8286_v22 }
 0x32a   :  { %4543 = vmatpush3.msra.mxu1 %v3534_v41 }
 0x32b   :  { %4544 = vmatprep.subr.mxu1 %v8286_v22 }
 0x32c   :  { %4545 = vmatpush3.msra.mxu1 %v3533_v9 }
 0x32d   :  { %4546 = vmatprep.subr.mxu1 %v8286_v22 }
 0x32e   :  { %4547 = vmatpush3.msra.mxu1 %v3532_v36  ;;  %v7383_v17 = vpop.f32.mrf.mxu0  ;;  %v3538_v36 = vld [vmem:[%s8275_s3 + $0x480] sm:$0xff] }
 0x32f   :  { %4548 = vmatprep.subr.mxu1 %v8286_v22 }
 0x330   :  { %4549 = vmatpush3.msra.mxu1 %v3531_v31  ;;  %v4780_v27 = vpop.f32.mrf.mxu0  ;;  %v3569_v31 = vld [vmem:[%s8275_s3 + $0x578] sm:$0xff] }
 0x331   :  { %4550 = vmatprep.subr.mxu1 %v8286_v22  ;;  %v3567_v27 = vld [vmem:[%s8275_s3 + $0x568] sm:$0xff] }
 0x332   :  { %4551 = vmatpush3.msra.mxu1 %v3530_v48  ;;  %v3568_v48 = vld [vmem:[%s8275_s3 + $0x570] sm:$0xff] }
 0x333   :  { %4552 = vmatprep.subr.mxu1 %v8286_v22 }
 0x334   :  { %4553 = vmatpush3.msra.mxu1 %v3529_v25  ;;  %v3563_v25 = vld [vmem:[%s8275_s3 + $0x548] sm:$0xff] }
 0x335   :  { %4554 = vmatprep.subr.mxu1 %v8286_v22 }
 0x336   :  { %4555 = vmatpush3.msra.mxu1 %v3528_v44  ;;  %v3562_v44 = vld [vmem:[%s8275_s3 + $0x540] sm:$0xff] }
 0x337   :  { %4556 = vmatprep.subr.mxu1 %v8286_v22 }
 0x338   :  { %4557 = vmatpush3.msra.mxu1 %v3527_v18  ;;  %v3561_v18 = vld [vmem:[%s8275_s3 + $0x538] sm:$0xff] }
 0x339   :  { %4558 = vmatprep.subr.mxu1 %v8286_v22 }
 0x33a   :  { %4559 = vmatpush3.msra.mxu1 %v3526_v61  ;;  %v1267_v49 = vpop.f32.mrf.mxu1 }
 0x33b   :  { %4560 = vmatprep.subr.mxu1 %v8286_v22  ;;  %v1271_v55 = vadd.f32 %v1267_v49, %v1181_v1 }
 0x33c   :  { %4561 = vmatpush3.msra.mxu1 %v3525_v53  ;;  %v4360_v50 = vpop.f32.mrf.mxu1  ;;  %v3560_v53 = vld [vmem:[%s8275_s3 + $0x530] sm:$0xff] }
 0x33d   :  { %4562 = vmatprep.subr.mxu1 %v8286_v22  ;;  %v3557_v50 = vld [vmem:[%s8275_s3 + $0x518] sm:$0xff] }
 0x33e   :  { %4563 = vmatpush3.msra.mxu1 %v3524_v63  ;;  %v3559_v63 = vld [vmem:[%s8275_s3 + $0x528] sm:$0xff] }
 0x33f   :  { %4564 = vmatprep.subr.mxu1 %v8286_v22 }
 0x340   :  { %4565 = vmatpush3.msra.mxu1 %v3523_v16  ;;  %v3556_v16 = vld [vmem:[%s8275_s3 + $0x510] sm:$0xff] }
 0x341   :  { %4566 = vmatprep.subr.mxu1 %v8286_v22 }
 0x342   :  { %4567 = vmatpush3.msra.mxu1 %v3522_v21  ;;  %v3555_v21 = vld [vmem:[%s8275_s3 + $0x508] sm:$0xff] }
 0x343   :  { %4569 = vmatmul.mubr.f32.vlgmr.msra.gmra.mxu1 %v8291_v6  ;;  %4571 = vmatprep.subr.mxu1 %v8286_v22  ;;  %v3554_v6 = vld [vmem:[%s8275_s3 + $0x500] sm:$0xff] }
 0x344   :  { %4572 = vmatpush3.msra.mxu1 %v3553_v23  ;;  %4603 = vmatprep.mubr.msk.f32.mxu1 %vm5205_vm0, %v8286_v22 }
 0x345   :  { %4573 = vmatprep.subr.mxu1 %v8286_v22 }
 0x346   :  { %4574 = vmatpush3.msra.mxu1 %v3552_v20 }
 0x347   :  { %4575 = vmatprep.subr.mxu1 %v8286_v22 }
 0x348   :  { %4576 = vmatpush3.msra.mxu1 %v3551_v19 }
 0x349   :  { %4577 = vmatprep.subr.mxu1 %v8286_v22 }
 0x34a   :  { %4578 = vmatpush3.msra.mxu1 %v3550_v56  ;;  %v3585_v56 = vld [vmem:[%s8275_s3 + $0x5f8] sm:$0xff] }
 0x34b   :  { %4579 = vmatprep.subr.mxu1 %v8286_v22 }
 0x34c   :  { %4580 = vmatpush3.msra.mxu1 %v3549_v5  ;;  %v3584_v5 = vld [vmem:[%s8275_s3 + $0x5f0] sm:$0xff] }
 0x34d   :  { %4581 = vmatprep.subr.mxu1 %v8286_v22 }
 0x34e   :  { %4582 = vmatpush3.msra.mxu1 %v3548_v15  ;;  %v3583_v15 = vld [vmem:[%s8275_s3 + $0x5e8] sm:$0xff] }
 0x34f   :  { %4583 = vmatprep.subr.mxu1 %v8286_v22  ;;  %v7458_v26 = vpop.f32.mrf.mxu0 }
 0x350   :  { %4584 = vmatpush3.msra.mxu1 %v3547_v54  ;;  %v3579_v54 = vld [vmem:[%s8275_s3 + $0x5c8] sm:$0xff] }
 0x351   :  { %4585 = vmatprep.subr.mxu1 %v8286_v22  ;;  %v4850_v1 = vpop.f32.mrf.mxu0 }
 0x352   :  { %4586 = vmatpush3.msra.mxu1 %v3546_v60  ;;  %v3578_v60 = vld [vmem:[%s8275_s3 + $0x5c0] sm:$0xff]  ;;  %v3576_v1 = vld [vmem:[%s8275_s3 + $0x5b0] sm:$0xff] }
 0x353   :  { %4587 = vmatprep.subr.mxu1 %v8286_v22 }
 0x354   :  { %4588 = vmatpush3.msra.mxu1 %v3545_v40  ;;  %v3577_v40 = vld [vmem:[%s8275_s3 + $0x5b8] sm:$0xff] }
 0x355   :  { %4589 = vmatprep.subr.mxu1 %v8286_v22 }
 0x356   :  { %4590 = vmatpush3.msra.mxu1 %v3544_v29 }
 0x357   :  { %4591 = vmatprep.subr.mxu1 %v8286_v22 }
 0x358   :  { %4592 = vmatpush3.msra.mxu1 %v3543_v38  ;;  %v3575_v38 = vld [vmem:[%s8275_s3 + $0x5a8] sm:$0xff] }
 0x359   :  { %4593 = vmatprep.subr.mxu1 %v8286_v22 }
 0x35a   :  { %4594 = vmatpush3.msra.mxu1 %v3542_v3 }
 0x35b   :  { %4595 = vmatprep.subr.mxu1 %v8286_v22 }
 0x35c   :  { %4596 = vmatpush3.msra.mxu1 %v3541_v58  ;;  %v1355_v37 = vpop.f32.mrf.mxu1  ;;  %v3574_v58 = vld [vmem:[%s8275_s3 + $0x5a0] sm:$0xff] }
 0x35d   :  { %4597 = vmatprep.subr.mxu1 %v8286_v22  ;;  %v1359_v41 = vadd.f32 %v1355_v37, %v1271_v55  ;;  %v3558_v55 = vld [vmem:[%s8275_s3 + $0x520] sm:$0xff]  ;;  %v3572_v37 = vld [vmem:[%s8275_s3 + $0x590] sm:$0xff] }
 0x35e   :  { %4598 = vmatpush3.msra.mxu1 %v3540_v12  ;;  %v4395_v9 = vpop.f32.mrf.mxu1  ;;  %v3573_v12 = vld [vmem:[%s8275_s3 + $0x598] sm:$0xff] }
 0x35f   :  { %4599 = vmatprep.subr.mxu1 %v8286_v22 }
 0x360   :  { %4600 = vmatpush3.msra.mxu1 %v3539_v30  ;;  %v3571_v30 = vld [vmem:[%s8275_s3 + $0x588] sm:$0xff] }
 0x361   :  { %4601 = vmatprep.subr.mxu1 %v8286_v22 }
 0x362   :  { %4602 = vmatpush3.msra.mxu1 %v3538_v36 }
 0x363   :  { %4604 = vmatmul.mubr.f32.vlgmr.msra.gmra.mxu1 %v995_v39  ;;  %4606 = vmatprep.subr.mxu1 %v8286_v22  ;;  %v3564_v39 = vld [vmem:[%s8275_s3 + $0x550] sm:$0xff] }
 0x364   :  { %4607 = vmatpush3.msra.mxu1 %v3569_v31  ;;  %4638 = vmatprep.mubr.msk.f32.mxu1 %vm5205_vm0, %v8286_v22  ;;  %v3601_v31 = vld [vmem:[%s8275_s3 + $0x678] sm:$0xff] }
 0x365   :  { %4608 = vmatprep.subr.mxu1 %v8286_v22 }
 0x366   :  { %4609 = vmatpush3.msra.mxu1 %v3568_v48 }
 0x367   :  { %4610 = vmatprep.subr.mxu1 %v8286_v22 }
 0x368   :  { %4611 = vmatpush3.msra.mxu1 %v3567_v27  ;;  %v8292_v27 = vmax.f32 %v6020_v14, %v6513_v11  ;;  %v3598_v14 = vld [vmem:[%s8275_s3 + $0x660] sm:$0xff]  ;;  %v3597_v11 = vld [vmem:[%s8275_s3 + $0x658] sm:$0xff] }
 0x369   :  { %4612 = vmatprep.subr.mxu1 %v8286_v22 }
 0x36a   :  { %4613 = vmatpush3.msra.mxu1 %v3566_v4  ;;  %v3600_v4 = vld [vmem:[%s8275_s3 + $0x670] sm:$0xff] }
 0x36b   :  { %4614 = vmatprep.subr.mxu1 %v8286_v22 }
 0x36c   :  { %4615 = vmatpush3.msra.mxu1 %v3565_v57  ;;  %v3599_v57 = vld [vmem:[%s8275_s3 + $0x668] sm:$0xff] }
 0x36d   :  { %4616 = vmatprep.subr.mxu1 %v8286_v22 }
 0x36e   :  { %4617 = vmatpush3.msra.mxu1 %v3564_v39  ;;  %v3596_v39 = vld [vmem:[%s8275_s3 + $0x650] sm:$0xff] }
 0x36f   :  { %4618 = vmatprep.subr.mxu1 %v8286_v22 }
 0x370   :  { %4619 = vmatpush3.msra.mxu1 %v3563_v25  ;;  %v3595_v25 = vld [vmem:[%s8275_s3 + $0x648] sm:$0xff] }
 0x371   :  { %4620 = vmatprep.subr.mxu1 %v8286_v22  ;;  %v7533_v61 = vpop.f32.mrf.mxu0 }
 0x372   :  { %4621 = vmatpush3.msra.mxu1 %v3562_v44  ;;  %v3594_v44 = vld [vmem:[%s8275_s3 + $0x640] sm:$0xff] }
 0x373   :  { %4622 = vmatprep.subr.mxu1 %v8286_v22  ;;  %v4920_v49 = vpop.f32.mrf.mxu0 }
 0x374   :  { %4623 = vmatpush3.msra.mxu1 %v3561_v18  ;;  %v3593_v18 = vld [vmem:[%s8275_s3 + $0x638] sm:$0xff] }
 0x375   :  { %4624 = vmatprep.subr.mxu1 %v8286_v22 }
 0x376   :  { %4625 = vmatpush3.msra.mxu1 %v3560_v53  ;;  %v3592_v53 = vld [vmem:[%s8275_s3 + $0x630] sm:$0xff] }
 0x377   :  { %4626 = vmatprep.subr.mxu1 %v8286_v22 }
 0x378   :  { %4627 = vmatpush3.msra.mxu1 %v3559_v63  ;;  %v3591_v63 = vld [vmem:[%s8275_s3 + $0x628] sm:$0xff] }
 0x379   :  { %4628 = vmatprep.subr.mxu1 %v8286_v22 }
 0x37a   :  { %4629 = vmatpush3.msra.mxu1 %v3558_v55 }
 0x37b   :  { %4630 = vmatprep.subr.mxu1 %v8286_v22 }
 0x37c   :  { %4631 = vmatpush3.msra.mxu1 %v3557_v50  ;;  %v3590_v50 = vld [vmem:[%s8275_s3 + $0x620] sm:$0xff] }
 0x37d   :  { %4632 = vmatprep.subr.mxu1 %v8286_v22 }
 0x37e   :  { %4633 = vmatpush3.msra.mxu1 %v3556_v16  ;;  %v1443_v23 = vpop.f32.mrf.mxu1  ;;  %v3589_v16 = vld [vmem:[%s8275_s3 + $0x618] sm:$0xff] }
 0x37f   :  { %4634 = vmatprep.subr.mxu1 %v8286_v22  ;;  %v1447_v20 = vadd.f32 %v1443_v23, %v1359_v41  ;;  %v3570_v41 = vld [vmem:[%s8275_s3 + $0x580] sm:$0xff]  ;;  %v3587_v23 = vld [vmem:[%s8275_s3 + $0x608] sm:$0xff] }
 0x380   :  { %4635 = vmatpush3.msra.mxu1 %v3555_v21  ;;  %v4430_v19 = vpop.f32.mrf.mxu1  ;;  %v3588_v21 = vld [vmem:[%s8275_s3 + $0x610] sm:$0xff] }
 0x381   :  { %4636 = vmatprep.subr.mxu1 %v8286_v22 }
 0x382   :  { %4637 = vmatpush3.msra.mxu1 %v3554_v6  ;;  %v3586_v6 = vld [vmem:[%s8275_s3 + $0x600] sm:$0xff] }
 0x383   :  { %4639 = vmatmul.mubr.f32.vlgmr.msra.gmra.mxu1 %v996_v43  ;;  %4641 = vmatprep.subr.mxu1 %v8286_v22  ;;  %v3580_v43 = vld [vmem:[%s8275_s3 + $0x5d0] sm:$0xff] }
 0x384   :  { %4642 = vmatpush3.msra.mxu1 %v3585_v56  ;;  %4673 = vmatprep.mubr.msk.f32.mxu1 %vm5205_vm0, %v8286_v22 }
 0x385   :  { %4643 = vmatprep.subr.mxu1 %v8286_v22 }
 0x386   :  { %4644 = vmatpush3.msra.mxu1 %v3584_v5  ;;  %v8293_v5 = vmax.f32 %v6034_v47, %v6528_v7  ;;  %v3614_v47 = vld [vmem:[%s8275_s3 + $0x6e0] sm:$0xff]  ;;  %v3613_v7 = vld [vmem:[%s8275_s3 + $0x6d8] sm:$0xff] }
 0x387   :  { %4645 = vmatprep.subr.mxu1 %v8286_v22 }
 0x388   :  { %4646 = vmatpush3.msra.mxu1 %v3583_v15  ;;  %v3616_v15 = vld [vmem:[%s8275_s3 + $0x6f0] sm:$0xff] }
 0x389   :  { %4647 = vmatprep.subr.mxu1 %v8286_v22 }
 0x38a   :  { %4648 = vmatpush3.msra.mxu1 %v3582_v10 }
 0x38b   :  { %4649 = vmatprep.subr.mxu1 %v8286_v22 }
 0x38c   :  { %4650 = vmatpush3.msra.mxu1 %v3581_v51  ;;  %v3615_v51 = vld [vmem:[%s8275_s3 + $0x6e8] sm:$0xff] }
 0x38d   :  { %4651 = vmatprep.subr.mxu1 %v8286_v22 }
 0x38e   :  { %4652 = vmatpush3.msra.mxu1 %v3580_v43  ;;  %v3612_v43 = vld [vmem:[%s8275_s3 + $0x6d0] sm:$0xff] }
 0x38f   :  { %4653 = vmatprep.subr.mxu1 %v8286_v22 }
 0x390   :  { %4654 = vmatpush3.msra.mxu1 %v3579_v54  ;;  %v3611_v54 = vld [vmem:[%s8275_s3 + $0x6c8] sm:$0xff] }
 0x391   :  { %4655 = vmatprep.subr.mxu1 %v8286_v22 }
 0x392   :  { %4656 = vmatpush3.msra.mxu1 %v3578_v60  ;;  %v3610_v60 = vld [vmem:[%s8275_s3 + $0x6c0] sm:$0xff] }
 0x393   :  { %4657 = vmatprep.subr.mxu1 %v8286_v22  ;;  %v7608_v29 = vpop.f32.mrf.mxu0 }
 0x394   :  { %4658 = vmatpush3.msra.mxu1 %v3577_v40  ;;  %v3609_v40 = vld [vmem:[%s8275_s3 + $0x6b8] sm:$0xff] }
 0x395   :  { %4659 = vmatprep.subr.mxu1 %v8286_v22  ;;  %v4990_v3 = vpop.f32.mrf.mxu0 }
 0x396   :  { %4660 = vmatpush3.msra.mxu1 %v3576_v1  ;;  %v3608_v1 = vld [vmem:[%s8275_s3 + $0x6b0] sm:$0xff] }
 0x397   :  { %4661 = vmatprep.subr.mxu1 %v8286_v22 }
 0x398   :  { %4662 = vmatpush3.msra.mxu1 %v3575_v38  ;;  %v3607_v38 = vld [vmem:[%s8275_s3 + $0x6a8] sm:$0xff] }
 0x399   :  { %4663 = vmatprep.subr.mxu1 %v8286_v22 }
 0x39a   :  { %4664 = vmatpush3.msra.mxu1 %v3574_v58  ;;  %v3606_v58 = vld [vmem:[%s8275_s3 + $0x6a0] sm:$0xff] }
 0x39b   :  { %4665 = vmatprep.subr.mxu1 %v8286_v22 }
 0x39c   :  { %4666 = vmatpush3.msra.mxu1 %v3573_v12 }
 0x39d   :  { %4667 = vmatprep.subr.mxu1 %v8286_v22 }
 0x39e   :  { %4668 = vmatpush3.msra.mxu1 %v3572_v37  ;;  %v3605_v37 = vld [vmem:[%s8275_s3 + $0x698] sm:$0xff] }
 0x39f   :  { %4669 = vmatprep.subr.mxu1 %v8286_v22 }
 0x3a0   :  { %4670 = vmatpush3.msra.mxu1 %v3571_v30  ;;  %v1531_v9 = vpop.f32.mrf.mxu1  ;;  %v3604_v30 = vld [vmem:[%s8275_s3 + $0x690] sm:$0xff] }
 0x3a1   :  { %4671 = vmatprep.subr.mxu1 %v8286_v22  ;;  %v1535_v36 = vadd.f32 %v1531_v9, %v1447_v20  ;;  %v3617_v20 = vld [vmem:[%s8275_s3 + $0x6f8] sm:$0xff]  ;;  %v3602_v9 = vld [vmem:[%s8275_s3 + $0x680] sm:$0xff] }
 0x3a2   :  { %4672 = vmatpush3.msra.mxu1 %v3570_v41  ;;  %v4465_v48 = vpop.f32.mrf.mxu1  ;;  %v3603_v41 = vld [vmem:[%s8275_s3 + $0x688] sm:$0xff] }
 0x3a3   :  { %4674 = vmatmul.mubr.f32.vlgmr.msra.gmra.mxu1 %v8292_v27  ;;  %4676 = vmatprep.subr.mxu1 %v8286_v22  ;;  %v8294_v48 = vmax.f32 %v6053_v42, %v6543_v0  ;;  %v3648_v27 = vld [vmem:[%s8275_s3 + $0x7f0] sm:$0xff]  ;;  %v3646_v42 = vld [vmem:[%s8275_s3 + $0x7e0] sm:$0xff]  ;;  %v3645_v0 = vld [vmem:[%s8275_s3 + $0x7d8] sm:$0xff] }
 0x3a4   :  { %4677 = vmatpush3.msra.mxu1 %v3601_v31  ;;  %4708 = vmatprep.mubr.msk.f32.mxu1 %vm5205_vm0, %v8286_v22 }
 0x3a5   :  { %4678 = vmatprep.subr.mxu1 %v8286_v22 }
 0x3a6   :  { %4679 = vmatpush3.msra.mxu1 %v3600_v4 }
 0x3a7   :  { %4680 = vmatprep.subr.mxu1 %v8286_v22 }
 0x3a8   :  { %4681 = vmatpush3.msra.mxu1 %v3599_v57 }
 0x3a9   :  { %4682 = vmatprep.subr.mxu1 %v8286_v22 }
 0x3aa   :  { %4683 = vmatpush3.msra.mxu1 %v3598_v14  ;;  %v3647_v14 = vld [vmem:[%s8275_s3 + $0x7e8] sm:$0xff] }
 0x3ab   :  { %4684 = vmatprep.subr.mxu1 %v8286_v22 }
 0x3ac   :  { %4685 = vmatpush3.msra.mxu1 %v3597_v11  ;;  %v3644_v11 = vld [vmem:[%s8275_s3 + $0x7d0] sm:$0xff] }
 0x3ad   :  { %4686 = vmatprep.subr.mxu1 %v8286_v22 }
 0x3ae   :  { %4687 = vmatpush3.msra.mxu1 %v3596_v39  ;;  %v3643_v39 = vld [vmem:[%s8275_s3 + $0x7c8] sm:$0xff] }
 0x3af   :  { %4688 = vmatprep.subr.mxu1 %v8286_v22 }
 0x3b0   :  { %4689 = vmatpush3.msra.mxu1 %v3595_v25  ;;  %v3642_v25 = vld [vmem:[%s8275_s3 + $0x7c0] sm:$0xff] }
 0x3b1   :  { %4690 = vmatprep.subr.mxu1 %v8286_v22 }
 0x3b2   :  { %4691 = vmatpush3.msra.mxu1 %v3594_v44  ;;  %v3641_v44 = vld [vmem:[%s8275_s3 + $0x7b8] sm:$0xff] }
 0x3b3   :  { %4692 = vmatprep.subr.mxu1 %v8286_v22 }
 0x3b4   :  { %4693 = vmatpush3.msra.mxu1 %v3593_v18  ;;  %v3640_v18 = vld [vmem:[%s8275_s3 + $0x7b0] sm:$0xff] }
 0x3b5   :  { %4694 = vmatprep.subr.mxu1 %v8286_v22  ;;  %v7680_v49 = vpop.f32.mrf.mxu0 }
 0x3b6   :  { %4695 = vmatpush3.msra.mxu1 %v3592_v53  ;;  %v3639_v53 = vld [vmem:[%s8275_s3 + $0x7a8] sm:$0xff] }
 0x3b7   :  { %4696 = vmatprep.subr.mxu1 %v8286_v22  ;;  %v5060_v55 = vpop.f32.mrf.mxu0 }
 0x3b8   :  { %4697 = vmatpush3.msra.mxu1 %v3591_v63  ;;  %v3638_v63 = vld [vmem:[%s8275_s3 + $0x7a0] sm:$0xff]  ;;  %v3637_v55 = vld [vmem:[%s8275_s3 + $0x798] sm:$0xff] }
 0x3b9   :  { %4698 = vmatprep.subr.mxu1 %v8286_v22 }
 0x3ba   :  { %4699 = vmatpush3.msra.mxu1 %v3590_v50  ;;  %v3636_v50 = vld [vmem:[%s8275_s3 + $0x790] sm:$0xff] }
 0x3bb   :  { %4700 = vmatprep.subr.mxu1 %v8286_v22 }
 0x3bc   :  { %4701 = vmatpush3.msra.mxu1 %v3589_v16  ;;  %v3635_v16 = vld [vmem:[%s8275_s3 + $0x788] sm:$0xff] }
 0x3bd   :  { %4702 = vmatprep.subr.mxu1 %v8286_v22 }
 0x3be   :  { %4703 = vmatpush3.msra.mxu1 %v3588_v21  ;;  %v3634_v21 = vld [vmem:[%s8275_s3 + $0x780] sm:$0xff] }
 0x3bf   :  { %4704 = vmatprep.subr.mxu1 %v8286_v22 }
 0x3c0   :  { %4705 = vmatpush3.msra.mxu1 %v3587_v23  ;;  %v3681_v23 = vld [vmem:[%s8275_s3 + $0x8f8] sm:$0xff] }
 0x3c1   :  { %4706 = vmatprep.subr.mxu1 %v8286_v22 }
 0x3c2   :  { %4707 = vmatpush3.msra.mxu1 %v3586_v6  ;;  %v1619_v19 = vpop.f32.mrf.mxu1 }
 0x3c3   :  { %v1623_v56 = vadd.f32 %v1619_v19, %v1535_v36  ;;  %4709 = vmatmul.mubr.f32.vlgmr.msra.gmra.mxu1 %v8293_v5  ;;  %4711 = vmatprep.subr.mxu1 %v8286_v22  ;;  %v3649_v36 = vld [vmem:[%s8275_s3 + $0x7f8] sm:$0xff]  ;;  %v3679_v5 = vld [vmem:[%s8275_s3 + $0x8e8] sm:$0xff] }
 0x3c4   :  { %4712 = vmatpush3.msra.mxu1 %v3617_v20  ;;  %v4500_v10 = vpop.f32.mrf.mxu1  ;;  %4743 = vmatprep.mubr.msk.f32.mxu1 %vm5205_vm0, %v8286_v22  ;;  %v3680_v20 = vld [vmem:[%s8275_s3 + $0x8f0] sm:$0xff] }
 0x3c5   :  { %4713 = vmatprep.subr.mxu1 %v8286_v22  ;;  %v3674_v10 = vld [vmem:[%s8275_s3 + $0x8c0] sm:$0xff] }
 0x3c6   :  { %4714 = vmatpush3.msra.mxu1 %v3616_v15  ;;  %v3675_v15 = vld [vmem:[%s8275_s3 + $0x8c8] sm:$0xff] }
 0x3c7   :  { %4715 = vmatprep.subr.mxu1 %v8286_v22 }
 0x3c8   :  { %4716 = vmatpush3.msra.mxu1 %v3615_v51  ;;  %v3673_v51 = vld [vmem:[%s8275_s3 + $0x8b8] sm:$0xff] }
 0x3c9   :  { %4717 = vmatprep.subr.mxu1 %v8286_v22 }
 0x3ca   :  { %4718 = vmatpush3.msra.mxu1 %v3614_v47  ;;  %v3672_v47 = vld [vmem:[%s8275_s3 + $0x8b0] sm:$0xff] }
 0x3cb   :  { %4719 = vmatprep.subr.mxu1 %v8286_v22 }
 0x3cc   :  { %4720 = vmatpush3.msra.mxu1 %v3613_v7  ;;  %v3671_v7 = vld [vmem:[%s8275_s3 + $0x8a8] sm:$0xff] }
 0x3cd   :  { %4721 = vmatprep.subr.mxu1 %v8286_v22 }
 0x3ce   :  { %4722 = vmatpush3.msra.mxu1 %v3612_v43  ;;  %v3670_v43 = vld [vmem:[%s8275_s3 + $0x8a0] sm:$0xff] }
 0x3cf   :  { %4723 = vmatprep.subr.mxu1 %v8286_v22 }
 0x3d0   :  { %4724 = vmatpush3.msra.mxu1 %v3611_v54  ;;  %v3669_v54 = vld [vmem:[%s8275_s3 + $0x898] sm:$0xff] }
 0x3d1   :  { %4725 = vmatprep.subr.mxu1 %v8286_v22 }
 0x3d2   :  { %4726 = vmatpush3.msra.mxu1 %v3610_v60  ;;  %v3668_v60 = vld [vmem:[%s8275_s3 + $0x890] sm:$0xff] }
 0x3d3   :  { %4727 = vmatprep.subr.mxu1 %v8286_v22 }
 0x3d4   :  { %4728 = vmatpush3.msra.mxu1 %v3609_v40  ;;  %v3667_v40 = vld [vmem:[%s8275_s3 + $0x888] sm:$0xff] }
 0x3d5   :  { %4729 = vmatprep.subr.mxu1 %v8286_v22 }
 0x3d6   :  { %4730 = vmatpush3.msra.mxu1 %v3608_v1  ;;  %v3666_v1 = vld [vmem:[%s8275_s3 + $0x880] sm:$0xff] }
 0x3d7   :  { %4731 = vmatprep.subr.mxu1 %v8286_v22  ;;  %v7755_v3 = vpop.f32.mrf.mxu0 }
 0x3d8   :  { %4732 = vmatpush3.msra.mxu1 %v3607_v38  ;;  %v3713_v38 = vld [vmem:[%s8275_s3 + $0x9f8] sm:$0xff] }
 0x3d9   :  { %4733 = vmatprep.subr.mxu1 %v8286_v22  ;;  %v5130_v12 = vpop.f32.mrf.mxu0 }
 0x3da   :  { %4734 = vmatpush3.msra.mxu1 %v3606_v58  ;;  %v3712_v12 = vld [vmem:[%s8275_s3 + $0x9f0] sm:$0xff] }
 0x3db   :  { %4735 = vmatprep.subr.mxu1 %v8286_v22 }
 0x3dc   :  { %4736 = vmatpush3.msra.mxu1 %v3605_v37 }
 0x3dd   :  { %4737 = vmatprep.subr.mxu1 %v8286_v22 }
 0x3de   :  { %4738 = vmatpush3.msra.mxu1 %v3604_v30 }
 0x3df   :  { %4739 = vmatprep.subr.mxu1 %v8286_v22 }
 0x3e0   :  { %4740 = vmatpush3.msra.mxu1 %v3603_v41  ;;  %v3711_v41 = vld [vmem:[%s8275_s3 + $0x9e8] sm:$0xff] }
 0x3e1   :  { %4741 = vmatprep.subr.mxu1 %v8286_v22 }
 0x3e2   :  { %4742 = vmatpush3.msra.mxu1 %v3602_v9  ;;  %v3707_v9 = vld [vmem:[%s8275_s3 + $0x9c8] sm:$0xff] }
 0x3e3   :  { %v1707_v31 = vpop.f32.mrf.mxu1  ;;  %4744 = vmatmul.mubr.f32.vlgmr.msra.gmra.mxu1 %v8294_v48  ;;  %4781 = vmatprep.subr.mxu1 %v8286_v22  ;;  %v3704_v48 = vld [vmem:[%s8275_s3 + $0x9b0] sm:$0xff] }
 0x3e4   :  { %v1711_v4 = vadd.f32 %v1707_v31, %v1623_v56  ;;  %4782 = vmatpush3.msra.mxu1 %v3649_v36  ;;  %4813 = vmatprep.mubr.msk.f32.mxu1 %vm5205_vm0, %v8286_v22  ;;  %v3706_v36 = vld [vmem:[%s8275_s3 + $0x9c0] sm:$0xff]  ;;  %v3705_v31 = vld [vmem:[%s8275_s3 + $0x9b8] sm:$0xff] }
 0x3e5   :  { %v4535_v57 = vpop.f32.mrf.mxu1  ;;  %4783 = vmatprep.subr.mxu1 %v8286_v22 }
 0x3e6   :  { %4784 = vmatpush3.msra.mxu1 %v3648_v27  ;;  %v3703_v27 = vld [vmem:[%s8275_s3 + $0x9a8] sm:$0xff]  ;;  %v3701_v57 = vld [vmem:[%s8275_s3 + $0x998] sm:$0xff] }
 0x3e7   :  { %4785 = vmatprep.subr.mxu1 %v8286_v22 }
 0x3e8   :  { %4786 = vmatpush3.msra.mxu1 %v3647_v14  ;;  %v3700_v14 = vld [vmem:[%s8275_s3 + $0x990] sm:$0xff] }
 0x3e9   :  { %4787 = vmatprep.subr.mxu1 %v8286_v22 }
 0x3ea   :  { %4788 = vmatpush3.msra.mxu1 %v3646_v42  ;;  %v3699_v42 = vld [vmem:[%s8275_s3 + $0x988] sm:$0xff] }
 0x3eb   :  { %4789 = vmatprep.subr.mxu1 %v8286_v22 }
 0x3ec   :  { %4790 = vmatpush3.msra.mxu1 %v3645_v0  ;;  %v3698_v0 = vld [vmem:[%s8275_s3 + $0x980] sm:$0xff] }
 0x3ed   :  { %4791 = vmatprep.subr.mxu1 %v8286_v22 }
 0x3ee   :  { %4792 = vmatpush3.msra.mxu1 %v3644_v11  ;;  %v3745_v11 = vld [vmem:[%s8275_s3 + $0xaf8] sm:$0xff] }
 0x3ef   :  { %4793 = vmatprep.subr.mxu1 %v8286_v22 }
 0x3f0   :  { %4794 = vmatpush3.msra.mxu1 %v3643_v39 }
 0x3f1   :  { %4795 = vmatprep.subr.mxu1 %v8286_v22 }
 0x3f2   :  { %4796 = vmatpush3.msra.mxu1 %v3642_v25  ;;  %v3744_v25 = vld [vmem:[%s8275_s3 + $0xaf0] sm:$0xff] }
 0x3f3   :  { %4797 = vmatprep.subr.mxu1 %v8286_v22 }
 0x3f4   :  { %4798 = vmatpush3.msra.mxu1 %v3641_v44 }
 0x3f5   :  { %4799 = vmatprep.subr.mxu1 %v8286_v22 }
 0x3f6   :  { %4800 = vmatpush3.msra.mxu1 %v3640_v18 }
 0x3f7   :  { %4801 = vmatprep.subr.mxu1 %v8286_v22 }
 0x3f8   :  { %4802 = vmatpush3.msra.mxu1 %v3639_v53  ;;  %v3743_v53 = vld [vmem:[%s8275_s3 + $0xae8] sm:$0xff] }
 0x3f9   :  { %4803 = vmatprep.subr.mxu1 %v8286_v22 }
 0x3fa   :  { %4804 = vmatpush3.msra.mxu1 %v3638_v63  ;;  %v3739_v63 = vld [vmem:[%s8275_s3 + $0xac8] sm:$0xff] }
 0x3fb   :  { %4805 = vmatprep.subr.mxu1 %v8286_v22 }
 0x3fc   :  { %4806 = vmatpush3.msra.mxu1 %v3637_v55  ;;  %v3738_v55 = vld [vmem:[%s8275_s3 + $0xac0] sm:$0xff] }
 0x3fd   :  { %4807 = vmatprep.subr.mxu1 %v8286_v22 }
 0x3fe   :  { %4808 = vmatpush3.msra.mxu1 %v3636_v50  ;;  %v3737_v50 = vld [vmem:[%s8275_s3 + $0xab8] sm:$0xff] }
 0x3ff   :  { %4809 = vmatprep.subr.mxu1 %v8286_v22 }
 0x400   :  { %4810 = vmatpush3.msra.mxu1 %v3635_v16  ;;  %v3736_v16 = vld [vmem:[%s8275_s3 + $0xab0] sm:$0xff] }
 0x401   :  { %4811 = vmatprep.subr.mxu1 %v8286_v22 }
 0x402   :  { %4812 = vmatpush3.msra.mxu1 %v3634_v21  ;;  %v3735_v21 = vld [vmem:[%s8275_s3 + $0xaa8] sm:$0xff] }
 0x403   :  { %v1795_v6 = vpop.f32.mrf.mxu1  ;;  %4814 = vmatmul.mubr.f32.vlgmr.msra.gmra.mxu1 %v1001_v24  ;;  %4851 = vmatprep.subr.mxu1 %v8286_v22  ;;  %v3676_v24 = vld [vmem:[%s8275_s3 + $0x8d0] sm:$0xff] }
 0x404   :  { %v1799_v19 = vadd.f32 %v1795_v6, %v1711_v4  ;;  %4852 = vmatpush3.msra.mxu1 %v3681_v23  ;;  %4883 = vmatprep.mubr.msk.f32.mxu1 %vm5205_vm0, %v8286_v22  ;;  %v3702_v4 = vld [vmem:[%s8275_s3 + $0x9a0] sm:$0xff]  ;;  %v3733_v6 = vld [vmem:[%s8275_s3 + $0xa98] sm:$0xff] }
 0x405   :  { %v4570_v56 = vpop.f32.mrf.mxu1  ;;  %4853 = vmatprep.subr.mxu1 %v8286_v22  ;;  %v3734_v23 = vld [vmem:[%s8275_s3 + $0xaa0] sm:$0xff] }
 0x406   :  { %4854 = vmatpush3.msra.mxu1 %v3680_v20  ;;  %v3732_v20 = vld [vmem:[%s8275_s3 + $0xa90] sm:$0xff]  ;;  %v3730_v56 = vld [vmem:[%s8275_s3 + $0xa80] sm:$0xff] }
 0x407   :  { %4855 = vmatprep.subr.mxu1 %v8286_v22 }
 0x408   :  { %4856 = vmatpush3.msra.mxu1 %v3679_v5  ;;  %v3777_v5 = vld [vmem:[%s8275_s3 + $0xbf8] sm:$0xff] }
 0x409   :  { %4857 = vmatprep.subr.mxu1 %v8286_v22 }
 0x40a   :  { %4858 = vmatpush3.msra.mxu1 %v3678_v33 }
 0x40b   :  { %4859 = vmatprep.subr.mxu1 %v8286_v22 }
 0x40c   :  { %4860 = vmatpush3.msra.mxu1 %v3677_v52  ;;  %v8295_v52 = vmax.f32 %v6196_v2, %v6713_v34  ;;  %v3774_v2 = vld [vmem:[%s8275_s3 + $0xbe0] sm:$0xff]  ;;  %v3773_v34 = vld [vmem:[%s8275_s3 + $0xbd8] sm:$0xff] }
 0x40d   :  { %4861 = vmatprep.subr.mxu1 %v8286_v22 }
 0x40e   :  { %4862 = vmatpush3.msra.mxu1 %v3676_v24  ;;  %v3776_v24 = vld [vmem:[%s8275_s3 + $0xbf0] sm:$0xff] }
 0x40f   :  { %4863 = vmatprep.subr.mxu1 %v8286_v22 }
 0x410   :  { %4864 = vmatpush3.msra.mxu1 %v3675_v15 }
 0x411   :  { %4865 = vmatprep.subr.mxu1 %v8286_v22 }
 0x412   :  { %4866 = vmatpush3.msra.mxu1 %v3674_v10 }
 0x413   :  { %4867 = vmatprep.subr.mxu1 %v8286_v22 }
 0x414   :  { %4868 = vmatpush3.msra.mxu1 %v3673_v51  ;;  %v3775_v51 = vld [vmem:[%s8275_s3 + $0xbe8] sm:$0xff] }
 0x415   :  { %4869 = vmatprep.subr.mxu1 %v8286_v22 }
 0x416   :  { %4870 = vmatpush3.msra.mxu1 %v3672_v47  ;;  %v3772_v47 = vld [vmem:[%s8275_s3 + $0xbd0] sm:$0xff] }
 0x417   :  { %4871 = vmatprep.subr.mxu1 %v8286_v22 }
 0x418   :  { %4872 = vmatpush3.msra.mxu1 %v3671_v7  ;;  %v3771_v7 = vld [vmem:[%s8275_s3 + $0xbc8] sm:$0xff] }
 0x419   :  { %4873 = vmatprep.subr.mxu1 %v8286_v22 }
 0x41a   :  { %4874 = vmatpush3.msra.mxu1 %v3670_v43  ;;  %v3770_v43 = vld [vmem:[%s8275_s3 + $0xbc0] sm:$0xff] }
 0x41b   :  { %4875 = vmatprep.subr.mxu1 %v8286_v22 }
 0x41c   :  { %4876 = vmatpush3.msra.mxu1 %v3669_v54  ;;  %v3769_v54 = vld [vmem:[%s8275_s3 + $0xbb8] sm:$0xff] }
 0x41d   :  { %4877 = vmatprep.subr.mxu1 %v8286_v22 }
 0x41e   :  { %4878 = vmatpush3.msra.mxu1 %v3668_v60  ;;  %v3768_v60 = vld [vmem:[%s8275_s3 + $0xbb0] sm:$0xff] }
 0x41f   :  { %4879 = vmatprep.subr.mxu1 %v8286_v22 }
 0x420   :  { %4880 = vmatpush3.msra.mxu1 %v3667_v40  ;;  %v3767_v40 = vld [vmem:[%s8275_s3 + $0xba8] sm:$0xff] }
 0x421   :  { %4881 = vmatprep.subr.mxu1 %v8286_v22 }
 0x422   :  { %4882 = vmatpush3.msra.mxu1 %v3666_v1  ;;  %v3766_v1 = vld [vmem:[%s8275_s3 + $0xba0] sm:$0xff] }
 0x423   :  { %v1883_v58 = vpop.f32.mrf.mxu1  ;;  %4884 = vmatmul.mubr.f32.vlgmr.msra.gmra.mxu1 %v1003_v32  ;;  %4921 = vmatprep.subr.mxu1 %v8286_v22  ;;  %v3708_v32 = vld [vmem:[%s8275_s3 + $0x9d0] sm:$0xff] }
 0x424   :  { %v1887_v37 = vadd.f32 %v1883_v58, %v1799_v19  ;;  %4922 = vmatpush3.msra.mxu1 %v3713_v38  ;;  %4953 = vmatprep.mubr.msk.f32.mxu1 %vm5205_vm0, %v8286_v22  ;;  %v3731_v19 = vld [vmem:[%s8275_s3 + $0xa88] sm:$0xff]  ;;  %v3765_v38 = vld [vmem:[%s8275_s3 + $0xb98] sm:$0xff]  ;;  %v3764_v58 = vld [vmem:[%s8275_s3 + $0xb90] sm:$0xff] }
 0x425   :  { %v4605_v30 = vpop.f32.mrf.mxu1  ;;  %4923 = vmatprep.subr.mxu1 %v8286_v22 }
 0x426   :  { %4924 = vmatpush3.msra.mxu1 %v3712_v12  ;;  %v3763_v12 = vld [vmem:[%s8275_s3 + $0xb88] sm:$0xff] }
 0x427   :  { %4925 = vmatprep.subr.mxu1 %v8286_v22 }
 0x428   :  { %4926 = vmatpush3.msra.mxu1 %v3711_v41 }
 0x429   :  { %4927 = vmatprep.subr.mxu1 %v8286_v22 }
 0x42a   :  { %4928 = vmatpush3.msra.mxu1 %v3710_v62 }
 0x42b   :  { %4929 = vmatprep.subr.mxu1 %v8286_v22 }
 0x42c   :  { %4930 = vmatpush3.msra.mxu1 %v3709_v46 }
 0x42d   :  { %4931 = vmatprep.subr.mxu1 %v8286_v22 }
 0x42e   :  { %4932 = vmatpush3.msra.mxu1 %v3708_v32 }
 0x42f   :  { %4933 = vmatprep.subr.mxu1 %v8286_v22 }
 0x430   :  { %4934 = vmatpush3.msra.mxu1 %v3707_v9 }
 0x431   :  { %4935 = vmatprep.subr.mxu1 %v8286_v22 }
 0x432   :  { %4936 = vmatpush3.msra.mxu1 %v3706_v36  ;;  %v3232_v36 = vld [vmem:[%s8276_s5 + $0x78] sm:$0xff] }
 0x433   :  { %4937 = vmatprep.subr.mxu1 %v8286_v22 }
 0x434   :  { %4938 = vmatpush3.msra.mxu1 %v3705_v31  ;;  %v3231_v31 = vld [vmem:[%s8276_s5 + $0x70] sm:$0xff] }
 0x435   :  { %4939 = vmatprep.subr.mxu1 %v8286_v22 }
 0x436   :  { %4940 = vmatpush3.msra.mxu1 %v3704_v48  ;;  %v3227_v48 = vld [vmem:[%s8276_s5 + $0x50] sm:$0xff] }
 0x437   :  { %4941 = vmatprep.subr.mxu1 %v8286_v22 }
 0x438   :  { %4942 = vmatpush3.msra.mxu1 %v3703_v27  ;;  %v3226_v27 = vld [vmem:[%s8276_s5 + $0x48] sm:$0xff] }
 0x439   :  { %4943 = vmatprep.subr.mxu1 %v8286_v22 }
 0x43a   :  { %4944 = vmatpush3.msra.mxu1 %v3702_v4  ;;  %v3225_v4 = vld [vmem:[%s8276_s5 + $0x40] sm:$0xff] }
 0x43b   :  { %4945 = vmatprep.subr.mxu1 %v8286_v22 }
 0x43c   :  { %4946 = vmatpush3.msra.mxu1 %v3701_v57  ;;  %v3224_v57 = vld [vmem:[%s8276_s5 + $0x38] sm:$0xff] }
 0x43d   :  { %4947 = vmatprep.subr.mxu1 %v8286_v22 }
 0x43e   :  { %4948 = vmatpush3.msra.mxu1 %v3700_v14  ;;  %v3223_v14 = vld [vmem:[%s8276_s5 + $0x30] sm:$0xff] }
 0x43f   :  { %4949 = vmatprep.subr.mxu1 %v8286_v22 }
 0x440   :  { %4950 = vmatpush3.msra.mxu1 %v3699_v42  ;;  %v3222_v42 = vld [vmem:[%s8276_s5 + $0x28] sm:$0xff] }
 0x441   :  { %4951 = vmatprep.subr.mxu1 %v8286_v22 }
 0x442   :  { %4952 = vmatpush3.msra.mxu1 %v3698_v0 }
 0x443   :  { %v1971_v39 = vpop.f32.mrf.mxu1  ;;  %4954 = vmatmul.mubr.f32.vlgmr.msra.gmra.mxu1 %v1005_v35  ;;  %4991 = vmatprep.subr.mxu1 %v8286_v22  ;;  %v3740_v35 = vld [vmem:[%s8275_s3 + $0xad0] sm:$0xff] }
 0x444   :  { %v1975_v44 = vadd.f32 %v1971_v39, %v1887_v37  ;;  %4992 = vmatpush3.msra.mxu1 %v3745_v11  ;;  %5023 = vmatprep.mubr.msk.f32.mxu1 %vm5205_vm0, %v8286_v22  ;;  %v3762_v37 = vld [vmem:[%s8275_s3 + $0xb80] sm:$0xff] }
 0x445   :  { %v4640_v18 = vpop.f32.mrf.mxu1  ;;  %4993 = vmatprep.subr.mxu1 %v8286_v22  ;;  %v3221_v11 = vld [vmem:[%s8276_s5 + $0x20] sm:$0xff] }
 0x446   :  { %4994 = vmatpush3.msra.mxu1 %v3744_v25 }
 0x447   :  { %4995 = vmatprep.subr.mxu1 %v8286_v22 }
 0x448   :  { %4996 = vmatpush3.msra.mxu1 %v3743_v53  ;;  %v3218_v53 = vld [vmem:[%s8276_s5 + $0x8] sm:$0xff] }
 0x449   :  { %4997 = vmatprep.subr.mxu1 %v8286_v22 }
 0x44a   :  { %4998 = vmatpush3.msra.mxu1 %v3742_v8  ;;  %v3217_v8 = vld [vmem:[%s8276_s5] sm:$0xff] }
 0x44b   :  { %4999 = vmatprep.subr.mxu1 %v8286_v22 }
 0x44c   :  { %5000 = vmatpush3.msra.mxu1 %v3741_v45  ;;  %v3326_v45 = vld [vmem:[%s8277_s7 + $0x78] sm:$0xff] }
 0x44d   :  { %5001 = vmatprep.subr.mxu1 %v8286_v22  ;;  %5167 = vmatpush3.msra.mxu0 %v3326_v45 }
 0x44e   :  { %5002 = vmatpush3.msra.mxu1 %v3740_v35  ;;  %v3325_v35 = vld [vmem:[%s8277_s7 + $0x70] sm:$0xff]  ;;  %5168 = vmatprep.subr.mxu0 %v8286_v22 }
 0x44f   :  { %5003 = vmatprep.subr.mxu1 %v8286_v22  ;;  %5169 = vmatpush3.msra.mxu0 %v3325_v35 }
 0x450   :  { %5004 = vmatpush3.msra.mxu1 %v3739_v63  ;;  %v3324_v63 = vld [vmem:[%s8277_s7 + $0x68] sm:$0xff]  ;;  %5170 = vmatprep.subr.mxu0 %v8286_v22 }
 0x451   :  { %5005 = vmatprep.subr.mxu1 %v8286_v22  ;;  %5171 = vmatpush3.msra.mxu0 %v3324_v63 }
 0x452   :  { %5006 = vmatpush3.msra.mxu1 %v3738_v55  ;;  %v3323_v55 = vld [vmem:[%s8277_s7 + $0x60] sm:$0xff]  ;;  %5172 = vmatprep.subr.mxu0 %v8286_v22 }
 0x453   :  { %5007 = vmatprep.subr.mxu1 %v8286_v22  ;;  %5173 = vmatpush3.msra.mxu0 %v3323_v55 }
 0x454   :  { %5008 = vmatpush3.msra.mxu1 %v3737_v50  ;;  %v3322_v50 = vld [vmem:[%s8277_s7 + $0x58] sm:$0xff]  ;;  %5174 = vmatprep.subr.mxu0 %v8286_v22 }
 0x455   :  { %5009 = vmatprep.subr.mxu1 %v8286_v22  ;;  %5175 = vmatpush3.msra.mxu0 %v3322_v50 }
 0x456   :  { %5010 = vmatpush3.msra.mxu1 %v3736_v16  ;;  %v3321_v16 = vld [vmem:[%s8277_s7 + $0x50] sm:$0xff]  ;;  %5176 = vmatprep.subr.mxu0 %v8286_v22 }
 0x457   :  { %5011 = vmatprep.subr.mxu1 %v8286_v22  ;;  %5177 = vmatpush3.msra.mxu0 %v3321_v16 }
 0x458   :  { %5012 = vmatpush3.msra.mxu1 %v3735_v21  ;;  %v3320_v21 = vld [vmem:[%s8277_s7 + $0x48] sm:$0xff]  ;;  %5178 = vmatprep.subr.mxu0 %v8286_v22 }
 0x459   :  { %5013 = vmatprep.subr.mxu1 %v8286_v22  ;;  %5179 = vmatpush3.msra.mxu0 %v3320_v21 }
 0x45a   :  { %5014 = vmatpush3.msra.mxu1 %v3734_v23  ;;  %v3319_v23 = vld [vmem:[%s8277_s7 + $0x40] sm:$0xff]  ;;  %5180 = vmatprep.subr.mxu0 %v8286_v22 }
 0x45b   :  { %5015 = vmatprep.subr.mxu1 %v8286_v22  ;;  %5181 = vmatpush3.msra.mxu0 %v3319_v23 }
 0x45c   :  { %5016 = vmatpush3.msra.mxu1 %v3733_v6  ;;  %v3318_v6 = vld [vmem:[%s8277_s7 + $0x38] sm:$0xff]  ;;  %5182 = vmatprep.subr.mxu0 %v8286_v22 }
 0x45d   :  { %5017 = vmatprep.subr.mxu1 %v8286_v22  ;;  %5183 = vmatpush3.msra.mxu0 %v3318_v6 }
 0x45e   :  { %5018 = vmatpush3.msra.mxu1 %v3732_v20  ;;  %v3317_v20 = vld [vmem:[%s8277_s7 + $0x30] sm:$0xff]  ;;  %5184 = vmatprep.subr.mxu0 %v8286_v22 }
 0x45f   :  { %5019 = vmatprep.subr.mxu1 %v8286_v22  ;;  %5185 = vmatpush3.msra.mxu0 %v3317_v20 }
 0x460   :  { %5020 = vmatpush3.msra.mxu1 %v3731_v19  ;;  %v3316_v19 = vld [vmem:[%s8277_s7 + $0x28] sm:$0xff]  ;;  %5186 = vmatprep.subr.mxu0 %v8286_v22 }
 0x461   :  { %5021 = vmatprep.subr.mxu1 %v8286_v22  ;;  %5187 = vmatpush3.msra.mxu0 %v3316_v19 }
 0x462   :  { %5022 = vmatpush3.msra.mxu1 %v3730_v56  ;;  %v3315_v56 = vld [vmem:[%s8277_s7 + $0x20] sm:$0xff]  ;;  %5188 = vmatprep.subr.mxu0 %v8286_v22 }
 0x463   :  { %v2059_v33 = vpop.f32.mrf.mxu1  ;;  %5024 = vmatmul.mubr.f32.vlgmr.msra.gmra.mxu1 %v8295_v52  ;;  %5061 = vmatprep.subr.mxu1 %v8286_v22  ;;  %v3314_v52 = vld [vmem:[%s8277_s7 + $0x18] sm:$0xff] }
 0x464   :  { %v2063_v15 = vadd.f32 %v2059_v33, %v1975_v44  ;;  %5062 = vmatpush3.msra.mxu1 %v3777_v5  ;;  %5093 = vmatprep.mubr.msk.f32.mxu1 %vm5205_vm0, %v8286_v22  ;;  %v3220_v44 = vld [vmem:[%s8276_s5 + $0x18] sm:$0xff] }
 0x465   :  { %v4675_v10 = vpop.f32.mrf.mxu1  ;;  %5063 = vmatprep.subr.mxu1 %v8286_v22  ;;  %5189 = vmatpush3.msra.mxu0 %v3315_v56 }
 0x466   :  { %5064 = vmatpush3.msra.mxu1 %v3776_v24  ;;  %5190 = vmatprep.subr.mxu0 %v8286_v22 }
 0x467   :  { %5065 = vmatprep.subr.mxu1 %v8286_v22  ;;  %5191 = vmatpush3.msra.mxu0 %v3314_v52 }
 0x468   :  { %5066 = vmatpush3.msra.mxu1 %v3775_v51  ;;  %5192 = vmatprep.subr.mxu0 %v8286_v22 }
 0x469   :  { %5067 = vmatprep.subr.mxu1 %v8286_v22 }
 0x46a   :  { %5068 = vmatpush3.msra.mxu1 %v3774_v2 }
 0x46b   :  { %5069 = vmatprep.subr.mxu1 %v8286_v22 }
 0x46c   :  { %5070 = vmatpush3.msra.mxu1 %v3773_v34 }
 0x46d   :  { %5071 = vmatprep.subr.mxu1 %v8286_v22 }
 0x46e   :  { %5072 = vmatpush3.msra.mxu1 %v3772_v47 }
 0x46f   :  { %5073 = vmatprep.subr.mxu1 %v8286_v22 }
 0x470   :  { %5074 = vmatpush3.msra.mxu1 %v3771_v7 }
 0x471   :  { %5075 = vmatprep.subr.mxu1 %v8286_v22 }
 0x472   :  { %5076 = vmatpush3.msra.mxu1 %v3770_v43 }
 0x473   :  { %5077 = vmatprep.subr.mxu1 %v8286_v22 }
 0x474   :  { %5078 = vmatpush3.msra.mxu1 %v3769_v54 }
 0x475   :  { %5079 = vmatprep.subr.mxu1 %v8286_v22 }
 0x476   :  { %5080 = vmatpush3.msra.mxu1 %v3768_v60 }
 0x477   :  { %5081 = vmatprep.subr.mxu1 %v8286_v22 }
 0x478   :  { %5082 = vmatpush3.msra.mxu1 %v3767_v40 }
 0x479   :  { %5083 = vmatprep.subr.mxu1 %v8286_v22 }
 0x47a   :  { %5084 = vmatpush3.msra.mxu1 %v3766_v1  ;;  %v3794_v1 = vld [vmem:[%s8278_s4] ss:$0 sm:$0xff] }
 0x47b   :  { %5085 = vmatprep.subr.mxu1 %v8286_v22 }
 0x47c   :  { %5086 = vmatpush3.msra.mxu1 %v3765_v38 }
 0x47d   :  { %5087 = vmatprep.subr.mxu1 %v8286_v22 }
 0x47e   :  { %5088 = vmatpush3.msra.mxu1 %v3764_v58 }
 0x47f   :  { %5089 = vmatprep.subr.mxu1 %v8286_v22 }
 0x480   :  { %5090 = vmatpush3.msra.mxu1 %v3763_v12 }
 0x481   :  { %5091 = vmatprep.subr.mxu1 %v8286_v22 }
 0x482   :  { %5092 = vmatpush3.msra.mxu1 %v3762_v37 }
 0x483   :  { %v2147_v30 = vpop.f32.mrf.mxu1  ;;  %5094 = vmatmul.mubr.f32.vlgmr.msra.gmra.mxu1 %v1009_v13  ;;  %5131 = vmatprep.subr.mxu1 %v8286_v22  ;;  %v3228_v13 = vld [vmem:[%s8276_s5 + $0x58] sm:$0xff] }
 0x484   :  { %v2151_v41 = vadd.f32 %v2147_v30, %v2063_v15  ;;  %5163 = vmatprep.mubr.msk.f32.mxu1 %vm5205_vm0, %v8286_v22  ;;  %5132 = vmatpush3.msra.mxu1 %v3232_v36 }
 0x485   :  { %v4710_v62 = vpop.f32.mrf.mxu1  ;;  %5133 = vmatprep.subr.mxu1 %v8286_v22 }
 0x486   :  { %5134 = vmatpush3.msra.mxu1 %v3231_v31 }
 0x487   :  { %5135 = vmatprep.subr.mxu1 %v8286_v22 }
 0x488   :  { %5136 = vmatpush3.msra.mxu1 %v3230_v28 }
 0x489   :  { %5137 = vmatprep.subr.mxu1 %v8286_v22 }
 0x48a   :  { %5138 = vmatpush3.msra.mxu1 %v3229_v59 }
 0x48b   :  { %5139 = vmatprep.subr.mxu1 %v8286_v22 }
 0x48c   :  { %5140 = vmatpush3.msra.mxu1 %v3228_v13 }
 0x48d   :  { %5141 = vmatprep.subr.mxu1 %v8286_v22 }
 0x48e   :  { %5142 = vmatpush3.msra.mxu1 %v3227_v48 }
 0x48f   :  { %5143 = vmatprep.subr.mxu1 %v8286_v22 }
 0x490   :  { %5144 = vmatpush3.msra.mxu1 %v3226_v27 }
 0x491   :  { %5145 = vmatprep.subr.mxu1 %v8286_v22 }
 0x492   :  { %5146 = vmatpush3.msra.mxu1 %v3225_v4 }
 0x493   :  { %5147 = vmatprep.subr.mxu1 %v8286_v22 }
 0x494   :  { %5148 = vmatpush3.msra.mxu1 %v3224_v57 }
 0x495   :  { %5149 = vmatprep.subr.mxu1 %v8286_v22 }
 0x496   :  { %5150 = vmatpush3.msra.mxu1 %v3223_v14 }
 0x497   :  { %5151 = vmatprep.subr.mxu1 %v8286_v22 }
 0x498   :  { %5152 = vmatpush3.msra.mxu1 %v3222_v42 }
 0x499   :  { %5153 = vmatprep.subr.mxu1 %v8286_v22 }
 0x49a   :  { %5154 = vmatpush3.msra.mxu1 %v3221_v11 }
 0x49b   :  { %5155 = vmatprep.subr.mxu1 %v8286_v22 }
 0x49c   :  { %5156 = vmatpush3.msra.mxu1 %v3220_v44 }
 0x49d   :  { %5157 = vmatprep.subr.mxu1 %v8286_v22 }
 0x4a3   :  { %v2235_v46 = vpop.f32.mrf.mxu1 }
 0x4a4   :  { %v2239_v32 = vadd.f32 %v2235_v46, %v2151_v41 }
 0x4a5   :  { %v4745_v9 = vpop.f32.mrf.mxu1 }
 0x4a6   :  { %v2327_v0 = vadd.f32 %v7383_v17, %v2239_v32  ;;  %v3219_v17 = vld [vmem:[%s8276_s5 + $0x10] sm:$0xff]  ;;  %v3796_v32 = vld [vmem:[%s8280_s8] ss:$0 sm:$0xff] }
 0x4a7   :  { %5158 = vmatpush3.msra.mxu1 %v3219_v17 }
 0x4a8   :  { %5159 = vmatprep.subr.mxu1 %v8286_v22 }
 0x4a9   :  { %5160 = vmatpush3.msra.mxu1 %v3218_v53 }
 0x4aa   :  { %5161 = vmatprep.subr.mxu1 %v8286_v22 }
 0x4ab   :  { %5162 = vmatpush3.msra.mxu1 %v3217_v8 }
 0x4c3   :  { %v2411_v39 = vpop.f32.mrf.mxu1 }
 0x4c4   :  { %v2415_v25 = vadd.f32 %v2411_v39, %v2327_v0 }
 0x4c5   :  { %v4815_v18 = vpop.f32.mrf.mxu1 }
 0x4c6   :  { %v2503_v5 = vadd.f32 %v7458_v26, %v2415_v25 }
 0x4e3   :  { %v2587_v33 = vpop.f32.mrf.mxu1 }
 0x4e4   :  { %v2591_v24 = vadd.f32 %v2587_v33, %v2503_v5 }
 0x4e5   :  { %v4885_v15 = vpop.f32.mrf.mxu1 }
 0x4e6   :  { %v2679_v34 = vadd.f32 %v7533_v61, %v2591_v24  ;;  %v3313_v61 = vld [vmem:[%s8277_s7 + $0x10] sm:$0xff] }
 0x4e7   :  { %5193 = vmatpush3.msra.mxu0 %v3313_v61 }
 0x4e8   :  { %5194 = vmatprep.subr.mxu0 %v8286_v22 }
 0x503   :  { %v2763_v10 = vpop.f32.mrf.mxu1 }
 0x504   :  { %v2767_v47 = vadd.f32 %v2763_v10, %v2679_v34 }
 0x505   :  { %v4955_v51 = vpop.f32.mrf.mxu1 }
 0x506   :  { %v2855_v7 = vadd.f32 %v7608_v29, %v2767_v47  ;;  %v3312_v29 = vld [vmem:[%s8277_s7 + $0x8] sm:$0xff] }
 0x507   :  { %5195 = vmatpush3.msra.mxu0 %v3312_v29 }
 0x508   :  { %5196 = vmatprep.subr.mxu0 %v8286_v22 }
 0x523   :  { %v2939_v2 = vpop.f32.mrf.mxu1 }
 0x524   :  { %v2943_v43 = vadd.f32 %v2939_v2, %v2855_v7 }
 0x525   :  { %v5025_v26 = vpop.f32.mrf.mxu1 }
 0x526   :  { %v3031_v54 = vadd.f32 %v7680_v49, %v2943_v43  ;;  %v3311_v49 = vld [vmem:[%s8277_s7] sm:$0xff] }
 0x527   :  { %5197 = vmatpush3.msra.mxu0 %v3311_v49 }
 0x543   :  { %v3115_v60 = vpop.f32.mrf.mxu1 }
 0x544   :  { %v3119_v40 = vadd.f32 %v3115_v60, %v3031_v54 }
 0x545   :  { %v5095_v38 = vpop.f32.mrf.mxu1 }
 0x546   :  { %v3207_v58 = vadd.f32 %v7755_v3, %v3119_v40  ;;  %v3795_v3 = vld [vmem:[%s8279_s6] ss:$0 sm:$0xff] }
 0x548   :  { %v3215_v12 = vadd.f32 %v3794_v1, %v3207_v58 }
 0x54a   :  { %v3216_v37 = vmax.f32 %v3215_v12, 0.0 }
 0x54c   :  { %5164 = vmatmul.mubr.f32.vlgmr.msra.gmra.mxu1 %v3216_v37 }
 0x60c   :  { %v3306_v30 = vpop.f32.mrf.mxu1 }
 0x60d   :  { %v3307_v41 = vadd.f32 %v3795_v3, %v3306_v30 }
 0x60e   :  { %v5165_v62 = vpop.f32.mrf.mxu1 }
 0x60f   :  { %v3310_v46 = vmax.f32 %v3307_v41, 0.0 }
 0x611   :  { %5199 = vmatmul.mubr.f32.vlgmr.msra.gmra.mxu0 %v3310_v46 }
 0x6d1   :  { %v3400_v9 = vpop.f32.mrf.mxu0 }
 0x6d2   :  { %v3401_v22 = vadd.f32 %v3796_v32, %v3400_v9 }
 0x6d3   :  { %v5200_v36 = vpop.f32.mrf.mxu0 }
 0x6d4   :  { %3404 = vst [vmem:[%s8281_s9] sm:$0xff] %v3401_v22 }

</bundles_post_ra>
